<compile_context>
chip_gen: v5e
topology: v5e:2x2
jax: 0.10.0
libtpu: 0.0.40
codegen_flags: <defaults>
</compile_context>

<pallas_src>
import functools

import jax
import jax.numpy as jnp
from jax.experimental import pallas as pl
from jax.experimental.pallas import tpu as pltpu

EPS = 1e-5  # PyTorch InstanceNorm2d default eps (affine=False)


# ------------------------------------------------------------------ kernel --

def _residual_block_kernel(x_ref, w1_ref, w2_ref, o_ref, pad_ref, col_ref,
                           *, H, W):
    """Fused ResidualBlock for one sample (NHWC, C on the 128-lane axis).

    x_ref  : (1, H, W, C)    f32   input (conv path + residual)
    w1_ref : (9*C, C)        bf16  conv1 weights, im2col (tap-major) layout
    w2_ref : (9*C, C)        bf16  conv2 weights, im2col layout
    o_ref  : (1, H, W, C)    f32   output
    pad_ref: (H+2, W+2, C)   f32   scratch: reflection-padded activation
    col_ref: (H*W, 9*C)      bf16  scratch: im2col matrix
    """
    C = x_ref.shape[-1]
    HW = H * W

    def reflect_pad(act):                      # act: (H, W, C) f32 value
        # interior
        pad_ref[1:H + 1, 1:W + 1, :] = act
        # reflected top / bottom rows (pad=1 -> source rows 1 and H-2)
        pad_ref[0:1, 1:W + 1, :] = act[1:2, :, :]
        pad_ref[H + 1:H + 2, 1:W + 1, :] = act[H - 2:H - 1, :, :]
        # reflected left / right columns (copied from already-padded columns
        # so the four corners come out right)
        pad_ref[:, 0:1, :] = pad_ref[:, 2:3, :]
        pad_ref[:, W + 1:W + 2, :] = pad_ref[:, W - 1:W, :]

    def im2col():
        # write the 9 shifted windows once into the im2col scratch
        for di in range(3):
            for dj in range(3):
                tap = di * 3 + dj
                slab = pad_ref[di:di + H, dj:dj + W, :]          # (H, W, C)
                col_ref[:, tap * C:(tap + 1) * C] = (
                    slab.astype(jnp.bfloat16).reshape(HW, C))

    def conv_instance_norm(w_ref):
        # one deep-K GEMM (K = 9*C) on the MXU, f32 accumulation
        acc = jnp.dot(col_ref[...], w_ref[...],
                      preferred_element_type=jnp.float32)        # (HW, C)
        # one-pass InstanceNorm stats (biased variance, per channel)
        inv_hw = 1.0 / HW
        mean = jnp.sum(acc, axis=0, keepdims=True) * inv_hw
        mean_sq = jnp.sum(acc * acc, axis=0, keepdims=True) * inv_hw
        var = mean_sq - mean * mean
        return (acc - mean) * jax.lax.rsqrt(var + EPS)

    x = x_ref[0]                                                 # (H, W, C) f32

    # conv1 + InstanceNorm + ReLU
    reflect_pad(x)
    im2col()
    y = jnp.maximum(conv_instance_norm(w1_ref), 0.0)             # (HW, C) f32

    # conv2 + InstanceNorm (intermediate y never leaves VMEM)
    reflect_pad(y.reshape(H, W, C))
    im2col()
    z = conv_instance_norm(w2_ref)                               # (HW, C) f32

    # residual add in f32 against the original input
    o_ref[...] = (x.reshape(HW, C) + z).reshape(1, H, W, C)


# ------------------------------------------------------------------ module --

def residual_block_forward(x, w1, b1, w2, b2):
    """PyTorch ResidualBlock.forward.

    x: (N, C, H, W) f32; w1/w2: (C, C, 3, 3) f32 (PyTorch OIHW); b1/b2: (C,).
    The conv biases are mathematically cancelled by the affine=False
    InstanceNorm that follows each conv, so they are not sent to the kernel.
    """
    del b1, b2
    N, C, H, W = x.shape

    # NCHW -> NHWC (channels on the 128-lane axis); weights -> im2col layout
    # (9*Cin, Cout) bf16 with tap = di*3 + dj matching the kernel's im2col.
    x_nhwc = jnp.transpose(x, (0, 2, 3, 1))
    wf1 = jnp.transpose(w1, (2, 3, 1, 0)).reshape(9 * C, C).astype(jnp.bfloat16)
    wf2 = jnp.transpose(w2, (2, 3, 1, 0)).reshape(9 * C, C).astype(jnp.bfloat16)

    out = pl.pallas_call(
        functools.partial(_residual_block_kernel, H=H, W=W),
        out_shape=jax.ShapeDtypeStruct((N, H, W, C), jnp.float32),
        grid=(N,),
        in_specs=[
            pl.BlockSpec((1, H, W, C), lambda n: (n, 0, 0, 0)),
            pl.BlockSpec((9 * C, C), lambda n: (0, 0)),   # weights stay resident
            pl.BlockSpec((9 * C, C), lambda n: (0, 0)),
        ],
        out_specs=pl.BlockSpec((1, H, W, C), lambda n: (n, 0, 0, 0)),
        scratch_shapes=[
            pltpu.VMEM((H + 2, W + 2, C), jnp.float32),   # padded activation
            pltpu.VMEM((H * W, 9 * C), jnp.bfloat16),     # im2col matrix
        ],
        compiler_params=pltpu.CompilerParams(
            dimension_semantics=("parallel",)),
    )(x_nhwc, wf1, wf2)

    return jnp.transpose(out, (0, 3, 1, 2))               # back to NCHW


# ------------------------------------------------------------ pure-JAX ref --

def conv_block_ref(x, w1, b1, w2, b2):
    def conv(z, w, b):
        zp = jnp.pad(z, ((0, 0), (0, 0), (1, 1), (1, 1)), mode="reflect")
        o = jax.lax.conv_general_dilated(
            zp, w, (1, 1), "VALID",
            dimension_numbers=("NCHW", "OIHW", "NCHW"),
            preferred_element_type=jnp.float32)
        return o + b[None, :, None, None]

    def inorm(z):
        m = jnp.mean(z, axis=(2, 3), keepdims=True)
        v = jnp.mean(jnp.square(z - m), axis=(2, 3), keepdims=True)
        return (z - m) * jax.lax.rsqrt(v + EPS)

    y = jnp.maximum(inorm(conv(x, w1, b1)), 0.0)
    return inorm(conv(y, w2, b2))


def residual_block_ref(x, w1, b1, w2, b2):
    return x + conv_block_ref(x, w1, b1, w2, b2)


# -------------------------------------------------------------------- main --

if __name__ == "__main__":
    key = jax.random.PRNGKey(0)
    kx, k1, k2, k3, k4 = jax.random.split(key, 5)

    N, C, H, W = 2, 128, 16, 16            # in_features = 128 (lane-dense)
    fan_in = C * 9

    x = jax.random.normal(kx, (N, C, H, W), jnp.float32)
    w1 = jax.random.normal(k1, (C, C, 3, 3), jnp.float32) / jnp.sqrt(fan_in)
    b1 = jax.random.normal(k2, (C,), jnp.float32) * 0.01
    w2 = jax.random.normal(k3, (C, C, 3, 3), jnp.float32) / jnp.sqrt(fan_in)
    b2 = jax.random.normal(k4, (C,), jnp.float32) * 0.01

    fwd = jax.jit(residual_block_forward)
    out = jax.block_until_ready(fwd(x, w1, b1, w2, b2))

    assert out.shape == (N, C, H, W), out.shape
    assert bool(jnp.all(jnp.isfinite(out)))

    # Reference: conv path on bf16-quantized operands (the kernel uses bf16
    # MXU operands with f32 accumulation), residual add with f32 x, biases
    # included (they must be cancelled by the InstanceNorm, as in the kernel).
    xq = x.astype(jnp.bfloat16).astype(jnp.float32)
    w1q = w1.astype(jnp.bfloat16).astype(jnp.float32)
    w2q = w2.astype(jnp.bfloat16).astype(jnp.float32)
    ref = x + conv_block_ref(xq, w1q, b1, w2q, b2)
    err = float(jnp.max(jnp.abs(out - ref)))
    assert err < 0.15, f"max abs err {err}"

    print("KERNEL_OK")
</pallas_src>

<mosaic_0001>
module attributes {stable_mosaic.version = 11 : i64} {
  func.func @_residual_block_kernel(%arg0: i32, %arg1: memref<1x16x16x128xf32, #tpu.memory_space<vmem>>, %arg2: memref<1152x128xbf16, #tpu.memory_space<vmem>>, %arg3: memref<1152x128xbf16, #tpu.memory_space<vmem>>, %arg4: memref<1x16x16x128xf32, #tpu.memory_space<vmem>>, %arg5: memref<18x18x128xf32, #tpu.memory_space<vmem>>, %arg6: memref<256x1152xbf16, #tpu.memory_space<vmem>>) attributes {dimension_semantics = [#tpu.dimension_semantics<parallel>], iteration_bounds = array<i64: 2>, scalar_prefetch = 0 : i64, scratch_operands = 2 : i64, tpu.core_type = #tpu.core_type<tc>, window_params = [{transform_indices = @transform_0, window_bounds = array<i64: 1, 16, 16, 128>}, {pipeline_mode = #tpu.pipeline_mode<synchronous>, transform_indices = @transform_1, window_bounds = array<i64: 1152, 128>}, {pipeline_mode = #tpu.pipeline_mode<synchronous>, transform_indices = @transform_2, window_bounds = array<i64: 1152, 128>}, {transform_indices = @transform_3, window_bounds = array<i64: 1, 16, 16, 128>}]} {
    %c0 = arith.constant 0 : index
    %c0_0 = arith.constant 0 : index
    %c0_1 = arith.constant 0 : index
    %c0_2 = arith.constant 0 : index
    %0 = vector.load %arg1[%c0, %c0_0, %c0_1, %c0_2] : memref<1x16x16x128xf32, #tpu.memory_space<vmem>>, vector<1x16x16x128xf32>
    %1 = vector.shape_cast %0 : vector<1x16x16x128xf32> to vector<16x16x128xf32>
    %c1 = arith.constant 1 : index
    %c1_3 = arith.constant 1 : index
    %c0_4 = arith.constant 0 : index
    %2 = vector.load %arg5[%c1, %c1_3, %c0_4] : memref<18x18x128xf32, #tpu.memory_space<vmem>>, vector<16x16x128xf32>
    tpu.vector_store %arg5[%c1, %c1_3, %c0_4], %1 {strides = array<i32>} : memref<18x18x128xf32, #tpu.memory_space<vmem>>, vector<16x16x128xf32>,
    %3 = vector.extract_strided_slice %1 {offsets = [1, 0, 0], sizes = [1, 16, 128], strides = [1, 1, 1]} : vector<16x16x128xf32> to vector<1x16x128xf32>
    %c0_5 = arith.constant 0 : index
    %c1_6 = arith.constant 1 : index
    %c0_7 = arith.constant 0 : index
    %4 = vector.load %arg5[%c0_5, %c1_6, %c0_7] : memref<18x18x128xf32, #tpu.memory_space<vmem>>, vector<1x16x128xf32>
    tpu.vector_store %arg5[%c0_5, %c1_6, %c0_7], %3 {strides = array<i32>} : memref<18x18x128xf32, #tpu.memory_space<vmem>>, vector<1x16x128xf32>,
    %5 = vector.extract_strided_slice %1 {offsets = [14, 0, 0], sizes = [1, 16, 128], strides = [1, 1, 1]} : vector<16x16x128xf32> to vector<1x16x128xf32>
    %c17 = arith.constant 17 : index
    %c1_8 = arith.constant 1 : index
    %c0_9 = arith.constant 0 : index
    %6 = vector.load %arg5[%c17, %c1_8, %c0_9] : memref<18x18x128xf32, #tpu.memory_space<vmem>>, vector<1x16x128xf32>
    tpu.vector_store %arg5[%c17, %c1_8, %c0_9], %5 {strides = array<i32>} : memref<18x18x128xf32, #tpu.memory_space<vmem>>, vector<1x16x128xf32>,
    %c0_10 = arith.constant 0 : index
    %c2 = arith.constant 2 : index
    %c0_11 = arith.constant 0 : index
    %7 = vector.load %arg5[%c0_10, %c2, %c0_11] : memref<18x18x128xf32, #tpu.memory_space<vmem>>, vector<18x1x128xf32>
    %c0_12 = arith.constant 0 : index
    %c0_13 = arith.constant 0 : index
    %c0_14 = arith.constant 0 : index
    %8 = vector.load %arg5[%c0_12, %c0_13, %c0_14] : memref<18x18x128xf32, #tpu.memory_space<vmem>>, vector<18x1x128xf32>
    tpu.vector_store %arg5[%c0_12, %c0_13, %c0_14], %7 {strides = array<i32>} : memref<18x18x128xf32, #tpu.memory_space<vmem>>, vector<18x1x128xf32>,
    %c0_15 = arith.constant 0 : index
    %c15 = arith.constant 15 : index
    %c0_16 = arith.constant 0 : index
    %9 = vector.load %arg5[%c0_15, %c15, %c0_16] : memref<18x18x128xf32, #tpu.memory_space<vmem>>, vector<18x1x128xf32>
    %c0_17 = arith.constant 0 : index
    %c17_18 = arith.constant 17 : index
    %c0_19 = arith.constant 0 : index
    %10 = vector.load %arg5[%c0_17, %c17_18, %c0_19] : memref<18x18x128xf32, #tpu.memory_space<vmem>>, vector<18x1x128xf32>
    tpu.vector_store %arg5[%c0_17, %c17_18, %c0_19], %9 {strides = array<i32>} : memref<18x18x128xf32, #tpu.memory_space<vmem>>, vector<18x1x128xf32>,
    %c0_20 = arith.constant 0 : index
    %c0_21 = arith.constant 0 : index
    %c0_22 = arith.constant 0 : index
    %11 = vector.load %arg5[%c0_20, %c0_21, %c0_22] : memref<18x18x128xf32, #tpu.memory_space<vmem>>, vector<16x16x128xf32>
    %12 = arith.truncf %11 : vector<16x16x128xf32> to vector<16x16x128xbf16>
    %13 = vector.shape_cast %12 : vector<16x16x128xbf16> to vector<256x128xbf16>
    %c0_23 = arith.constant 0 : index
    %c0_24 = arith.constant 0 : index
    %14 = vector.load %arg6[%c0_23, %c0_24] : memref<256x1152xbf16, #tpu.memory_space<vmem>>, vector<256x128xbf16>
    tpu.vector_store %arg6[%c0_23, %c0_24], %13 {strides = array<i32>} : memref<256x1152xbf16, #tpu.memory_space<vmem>>, vector<256x128xbf16>,
    %c0_25 = arith.constant 0 : index
    %c1_26 = arith.constant 1 : index
    %c0_27 = arith.constant 0 : index
    %15 = vector.load %arg5[%c0_25, %c1_26, %c0_27] : memref<18x18x128xf32, #tpu.memory_space<vmem>>, vector<16x16x128xf32>
    %16 = arith.truncf %15 : vector<16x16x128xf32> to vector<16x16x128xbf16>
    %17 = vector.shape_cast %16 : vector<16x16x128xbf16> to vector<256x128xbf16>
    %c0_28 = arith.constant 0 : index
    %c128 = arith.constant 128 : index
    %18 = vector.load %arg6[%c0_28, %c128] : memref<256x1152xbf16, #tpu.memory_space<vmem>>, vector<256x128xbf16>
    tpu.vector_store %arg6[%c0_28, %c128], %17 {strides = array<i32>} : memref<256x1152xbf16, #tpu.memory_space<vmem>>, vector<256x128xbf16>,
    %c0_29 = arith.constant 0 : index
    %c2_30 = arith.constant 2 : index
    %c0_31 = arith.constant 0 : index
    %19 = vector.load %arg5[%c0_29, %c2_30, %c0_31] : memref<18x18x128xf32, #tpu.memory_space<vmem>>, vector<16x16x128xf32>
    %20 = arith.truncf %19 : vector<16x16x128xf32> to vector<16x16x128xbf16>
    %21 = vector.shape_cast %20 : vector<16x16x128xbf16> to vector<256x128xbf16>
    %c0_32 = arith.constant 0 : index
    %c256 = arith.constant 256 : index
    %22 = vector.load %arg6[%c0_32, %c256] : memref<256x1152xbf16, #tpu.memory_space<vmem>>, vector<256x128xbf16>
    tpu.vector_store %arg6[%c0_32, %c256], %21 {strides = array<i32>} : memref<256x1152xbf16, #tpu.memory_space<vmem>>, vector<256x128xbf16>,
    %c1_33 = arith.constant 1 : index
    %c0_34 = arith.constant 0 : index
    %c0_35 = arith.constant 0 : index
    %23 = vector.load %arg5[%c1_33, %c0_34, %c0_35] : memref<18x18x128xf32, #tpu.memory_space<vmem>>, vector<16x16x128xf32>
    %24 = arith.truncf %23 : vector<16x16x128xf32> to vector<16x16x128xbf16>
    %25 = vector.shape_cast %24 : vector<16x16x128xbf16> to vector<256x128xbf16>
    %c0_36 = arith.constant 0 : index
    %c384 = arith.constant 384 : index
    %26 = vector.load %arg6[%c0_36, %c384] : memref<256x1152xbf16, #tpu.memory_space<vmem>>, vector<256x128xbf16>
    tpu.vector_store %arg6[%c0_36, %c384], %25 {strides = array<i32>} : memref<256x1152xbf16, #tpu.memory_space<vmem>>, vector<256x128xbf16>,
    %c1_37 = arith.constant 1 : index
    %c1_38 = arith.constant 1 : index
    %c0_39 = arith.constant 0 : index
    %27 = vector.load %arg5[%c1_37, %c1_38, %c0_39] : memref<18x18x128xf32, #tpu.memory_space<vmem>>, vector<16x16x128xf32>
    %28 = arith.truncf %27 : vector<16x16x128xf32> to vector<16x16x128xbf16>
    %29 = vector.shape_cast %28 : vector<16x16x128xbf16> to vector<256x128xbf16>
    %c0_40 = arith.constant 0 : index
    %c512 = arith.constant 512 : index
    %30 = vector.load %arg6[%c0_40, %c512] : memref<256x1152xbf16, #tpu.memory_space<vmem>>, vector<256x128xbf16>
    tpu.vector_store %arg6[%c0_40, %c512], %29 {strides = array<i32>} : memref<256x1152xbf16, #tpu.memory_space<vmem>>, vector<256x128xbf16>,
    %c1_41 = arith.constant 1 : index
    %c2_42 = arith.constant 2 : index
    %c0_43 = arith.constant 0 : index
    %31 = vector.load %arg5[%c1_41, %c2_42, %c0_43] : memref<18x18x128xf32, #tpu.memory_space<vmem>>, vector<16x16x128xf32>
    %32 = arith.truncf %31 : vector<16x16x128xf32> to vector<16x16x128xbf16>
    %33 = vector.shape_cast %32 : vector<16x16x128xbf16> to vector<256x128xbf16>
    %c0_44 = arith.constant 0 : index
    %c640 = arith.constant 640 : index
    %34 = vector.load %arg6[%c0_44, %c640] : memref<256x1152xbf16, #tpu.memory_space<vmem>>, vector<256x128xbf16>
    tpu.vector_store %arg6[%c0_44, %c640], %33 {strides = array<i32>} : memref<256x1152xbf16, #tpu.memory_space<vmem>>, vector<256x128xbf16>,
    %c2_45 = arith.constant 2 : index
    %c0_46 = arith.constant 0 : index
    %c0_47 = arith.constant 0 : index
    %35 = vector.load %arg5[%c2_45, %c0_46, %c0_47] : memref<18x18x128xf32, #tpu.memory_space<vmem>>, vector<16x16x128xf32>
    %36 = arith.truncf %35 : vector<16x16x128xf32> to vector<16x16x128xbf16>
    %37 = vector.shape_cast %36 : vector<16x16x128xbf16> to vector<256x128xbf16>
    %c0_48 = arith.constant 0 : index
    %c768 = arith.constant 768 : index
    %38 = vector.load %arg6[%c0_48, %c768] : memref<256x1152xbf16, #tpu.memory_space<vmem>>, vector<256x128xbf16>
    tpu.vector_store %arg6[%c0_48, %c768], %37 {strides = array<i32>} : memref<256x1152xbf16, #tpu.memory_space<vmem>>, vector<256x128xbf16>,
    %c2_49 = arith.constant 2 : index
    %c1_50 = arith.constant 1 : index
    %c0_51 = arith.constant 0 : index
    %39 = vector.load %arg5[%c2_49, %c1_50, %c0_51] : memref<18x18x128xf32, #tpu.memory_space<vmem>>, vector<16x16x128xf32>
    %40 = arith.truncf %39 : vector<16x16x128xf32> to vector<16x16x128xbf16>
    %41 = vector.shape_cast %40 : vector<16x16x128xbf16> to vector<256x128xbf16>
    %c0_52 = arith.constant 0 : index
    %c896 = arith.constant 896 : index
    %42 = vector.load %arg6[%c0_52, %c896] : memref<256x1152xbf16, #tpu.memory_space<vmem>>, vector<256x128xbf16>
    tpu.vector_store %arg6[%c0_52, %c896], %41 {strides = array<i32>} : memref<256x1152xbf16, #tpu.memory_space<vmem>>, vector<256x128xbf16>,
    %c2_53 = arith.constant 2 : index
    %c2_54 = arith.constant 2 : index
    %c0_55 = arith.constant 0 : index
    %43 = vector.load %arg5[%c2_53, %c2_54, %c0_55] : memref<18x18x128xf32, #tpu.memory_space<vmem>>, vector<16x16x128xf32>
    %44 = arith.truncf %43 : vector<16x16x128xf32> to vector<16x16x128xbf16>
    %45 = vector.shape_cast %44 : vector<16x16x128xbf16> to vector<256x128xbf16>
    %c0_56 = arith.constant 0 : index
    %c1024 = arith.constant 1024 : index
    %46 = vector.load %arg6[%c0_56, %c1024] : memref<256x1152xbf16, #tpu.memory_space<vmem>>, vector<256x128xbf16>
    tpu.vector_store %arg6[%c0_56, %c1024], %45 {strides = array<i32>} : memref<256x1152xbf16, #tpu.memory_space<vmem>>, vector<256x128xbf16>,
    %c0_57 = arith.constant 0 : index
    %c0_58 = arith.constant 0 : index
    %47 = vector.load %arg6[%c0_57, %c0_58] : memref<256x1152xbf16, #tpu.memory_space<vmem>>, vector<256x1152xbf16>
    %c0_59 = arith.constant 0 : index
    %c0_60 = arith.constant 0 : index
    %48 = vector.load %arg2[%c0_59, %c0_60] : memref<1152x128xbf16, #tpu.memory_space<vmem>>, vector<1152x128xbf16>
    %cst = arith.constant dense<0.000000e+00> : vector<256x128xf32>
    %49 = tpu.matmul %47, %48, %cst {dimension_numbers = #tpu.dot_dimension_numbers<[1], [0], [0], [1], [0, 0, 1, 1], [], []>} : vector<256x1152xbf16>, vector<1152x128xbf16>, vector<256x128xf32> -> vector<256x128xf32>
    %cst_61 = arith.constant dense<0.000000e+00> : vector<128xf32>
    %50 = vector.multi_reduction <add>, %49, %cst_61 [0] : vector<256x128xf32> to vector<128xf32>
    %51 = vector.shape_cast %50 : vector<128xf32> to vector<1x128xf32>
    %cst_62 = arith.constant 3.906250e-03 : f32
    %52 = vector.broadcast %cst_62 : f32 to vector<1x128xf32>
    %53 = arith.mulf %51, %52 : vector<1x128xf32>
    %54 = arith.mulf %49, %49 : vector<256x128xf32>
    %cst_63 = arith.constant dense<0.000000e+00> : vector<128xf32>
    %55 = vector.multi_reduction <add>, %54, %cst_63 [0] : vector<256x128xf32> to vector<128xf32>
    %56 = vector.shape_cast %55 : vector<128xf32> to vector<1x128xf32>
    %cst_64 = arith.constant 3.906250e-03 : f32
    %57 = vector.broadcast %cst_64 : f32 to vector<1x128xf32>
    %58 = arith.mulf %56, %57 : vector<1x128xf32>
    %59 = arith.mulf %53, %53 : vector<1x128xf32>
    %60 = arith.subf %58, %59 : vector<1x128xf32>
    %61 = vector.broadcast %53 : vector<1x128xf32> to vector<256x128xf32>
    %62 = arith.subf %49, %61 : vector<256x128xf32>
    %cst_65 = arith.constant 9.99999974E-6 : f32
    %63 = vector.broadcast %cst_65 : f32 to vector<1x128xf32>
    %64 = arith.addf %60, %63 : vector<1x128xf32>
    %65 = math.rsqrt %64 : vector<1x128xf32>
    %66 = vector.broadcast %65 : vector<1x128xf32> to vector<256x128xf32>
    %67 = arith.mulf %62, %66 : vector<256x128xf32>
    %cst_66 = arith.constant 0.000000e+00 : f32
    %68 = vector.broadcast %cst_66 : f32 to vector<256x128xf32>
    %69 = arith.maximumf %67, %68 : vector<256x128xf32>
    %70 = vector.shape_cast %69 : vector<256x128xf32> to vector<16x16x128xf32>
    %c1_67 = arith.constant 1 : index
    %c1_68 = arith.constant 1 : index
    %c0_69 = arith.constant 0 : index
    %71 = vector.load %arg5[%c1_67, %c1_68, %c0_69] : memref<18x18x128xf32, #tpu.memory_space<vmem>>, vector<16x16x128xf32>
    tpu.vector_store %arg5[%c1_67, %c1_68, %c0_69], %70 {strides = array<i32>} : memref<18x18x128xf32, #tpu.memory_space<vmem>>, vector<16x16x128xf32>,
    %72 = vector.extract_strided_slice %70 {offsets = [1, 0, 0], sizes = [1, 16, 128], strides = [1, 1, 1]} : vector<16x16x128xf32> to vector<1x16x128xf32>
    %c0_70 = arith.constant 0 : index
    %c1_71 = arith.constant 1 : index
    %c0_72 = arith.constant 0 : index
    %73 = vector.load %arg5[%c0_70, %c1_71, %c0_72] : memref<18x18x128xf32, #tpu.memory_space<vmem>>, vector<1x16x128xf32>
    tpu.vector_store %arg5[%c0_70, %c1_71, %c0_72], %72 {strides = array<i32>} : memref<18x18x128xf32, #tpu.memory_space<vmem>>, vector<1x16x128xf32>,
    %74 = vector.extract_strided_slice %70 {offsets = [14, 0, 0], sizes = [1, 16, 128], strides = [1, 1, 1]} : vector<16x16x128xf32> to vector<1x16x128xf32>
    %c17_73 = arith.constant 17 : index
    %c1_74 = arith.constant 1 : index
    %c0_75 = arith.constant 0 : index
    %75 = vector.load %arg5[%c17_73, %c1_74, %c0_75] : memref<18x18x128xf32, #tpu.memory_space<vmem>>, vector<1x16x128xf32>
    tpu.vector_store %arg5[%c17_73, %c1_74, %c0_75], %74 {strides = array<i32>} : memref<18x18x128xf32, #tpu.memory_space<vmem>>, vector<1x16x128xf32>,
    %c0_76 = arith.constant 0 : index
    %c2_77 = arith.constant 2 : index
    %c0_78 = arith.constant 0 : index
    %76 = vector.load %arg5[%c0_76, %c2_77, %c0_78] : memref<18x18x128xf32, #tpu.memory_space<vmem>>, vector<18x1x128xf32>
    %c0_79 = arith.constant 0 : index
    %c0_80 = arith.constant 0 : index
    %c0_81 = arith.constant 0 : index
    %77 = vector.load %arg5[%c0_79, %c0_80, %c0_81] : memref<18x18x128xf32, #tpu.memory_space<vmem>>, vector<18x1x128xf32>
    tpu.vector_store %arg5[%c0_79, %c0_80, %c0_81], %76 {strides = array<i32>} : memref<18x18x128xf32, #tpu.memory_space<vmem>>, vector<18x1x128xf32>,
    %c0_82 = arith.constant 0 : index
    %c15_83 = arith.constant 15 : index
    %c0_84 = arith.constant 0 : index
    %78 = vector.load %arg5[%c0_82, %c15_83, %c0_84] : memref<18x18x128xf32, #tpu.memory_space<vmem>>, vector<18x1x128xf32>
    %c0_85 = arith.constant 0 : index
    %c17_86 = arith.constant 17 : index
    %c0_87 = arith.constant 0 : index
    %79 = vector.load %arg5[%c0_85, %c17_86, %c0_87] : memref<18x18x128xf32, #tpu.memory_space<vmem>>, vector<18x1x128xf32>
    tpu.vector_store %arg5[%c0_85, %c17_86, %c0_87], %78 {strides = array<i32>} : memref<18x18x128xf32, #tpu.memory_space<vmem>>, vector<18x1x128xf32>,
    %c0_88 = arith.constant 0 : index
    %c0_89 = arith.constant 0 : index
    %c0_90 = arith.constant 0 : index
    %80 = vector.load %arg5[%c0_88, %c0_89, %c0_90] : memref<18x18x128xf32, #tpu.memory_space<vmem>>, vector<16x16x128xf32>
    %81 = arith.truncf %80 : vector<16x16x128xf32> to vector<16x16x128xbf16>
    %82 = vector.shape_cast %81 : vector<16x16x128xbf16> to vector<256x128xbf16>
    %c0_91 = arith.constant 0 : index
    %c0_92 = arith.constant 0 : index
    %83 = vector.load %arg6[%c0_91, %c0_92] : memref<256x1152xbf16, #tpu.memory_space<vmem>>, vector<256x128xbf16>
    tpu.vector_store %arg6[%c0_91, %c0_92], %82 {strides = array<i32>} : memref<256x1152xbf16, #tpu.memory_space<vmem>>, vector<256x128xbf16>,
    %c0_93 = arith.constant 0 : index
    %c1_94 = arith.constant 1 : index
    %c0_95 = arith.constant 0 : index
    %84 = vector.load %arg5[%c0_93, %c1_94, %c0_95] : memref<18x18x128xf32, #tpu.memory_space<vmem>>, vector<16x16x128xf32>
    %85 = arith.truncf %84 : vector<16x16x128xf32> to vector<16x16x128xbf16>
    %86 = vector.shape_cast %85 : vector<16x16x128xbf16> to vector<256x128xbf16>
    %c0_96 = arith.constant 0 : index
    %c128_97 = arith.constant 128 : index
    %87 = vector.load %arg6[%c0_96, %c128_97] : memref<256x1152xbf16, #tpu.memory_space<vmem>>, vector<256x128xbf16>
    tpu.vector_store %arg6[%c0_96, %c128_97], %86 {strides = array<i32>} : memref<256x1152xbf16, #tpu.memory_space<vmem>>, vector<256x128xbf16>,
    %c0_98 = arith.constant 0 : index
    %c2_99 = arith.constant 2 : index
    %c0_100 = arith.constant 0 : index
    %88 = vector.load %arg5[%c0_98, %c2_99, %c0_100] : memref<18x18x128xf32, #tpu.memory_space<vmem>>, vector<16x16x128xf32>
    %89 = arith.truncf %88 : vector<16x16x128xf32> to vector<16x16x128xbf16>
    %90 = vector.shape_cast %89 : vector<16x16x128xbf16> to vector<256x128xbf16>
    %c0_101 = arith.constant 0 : index
    %c256_102 = arith.constant 256 : index
    %91 = vector.load %arg6[%c0_101, %c256_102] : memref<256x1152xbf16, #tpu.memory_space<vmem>>, vector<256x128xbf16>
    tpu.vector_store %arg6[%c0_101, %c256_102], %90 {strides = array<i32>} : memref<256x1152xbf16, #tpu.memory_space<vmem>>, vector<256x128xbf16>,
    %c1_103 = arith.constant 1 : index
    %c0_104 = arith.constant 0 : index
    %c0_105 = arith.constant 0 : index
    %92 = vector.load %arg5[%c1_103, %c0_104, %c0_105] : memref<18x18x128xf32, #tpu.memory_space<vmem>>, vector<16x16x128xf32>
    %93 = arith.truncf %92 : vector<16x16x128xf32> to vector<16x16x128xbf16>
    %94 = vector.shape_cast %93 : vector<16x16x128xbf16> to vector<256x128xbf16>
    %c0_106 = arith.constant 0 : index
    %c384_107 = arith.constant 384 : index
    %95 = vector.load %arg6[%c0_106, %c384_107] : memref<256x1152xbf16, #tpu.memory_space<vmem>>, vector<256x128xbf16>
    tpu.vector_store %arg6[%c0_106, %c384_107], %94 {strides = array<i32>} : memref<256x1152xbf16, #tpu.memory_space<vmem>>, vector<256x128xbf16>,
    %c1_108 = arith.constant 1 : index
    %c1_109 = arith.constant 1 : index
    %c0_110 = arith.constant 0 : index
    %96 = vector.load %arg5[%c1_108, %c1_109, %c0_110] : memref<18x18x128xf32, #tpu.memory_space<vmem>>, vector<16x16x128xf32>
    %97 = arith.truncf %96 : vector<16x16x128xf32> to vector<16x16x128xbf16>
    %98 = vector.shape_cast %97 : vector<16x16x128xbf16> to vector<256x128xbf16>
    %c0_111 = arith.constant 0 : index
    %c512_112 = arith.constant 512 : index
    %99 = vector.load %arg6[%c0_111, %c512_112] : memref<256x1152xbf16, #tpu.memory_space<vmem>>, vector<256x128xbf16>
    tpu.vector_store %arg6[%c0_111, %c512_112], %98 {strides = array<i32>} : memref<256x1152xbf16, #tpu.memory_space<vmem>>, vector<256x128xbf16>,
    %c1_113 = arith.constant 1 : index
    %c2_114 = arith.constant 2 : index
    %c0_115 = arith.constant 0 : index
    %100 = vector.load %arg5[%c1_113, %c2_114, %c0_115] : memref<18x18x128xf32, #tpu.memory_space<vmem>>, vector<16x16x128xf32>
    %101 = arith.truncf %100 : vector<16x16x128xf32> to vector<16x16x128xbf16>
    %102 = vector.shape_cast %101 : vector<16x16x128xbf16> to vector<256x128xbf16>
    %c0_116 = arith.constant 0 : index
    %c640_117 = arith.constant 640 : index
    %103 = vector.load %arg6[%c0_116, %c640_117] : memref<256x1152xbf16, #tpu.memory_space<vmem>>, vector<256x128xbf16>
    tpu.vector_store %arg6[%c0_116, %c640_117], %102 {strides = array<i32>} : memref<256x1152xbf16, #tpu.memory_space<vmem>>, vector<256x128xbf16>,
    %c2_118 = arith.constant 2 : index
    %c0_119 = arith.constant 0 : index
    %c0_120 = arith.constant 0 : index
    %104 = vector.load %arg5[%c2_118, %c0_119, %c0_120] : memref<18x18x128xf32, #tpu.memory_space<vmem>>, vector<16x16x128xf32>
    %105 = arith.truncf %104 : vector<16x16x128xf32> to vector<16x16x128xbf16>
    %106 = vector.shape_cast %105 : vector<16x16x128xbf16> to vector<256x128xbf16>
    %c0_121 = arith.constant 0 : index
    %c768_122 = arith.constant 768 : index
    %107 = vector.load %arg6[%c0_121, %c768_122] : memref<256x1152xbf16, #tpu.memory_space<vmem>>, vector<256x128xbf16>
    tpu.vector_store %arg6[%c0_121, %c768_122], %106 {strides = array<i32>} : memref<256x1152xbf16, #tpu.memory_space<vmem>>, vector<256x128xbf16>,
    %c2_123 = arith.constant 2 : index
    %c1_124 = arith.constant 1 : index
    %c0_125 = arith.constant 0 : index
    %108 = vector.load %arg5[%c2_123, %c1_124, %c0_125] : memref<18x18x128xf32, #tpu.memory_space<vmem>>, vector<16x16x128xf32>
    %109 = arith.truncf %108 : vector<16x16x128xf32> to vector<16x16x128xbf16>
    %110 = vector.shape_cast %109 : vector<16x16x128xbf16> to vector<256x128xbf16>
    %c0_126 = arith.constant 0 : index
    %c896_127 = arith.constant 896 : index
    %111 = vector.load %arg6[%c0_126, %c896_127] : memref<256x1152xbf16, #tpu.memory_space<vmem>>, vector<256x128xbf16>
    tpu.vector_store %arg6[%c0_126, %c896_127], %110 {strides = array<i32>} : memref<256x1152xbf16, #tpu.memory_space<vmem>>, vector<256x128xbf16>,
    %c2_128 = arith.constant 2 : index
    %c2_129 = arith.constant 2 : index
    %c0_130 = arith.constant 0 : index
    %112 = vector.load %arg5[%c2_128, %c2_129, %c0_130] : memref<18x18x128xf32, #tpu.memory_space<vmem>>, vector<16x16x128xf32>
    %113 = arith.truncf %112 : vector<16x16x128xf32> to vector<16x16x128xbf16>
    %114 = vector.shape_cast %113 : vector<16x16x128xbf16> to vector<256x128xbf16>
    %c0_131 = arith.constant 0 : index
    %c1024_132 = arith.constant 1024 : index
    %115 = vector.load %arg6[%c0_131, %c1024_132] : memref<256x1152xbf16, #tpu.memory_space<vmem>>, vector<256x128xbf16>
    tpu.vector_store %arg6[%c0_131, %c1024_132], %114 {strides = array<i32>} : memref<256x1152xbf16, #tpu.memory_space<vmem>>, vector<256x128xbf16>,
    %c0_133 = arith.constant 0 : index
    %c0_134 = arith.constant 0 : index
    %116 = vector.load %arg6[%c0_133, %c0_134] : memref<256x1152xbf16, #tpu.memory_space<vmem>>, vector<256x1152xbf16>
    %c0_135 = arith.constant 0 : index
    %c0_136 = arith.constant 0 : index
    %117 = vector.load %arg3[%c0_135, %c0_136] : memref<1152x128xbf16, #tpu.memory_space<vmem>>, vector<1152x128xbf16>
    %cst_137 = arith.constant dense<0.000000e+00> : vector<256x128xf32>
    %118 = tpu.matmul %116, %117, %cst_137 {dimension_numbers = #tpu.dot_dimension_numbers<[1], [0], [0], [1], [0, 0, 1, 1], [], []>} : vector<256x1152xbf16>, vector<1152x128xbf16>, vector<256x128xf32> -> vector<256x128xf32>
    %cst_138 = arith.constant dense<0.000000e+00> : vector<128xf32>
    %119 = vector.multi_reduction <add>, %118, %cst_138 [0] : vector<256x128xf32> to vector<128xf32>
    %120 = vector.shape_cast %119 : vector<128xf32> to vector<1x128xf32>
    %cst_139 = arith.constant 3.906250e-03 : f32
    %121 = vector.broadcast %cst_139 : f32 to vector<1x128xf32>
    %122 = arith.mulf %120, %121 : vector<1x128xf32>
    %123 = arith.mulf %118, %118 : vector<256x128xf32>
    %cst_140 = arith.constant dense<0.000000e+00> : vector<128xf32>
    %124 = vector.multi_reduction <add>, %123, %cst_140 [0] : vector<256x128xf32> to vector<128xf32>
    %125 = vector.shape_cast %124 : vector<128xf32> to vector<1x128xf32>
    %cst_141 = arith.constant 3.906250e-03 : f32
    %126 = vector.broadcast %cst_141 : f32 to vector<1x128xf32>
    %127 = arith.mulf %125, %126 : vector<1x128xf32>
    %128 = arith.mulf %122, %122 : vector<1x128xf32>
    %129 = arith.subf %127, %128 : vector<1x128xf32>
    %130 = vector.broadcast %122 : vector<1x128xf32> to vector<256x128xf32>
    %131 = arith.subf %118, %130 : vector<256x128xf32>
    %cst_142 = arith.constant 9.99999974E-6 : f32
    %132 = vector.broadcast %cst_142 : f32 to vector<1x128xf32>
    %133 = arith.addf %129, %132 : vector<1x128xf32>
    %134 = math.rsqrt %133 : vector<1x128xf32>
    %135 = vector.broadcast %134 : vector<1x128xf32> to vector<256x128xf32>
    %136 = arith.mulf %131, %135 : vector<256x128xf32>
    %137 = vector.shape_cast %1 : vector<16x16x128xf32> to vector<256x128xf32>
    %138 = arith.addf %137, %136 : vector<256x128xf32>
    %139 = vector.shape_cast %138 : vector<256x128xf32> to vector<1x16x16x128xf32>
    %c0_143 = arith.constant 0 : index
    %c0_144 = arith.constant 0 : index
    %c0_145 = arith.constant 0 : index
    %c0_146 = arith.constant 0 : index
    %140 = vector.load %arg4[%c0_143, %c0_144, %c0_145, %c0_146] : memref<1x16x16x128xf32, #tpu.memory_space<vmem>>, vector<1x16x16x128xf32>
    tpu.vector_store %arg4[%c0_143, %c0_144, %c0_145, %c0_146], %139 {strides = array<i32>} : memref<1x16x16x128xf32, #tpu.memory_space<vmem>>, vector<1x16x16x128xf32>,
    return
  }
  func.func @transform_0(%arg0: i32) -> (i32, i32, i32, i32) {
    %c0_i32 = arith.constant 0 : i32
    %c0_i32_0 = arith.constant 0 : i32
    %c0_i32_1 = arith.constant 0 : i32
    %c0_i32_2 = arith.constant 0 : i32
    return %arg0, %c0_i32, %c0_i32_0, %c0_i32_1 : i32, i32, i32, i32
  }
  func.func @transform_1(%arg0: i32) -> (i32, i32) {
    %c0_i32 = arith.constant 0 : i32
    %c0_i32_0 = arith.constant 0 : i32
    %c0_i32_1 = arith.constant 0 : i32
    return %c0_i32, %c0_i32_0 : i32, i32
  }
  func.func @transform_2(%arg0: i32) -> (i32, i32) {
    %c0_i32 = arith.constant 0 : i32
    %c0_i32_0 = arith.constant 0 : i32
    %c0_i32_1 = arith.constant 0 : i32
    return %c0_i32, %c0_i32_0 : i32, i32
  }
  func.func @transform_3(%arg0: i32) -> (i32, i32, i32, i32) {
    %c0_i32 = arith.constant 0 : i32
    %c0_i32_0 = arith.constant 0 : i32
    %c0_i32_1 = arith.constant 0 : i32
    %c0_i32_2 = arith.constant 0 : i32
    return %arg0, %c0_i32, %c0_i32_0, %c0_i32_1 : i32, i32, i32, i32
  }
}

</mosaic_0001>

<bundles_post_ra>
// kernel: residual_block_forward.1
= control target key start
LH: loop header
LB: loop body
LE: loop exit
PB: predicated region body
PF: predicated region fallthrough
CT: control target
= control target key end

     0   :  { %8 = vsyncpa [#allocation5], 0  ;;  %s11787_s0 = inlined_call_operand.vmem [shape: f32[2,16,16,128], index: 0, kind: input, shape index: {}]   ;;  %s11788_s1 = inlined_call_operand.vmem [shape: bf16[1152,128], index: 1, kind: input, shape index: {}]   ;;  %s11789_s2 = inlined_call_operand.vmem [shape: bf16[1152,128], index: 2, kind: input, shape index: {}]   ;;  %s11790_s3 = inlined_call_operand.hbm [shape: f32[2,16,16,128], index: 3, kind: output, shape index: {}]  }
   0x1   :  { %10 = vsyncpa [#allocation5 + $0x1], 0  ;;  %s9559_s12 = smov 0   ;;  %s9561_s13 = smov 0  }
   0x2   :  { %s9563_s14 = smov 0   ;;  %s9565_s15 = smov 0  }
   0x3 LB: > { %s9580_s16 = sadd.s32 4294967295, %s9535_s15   ;;  %s7238_s17 = sadd.s32 4294967294, %s9535_s15   ;;  %s9535_s15 = sphi %s9565_s15, %s11957_s15   ;;  %s9531_s14 = sphi %s9563_s14, %s11956_s14   ;;  %s9527_s13 = sphi %s9561_s13, %s11955_s13   ;;  %s9523_s12 = sphi %s9559_s12, %s11954_s12  }
   0x4   : > { %s9584_s18 = sadd.s32 1, %s9535_s15   ;;  %s91_s19 = sadd.s32 1, %s9531_s14 }
   0x5   : > { %s88_s20 = ssub.s32 %s9535_s15, %s9584_s18  ;;  %p101_p0 = scmp.ne.s32.totalorder %s9531_s14, %s9527_s13 }
   0x6   : > { %p89_p1 = scmp.eq.s32.totalorder %s88_s20, 0  ;;  %p102_p2 = scmp.eq.s32.totalorder %s9580_s16, 1 }
   0x7   : > { %p107_p3 = scmp.ne.s32.totalorder %s9527_s13, %s9523_s12  ;;  %p108_p4 = scmp.eq.s32.totalorder %s7238_s17, 1 }
   0x8   : > { %s9595_s21 = scalar_select %p89_p1, %s9531_s14, %s91_s19  }
   0x9   : > { %p9597_p5 = por %p102_p2, %p101_p0  ;;  %p9601_p6 = por %p108_p4, %p107_p3 }
   0xa   : > { %p7241_p7 = scmp.ge.s32.totalorder %s9535_s15, 1  ;;  %p140_p8 = scmp.lt.s32.totalorder %s9535_s15, 3 }
   0xc   : > { %p141_p9 = pnand %p7241_p7, %p140_p8 }
   0xe   : > { %144 = sbr.rel (%p141_p9) target bundleno = 1919 (0x77f), region = 32 }
  0x13   : > { %v9138_v0 = vld [vmem:[%s11788_s1 + $0x78] sm:$0xff]  ;;  %p164_p10 = scmp.lt.s32.totalorder %s9580_s16, 1  ;;  %v9137_v2 = vld [vmem:[%s11788_s1 + $0x70] sm:$0xff]  ;;  %v9136_v4 = vld [vmem:[%s11788_s1 + $0x68] sm:$0xff]  ;;  %s161_s8 = sand.u32 1, %s9527_s13  }
  0x14   : > { %v9130_v1 = vld [vmem:[%s11788_s1 + $0x38] sm:$0xff]  ;;  %9420 = vmatpush.bf16.msra.mxu3 %v9138_v0  ;;  %v9129_v3 = vld [vmem:[%s11788_s1 + $0x30] sm:$0xff]  ;;  %2737 = vmatpush.bf16.msra.mxu1 %v9138_v0  ;;  %v9128_v5 = vld [vmem:[%s11788_s1 + $0x28] sm:$0xff]  ;;  %s7242_s9 = sshll.u32 %s161_s8, 8  ;;  %s9411_s17 = sshll.u32 %s9580_s16, 8 }
  0x15   : > { %9412 = vmatpush.bf16.msra.mxu2 %v9130_v1  ;;  %s165_s5 = scalar_select %p164_p10, %s9580_s16, 1  ;;  %2648 = vmatpush.bf16.msra.mxu0 %v9130_v1  ;;  %v9135_v12 = vld [vmem:[%s11788_s1 + $0x60] sm:$0xff]  ;;  %v9134_v16 = vld [vmem:[%s11788_s1 + $0x58] sm:$0xff]  ;;  %v9133_v21 = vld [vmem:[%s11788_s1 + $0x50] sm:$0xff] }
  0x16   : > { %v9127_v13 = vld [vmem:[%s11788_s1 + $0x20] sm:$0xff]  ;;  %v9126_v17 = vld [vmem:[%s11788_s1 + $0x18] sm:$0xff]  ;;  %v9125_v23 = vld [vmem:[%s11788_s1 + $0x10] sm:$0xff]  ;;  %s11673_s10 = scalar_lea.vmem [#allocation4], %s7242_s9  ;;  %s7172_s24 = scalar_lea.hbm %s11790_s3, %s9411_s17 }
  0x17   : > { %s8978_s6 = sshll.u32 %s165_s5, 8  ;;  %v9132_v30 = vld [vmem:[%s11788_s1 + $0x48] sm:$0xff]  ;;  %v9131_v36 = vld [vmem:[%s11788_s1 + $0x40] sm:$0xff]  ;;  %v9146_v46 = vld [vmem:[%s11788_s1 + $0xb8] sm:$0xff]  ;;  %s7173_s16 = sshll.u32 %s11673_s10, 4  ;;  %s7174_s16 = int_to_ptr.vmem [resolvable:$true] %s7173_s16 }
  0x18   : > { %s9627_s11 = scalar_lea.vmem %s11787_s0, %s8978_s6  ;;  %9421 = vmatpush.bf16.msra.mxu3 %v9137_v2  ;;  %2738 = vmatpush.bf16.msra.mxu1 %v9137_v2  ;;  %v9124_v31 = vld [vmem:[%s11788_s1 + $0x8] sm:$0xff]  ;;  %v9123_v37 = vld [vmem:[%s11788_s1] sm:$0xff]  ;;  %v9154_v47 = vld [vmem:[%s11788_s1 + $0xf8] sm:$0xff]  ;;  %s7175_s25 = sshll.u32 %s7172_s24, 4  ;;  %s7176_s25 = int_to_ptr.hbm [resolvable:$true] %s7175_s25 }
  0x19   : > { %9413 = vmatpush.bf16.msra.mxu2 %v9129_v3  ;;  %v9633_v6 = vld [vmem:[%s9627_s11 + $0x70] sm:$0xff]  ;;  %v9636_v7 = vld [vmem:[%s9627_s11 + $0x78] sm:$0xff]  ;;  %2649 = vmatpush.bf16.msra.mxu0 %v9129_v3  ;;  %v9680_v22 = vld [vmem:[%s9627_s11 + $0x80] sm:$0xff]  ;;  %s7161_s26 = scalar_lea.sflag [#allocation5], %s161_s8  ;;  %s9487_s27 = sshra.s32 %s7176_s25, 4  ;;  %s9488_s27 = int_to_ptr.hbm [resolvable:$true] %s9487_s27 }
  0x1a   : > { %11832 = vst [vmem:[#allocation7_spill] sm:$0xff] %v9633_v6  ;;  %v455_v8 = vpack.c.bf16 %v9633_v6, %v9633_v6  ;;  %v456_v9 = vpack.c.bf16 %v9636_v7, %v9636_v7  ;;  %v9645_v10 = vld [vmem:[%s9627_s11 + $0x10] sm:$0xff]  ;;  %v9648_v11 = vld [vmem:[%s9627_s11 + $0x18] sm:$0xff]  ;;  %v9686_v25 = vld [vmem:[%s9627_s11 + $0x88] sm:$0xff]  ;;  %v457_v27 = vpack.c.bf16 %v9680_v22, %v9680_v22  ;;  %s9489_s28 = scalar_lea.hbm %s9488_s27, 256  ;;  %s9493_s30 = scalar_lea.hbm %s11790_s3, 512 }
  0x1b   : > { %11833 = vst [vmem:[#allocation8_spill] sm:$0xff] %v9636_v7  ;;  %v9660_v14 = vpack.c.bf16 %v9645_v10, %v9645_v10  ;;  %v9665_v15 = vpack.c.bf16 %v9648_v11, %v9648_v11  ;;  %v458_v29 = vpack.c.bf16 %v9686_v25, %v9686_v25  ;;  %v9701_v34 = vld [vmem:[%s9627_s11] sm:$0xff]  ;;  %v9704_v35 = vld [vmem:[%s9627_s11 + $0x8] sm:$0xff]  ;;  %v9162_v51 = vld [vmem:[%s11788_s1 + $0x138] sm:$0xff]  ;;  %p9490_p11 = scmp.ne.s32.totalorder %s9488_s27, %s9489_s28  ;;  %p9494_p0 = scmp.lt.s32.totalorder %s9488_s27, %s11790_s3 }
  0x1c   : > { %216 = vst [vmem:[#allocation2 + $0xc1] sm:$0xff] %v9633_v6  ;;  %9422 = vmatpush.bf16.msra.mxu3 %v9136_v4  ;;  %2739 = vmatpush.bf16.msra.mxu1 %v9136_v4  ;;  %v9715_v42 = vpack.c.bf16 %v9701_v34, %v9701_v34  ;;  %v9726_v49 = vpack.c.bf16 %v9704_v35, %v9704_v35  ;;  %v9733_v55 = vld [vmem:[%s9627_s11 + $0x90] sm:$0xff]  ;;  %v9736_v56 = vld [vmem:[%s9627_s11 + $0x98] sm:$0xff]  ;;  %p9495_p1 = scmp.lt.s32.totalorder %s9493_s30, %s9489_s28 }
  0x1d   : > { %217 = vst [vmem:[#allocation2 + $0xc9] sm:$0xff] %v9636_v7  ;;  %9414 = vmatpush.bf16.msra.mxu2 %v9128_v5  ;;  %2650 = vmatpush.bf16.msra.mxu0 %v9128_v5  ;;  %v9145_v58 = vld [vmem:[%s11788_s1 + $0xb0] sm:$0xff]  ;;  %v459_v60 = vpack.c.bf16 %v9733_v55, %v9733_v55  ;;  %v460_v4 = vpack.c.bf16 %v9736_v56, %v9736_v56  ;;  %p9491_p12 = pnand %p9490_p11, %p9597_p5 }
  0x1e   : > { %11834 = vst [vmem:[#allocation9_spill] sm:$0xff] %v9645_v10  ;;  %v9153_v59 = vld [vmem:[%s11788_s1 + $0xf0] sm:$0xff]  ;;  %p9496_p2 = por %p9495_p1, %p9494_p0 }
  0x1f   : > { %487 = vst [vmem:[#allocation3 + $0x244] sm:$0xf] %v455_v8  ;;  %v9161_v63 = vld [vmem:[%s11788_s1 + $0x130] sm:$0xff]  ;;  %p9492_p13 = pneg %p9491_p12 }
  0x20   : > { %11835 = vst [vmem:[#allocation10_spill] sm:$0xff] %v9648_v11  ;;  %9423 = vmatpush.bf16.msra.mxu3 %v9135_v12  ;;  %2740 = vmatpush.bf16.msra.mxu1 %v9135_v12  ;;  %v9144_v12 = vld [vmem:[%s11788_s1 + $0xa8] sm:$0xff] }
  0x21   : > { %488 = vst [vmem:[#allocation3 + $0x268] sm:$0xf] %v456_v9  ;;  %9415 = vmatpush.bf16.msra.mxu2 %v9127_v13  ;;  %2651 = vmatpush.bf16.msra.mxu0 %v9127_v13  ;;  %p9497_p3 = pnand %p9496_p2, %p9492_p13 }
  0x22   : > { %234 = vst [vmem:[#allocation2 + $0x1] sm:$0xff] %v9645_v10 }
  0x23   : > { %235 = vst [vmem:[#allocation2 + $0x9] sm:$0xff] %v9648_v11  ;;  %v247_v18 = vld [vmem:[#allocation2 + $0xc2] sm:$0x1] }
  0x24   : > { %204 = vst [vmem:[#allocation2 + $0x31] sm:$0xff] %v9645_v10  ;;  %v328_v19 = vld [vmem:[#allocation2 + $0xc8] sm:$0xff]  ;;  %9424 = vmatpush.bf16.msra.mxu3 %v9134_v16  ;;  %2741 = vmatpush.bf16.msra.mxu1 %v9134_v16 }
  0x25   : > { %205 = vst [vmem:[#allocation2 + $0x39] sm:$0xff] %v9648_v11  ;;  %v360_v20 = vpack.c.bf16 %v328_v19, %v328_v19  ;;  %9416 = vmatpush.bf16.msra.mxu2 %v9126_v17  ;;  %2652 = vmatpush.bf16.msra.mxu0 %v9126_v17  ;;  %v9160_v19 = vld [vmem:[%s11788_s1 + $0x128] sm:$0xff] }
  0x26   : > { %265 = vst [vmem:[#allocation2 + $0xc0] sm:$0x1] %v247_v18  ;;  %v9051_v38 = vld [vmem:[#allocation3 + $0x244] sm:$0xf]  ;;  %v9152_v18 = vld [vmem:[%s11788_s1 + $0xe8] sm:$0xff] }
  0x27   : > { %471 = vst [vmem:[#allocation3 + $0x4] sm:$0xf] %v9660_v14 }
  0x28   : > { %472 = vst [vmem:[#allocation3 + $0x28] sm:$0xf] %v9665_v15  ;;  %9425 = vmatpush.bf16.msra.mxu3 %v9133_v21  ;;  %2742 = vmatpush.bf16.msra.mxu1 %v9133_v21  ;;  %v7537_v39 = vld [vmem:[#allocation3 + $0x264] sm:$0xf0] }
  0x29   : > { %11836 = vst [vmem:[#allocation11_spill] sm:$0xff] %v9680_v22  ;;  %v239_v24 = vld [vmem:[#allocation2 + $0x2] sm:$0x1]  ;;  %9417 = vmatpush.bf16.msra.mxu2 %v9125_v23  ;;  %2653 = vmatpush.bf16.msra.mxu0 %v9125_v23  ;;  %v7540_v50 = vor.u32 %v9051_v38, %v7537_v39 }
  0x2a   : > { %392 = vst [vmem:[#allocation3 + $0x264] sm:$0xf] %v360_v20  ;;  %v312_v26 = vld [vmem:[#allocation2 + $0x8] sm:$0xff] }
  0x2b   : > { %11837 = vst [vmem:[#allocation12_spill] sm:$0xff] %v9686_v25  ;;  %v344_v28 = vpack.c.bf16 %v312_v26, %v312_v26  ;;  %v241_v16 = vld [vmem:[#allocation2 + $0x32] sm:$0x1] }
  0x2c   : > { %257 = vst [vmem:[#allocation2] sm:$0x1] %v239_v24  ;;  %9426 = vmatpush.bf16.msra.mxu3 %v9132_v30  ;;  %2743 = vmatpush.bf16.msra.mxu1 %v9132_v30  ;;  %v316_v5 = vld [vmem:[#allocation2 + $0x38] sm:$0xff] }
  0x2d   : > { %218 = vst [vmem:[#allocation2 + $0xd9] sm:$0xff] %v9680_v22  ;;  %v327_v32 = vld [vmem:[#allocation2 + $0xc0] sm:$0xff]  ;;  %9418 = vmatpush.bf16.msra.mxu2 %v9124_v31  ;;  %2654 = vmatpush.bf16.msra.mxu0 %v9124_v31  ;;  %v9760_v17 = vpack.c.bf16 %v316_v5, %v316_v5 }
  0x2e   : > { %219 = vst [vmem:[#allocation2 + $0xe1] sm:$0xff] %v9686_v25  ;;  %v359_v33 = vpack.c.bf16 %v327_v32, %v327_v32  ;;  %v8979_v41 = vld [vmem:[#allocation3 + $0x4] sm:$0xf]  ;;  %v9774_v32 = vld [vmem:[%s9627_s11 + $0xa0] sm:$0xff] }
  0x2f   : > { %376 = vst [vmem:[#allocation3 + $0x24] sm:$0xf] %v344_v28  ;;  %v7249_v44 = vld [vmem:[#allocation3 + $0x24] sm:$0xf0]  ;;  %v461_v38 = vpack.c.bf16 %v9774_v32, %v9774_v32 }
  0x30   : > { %489 = vst [vmem:[#allocation3 + $0x28c] sm:$0xf] %v457_v27  ;;  %9427 = vmatpush.bf16.msra.mxu3 %v9131_v36  ;;  %v7252_v54 = vor.u32 %v8979_v41, %v7249_v44  ;;  %2744 = vmatpush.bf16.msra.mxu1 %v9131_v36 }
  0x31   : > { %11838 = vst [vmem:[#allocation13_spill] sm:$0xff] %v9701_v34  ;;  %9419 = vmatpush.bf16.msra.mxu2 %v9123_v37  ;;  %v9055_v53 = vld [vmem:[#allocation3 + $0x260] sm:$0xf0]  ;;  %2655 = vmatpush.bf16.msra.mxu0 %v9123_v37  ;;  %v9777_v37 = vld [vmem:[%s9627_s11 + $0xa8] sm:$0xff] }
  0x32   : > { %490 = vst [vmem:[#allocation3 + $0x2b0] sm:$0xf] %v458_v29  ;;  %v462_v44 = vpack.c.bf16 %v9777_v37, %v9777_v37 }
  0x33   : > { %11839 = vst [vmem:[#allocation14_spill] sm:$0xff] %v9704_v35  ;;  %v311_v40 = vld [vmem:[#allocation2] sm:$0xff]  ;;  %2785 = vmatmul.bf16.vlgmr.msra.gmra.mxu3 %v7540_v50  ;;  %2745 = vmatmul.bf16.vlgmr.msra.gmra.mxu1 %v7252_v54  ;;  %v9796_v50 = vld [vmem:[%s9627_s11 + $0x28] sm:$0xff] }
  0x34   : > { %391 = vst [vmem:[#allocation3 + $0x240] sm:$0xf] %v359_v33  ;;  %v343_v43 = vpack.c.bf16 %v311_v40, %v311_v40  ;;  %v248_v45 = vld [vmem:[#allocation2 + $0xda] sm:$0x1]  ;;  %2915 = vmatpush.bf16.msrb.mxu3 %v9154_v47 }
  0x35   : > { %202 = vst [vmem:[#allocation2 + $0x19] sm:$0xff] %v9701_v34  ;;  %v330_v48 = vld [vmem:[#allocation2 + $0xe0] sm:$0xff]  ;;  %2826 = vmatpush.bf16.msrb.mxu2 %v9146_v46  ;;  %3004 = vmatpush.bf16.msrb.mxu0 %v9162_v51 }
  0x36   : > { %203 = vst [vmem:[#allocation2 + $0x21] sm:$0xff] %v9704_v35  ;;  %v362_v52 = vpack.c.bf16 %v330_v48, %v330_v48  ;;  %v8983_v0 = vld [vmem:[#allocation3 + $0x20] sm:$0xf0]  ;;  %v9143_v48 = vld [vmem:[%s11788_s1 + $0xa0] sm:$0xff] }
  0x37   : > { %266 = vst [vmem:[#allocation2 + $0xd8] sm:$0x1] %v248_v45  ;;  %v9060_v21 = vld [vmem:[#allocation3 + $0x28c] sm:$0xf] }
  0x38   : > { %375 = vst [vmem:[#allocation3] sm:$0xf] %v343_v43  ;;  %2916 = vmatpush.bf16.msrb.mxu3 %v9153_v59  ;;  %v9159_v59 = vld [vmem:[%s11788_s1 + $0x120] sm:$0xff] }
  0x39   : > { %473 = vst [vmem:[#allocation3 + $0x4c] sm:$0xf] %v9715_v42  ;;  %2827 = vmatpush.bf16.msrb.mxu2 %v9145_v58  ;;  %3005 = vmatpush.bf16.msrb.mxu0 %v9161_v63  ;;  %v7573_v24 = vld [vmem:[#allocation3 + $0x2ac] sm:$0xf0]  ;;  %v9820_v63 = vld [vmem:[%s9627_s11 + $0xb8] sm:$0xff] }
  0x3a   : > { %11840 = vst [vmem:[#allocation15_spill] sm:$0xff] %v9733_v55  ;;  %v7576_v33 = vor.u32 %v9060_v21, %v7573_v24  ;;  %v9151_v58 = vld [vmem:[%s11788_s1 + $0xe0] sm:$0xff]  ;;  %v9831_v24 = vld [vmem:[%s9627_s11 + $0x30] sm:$0xff] }
  0x3b   : > { %394 = vst [vmem:[#allocation3 + $0x2ac] sm:$0xf] %v362_v52  ;;  %v7535_v57 = vld [vmem:[#allocation3 + $0x240] sm:$0xf] }
  0x3c   : > { %11841 = vst [vmem:[#allocation16_spill] sm:$0xff] %v9736_v56  ;;  %v7536_v61 = vor.u32 %v9055_v53, %v7535_v57  ;;  %v240_v62 = vld [vmem:[#allocation2 + $0x1a] sm:$0x1]  ;;  %2917 = vmatpush.bf16.msrb.mxu3 %v9152_v18  ;;  %v9805_v53 = vpack.c.bf16 %v9796_v50, %v9796_v50 }
  0x3d   : > { %474 = vst [vmem:[#allocation3 + $0x70] sm:$0xf] %v9726_v49  ;;  %v314_v1 = vld [vmem:[#allocation2 + $0x20] sm:$0xff]  ;;  %2828 = vmatpush.bf16.msrb.mxu2 %v9144_v12  ;;  %3006 = vmatpush.bf16.msrb.mxu0 %v9160_v19 }
  0x3e   : > { %220 = vst [vmem:[#allocation2 + $0xf1] sm:$0xff] %v9733_v55  ;;  %2696 = vmatmul.bf16.vlgmr.msra.gmra.mxu2 %v7536_v61  ;;  %v329_v2 = vld [vmem:[#allocation2 + $0xd8] sm:$0xff]  ;;  %v9751_v3 = vpack.c.bf16 %v314_v1, %v314_v1  ;;  %v9816_v61 = vld [vmem:[%s9627_s11 + $0xb0] sm:$0xff] }
  0x3f   : > { %258 = vst [vmem:[#allocation2 + $0x18] sm:$0x1] %v240_v62  ;;  %v7247_v8 = vld [vmem:[#allocation3] sm:$0xf]  ;;  %v361_v9 = vpack.c.bf16 %v329_v2, %v329_v2  ;;  %v463_v2 = vpack.c.bf16 %v9816_v61, %v9816_v61 }
  0x40   : > { %221 = vst [vmem:[#allocation2 + $0xf9] sm:$0xff] %v9736_v56  ;;  %v7248_v13 = vor.u32 %v8983_v0, %v7247_v8  ;;  %v8988_v28 = vld [vmem:[#allocation3 + $0x4c] sm:$0xf]  ;;  %2918 = vmatpush.bf16.msrb.mxu3 %v9151_v58  ;;  %v464_v8 = vpack.c.bf16 %v9820_v63, %v9820_v63 }
  0x41   : > { %491 = vst [vmem:[#allocation3 + $0x2d4] sm:$0xf] %v459_v60  ;;  %2829 = vmatpush.bf16.msrb.mxu2 %v9143_v48  ;;  %3007 = vmatpush.bf16.msrb.mxu0 %v9159_v59 }
  0x42   : > { %378 = vst [vmem:[#allocation3 + $0x6c] sm:$0xf] %v9751_v3  ;;  %2656 = vmatmul.bf16.vlgmr.msra.gmra.mxu0 %v7248_v13  ;;  %v9064_v31 = vld [vmem:[#allocation3 + $0x2a8] sm:$0xf0] }
  0x43   : > { %393 = vst [vmem:[#allocation3 + $0x288] sm:$0xf] %v361_v9  ;;  %2790 = vmatmul.bf16.gmra.mxu3 %v7576_v33 }
  0x44   : > { %492 = vst [vmem:[#allocation3 + $0x2f8] sm:$0xf] %v460_v4  ;;  %v7285_v29 = vld [vmem:[#allocation3 + $0x6c] sm:$0xf0] }
  0x45   : > { %v249_v20 = vld [vmem:[#allocation2 + $0xf2] sm:$0x1]  ;;  %259 = vst [vmem:[#allocation2 + $0x30] sm:$0x1] %v241_v16  ;;  %v7288_v39 = vor.u32 %v8988_v28, %v7285_v29  ;;  %v9835_v29 = vld [vmem:[%s9627_s11 + $0x38] sm:$0xff] }
  0x46   : > { %v313_v23 = vld [vmem:[#allocation2 + $0x18] sm:$0xff]  ;;  %267 = vst [vmem:[#allocation2 + $0xf0] sm:$0x1] %v249_v20 }
  0x47   : > { %v9768_v26 = vpack.c.bf16 %v313_v23, %v313_v23  ;;  %v332_v27 = vld [vmem:[#allocation2 + $0xf8] sm:$0xff]  ;;  %380 = vst [vmem:[#allocation3 + $0xb4] sm:$0xf] %v9760_v17  ;;  %2750 = vmatmul.bf16.gmra.mxu1 %v7288_v39 }
  0x48   : > { %v364_v30 = vpack.c.bf16 %v332_v27, %v332_v27  ;;  %475 = vst [vmem:[#allocation3 + $0x94] sm:$0xf] %v9660_v14  ;;  %v9069_v62 = vld [vmem:[#allocation3 + $0x2d4] sm:$0xf] }
  0x49   : > { %377 = vst [vmem:[#allocation3 + $0x48] sm:$0xf] %v9768_v26  ;;  %v8992_v45 = vld [vmem:[#allocation3 + $0x68] sm:$0xf0] }
  0x4a   : > { %11842 = vst [vmem:[#allocation17_spill] sm:$0xff] %v9774_v32  ;;  %v7571_v36 = vld [vmem:[#allocation3 + $0x288] sm:$0xf] }
  0x4b   : > { %396 = vst [vmem:[#allocation3 + $0x2f4] sm:$0xf] %v364_v30  ;;  %v7572_v40 = vor.u32 %v9064_v31, %v7571_v36  ;;  %v7609_v0 = vld [vmem:[#allocation3 + $0x2f4] sm:$0xf0]  ;;  %v9839_v30 = vpack.c.bf16 %v9831_v24, %v9831_v24 }
  0x4c   : > { %11843 = vst [vmem:[#allocation18_spill] sm:$0xff] %v9777_v37  ;;  %v315_v41 = vld [vmem:[#allocation2 + $0x30] sm:$0xff]  ;;  %v7612_v13 = vor.u32 %v9069_v62, %v7609_v0 }
  0x4d   : > { %476 = vst [vmem:[#allocation3 + $0xb8] sm:$0xf] %v9665_v15  ;;  %v331_v14 = vld [vmem:[#allocation2 + $0xf0] sm:$0xff]  ;;  %v9783_v43 = vpack.c.bf16 %v315_v41, %v315_v41  ;;  %v9790_v15 = vld [vmem:[%s9627_s11 + $0x20] sm:$0xff]  ;;  %v9848_v41 = vpack.c.bf16 %v9835_v29, %v9835_v29 }
  0x4e   : > { %222 = vst [vmem:[#allocation2 + $0x109] sm:$0xff] %v9774_v32  ;;  %v363_v46 = vpack.c.bf16 %v331_v14, %v331_v14  ;;  %2701 = vmatmul.bf16.gmra.mxu2 %v7572_v40  ;;  %v9800_v52 = vpack.c.bf16 %v9790_v15, %v9790_v15  ;;  %v9001_v28 = vld [vmem:[#allocation3 + $0xb0] sm:$0xf0] }
  0x4f   : > { %223 = vst [vmem:[#allocation2 + $0x111] sm:$0xff] %v9777_v37  ;;  %v8997_v1 = vld [vmem:[#allocation3 + $0x94] sm:$0xf] }
  0x50   : > { %493 = vst [vmem:[#allocation3 + $0x31c] sm:$0xf] %v461_v38  ;;  %v7283_v47 = vld [vmem:[#allocation3 + $0x48] sm:$0xf] }
  0x51   : > { %379 = vst [vmem:[#allocation3 + $0x90] sm:$0xf] %v9783_v43  ;;  %v7284_v51 = vor.u32 %v8992_v45, %v7283_v47  ;;  %v9142_v38 = vld [vmem:[%s11788_s1 + $0x98] sm:$0xff]  ;;  %v9865_v47 = vld [vmem:[%s9627_s11 + $0xc8] sm:$0xff] }
  0x52   : > { %11844 = vst [vmem:[#allocation19_spill] sm:$0xff] %v9790_v15  ;;  %v9073_v4 = vld [vmem:[#allocation3 + $0x2f0] sm:$0xf0]  ;;  %2830 = vmatpush.bf16.msrb.mxu2 %v9142_v38  ;;  %v9150_v45 = vld [vmem:[%s11788_s1 + $0xd8] sm:$0xff] }
  0x53   : > { %395 = vst [vmem:[#allocation3 + $0x2d0] sm:$0xf] %v363_v46  ;;  %2661 = vmatmul.bf16.gmra.mxu0 %v7284_v51  ;;  %2795 = vmatmul.bf16.gmra.mxu3 %v7612_v13  ;;  %v9158_v46 = vld [vmem:[%s11788_s1 + $0x118] sm:$0xff] }
  0x54   : > { %11845 = vst [vmem:[#allocation20_spill] sm:$0xff] %v9796_v50  ;;  %v7321_v5 = vld [vmem:[#allocation3 + $0xb4] sm:$0xf0]  ;;  %2919 = vmatpush.bf16.msrb.mxu3 %v9150_v45  ;;  %3008 = vmatpush.bf16.msrb.mxu0 %v9158_v46  ;;  %v9904_v45 = vld [vmem:[%s9627_s11 + $0xd8] sm:$0xff] }
  0x55   : > { %494 = vst [vmem:[#allocation3 + $0x340] sm:$0xf] %v462_v44  ;;  %v250_v54 = vld [vmem:[#allocation2 + $0x10a] sm:$0x1]  ;;  %v7324_v18 = vor.u32 %v8997_v1, %v7321_v5  ;;  %v9854_v44 = vld [vmem:[%s9627_s11 + $0xc0] sm:$0xff]  ;;  %v466_v1 = vpack.c.bf16 %v9865_v47, %v9865_v47 }
  0x56   : > { %206 = vst [vmem:[#allocation2 + $0x49] sm:$0xff] %v9790_v15  ;;  %v334_v57 = vld [vmem:[#allocation2 + $0x110] sm:$0xff]  ;;  %v465_v48 = vpack.c.bf16 %v9854_v44, %v9854_v44 }
  0x57   : > { %207 = vst [vmem:[#allocation2 + $0x51] sm:$0xff] %v9796_v50  ;;  %v366_v60 = vpack.c.bf16 %v334_v57, %v334_v57  ;;  %2755 = vmatmul.bf16.gmra.mxu1 %v7324_v18  ;;  %v9078_v51 = vld [vmem:[#allocation3 + $0x31c] sm:$0xf] }
  0x58   : > { %268 = vst [vmem:[#allocation2 + $0x108] sm:$0x1] %v250_v54  ;;  %v7319_v27 = vld [vmem:[#allocation3 + $0x90] sm:$0xf]  ;;  %v9880_v18 = vld [vmem:[%s9627_s11 + $0x48] sm:$0xff] }
  0x59   : > { %477 = vst [vmem:[#allocation3 + $0xdc] sm:$0xf] %v9800_v52  ;;  %v7320_v33 = vor.u32 %v9001_v28, %v7319_v27 }
  0x5a   : > { %11846 = vst [vmem:[#allocation21_spill] sm:$0xff] %v9816_v61  ;;  %v7607_v9 = vld [vmem:[#allocation3 + $0x2d0] sm:$0xf] }
  0x5b   : > { %478 = vst [vmem:[#allocation3 + $0x100] sm:$0xf] %v9805_v53  ;;  %v7608_v21 = vor.u32 %v9073_v4, %v7607_v9  ;;  %v9876_v9 = vld [vmem:[%s9627_s11 + $0x40] sm:$0xff] }
  0x5c   : > { %11847 = vst [vmem:[#allocation22_spill] sm:$0xff] %v9820_v63  ;;  %v7645_v57 = vld [vmem:[#allocation3 + $0x33c] sm:$0xf0] }
  0x5d   : > { %398 = vst [vmem:[#allocation3 + $0x33c] sm:$0xf] %v366_v60  ;;  %v242_v12 = vld [vmem:[#allocation2 + $0x4a] sm:$0x1] }
  0x5e   : > { %224 = vst [vmem:[#allocation2 + $0x121] sm:$0xff] %v9816_v61  ;;  %v318_v16 = vld [vmem:[#allocation2 + $0x50] sm:$0xff]  ;;  %2706 = vmatmul.bf16.gmra.mxu2 %v7608_v21 }
  0x5f   : > { %225 = vst [vmem:[#allocation2 + $0x129] sm:$0xff] %v9820_v63  ;;  %v333_v19 = vld [vmem:[#allocation2 + $0x108] sm:$0xff]  ;;  %v9828_v20 = vpack.c.bf16 %v318_v16, %v318_v16 }
  0x60   : > { %260 = vst [vmem:[#allocation2 + $0x48] sm:$0x1] %v242_v12  ;;  %v365_v23 = vpack.c.bf16 %v333_v19, %v333_v19  ;;  %v9006_v59 = vld [vmem:[#allocation3 + $0xdc] sm:$0xf]  ;;  %v9884_v19 = vpack.c.bf16 %v9876_v9, %v9876_v9 }
  0x61   : > { %495 = vst [vmem:[#allocation3 + $0x364] sm:$0xf] %v463_v2 }
  0x62   : > { %496 = vst [vmem:[#allocation3 + $0x388] sm:$0xf] %v464_v8  ;;  %v7357_v60 = vld [vmem:[#allocation3 + $0xfc] sm:$0xf0]  ;;  %v7648_v8 = vor.u32 %v9078_v51, %v7645_v57 }
  0x63   : > { %11848 = vst [vmem:[#allocation23_spill] sm:$0xff] %v9831_v24  ;;  %2666 = vmatmul.bf16.gmra.mxu0 %v7320_v33  ;;  %v7360_v12 = vor.u32 %v9006_v59, %v7357_v60  ;;  %v9892_v33 = vpack.c.bf16 %v9880_v18, %v9880_v18  ;;  %v9157_v51 = vld [vmem:[%s11788_s1 + $0x110] sm:$0xff] }
  0x64   : > { %382 = vst [vmem:[#allocation3 + $0xfc] sm:$0xf] %v9828_v20  ;;  %v9082_v4 = vld [vmem:[#allocation3 + $0x338] sm:$0xf0]  ;;  %2800 = vmatmul.bf16.gmra.mxu3 %v7648_v8  ;;  %3009 = vmatpush.bf16.msrb.mxu0 %v9157_v51 }
  0x65   : > { %397 = vst [vmem:[#allocation3 + $0x318] sm:$0xf] %v365_v23  ;;  %v251_v31 = vld [vmem:[#allocation2 + $0x122] sm:$0x1] }
  0x66   : > { %11849 = vst [vmem:[#allocation24_spill] sm:$0xff] %v9835_v29  ;;  %v336_v36 = vld [vmem:[#allocation2 + $0x128] sm:$0xff] }
  0x67   : > { %208 = vst [vmem:[#allocation2 + $0x61] sm:$0xff] %v9831_v24  ;;  %v317_v39 = vld [vmem:[#allocation2 + $0x48] sm:$0xff]  ;;  %v368_v40 = vpack.c.bf16 %v336_v36, %v336_v36  ;;  %2760 = vmatmul.bf16.gmra.mxu1 %v7360_v12 }
  0x68   : > { %269 = vst [vmem:[#allocation2 + $0x120] sm:$0x1] %v251_v31  ;;  %v9850_v14 = vpack.c.bf16 %v317_v39, %v317_v39  ;;  %v9141_v39 = vld [vmem:[%s11788_s1 + $0x90] sm:$0xff] }
  0x69   : > { %209 = vst [vmem:[#allocation2 + $0x69] sm:$0xff] %v9835_v29  ;;  %2831 = vmatpush.bf16.msrb.mxu2 %v9141_v39 }
  0x6a   : > { %479 = vst [vmem:[#allocation3 + $0x124] sm:$0xf] %v9839_v30 }
  0x6b   : > { %400 = vst [vmem:[#allocation3 + $0x384] sm:$0xf] %v368_v40  ;;  %v9010_v16 = vld [vmem:[#allocation3 + $0xf8] sm:$0xf0]  ;;  %v9900_v40 = vld [vmem:[%s9627_s11 + $0xd0] sm:$0xff] }
  0x6c   : > { %11850 = vst [vmem:[#allocation25_spill] sm:$0xff] %v9854_v44  ;;  %v7643_v2 = vld [vmem:[#allocation3 + $0x318] sm:$0xf] }
  0x6d   : > { %381 = vst [vmem:[#allocation3 + $0xd8] sm:$0xf] %v9850_v14  ;;  %v7644_v13 = vor.u32 %v9082_v4, %v7643_v2  ;;  %v9921_v2 = vld [vmem:[%s9627_s11 + $0x50] sm:$0xff] }
  0x6e   : > { %480 = vst [vmem:[#allocation3 + $0x148] sm:$0xf] %v9848_v41  ;;  %v243_v54 = vld [vmem:[#allocation2 + $0x62] sm:$0x1] }
  0x6f   : > { %11851 = vst [vmem:[#allocation26_spill] sm:$0xff] %v9865_v47  ;;  %v335_v58 = vld [vmem:[#allocation2 + $0x120] sm:$0xff]  ;;  %2711 = vmatmul.bf16.gmra.mxu2 %v7644_v13 }
  0x70   : > { %226 = vst [vmem:[#allocation2 + $0x139] sm:$0xff] %v9854_v44  ;;  %v367_v62 = vpack.c.bf16 %v335_v58, %v335_v58  ;;  %v320_v0 = vld [vmem:[#allocation2 + $0x68] sm:$0xff]  ;;  %v9087_v58 = vld [vmem:[#allocation3 + $0x364] sm:$0xf] }
  0x71   : > { %261 = vst [vmem:[#allocation2 + $0x60] sm:$0x1] %v243_v54  ;;  %v9873_v5 = vpack.c.bf16 %v320_v0, %v320_v0  ;;  %v467_v54 = vpack.c.bf16 %v9900_v40, %v9900_v40  ;;  %v7681_v0 = vld [vmem:[#allocation3 + $0x384] sm:$0xf0]  ;;  %v9015_v4 = vld [vmem:[#allocation3 + $0x124] sm:$0xf] }
  0x72   : > { %227 = vst [vmem:[#allocation2 + $0x141] sm:$0xff] %v9865_v47  ;;  %v9091_v13 = vld [vmem:[#allocation3 + $0x380] sm:$0xf0] }
  0x73   : > { %497 = vst [vmem:[#allocation3 + $0x3ac] sm:$0xf] %v465_v48  ;;  %v9149_v48 = vld [vmem:[%s11788_s1 + $0xd0] sm:$0xff] }
  0x74   : > { %399 = vst [vmem:[#allocation3 + $0x360] sm:$0xf] %v367_v62  ;;  %v7355_v21 = vld [vmem:[#allocation3 + $0xd8] sm:$0xf]  ;;  %2920 = vmatpush.bf16.msrb.mxu3 %v9149_v48  ;;  %v468_v62 = vpack.c.bf16 %v9904_v45, %v9904_v45 }
  0x75   : > { %11852 = vst [vmem:[#allocation27_spill] sm:$0xff] %v9876_v9  ;;  %v7356_v36 = vor.u32 %v9010_v16, %v7355_v21  ;;  %v7393_v8 = vld [vmem:[#allocation3 + $0x144] sm:$0xf0]  ;;  %v7684_v16 = vor.u32 %v9087_v58, %v7681_v0  ;;  %v9942_v58 = vld [vmem:[%s9627_s11 + $0xe0] sm:$0xff] }
  0x76   : > { %384 = vst [vmem:[#allocation3 + $0x144] sm:$0xf] %v9873_v5  ;;  %v9925_v21 = vld [vmem:[%s9627_s11 + $0x58] sm:$0xff] }
  0x77   : > { %498 = vst [vmem:[#allocation3 + $0x3d0] sm:$0xf] %v466_v1  ;;  %v252_v23 = vld [vmem:[#allocation2 + $0x13a] sm:$0x1]  ;;  %2671 = vmatmul.bf16.gmra.mxu0 %v7356_v36  ;;  %2805 = vmatmul.bf16.gmra.mxu3 %v7684_v16  ;;  %v9156_v16 = vld [vmem:[%s11788_s1 + $0x108] sm:$0xff] }
  0x78   : > { %11853 = vst [vmem:[#allocation28_spill] sm:$0xff] %v9880_v18  ;;  %v319_v27 = vld [vmem:[#allocation2 + $0x60] sm:$0xff]  ;;  %3010 = vmatpush.bf16.msrb.mxu0 %v9156_v16 }
  0x79   : > { %210 = vst [vmem:[#allocation2 + $0x79] sm:$0xff] %v9876_v9  ;;  %v9887_v28 = vpack.c.bf16 %v319_v27, %v319_v27  ;;  %v338_v31 = vld [vmem:[#allocation2 + $0x140] sm:$0xff]  ;;  %v7396_v27 = vor.u32 %v9015_v4, %v7393_v8 }
  0x7a   : > { %270 = vst [vmem:[#allocation2 + $0x138] sm:$0x1] %v252_v23  ;;  %v370_v38 = vpack.c.bf16 %v338_v31, %v338_v31  ;;  %v9929_v23 = vpack.c.bf16 %v9921_v2, %v9921_v2 }
  0x7b   : > { %211 = vst [vmem:[#allocation2 + $0x81] sm:$0xff] %v9880_v18  ;;  %v7679_v12 = vld [vmem:[#allocation3 + $0x360] sm:$0xf]  ;;  %2765 = vmatmul.bf16.gmra.mxu1 %v7396_v27  ;;  %v469_v27 = vpack.c.bf16 %v9942_v58, %v9942_v58 }
  0x7c   : > { %481 = vst [vmem:[#allocation3 + $0x16c] sm:$0xf] %v9884_v19  ;;  %v7680_v36 = vor.u32 %v9091_v13, %v7679_v12  ;;  %v9148_v13 = vld [vmem:[%s11788_s1 + $0xc8] sm:$0xff] }
  0x7d   : > { %383 = vst [vmem:[#allocation3 + $0x120] sm:$0xf] %v9887_v28  ;;  %2921 = vmatpush.bf16.msrb.mxu3 %v9148_v13 }
  0x7e   : > { %11854 = vst [vmem:[#allocation29_spill] sm:$0xff] %v9900_v40 }
  0x7f   : > { %402 = vst [vmem:[#allocation3 + $0x3cc] sm:$0xf] %v370_v38  ;;  %2716 = vmatmul.bf16.gmra.mxu2 %v7680_v36  ;;  %v9170_v36 = vld [vmem:[%s11788_s1 + $0x178] sm:$0xff] }
  0x80   : > { %482 = vst [vmem:[#allocation3 + $0x190] sm:$0xf] %v9892_v33  ;;  %v244_v46 = vld [vmem:[#allocation2 + $0x7a] sm:$0x1]  ;;  %3093 = vmatpush.bf16.msrb.mxu1 %v9170_v36 }
  0x81   : > { %11855 = vst [vmem:[#allocation30_spill] sm:$0xff] %v9904_v45  ;;  %v337_v57 = vld [vmem:[#allocation2 + $0x138] sm:$0xff] }
  0x82   : > { %228 = vst [vmem:[#allocation2 + $0x151] sm:$0xff] %v9900_v40  ;;  %v369_v59 = vpack.c.bf16 %v337_v57, %v337_v57  ;;  %v322_v60 = vld [vmem:[#allocation2 + $0x80] sm:$0xff]  ;;  %v9977_v40 = vld [vmem:[%s9627_s11 + $0x68] sm:$0xff] }
  0x83   : > { %262 = vst [vmem:[#allocation2 + $0x78] sm:$0x1] %v244_v46  ;;  %v9918_v1 = vpack.c.bf16 %v322_v60, %v322_v60  ;;  %v9019_v46 = vld [vmem:[#allocation3 + $0x140] sm:$0xf0]  ;;  %v9140_v60 = vld [vmem:[%s11788_s1 + $0x88] sm:$0xff] }
  0x84   : > { %229 = vst [vmem:[#allocation2 + $0x159] sm:$0xff] %v9904_v45  ;;  %v7391_v39 = vld [vmem:[#allocation3 + $0x120] sm:$0xf]  ;;  %2832 = vmatpush.bf16.msrb.mxu2 %v9140_v60 }
  0x85   : > { %499 = vst [vmem:[#allocation3 + $0x3f4] sm:$0xf] %v467_v54  ;;  %v9937_v54 = vpack.c.bf16 %v9925_v21, %v9925_v21 }
  0x86   : > { %11856 = vst [vmem:[#allocation31_spill] sm:$0xff] %v9921_v2 }
  0x87   : > { %401 = vst [vmem:[#allocation3 + $0x3a8] sm:$0xf] %v369_v59  ;;  %v7392_v59 = vor.u32 %v9019_v46, %v7391_v39  ;;  %v9096_v39 = vld [vmem:[#allocation3 + $0x3ac] sm:$0xf]  ;;  %v7717_v46 = vld [vmem:[#allocation3 + $0x3cc] sm:$0xf0] }
  0x88   : > { %386 = vst [vmem:[#allocation3 + $0x18c] sm:$0xf] %v9918_v1  ;;  %v7429_v60 = vld [vmem:[#allocation3 + $0x18c] sm:$0xf0] }
  0x89   : > { %500 = vst [vmem:[#allocation3 + $0x418] sm:$0xf] %v468_v62  ;;  %v253_v31 = vld [vmem:[#allocation2 + $0x152] sm:$0x1]  ;;  %v9949_v62 = vld [vmem:[%s9627_s11 + $0xe8] sm:$0xff]  ;;  %2676 = vmatmul.bf16.gmra.mxu0 %v7392_v59 }
  0x8a   : > { %11857 = vst [vmem:[#allocation32_spill] sm:$0xff] %v9925_v21  ;;  %v321_v38 = vld [vmem:[#allocation2 + $0x78] sm:$0xff] }
  0x8b   : > { %212 = vst [vmem:[#allocation2 + $0x91] sm:$0xff] %v9921_v2  ;;  %v9932_v48 = vpack.c.bf16 %v321_v38, %v321_v38  ;;  %v340_v51 = vld [vmem:[#allocation2 + $0x158] sm:$0xff]  ;;  %v470_v38 = vpack.c.bf16 %v9949_v62, %v9949_v62 }
  0x8c   : > { %271 = vst [vmem:[#allocation2 + $0x150] sm:$0x1] %v253_v31  ;;  %v372_v57 = vpack.c.bf16 %v340_v51, %v340_v51  ;;  %v9024_v51 = vld [vmem:[#allocation3 + $0x16c] sm:$0xf] }
  0x8d   : > { %213 = vst [vmem:[#allocation2 + $0x99] sm:$0xff] %v9925_v21  ;;  %v9100_v59 = vld [vmem:[#allocation3 + $0x3c8] sm:$0xf0] }
  0x8e   : > { %483 = vst [vmem:[#allocation3 + $0x1b4] sm:$0xf] %v9929_v23 }
  0x8f   : > { %385 = vst [vmem:[#allocation3 + $0x168] sm:$0xf] %v9932_v48 }
  0x90   : > { %11858 = vst [vmem:[#allocation33_spill] sm:$0xff] %v9942_v58 }
  0x91   : > { %404 = vst [vmem:[#allocation3 + $0x414] sm:$0xf] %v372_v57  ;;  %v9971_v57 = vld [vmem:[%s9627_s11 + $0x60] sm:$0xff] }
  0x92   : > { %484 = vst [vmem:[#allocation3 + $0x1d8] sm:$0xf] %v9937_v54  ;;  %v245_v0 = vld [vmem:[#allocation2 + $0x92] sm:$0x1] }
  0x93   : > { %11859 = vst [vmem:[#allocation34_spill] sm:$0xff] %v9949_v62  ;;  %v339_v4 = vld [vmem:[#allocation2 + $0x150] sm:$0xff] }
  0x94   : > { %230 = vst [vmem:[#allocation2 + $0x169] sm:$0xff] %v9942_v58  ;;  %v371_v8 = vpack.c.bf16 %v339_v4, %v339_v4  ;;  %v324_v12 = vld [vmem:[#allocation2 + $0x98] sm:$0xff] }
  0x95   : > { %263 = vst [vmem:[#allocation2 + $0x90] sm:$0x1] %v245_v0  ;;  %v9961_v31 = vpack.c.bf16 %v324_v12, %v324_v12  ;;  %v7715_v0 = vld [vmem:[#allocation3 + $0x3a8] sm:$0xf]  ;;  %v7720_v12 = vor.u32 %v9096_v39, %v7717_v46  ;;  %v9028_v39 = vld [vmem:[#allocation3 + $0x188] sm:$0xf0] }
  0x96   : > { %231 = vst [vmem:[#allocation2 + $0x171] sm:$0xff] %v9949_v62  ;;  %v7716_v45 = vor.u32 %v9100_v59, %v7715_v0  ;;  %v9169_v59 = vld [vmem:[%s11788_s1 + $0x170] sm:$0xff] }
  0x97   : > { %237 = vst [vmem:[#allocation2 + $0x199] sm:$0xff] %v9942_v58  ;;  %2810 = vmatmul.bf16.gmra.mxu3 %v7720_v12  ;;  %3094 = vmatpush.bf16.msrb.mxu1 %v9169_v59  ;;  %v9147_v12 = vld [vmem:[%s11788_s1 + $0xc0] sm:$0xff] }
  0x98   : > { %403 = vst [vmem:[#allocation3 + $0x3f0] sm:$0xf] %v371_v8  ;;  %v7432_v8 = vor.u32 %v9024_v51, %v7429_v60  ;;  %2721 = vmatmul.bf16.gmra.mxu2 %v7716_v45  ;;  %v9139_v51 = vld [vmem:[%s11788_s1 + $0x80] sm:$0xff]  ;;  %2922 = vmatpush.bf16.msrb.mxu3 %v9147_v12 }
  0x99   : > { %388 = vst [vmem:[#allocation3 + $0x1d4] sm:$0xf] %v9961_v31  ;;  %2833 = vmatpush.bf16.msrb.mxu2 %v9139_v51  ;;  %v276_v12 = vld [vmem:[#allocation2 + $0x27] sm:$0x1] }
  0x9a   : > { %11860 = vst [vmem:[#allocation35_spill] sm:$0xff] %v9971_v57  ;;  %2770 = vmatmul.bf16.gmra.mxu1 %v7432_v8  ;;  %v9168_v8 = vld [vmem:[%s11788_s1 + $0x168] sm:$0xff] }
  0x9b   : > { %501 = vst [vmem:[#allocation3 + $0x43c] sm:$0xf] %v469_v27  ;;  %v254_v4 = vld [vmem:[#allocation2 + $0x16a] sm:$0x1]  ;;  %v9982_v27 = vpack.c.bf16 %v9971_v57, %v9971_v57  ;;  %3095 = vmatpush.bf16.msrb.mxu1 %v9168_v8 }
  0x9c   : > { %502 = vst [vmem:[#allocation3 + $0x460] sm:$0xf] %v470_v38  ;;  %v323_v58 = vld [vmem:[#allocation2 + $0x90] sm:$0xff]  ;;  %v7427_v38 = vld [vmem:[#allocation3 + $0x168] sm:$0xf] }
  0x9d   : > { %238 = vst [vmem:[#allocation2 + $0x1a1] sm:$0xff] %v9949_v62  ;;  %v9974_v13 = vpack.c.bf16 %v323_v58, %v323_v58  ;;  %v342_v16 = vld [vmem:[#allocation2 + $0x170] sm:$0xff]  ;;  %v9987_v58 = vpack.c.bf16 %v9977_v40, %v9977_v40  ;;  %v7428_v46 = vor.u32 %v9028_v39, %v7427_v38  ;;  %v503_v38 = vld [vmem:[#allocation2 + $0x2] sm:$0xff] }
  0x9e   : > { %272 = vst [vmem:[#allocation2 + $0x168] sm:$0x1] %v254_v4  ;;  %v374_v36 = vpack.c.bf16 %v342_v16, %v342_v16  ;;  %v275_v4 = vld [vmem:[#allocation2 + $0xf] sm:$0x1]  ;;  %v9105_v16 = vld [vmem:[#allocation3 + $0x3f4] sm:$0xf]  ;;  %v535_v59 = vpack.c.bf16 %v503_v38, %v503_v38 }
  0x9f   : > { %11861 = vst [vmem:[#allocation36_spill] sm:$0xff] %v9977_v40  ;;  %2681 = vmatmul.bf16.gmra.mxu0 %v7428_v46  ;;  %v7753_v39 = vld [vmem:[#allocation3 + $0x414] sm:$0xf0]  ;;  %v9033_v46 = vld [vmem:[#allocation3 + $0x1b4] sm:$0xf] }
  0xa0   : > { %214 = vst [vmem:[#allocation2 + $0xa9] sm:$0xff] %v9971_v57  ;;  %v7756_v8 = vor.u32 %v9105_v16, %v7753_v39  ;;  %v9037_v62 = vld [vmem:[#allocation3 + $0x1d0] sm:$0xf0]  ;;  %v9165_v39 = vld [vmem:[%s11788_s1 + $0x150] sm:$0xff] }
  0xa1   : > { %387 = vst [vmem:[#allocation3 + $0x1b0] sm:$0xf] %v9974_v13 }
  0xa2   : > { %406 = vst [vmem:[#allocation3 + $0x45c] sm:$0xf] %v374_v36 }
  0xa3   : > { %215 = vst [vmem:[#allocation2 + $0xb1] sm:$0xff] %v9977_v40 }
  0xa4   : > { %485 = vst [vmem:[#allocation3 + $0x1fc] sm:$0xf] %v9982_v27 }
  0xa5   : > { %486 = vst [vmem:[#allocation3 + $0x220] sm:$0xf] %v9987_v58  ;;  %v341_v60 = vld [vmem:[#allocation2 + $0x168] sm:$0xff] }
  0xa6   : > { %663 = vst [vmem:[#allocation3 + $0xc] sm:$0xf] %v9768_v26  ;;  %v373_v0 = vpack.c.bf16 %v341_v60, %v341_v60  ;;  %v9155_v26 = vld [vmem:[%s11788_s1 + $0x100] sm:$0xff] }
  0xa7   : > { %v246_v45 = vld [vmem:[#allocation2 + $0xaa] sm:$0x1]  ;;  %664 = vst [vmem:[#allocation3 + $0x30] sm:$0xf] %v9751_v3  ;;  %v9167_v3 = vld [vmem:[%s11788_s1 + $0x160] sm:$0xff]  ;;  %3011 = vmatpush.bf16.msrb.mxu0 %v9155_v26  ;;  %2815 = vmatmul.bf16.gmra.mxu3 %v7756_v8 }
  0xa8   : > { %264 = vst [vmem:[#allocation2 + $0xa8] sm:$0x1] %v246_v45  ;;  %v9109_v60 = vld [vmem:[#allocation3 + $0x410] sm:$0xf0]  ;;  %v7751_v45 = vld [vmem:[#allocation3 + $0x3f0] sm:$0xf]  ;;  %3096 = vmatpush.bf16.msrb.mxu1 %v9167_v3 }
  0xa9   : > { %405 = vst [vmem:[#allocation3 + $0x438] sm:$0xf] %v373_v0  ;;  %v7465_v0 = vld [vmem:[#allocation3 + $0x1d4] sm:$0xf0]  ;;  %v7752_v38 = vor.u32 %v9109_v60, %v7751_v45  ;;  %v9118_v45 = vld [vmem:[#allocation3 + $0x458] sm:$0xf0] }
  0xaa   : > { %v326_v36 = vld [vmem:[#allocation2 + $0xb0] sm:$0xff]  ;;  %293 = vst [vmem:[#allocation2 + $0x11] sm:$0x1] %v275_v4  ;;  %v9166_v4 = vld [vmem:[%s11788_s1 + $0x158] sm:$0xff] }
  0xab   : > { %v10012_v51 = vpack.c.bf16 %v326_v36, %v326_v36  ;;  %759 = vst [vmem:[#allocation3 + $0x10] sm:$0xf] %v9715_v42  ;;  %v7468_v36 = vor.u32 %v9033_v46, %v7465_v0  ;;  %2726 = vmatmul.bf16.gmra.mxu2 %v7752_v38  ;;  %v791_v46 = vld [vmem:[#allocation2 + $0x1a] sm:$0xff]  ;;  %v7789_v0 = vld [vmem:[#allocation3 + $0x45c] sm:$0xf0] }
  0xac   : > { %760 = vst [vmem:[#allocation3 + $0x34] sm:$0xf] %v9726_v49  ;;  %v7463_v49 = vld [vmem:[#allocation3 + $0x1b0] sm:$0xf]  ;;  %3097 = vmatpush.bf16.msrb.mxu1 %v9166_v4 }
  0xad   : > { %390 = vst [vmem:[#allocation3 + $0x21c] sm:$0xf] %v10012_v51  ;;  %2775 = vmatmul.bf16.gmra.mxu1 %v7468_v36  ;;  %v7464_v3 = vor.u32 %v9037_v62, %v7463_v49  ;;  %v9164_v62 = vld [vmem:[%s11788_s1 + $0x148] sm:$0xff]  ;;  %v698_v8 = vld [vmem:[#allocation2 + $0x39] sm:$0xff]  ;;  %v7501_v36 = vld [vmem:[#allocation3 + $0x21c] sm:$0xf0] }
  0xae   : > { %567 = vst [vmem:[#allocation3 + $0x8] sm:$0xf] %v535_v59  ;;  %v730_v38 = vpack.c.bf16 %v698_v8, %v698_v8  ;;  %v277_v49 = vld [vmem:[#allocation2 + $0x3f] sm:$0x1] }
  0xaf   : > { %v325_v26 = vld [vmem:[#allocation2 + $0xa8] sm:$0xff]  ;;  %294 = vst [vmem:[#allocation2 + $0x29] sm:$0x1] %v276_v12  ;;  %2686 = vmatmul.bf16.gmra.mxu0 %v7464_v3  ;;  %v697_v12 = vld [vmem:[#allocation2 + $0x31] sm:$0xff] }
  0xb0   : > { %v10020_v42 = vpack.c.bf16 %v325_v26, %v325_v26  ;;  %665 = vst [vmem:[#allocation3 + $0x54] sm:$0xf] %v9783_v43  ;;  %v9178_v43 = vld [vmem:[%s11788_s1 + $0x1b8] sm:$0xff]  ;;  %3098 = vmatpush.bf16.msrb.mxu1 %v9165_v39  ;;  %v7787_v4 = vld [vmem:[#allocation3 + $0x438] sm:$0xf]  ;;  %v729_v26 = vpack.c.bf16 %v697_v12, %v697_v12 }
  0xb1   : > { %v504_v47 = vld [vmem:[#allocation2 + $0xa] sm:$0xff]  ;;  %666 = vst [vmem:[#allocation3 + $0x78] sm:$0xf] %v9760_v17  ;;  %3182 = vmatpush.bf16.msra.mxu2 %v9178_v43  ;;  %v9186_v17 = vld [vmem:[%s11788_s1 + $0x1f8] sm:$0xff]  ;;  %v7788_v43 = vor.u32 %v9118_v45, %v7787_v4  ;;  %v278_v45 = vld [vmem:[#allocation2 + $0x57] sm:$0x1] }
  0xb2   : > { %389 = vst [vmem:[#allocation3 + $0x1f8] sm:$0xf] %v10020_v42  ;;  %v536_v16 = vpack.c.bf16 %v504_v47, %v504_v47  ;;  %v823_v47 = vpack.c.bf16 %v791_v46, %v791_v46  ;;  %3271 = vmatpush.bf16.msra.mxu3 %v9186_v17  ;;  %v9194_v3 = vld [vmem:[%s11788_s1 + $0x238] sm:$0xff]  ;;  %v7263_v8 = vld [vmem:[#allocation3 + $0x10] sm:$0xf] }
  0xb3   : > { %667 = vst [vmem:[#allocation3 + $0x9c] sm:$0xf] %v9850_v14  ;;  %v9114_v14 = vld [vmem:[#allocation3 + $0x43c] sm:$0xf]  ;;  %3360 = vmatpush.bf16.msra.mxu0 %v9194_v3  ;;  %v8985_v4 = vld [vmem:[#allocation3 + $0x30] sm:$0xf0] }
  0xb4   : > { %568 = vst [vmem:[#allocation3 + $0x2c] sm:$0xf] %v536_v16  ;;  %3099 = vmatpush.bf16.msrb.mxu1 %v9164_v62  ;;  %v7792_v16 = vor.u32 %v9114_v14, %v7789_v0 }
  0xb5   : > { %668 = vst [vmem:[#allocation3 + $0xc0] sm:$0xf] %v9828_v20  ;;  %v9042_v20 = vld [vmem:[#allocation3 + $0x1fc] sm:$0xf]  ;;  %v7255_v14 = vld [vmem:[#allocation3 + $0x8] sm:$0xf] }
  0xb6   : > { %v792_v59 = vld [vmem:[#allocation2 + $0x22] sm:$0xff]  ;;  %763 = vst [vmem:[#allocation3 + $0xa0] sm:$0xf] %v9800_v52  ;;  %v7504_v39 = vor.u32 %v9042_v20, %v7501_v36  ;;  %v2746_v20 = vpop.f32.mrf.mxu1  ;;  %v2786_v36 = vpop.f32.mrf.mxu3 }
  0xb7   : > { %v824_v60 = vpack.c.bf16 %v792_v59, %v792_v59  ;;  %855 = vst [vmem:[#allocation3 + $0x14] sm:$0xf] %v823_v47  ;;  %v9163_v52 = vld [vmem:[%s11788_s1 + $0x140] sm:$0xff]  ;;  %v9046_v59 = vld [vmem:[#allocation3 + $0x218] sm:$0xf0]  ;;  %2820 = vmatmul.bf16.gmra.mxu3 %v7792_v16  ;;  %v9185_v16 = vld [vmem:[%s11788_s1 + $0x1f0] sm:$0xff] }
  0xb8   : > { %569 = vst [vmem:[#allocation3 + $0x50] sm:$0xf] %v823_v47  ;;  %3100 = vmatpush.bf16.msrb.mxu1 %v9163_v52  ;;  %v793_v47 = vld [vmem:[#allocation2 + $0x32] sm:$0xff]  ;;  %3272 = vmatpush.bf16.msra.mxu3 %v9185_v16  ;;  %v8989_v3 = vld [vmem:[#allocation3 + $0x54] sm:$0xf] }
  0xb9   : > { %856 = vst [vmem:[#allocation3 + $0x38] sm:$0xf] %v824_v60  ;;  %v7499_v46 = vld [vmem:[#allocation3 + $0x1f8] sm:$0xf]  ;;  %v825_v17 = vpack.c.bf16 %v793_v47, %v793_v47  ;;  %v279_v47 = vld [vmem:[#allocation2 + $0x6f] sm:$0x1] }
  0xba   : > { %570 = vst [vmem:[#allocation3 + $0x74] sm:$0xf] %v824_v60 }
  0xbb   : > { %764 = vst [vmem:[#allocation3 + $0xc4] sm:$0xf] %v9805_v53  ;;  %2731 = vmatmul.bf16.gmra.mxu2 %v7788_v43  ;;  %v7500_v53 = vor.u32 %v9046_v59, %v7499_v46 }
  0xbc   : > { %761 = vst [vmem:[#allocation3 + $0x58] sm:$0xf] %v729_v26  ;;  %v795_v26 = vld [vmem:[#allocation2 + $0x4a] sm:$0xff] }
  0xbd   : > { %762 = vst [vmem:[#allocation3 + $0x7c] sm:$0xf] %v730_v38  ;;  %2780 = vmatmul.bf16.gmra.mxu1 %v7504_v39  ;;  %v827_v52 = vpack.c.bf16 %v795_v26, %v795_v26  ;;  %v7293_v39 = vld [vmem:[#allocation3 + $0x74] sm:$0xf0] }
  0xbe   : > { %295 = vst [vmem:[#allocation2 + $0x41] sm:$0x1] %v277_v49  ;;  %v8981_v0 = vld [vmem:[#allocation3 + $0x14] sm:$0xf]  ;;  %v2788_v46 = vpop.f32.mrf.mxu3 }
  0xbf   : > { %669 = vst [vmem:[#allocation3 + $0xe4] sm:$0xf] %v9887_v28  ;;  %2691 = vmatmul.bf16.gmra.mxu0 %v7500_v53  ;;  %v8980_v28 = vld [vmem:[#allocation3 + $0xc] sm:$0xf]  ;;  %v7291_v59 = vld [vmem:[#allocation3 + $0x50] sm:$0xf] }
  0xc0   : > { %670 = vst [vmem:[#allocation3 + $0x108] sm:$0xf] %v9873_v5  ;;  %v7257_v5 = vld [vmem:[#allocation3 + $0x2c] sm:$0xf0] }
  0xc1   : > { %765 = vst [vmem:[#allocation3 + $0xe8] sm:$0xf] %v9839_v30  ;;  %v7265_v30 = vld [vmem:[#allocation3 + $0x34] sm:$0xf0]  ;;  %v8993_v53 = vld [vmem:[#allocation3 + $0x70] sm:$0xf0] }
  0xc2   : > { %766 = vst [vmem:[#allocation3 + $0x10c] sm:$0xf] %v9848_v41  ;;  %v8984_v41 = vld [vmem:[#allocation3 + $0x28] sm:$0xf0] }
  0xc3   : > { %671 = vst [vmem:[#allocation3 + $0x12c] sm:$0xf] %v9932_v48  ;;  %v7260_v48 = vor.u32 %v8980_v28, %v7257_v5  ;;  %v7256_v12 = vor.u32 %v8984_v41, %v7255_v14 }
  0xc4   : > { %672 = vst [vmem:[#allocation3 + $0x150] sm:$0xf] %v9918_v1  ;;  %v7268_v1 = vor.u32 %v8981_v0, %v7265_v30  ;;  %v7292_v30 = vor.u32 %v8993_v53, %v7291_v59  ;;  %v8994_v41 = vld [vmem:[#allocation3 + $0x78] sm:$0xf0] }
  0xc5   : > { %v794_v62 = vld [vmem:[#allocation2 + $0x3a] sm:$0xff]  ;;  %857 = vst [vmem:[#allocation3 + $0x5c] sm:$0xf] %v825_v17 }
  0xc6   : > { %v826_v60 = vpack.c.bf16 %v794_v62, %v794_v62  ;;  %571 = vst [vmem:[#allocation3 + $0x98] sm:$0xf] %v825_v17  ;;  %v7296_v62 = vor.u32 %v8989_v3, %v7293_v39  ;;  %v280_v39 = vld [vmem:[#allocation2 + $0x87] sm:$0x1] }
  0xc7   : > { %767 = vst [vmem:[#allocation3 + $0x130] sm:$0xf] %v9884_v19  ;;  %2923 = vmatmul.bf16.vlgmr.msrb.gmra.mxu3 %v7260_v48  ;;  %v7264_v19 = vor.u32 %v8985_v4, %v7263_v8 }
  0xc8   : > { %858 = vst [vmem:[#allocation3 + $0x80] sm:$0xf] %v826_v60 }
  0xc9   : > { %572 = vst [vmem:[#allocation3 + $0xbc] sm:$0xf] %v826_v60  ;;  %v9193_v60 = vld [vmem:[%s11788_s1 + $0x230] sm:$0xff] }
  0xca   : > { %768 = vst [vmem:[#allocation3 + $0x154] sm:$0xf] %v9892_v33  ;;  %v2657_v33 = vpop.f32.mrf.mxu0  ;;  %3361 = vmatpush.bf16.msra.mxu0 %v9193_v60  ;;  %v9003_v60 = vld [vmem:[#allocation3 + $0xc0] sm:$0xf0] }
  0xcb   : > { %296 = vst [vmem:[#allocation2 + $0x59] sm:$0x1] %v278_v45  ;;  %2834 = vmatmul.bf16.vlgmr.msrb.gmra.mxu2 %v7256_v12 }
  0xcc   : > { %673 = vst [vmem:[#allocation3 + $0x174] sm:$0xf] %v9974_v13  ;;  %v10060_v13 = vadd.f32 %v2746_v20, %v2657_v33  ;;  %v797_v20 = vld [vmem:[#allocation2 + $0x62] sm:$0xff] }
  0xcd   : > { %674 = vst [vmem:[#allocation3 + $0x198] sm:$0xf] %v9961_v31  ;;  %3101 = vmatmul.bf16.vlgmr.msrb.gmra.mxu1 %v7268_v1  ;;  %v9177_v31 = vld [vmem:[%s11788_s1 + $0x1b0] sm:$0xff]  ;;  %v2791_v1 = vpop.f32.mrf.mxu3  ;;  %v829_v4 = vpack.c.bf16 %v797_v20, %v797_v20  ;;  %v7327_v16 = vld [vmem:[#allocation3 + $0x98] sm:$0xf] }
  0xce   : > { %769 = vst [vmem:[#allocation3 + $0x178] sm:$0xf] %v9929_v23  ;;  %v2697_v23 = vpop.f32.mrf.mxu2  ;;  %3183 = vmatpush.bf16.msra.mxu2 %v9177_v31  ;;  %v8998_v31 = vld [vmem:[#allocation3 + $0x9c] sm:$0xf] }
  0xcf   : > { %770 = vst [vmem:[#allocation3 + $0x19c] sm:$0xf] %v9937_v54  ;;  %3012 = vmatmul.bf16.vlgmr.msrb.gmra.mxu0 %v7264_v19  ;;  %v10067_v54 = vadd.f32 %v2786_v36, %v2697_v23  ;;  %v7301_v43 = vld [vmem:[#allocation3 + $0x7c] sm:$0xf0] }
  0xd0   : > { %675 = vst [vmem:[#allocation3 + $0x1bc] sm:$0xf] %v10020_v42  ;;  %v2748_v42 = vpop.f32.mrf.mxu1  ;;  %v9002_v3 = vld [vmem:[#allocation3 + $0xb8] sm:$0xf0] }
  0xd1   : > { %676 = vst [vmem:[#allocation3 + $0x1e0] sm:$0xf] %v10012_v51  ;;  %v8990_v51 = vld [vmem:[#allocation3 + $0x5c] sm:$0xf] }
  0xd2   : > { %v796_v38 = vld [vmem:[#allocation2 + $0x52] sm:$0xff]  ;;  %771 = vst [vmem:[#allocation3 + $0x1c0] sm:$0xf] %v9982_v27  ;;  %v2659_v27 = vpop.f32.mrf.mxu0  ;;  %v7304_v5 = vor.u32 %v8990_v51, %v7301_v43 }
  0xd3   : > { %v828_v49 = vpack.c.bf16 %v796_v38, %v796_v38  ;;  %859 = vst [vmem:[#allocation3 + $0xa4] sm:$0xf] %v827_v52  ;;  %v10073_v17 = vadd.f32 %v2748_v42, %v2659_v27  ;;  %v7329_v38 = vld [vmem:[#allocation3 + $0xbc] sm:$0xf0] }
  0xd4   : > { %573 = vst [vmem:[#allocation3 + $0xe0] sm:$0xf] %v827_v52  ;;  %v7332_v43 = vor.u32 %v8998_v31, %v7329_v38 }
  0xd5   : > { %860 = vst [vmem:[#allocation3 + $0xc8] sm:$0xf] %v828_v49  ;;  %v2793_v42 = vpop.f32.mrf.mxu3 }
  0xd6   : > { %574 = vst [vmem:[#allocation3 + $0x104] sm:$0xf] %v828_v49  ;;  %v2699_v28 = vpop.f32.mrf.mxu2 }
  0xd7   : > { %772 = vst [vmem:[#allocation3 + $0x1e4] sm:$0xf] %v9987_v58  ;;  %v10078_v14 = vadd.f32 %v2788_v46, %v2699_v28  ;;  %v7299_v58 = vld [vmem:[#allocation3 + $0x58] sm:$0xf]  ;;  %2928 = vmatmul.bf16.gmra.mxu3 %v7296_v62  ;;  %v7335_v62 = vld [vmem:[#allocation3 + $0xa0] sm:$0xf] }
  0xd8   : > { %297 = vst [vmem:[#allocation2 + $0x71] sm:$0x1] %v279_v47  ;;  %v2751_v0 = vpop.f32.mrf.mxu1  ;;  %v7300_v45 = vor.u32 %v8994_v41, %v7299_v58  ;;  %v7328_v47 = vor.u32 %v9002_v3, %v7327_v16  ;;  %v7336_v28 = vor.u32 %v9003_v60, %v7335_v62  ;;  %v9176_v41 = vld [vmem:[%s11788_s1 + $0x1a8] sm:$0xff]  ;;  %v281_v16 = vld [vmem:[#allocation2 + $0x9f] sm:$0x1] }
  0xd9   : > { %861 = vst [vmem:[#allocation3 + $0xec] sm:$0xf] %v829_v4  ;;  %3184 = vmatpush.bf16.msra.mxu2 %v9176_v41  ;;  %v7371_v60 = vld [vmem:[#allocation3 + $0xe8] sm:$0xf] }
  0xda   : > { %v2662_v48 = vpop.f32.mrf.mxu0  ;;  %575 = vst [vmem:[#allocation3 + $0x128] sm:$0xf] %v829_v4  ;;  %v8999_v52 = vld [vmem:[#allocation3 + $0xa4] sm:$0xf] }
  0xdb   : > { %2839 = vmatmul.bf16.gmra.mxu2 %v7292_v30  ;;  %v10080_v12 = vadd.f32 %v2751_v0, %v2662_v48  ;;  %298 = vst [vmem:[#allocation2 + $0x89] sm:$0x1] %v280_v39  ;;  %v799_v30 = vld [vmem:[#allocation2 + $0x7a] sm:$0xff]  ;;  %v801_v41 = vld [vmem:[#allocation2 + $0x92] sm:$0xff] }
  0xdc   : > { %v7337_v23 = vld [vmem:[#allocation3 + $0xc4] sm:$0xf0]  ;;  %v831_v48 = vpack.c.bf16 %v799_v30, %v799_v30  ;;  %299 = vst [vmem:[#allocation2 + $0xa1] sm:$0x1] %v281_v16 }
  0xdd   : > { %3106 = vmatmul.bf16.gmra.mxu1 %v7304_v5  ;;  %v7340_v46 = vor.u32 %v8999_v52, %v7337_v23  ;;  %v2796_v0 = vpop.f32.mrf.mxu3 }
  0xde   : > { %v2702_v19 = vpop.f32.mrf.mxu2  ;;  %863 = vst [vmem:[#allocation3 + $0x134] sm:$0xf] %v831_v48 }
  0xdf   : > { %v798_v8 = vld [vmem:[#allocation2 + $0x6a] sm:$0xff]  ;;  %3017 = vmatmul.bf16.gmra.mxu0 %v7300_v45  ;;  %v10082_v36 = vadd.f32 %v2791_v1, %v2702_v19  ;;  %577 = vst [vmem:[#allocation3 + $0x170] sm:$0xf] %v831_v48 }
  0xe0   : > { %v830_v33 = vpack.c.bf16 %v798_v8, %v798_v8  ;;  %v2753_v26 = vpop.f32.mrf.mxu1  ;;  %v9184_v19 = vld [vmem:[%s11788_s1 + $0x1e8] sm:$0xff]  ;;  %v9008_v31 = vld [vmem:[#allocation3 + $0xec] sm:$0xf] }
  0xe1   : > { %3273 = vmatpush.bf16.msra.mxu3 %v9184_v19 }
  0xe2   : > { %862 = vst [vmem:[#allocation3 + $0x110] sm:$0xf] %v830_v33  ;;  %v2664_v49 = vpop.f32.mrf.mxu0  ;;  %v800_v45 = vld [vmem:[#allocation2 + $0x82] sm:$0xff] }
  0xe3   : > { %576 = vst [vmem:[#allocation3 + $0x14c] sm:$0xf] %v830_v33  ;;  %v10084_v51 = vadd.f32 %v2753_v26, %v2664_v49  ;;  %v832_v20 = vpack.c.bf16 %v800_v45, %v800_v45  ;;  %v9007_v33 = vld [vmem:[#allocation3 + $0xe4] sm:$0xf]  ;;  %v7365_v26 = vld [vmem:[#allocation3 + $0x104] sm:$0xf0] }
  0xe4   : > { %v7363_v49 = vld [vmem:[#allocation3 + $0xe0] sm:$0xf]  ;;  %v7368_v39 = vor.u32 %v9007_v33, %v7365_v26  ;;  %v802_v48 = vld [vmem:[#allocation2 + $0x9a] sm:$0xff] }
  0xe5   : > { %864 = vst [vmem:[#allocation3 + $0x158] sm:$0xf] %v832_v20  ;;  %v2798_v23 = vpop.f32.mrf.mxu3  ;;  %v9016_v26 = vld [vmem:[#allocation3 + $0x12c] sm:$0xf] }
  0xe6   : > { %v2704_v27 = vpop.f32.mrf.mxu2  ;;  %578 = vst [vmem:[#allocation3 + $0x194] sm:$0xf] %v832_v20 }
  0xe7   : > { %v10086_v59 = vadd.f32 %v2793_v42, %v2704_v27  ;;  %2933 = vmatmul.bf16.gmra.mxu3 %v7332_v43  ;;  %v9011_v42 = vld [vmem:[#allocation3 + $0x100] sm:$0xf0]  ;;  %v9192_v43 = vld [vmem:[%s11788_s1 + $0x228] sm:$0xff] }
  0xe8   : > { %v2756_v53 = vpop.f32.mrf.mxu1  ;;  %v7364_v62 = vor.u32 %v9011_v42, %v7363_v49  ;;  %3362 = vmatpush.bf16.msra.mxu0 %v9192_v43  ;;  %v7399_v42 = vld [vmem:[#allocation3 + $0x128] sm:$0xf] }
  0xe9   : > { %v7373_v38 = vld [vmem:[#allocation3 + $0x10c] sm:$0xf0] }
  0xea   : > { %v2667_v5 = vpop.f32.mrf.mxu0  ;;  %v9020_v16 = vld [vmem:[#allocation3 + $0x148] sm:$0xf0] }
  0xeb   : > { %2844 = vmatmul.bf16.gmra.mxu2 %v7328_v47  ;;  %v10088_v58 = vadd.f32 %v2756_v53, %v2667_v5 }
  0xed   : > { %3111 = vmatmul.bf16.gmra.mxu1 %v7340_v46  ;;  %v7376_v46 = vor.u32 %v9008_v31, %v7373_v38  ;;  %v2801_v30 = vpop.f32.mrf.mxu3  ;;  %v7401_v31 = vld [vmem:[#allocation3 + $0x14c] sm:$0xf0]  ;;  %v9017_v38 = vld [vmem:[#allocation3 + $0x134] sm:$0xf] }
  0xee   : > { %v2707_v1 = vpop.f32.mrf.mxu2 }
  0xef   : > { %3022 = vmatmul.bf16.gmra.mxu0 %v7336_v28  ;;  %v10093_v8 = vadd.f32 %v2796_v0, %v2707_v1  ;;  %v9012_v28 = vld [vmem:[#allocation3 + $0x108] sm:$0xf0]  ;;  %v833_v1 = vpack.c.bf16 %v801_v41, %v801_v41 }
  0xf0   : > { %v2758_v4 = vpop.f32.mrf.mxu1  ;;  %v7372_v5 = vor.u32 %v9012_v28, %v7371_v60  ;;  %v7400_v28 = vor.u32 %v9020_v16, %v7399_v42  ;;  %v9183_v16 = vld [vmem:[%s11788_s1 + $0x1e0] sm:$0xff] }
  0xf1   : > { %865 = vst [vmem:[#allocation3 + $0x17c] sm:$0xf] %v833_v1  ;;  %3274 = vmatpush.bf16.msra.mxu3 %v9183_v16  ;;  %v9191_v16 = vld [vmem:[%s11788_s1 + $0x220] sm:$0xff] }
  0xf2   : > { %v2669_v52 = vpop.f32.mrf.mxu0  ;;  %579 = vst [vmem:[#allocation3 + $0x1b8] sm:$0xf] %v833_v1  ;;  %v803_v1 = vld [vmem:[#allocation2 + $0xaa] sm:$0xff]  ;;  %3363 = vmatpush.bf16.msra.mxu0 %v9191_v16 }
  0xf3   : > { %v10098_v3 = vadd.f32 %v2758_v4, %v2669_v52  ;;  %v834_v4 = vpack.c.bf16 %v802_v48, %v802_v48  ;;  %v7409_v52 = vld [vmem:[#allocation3 + $0x154] sm:$0xf0] }
  0xf5   : > { %866 = vst [vmem:[#allocation3 + $0x1a0] sm:$0xf] %v834_v4  ;;  %v2803_v49 = vpop.f32.mrf.mxu3 }
  0xf6   : > { %v2709_v27 = vpop.f32.mrf.mxu2  ;;  %580 = vst [vmem:[#allocation3 + $0x1dc] sm:$0xf] %v834_v4  ;;  %v9175_v4 = vld [vmem:[%s11788_s1 + $0x1a0] sm:$0xff] }
  0xf7   : > { %v10103_v53 = vadd.f32 %v2798_v23, %v2709_v27  ;;  %2938 = vmatmul.bf16.gmra.mxu3 %v7368_v39  ;;  %v282_v39 = vld [vmem:[#allocation2 + $0xb7] sm:$0x1]  ;;  %v7404_v27 = vor.u32 %v9016_v26, %v7401_v31  ;;  %v835_v26 = vpack.c.bf16 %v803_v1, %v803_v1  ;;  %3185 = vmatpush.bf16.msra.mxu2 %v9175_v4 }
  0xf8   : > { %v2761_v47 = vpop.f32.mrf.mxu1  ;;  %300 = vst [vmem:[#allocation2 + $0xb9] sm:$0x1] %v282_v39 }
  0xf9   : > { %867 = vst [vmem:[#allocation3 + $0x1c4] sm:$0xf] %v835_v26 }
  0xfa   : > { %v2672_v0 = vpop.f32.mrf.mxu0  ;;  %581 = vst [vmem:[#allocation3 + $0x200] sm:$0xf] %v835_v26 }
  0xfb   : > { %2849 = vmatmul.bf16.gmra.mxu2 %v7364_v62  ;;  %v10105_v45 = vadd.f32 %v2761_v47, %v2672_v0  ;;  %v7412_v47 = vor.u32 %v9017_v38, %v7409_v52  ;;  %v9021_v0 = vld [vmem:[#allocation3 + $0x150] sm:$0xf0] }
  0xfc   : > { %v613_v52 = vld [vmem:[#allocation2 + $0xc0] sm:$0xff] }
  0xfd   : > { %3116 = vmatmul.bf16.gmra.mxu1 %v7376_v46  ;;  %v2806_v48 = vpop.f32.mrf.mxu3  ;;  %v645_v39 = vpack.c.bf16 %v613_v52, %v613_v52  ;;  %v9038_v61 = vld [vmem:[#allocation3 + $0x1d8] sm:$0xf0] }
  0xfe   : > { %v2712_v20 = vpop.f32.mrf.mxu2 }
  0xff   : > { %3027 = vmatmul.bf16.gmra.mxu0 %v7372_v5  ;;  %v10107_v19 = vadd.f32 %v2801_v30, %v2712_v20  ;;  %v7407_v5 = vld [vmem:[#allocation3 + $0x130] sm:$0xf]  ;;  %677 = vst [vmem:[#allocation3 + $0x204] sm:$0xf] %v645_v39 }
 0x100   : > { %v2763_v33 = vpop.f32.mrf.mxu1  ;;  %v7408_v30 = vor.u32 %v9021_v0, %v7407_v5  ;;  %v710_v5 = vld [vmem:[#allocation2 + $0xc9] sm:$0xff] }
 0x101   : > { %v9026_v0 = vld [vmem:[#allocation3 + $0x17c] sm:$0xf] }
 0x102   : > { %v2674_v23 = vpop.f32.mrf.mxu0 }
 0x103   : > { %v10109_v43 = vadd.f32 %v2763_v33, %v2674_v23  ;;  %v804_v33 = vld [vmem:[#allocation2 + $0xb2] sm:$0xff]  ;;  %v614_v23 = vld [vmem:[#allocation2 + $0xc8] sm:$0xff] }
 0x104   : > { %v836_v38 = vpack.c.bf16 %v804_v33, %v804_v33  ;;  %v9029_v33 = vld [vmem:[#allocation3 + $0x190] sm:$0xf0] }
 0x105   : > { %v2808_v4 = vpop.f32.mrf.mxu3 }
 0x106   : > { %v2714_v46 = vpop.f32.mrf.mxu2  ;;  %868 = vst [vmem:[#allocation3 + $0x1e8] sm:$0xf] %v836_v38 }
 0x107   : > { %v10111_v62 = vadd.f32 %v2803_v49, %v2714_v46  ;;  %2943 = vmatmul.bf16.gmra.mxu3 %v7404_v27  ;;  %v646_v27 = vpack.c.bf16 %v614_v23, %v614_v23  ;;  %v9025_v46 = vld [vmem:[#allocation3 + $0x174] sm:$0xf]  ;;  %582 = vst [vmem:[#allocation3 + $0x224] sm:$0xf] %v836_v38  ;;  %v9030_v38 = vld [vmem:[#allocation3 + $0x198] sm:$0xf0] }
 0x108   : > { %v2766_v60 = vpop.f32.mrf.mxu1 }
 0x109   : > { %678 = vst [vmem:[#allocation3 + $0x228] sm:$0xf] %v646_v27 }
 0x10a   : > { %v2677_v41 = vpop.f32.mrf.mxu0 }
 0x10b   : > { %2854 = vmatmul.bf16.gmra.mxu2 %v7400_v28  ;;  %v10113_v20 = vadd.f32 %v2766_v60, %v2677_v41  ;;  %v7435_v60 = vld [vmem:[#allocation3 + $0x170] sm:$0xf] }
 0x10c   : > { %v709_v28 = vld [vmem:[#allocation2 + $0xc1] sm:$0xff] }
 0x10d   : > { %3121 = vmatmul.bf16.gmra.mxu1 %v7412_v47  ;;  %v7437_v47 = vld [vmem:[#allocation3 + $0x194] sm:$0xf0]  ;;  %v741_v41 = vpack.c.bf16 %v709_v28, %v709_v28  ;;  %v7436_v28 = vor.u32 %v9029_v33, %v7435_v60 }
 0x10e   : > { %v2717_v31 = vpop.f32.mrf.mxu2  ;;  %v7440_v23 = vor.u32 %v9025_v46, %v7437_v47 }
 0x10f   : > { %3032 = vmatmul.bf16.gmra.mxu0 %v7408_v30  ;;  %v10118_v49 = vadd.f32 %v2806_v48, %v2717_v31  ;;  %v7445_v30 = vld [vmem:[#allocation3 + $0x19c] sm:$0xf0]  ;;  %v742_v48 = vpack.c.bf16 %v710_v5, %v710_v5  ;;  %v283_v31 = vld [vmem:[#allocation2 + $0xcf] sm:$0x1]  ;;  %773 = vst [vmem:[#allocation3 + $0x208] sm:$0xf] %v741_v41 }
 0x110   : > { %v2768_v42 = vpop.f32.mrf.mxu1  ;;  %v7448_v27 = vor.u32 %v9026_v0, %v7445_v30  ;;  %301 = vst [vmem:[#allocation2 + $0xd1] sm:$0x1] %v283_v31  ;;  %v7443_v5 = vld [vmem:[#allocation3 + $0x178] sm:$0xf] }
 0x111   : > { %774 = vst [vmem:[#allocation3 + $0x22c] sm:$0xf] %v742_v48  ;;  %v615_v48 = vld [vmem:[#allocation2 + $0xd8] sm:$0xff] }
 0x112   : > { %v2679_v1 = vpop.f32.mrf.mxu0 }
 0x113   : > { %v10123_v52 = vadd.f32 %v2768_v42, %v2679_v1  ;;  %v7444_v42 = vor.u32 %v9030_v38, %v7443_v5  ;;  %v805_v1 = vld [vmem:[#allocation2 + $0xc2] sm:$0xff]  ;;  %v9035_v38 = vld [vmem:[#allocation3 + $0x1c4] sm:$0xf] }
 0x114   : > { %v837_v41 = vpack.c.bf16 %v805_v1, %v805_v1  ;;  %v712_v5 = vld [vmem:[#allocation2 + $0xe1] sm:$0xff] }
 0x116   : > { %v2719_v39 = vpop.f32.mrf.mxu2  ;;  %869 = vst [vmem:[#allocation3 + $0x20c] sm:$0xf] %v837_v41 }
 0x117   : > { %v10128_v44 = vadd.f32 %v2808_v4, %v2719_v39  ;;  %2948 = vmatmul.bf16.gmra.mxu3 %v7440_v23  ;;  %v806_v30 = vld [vmem:[#allocation2 + $0xca] sm:$0xff]  ;;  %v616_v4 = vld [vmem:[#allocation2 + $0xe0] sm:$0xff]  ;;  %v647_v23 = vpack.c.bf16 %v615_v48, %v615_v48  ;;  %583 = vst [vmem:[#allocation3 + $0x248] sm:$0xf] %v837_v41 }
 0x118   : > { %v2771_v26 = vpop.f32.mrf.mxu1  ;;  %v838_v31 = vpack.c.bf16 %v806_v30, %v806_v30  ;;  %v648_v16 = vpack.c.bf16 %v616_v4, %v616_v4  ;;  %v9034_v39 = vld [vmem:[#allocation3 + $0x1bc] sm:$0xf]  ;;  %v284_v30 = vld [vmem:[#allocation2 + $0xe7] sm:$0x1] }
 0x119   : > { %679 = vst [vmem:[#allocation3 + $0x24c] sm:$0xf] %v647_v23 }
 0x11a   : > { %v2811_v47 = vpop.f32.mrf.mxu3  ;;  %870 = vst [vmem:[#allocation3 + $0x230] sm:$0xf] %v838_v31 }
 0x11b   : > { %2859 = vmatmul.bf16.gmra.mxu2 %v7436_v28  ;;  %v7471_v28 = vld [vmem:[#allocation3 + $0x1b8] sm:$0xf]  ;;  %680 = vst [vmem:[#allocation3 + $0x270] sm:$0xf] %v648_v16  ;;  %v7479_v16 = vld [vmem:[#allocation3 + $0x1c0] sm:$0xf] }
 0x11c   : > { %v2682_v46 = vpop.f32.mrf.mxu0  ;;  %584 = vst [vmem:[#allocation3 + $0x26c] sm:$0xf] %v838_v31  ;;  %v7472_v56 = vor.u32 %v9038_v61, %v7471_v28  ;;  %v617_v28 = vld [vmem:[#allocation2 + $0xf0] sm:$0xff] }
 0x11d   : > { %3126 = vmatmul.bf16.gmra.mxu1 %v7448_v27  ;;  %v10130_v63 = vadd.f32 %v2771_v26, %v2682_v46  ;;  %v7473_v27 = vld [vmem:[#allocation3 + $0x1dc] sm:$0xf0]  ;;  %v711_v26 = vld [vmem:[#allocation2 + $0xd9] sm:$0xff]  ;;  %302 = vst [vmem:[#allocation2 + $0xe9] sm:$0x1] %v284_v30 }
 0x11e   : > { %v2722_v0 = vpop.f32.mrf.mxu2  ;;  %v7481_v46 = vld [vmem:[#allocation3 + $0x1e4] sm:$0xf0]  ;;  %v743_v1 = vpack.c.bf16 %v711_v26, %v711_v26  ;;  %v7476_v41 = vor.u32 %v9034_v39, %v7473_v27  ;;  %v9039_v26 = vld [vmem:[#allocation3 + $0x1e0] sm:$0xf0] }
 0x11f   : > { %3037 = vmatmul.bf16.gmra.mxu0 %v7444_v42  ;;  %v10132_v60 = vadd.f32 %v2811_v47, %v2722_v0  ;;  %v744_v42 = vpack.c.bf16 %v712_v5, %v712_v5  ;;  %v7484_v37 = vor.u32 %v9035_v38, %v7481_v46  ;;  %v7480_v5 = vor.u32 %v9039_v26, %v7479_v16  ;;  %v807_v39 = vld [vmem:[#allocation2 + $0xda] sm:$0xff]  ;;  %v713_v16 = vld [vmem:[#allocation2 + $0xf1] sm:$0xff] }
 0x120   : > { %v2773_v33 = vpop.f32.mrf.mxu1  ;;  %775 = vst [vmem:[#allocation3 + $0x250] sm:$0xf] %v743_v1  ;;  %v839_v38 = vpack.c.bf16 %v807_v39, %v807_v39  ;;  %v618_v1 = vld [vmem:[#allocation2 + $0xf8] sm:$0xff] }
 0x121   : > { %776 = vst [vmem:[#allocation3 + $0x274] sm:$0xf] %v744_v42  ;;  %v650_v30 = vpack.c.bf16 %v618_v1, %v618_v1  ;;  %v714_v26 = vld [vmem:[#allocation2 + $0xf9] sm:$0xff] }
 0x122   : > { %v2813_v0 = vpop.f32.mrf.mxu3  ;;  %871 = vst [vmem:[#allocation3 + $0x254] sm:$0xf] %v839_v38 }
 0x123   : > { %585 = vst [vmem:[#allocation3 + $0x290] sm:$0xf] %v839_v38  ;;  %v9056_v6 = vld [vmem:[#allocation3 + $0x268] sm:$0xf0] }
 0x124   : > { %v2684_v47 = vpop.f32.mrf.mxu0  ;;  %v808_v61 = vld [vmem:[#allocation2 + $0xe2] sm:$0xff]  ;;  %682 = vst [vmem:[#allocation3 + $0x2b8] sm:$0xf] %v650_v30 }
 0x125   : > { %v10134_v48 = vadd.f32 %v2773_v33, %v2684_v47  ;;  %v9174_v33 = vld [vmem:[%s11788_s1 + $0x198] sm:$0xff]  ;;  %v840_v47 = vpack.c.bf16 %v808_v61, %v808_v61  ;;  %v9047_v61 = vld [vmem:[#allocation3 + $0x220] sm:$0xf0] }
 0x126   : > { %v2724_v4 = vpop.f32.mrf.mxu2  ;;  %3186 = vmatpush.bf16.msra.mxu2 %v9174_v33  ;;  %v746_v33 = vpack.c.bf16 %v714_v26, %v714_v26  ;;  %v7515_v26 = vld [vmem:[#allocation3 + $0x208] sm:$0xf] }
 0x127   : > { %v10136_v23 = vadd.f32 %v2813_v0, %v2724_v4  ;;  %2953 = vmatmul.bf16.gmra.mxu3 %v7476_v41  ;;  %v649_v0 = vpack.c.bf16 %v617_v28, %v617_v28  ;;  %v7509_v41 = vld [vmem:[#allocation3 + $0x224] sm:$0xf0]  ;;  %872 = vst [vmem:[#allocation3 + $0x278] sm:$0xf] %v840_v47  ;;  %v7507_v4 = vld [vmem:[#allocation3 + $0x200] sm:$0xf] }
 0x128   : > { %586 = vst [vmem:[#allocation3 + $0x2b4] sm:$0xf] %v840_v47  ;;  %v285_v28 = vld [vmem:[#allocation2 + $0xff] sm:$0x1] }
 0x129   : > { %681 = vst [vmem:[#allocation3 + $0x294] sm:$0xf] %v649_v0  ;;  %v9048_v47 = vld [vmem:[#allocation3 + $0x228] sm:$0xf0] }
 0x12a   : > { %v2776_v32 = vpop.f32.mrf.mxu1  ;;  %v2816_v55 = vpop.f32.mrf.mxu3  ;;  %778 = vst [vmem:[#allocation3 + $0x2bc] sm:$0xf] %v746_v33  ;;  %v619_v33 = vld [vmem:[#allocation2 + $0x108] sm:$0xff] }
 0x12b   : > { %2864 = vmatmul.bf16.gmra.mxu2 %v7472_v56  ;;  %303 = vst [vmem:[#allocation2 + $0x101] sm:$0x1] %v285_v28 }
 0x12c   : > { %v2687_v31 = vpop.f32.mrf.mxu0 }
 0x12d   : > { %3131 = vmatmul.bf16.gmra.mxu1 %v7484_v37  ;;  %v10141_v27 = vadd.f32 %v2776_v32, %v2687_v31  ;;  %v9182_v37 = vld [vmem:[%s11788_s1 + $0x1d8] sm:$0xff]  ;;  %v9043_v32 = vld [vmem:[#allocation3 + $0x204] sm:$0xf]  ;;  %v745_v31 = vpack.c.bf16 %v713_v16, %v713_v16  ;;  %v7508_v16 = vor.u32 %v9047_v61, %v7507_v4 }
 0x12e   : > { %v2727_v46 = vpop.f32.mrf.mxu2  ;;  %3275 = vmatpush.bf16.msra.mxu3 %v9182_v37  ;;  %v7512_v38 = vor.u32 %v9043_v32, %v7509_v41  ;;  %v9190_v37 = vld [vmem:[%s11788_s1 + $0x218] sm:$0xff] }
 0x12f   : > { %3042 = vmatmul.bf16.gmra.mxu0 %v7480_v5  ;;  %v10143_v42 = vadd.f32 %v2816_v55, %v2727_v46  ;;  %v9044_v55 = vld [vmem:[#allocation3 + $0x20c] sm:$0xf]  ;;  %v7517_v5 = vld [vmem:[#allocation3 + $0x22c] sm:$0xf0]  ;;  %777 = vst [vmem:[#allocation3 + $0x298] sm:$0xf] %v745_v31 }
 0x130   : > { %v7520_v25 = vor.u32 %v9044_v55, %v7517_v5  ;;  %3364 = vmatpush.bf16.msra.mxu0 %v9190_v37  ;;  %v9052_v37 = vld [vmem:[#allocation3 + $0x24c] sm:$0xf] }
 0x132   : > { %v2778_v56 = vpop.f32.mrf.mxu1  ;;  %v2818_v46 = vpop.f32.mrf.mxu3  ;;  %v810_v5 = vld [vmem:[#allocation2 + $0xfa] sm:$0xff] }
 0x133   : > { %v842_v28 = vpack.c.bf16 %v810_v5, %v810_v5  ;;  %v286_v5 = vld [vmem:[#allocation2 + $0x117] sm:$0x1] }
 0x134   : > { %v2689_v39 = vpop.f32.mrf.mxu0  ;;  %304 = vst [vmem:[#allocation2 + $0x119] sm:$0x1] %v286_v5 }
 0x135   : > { %v10148_v1 = vadd.f32 %v2778_v56, %v2689_v39  ;;  %v7516_v56 = vor.u32 %v9048_v47, %v7515_v26  ;;  %v809_v39 = vld [vmem:[#allocation2 + $0xf2] sm:$0xff]  ;;  %874 = vst [vmem:[#allocation3 + $0x2c0] sm:$0xf] %v842_v28  ;;  %v9053_v47 = vld [vmem:[#allocation3 + $0x254] sm:$0xf] }
 0x136   : > { %v2729_v0 = vpop.f32.mrf.mxu2  ;;  %v841_v31 = vpack.c.bf16 %v809_v39, %v809_v39  ;;  %v716_v26 = vld [vmem:[#allocation2 + $0x111] sm:$0xff]  ;;  %588 = vst [vmem:[#allocation3 + $0x2fc] sm:$0xf] %v842_v28 }
 0x137   : > { %v10153_v22 = vadd.f32 %v2818_v46, %v2729_v0  ;;  %2958 = vmatmul.bf16.gmra.mxu3 %v7512_v38  ;;  %v620_v46 = vld [vmem:[#allocation2 + $0x110] sm:$0xff]  ;;  %v651_v38 = vpack.c.bf16 %v619_v33, %v619_v33  ;;  %v7545_v0 = vld [vmem:[#allocation3 + $0x26c] sm:$0xf0] }
 0x138   : > { %873 = vst [vmem:[#allocation3 + $0x29c] sm:$0xf] %v841_v31 }
 0x139   : > { %587 = vst [vmem:[#allocation3 + $0x2d8] sm:$0xf] %v841_v31  ;;  %v7548_v31 = vor.u32 %v9052_v37, %v7545_v0  ;;  %v811_v37 = vld [vmem:[#allocation2 + $0x10a] sm:$0xff] }
 0x13a   : > { %v2781_v30 = vpop.f32.mrf.mxu1  ;;  %v2821_v41 = vpop.f32.mrf.mxu3  ;;  %683 = vst [vmem:[#allocation3 + $0x2dc] sm:$0xf] %v651_v38  ;;  %v843_v0 = vpack.c.bf16 %v811_v37, %v811_v37 }
 0x13b   : > { %2869 = vmatmul.bf16.gmra.mxu2 %v7508_v16  ;;  %v7543_v16 = vld [vmem:[#allocation3 + $0x248] sm:$0xf] }
 0x13c   : > { %v2692_v32 = vpop.f32.mrf.mxu0  ;;  %v7544_v57 = vor.u32 %v9056_v6, %v7543_v16  ;;  %v621_v6 = vld [vmem:[#allocation2 + $0x120] sm:$0xff]  ;;  %v622_v16 = vld [vmem:[#allocation2 + $0x128] sm:$0xff]  ;;  %875 = vst [vmem:[#allocation3 + $0x2e4] sm:$0xf] %v843_v0  ;;  %v7589_v37 = vld [vmem:[#allocation3 + $0x2bc] sm:$0xf0] }
 0x13d   : > { %3136 = vmatmul.bf16.gmra.mxu1 %v7520_v25  ;;  %v10155_v7 = vadd.f32 %v2781_v30, %v2692_v32  ;;  %v652_v25 = vpack.c.bf16 %v620_v46, %v620_v46  ;;  %v715_v30 = vld [vmem:[#allocation2 + $0x109] sm:$0xff]  ;;  %589 = vst [vmem:[#allocation3 + $0x320] sm:$0xf] %v843_v0 }
 0x13e   : > { %v2732_v55 = vpop.f32.mrf.mxu2  ;;  %v7553_v32 = vld [vmem:[#allocation3 + $0x274] sm:$0xf0]  ;;  %v747_v39 = vpack.c.bf16 %v715_v30, %v715_v30  ;;  %v9057_v30 = vld [vmem:[#allocation3 + $0x270] sm:$0xf0]  ;;  %v287_v0 = vld [vmem:[#allocation2 + $0x12f] sm:$0x1] }
 0x13f   : > { %3047 = vmatmul.bf16.gmra.mxu0 %v7516_v56  ;;  %v10157_v4 = vadd.f32 %v2821_v41, %v2732_v55  ;;  %684 = vst [vmem:[#allocation3 + $0x300] sm:$0xf] %v652_v25  ;;  %v748_v56 = vpack.c.bf16 %v716_v26, %v716_v26  ;;  %v7556_v40 = vor.u32 %v9053_v47, %v7553_v32  ;;  %v7551_v25 = vld [vmem:[#allocation3 + $0x250] sm:$0xf]  ;;  %v812_v32 = vld [vmem:[#allocation2 + $0x112] sm:$0xff] }
 0x140   : > { %779 = vst [vmem:[#allocation3 + $0x2e0] sm:$0xf] %v747_v39  ;;  %v7552_v26 = vor.u32 %v9057_v30, %v7551_v25  ;;  %v7579_v25 = vld [vmem:[#allocation3 + $0x290] sm:$0xf] }
 0x141   : > { %780 = vst [vmem:[#allocation3 + $0x304] sm:$0xf] %v748_v56  ;;  %v717_v30 = vld [vmem:[#allocation2 + $0x121] sm:$0xff] }
 0x142   : > { %v2783_v61 = vpop.f32.mrf.mxu1  ;;  %v2823_v55 = vpop.f32.mrf.mxu3  ;;  %305 = vst [vmem:[#allocation2 + $0x131] sm:$0x1] %v287_v0 }
 0x144   : > { %v2694_v41 = vpop.f32.mrf.mxu0 }
 0x145   : > { %v10159_v33 = vadd.f32 %v2783_v61, %v2694_v41  ;;  %v9173_v61 = vld [vmem:[%s11788_s1 + $0x190] sm:$0xff]  ;;  %v653_v41 = vpack.c.bf16 %v621_v6, %v621_v6  ;;  %v9065_v6 = vld [vmem:[#allocation3 + $0x2b0] sm:$0xf0] }
 0x146   : > { %v2734_v46 = vpop.f32.mrf.mxu2  ;;  %3187 = vmatpush.bf16.msra.mxu2 %v9173_v61  ;;  %v9062_v61 = vld [vmem:[#allocation3 + $0x29c] sm:$0xf] }
 0x147   : > { %v10161_v38 = vadd.f32 %v2823_v55, %v2734_v46  ;;  %2963 = vmatmul.bf16.gmra.mxu3 %v7548_v31  ;;  %v654_v55 = vpack.c.bf16 %v622_v16, %v622_v16  ;;  %v9061_v31 = vld [vmem:[#allocation3 + $0x294] sm:$0xf]  ;;  %v7581_v46 = vld [vmem:[#allocation3 + $0x2b4] sm:$0xf0]  ;;  %685 = vst [vmem:[#allocation3 + $0x324] sm:$0xf] %v653_v41 }
 0x148   : > { %v7584_v16 = vor.u32 %v9061_v31, %v7581_v46 }
 0x149   : > { %686 = vst [vmem:[#allocation3 + $0x348] sm:$0xf] %v654_v55  ;;  %v7580_v55 = vor.u32 %v9065_v6, %v7579_v25  ;;  %v623_v25 = vld [vmem:[#allocation2 + $0x138] sm:$0xff] }
 0x14a   : > { %v3102_v21 = vpop.f32.mrf.mxu1  ;;  %v2924_v2 = vpop.f32.mrf.mxu3 }
 0x14b   : > { %2874 = vmatmul.bf16.gmra.mxu2 %v7544_v57  ;;  %v844_v57 = vpack.c.bf16 %v812_v32, %v812_v32 }
 0x14c   : > { %v3013_v28 = vpop.f32.mrf.mxu0 }
 0x14d   : > { %3141 = vmatmul.bf16.gmra.mxu1 %v7556_v40  ;;  %v9181_v40 = vld [vmem:[%s11788_s1 + $0x1d0] sm:$0xff]  ;;  %876 = vst [vmem:[#allocation3 + $0x308] sm:$0xf] %v844_v57 }
 0x14e   : > { %v2835_v47 = vpop.f32.mrf.mxu2  ;;  %3276 = vmatpush.bf16.msra.mxu3 %v9181_v40  ;;  %590 = vst [vmem:[#allocation3 + $0x344] sm:$0xf] %v844_v57  ;;  %v9066_v57 = vld [vmem:[#allocation3 + $0x2b8] sm:$0xf0] }
 0x14f   : > { %3052 = vmatmul.bf16.gmra.mxu0 %v7552_v26  ;;  %v2836_v39 = vadd.f32 %v2835_v47, %v10060_v13  ;;  %v718_v26 = vld [vmem:[#allocation2 + $0x129] sm:$0xff]  ;;  %v749_v47 = vpack.c.bf16 %v717_v30, %v717_v30 }
 0x150   : > { %v750_v18 = vpack.c.bf16 %v718_v26, %v718_v26  ;;  %v7587_v30 = vld [vmem:[#allocation3 + $0x298] sm:$0xf] }
 0x151   : > { %v2925_v5 = vadd.f32 %v2924_v2, %v2836_v39  ;;  %v9189_v39 = vld [vmem:[%s11788_s1 + $0x210] sm:$0xff]  ;;  %781 = vst [vmem:[#allocation3 + $0x328] sm:$0xf] %v749_v47  ;;  %v7588_v31 = vor.u32 %v9066_v57, %v7587_v30  ;;  %v813_v47 = vld [vmem:[#allocation2 + $0x122] sm:$0xff] }
 0x152   : > { %v3104_v56 = vpop.f32.mrf.mxu1  ;;  %v2926_v9 = vpop.f32.mrf.mxu3  ;;  %782 = vst [vmem:[#allocation3 + $0x34c] sm:$0xf] %v750_v18  ;;  %3365 = vmatpush.bf16.msra.mxu0 %v9189_v39  ;;  %v845_v18 = vpack.c.bf16 %v813_v47, %v813_v47  ;;  %v9071_v57 = vld [vmem:[#allocation3 + $0x2e4] sm:$0xf] }
 0x153   : > { %v3014_v13 = vadd.f32 %v3013_v28, %v2925_v5  ;;  %v7592_v28 = vor.u32 %v9062_v61, %v7589_v37  ;;  %v624_v37 = vld [vmem:[#allocation2 + $0x140] sm:$0xff] }
 0x154   : > { %v3015_v32 = vpop.f32.mrf.mxu0  ;;  %877 = vst [vmem:[#allocation3 + $0x32c] sm:$0xf] %v845_v18  ;;  %v656_v39 = vpack.c.bf16 %v624_v37, %v624_v37 }
 0x155   : > { %v10170_v2 = vadd.f32 %v3102_v21, %v3014_v13  ;;  %591 = vst [vmem:[#allocation3 + $0x368] sm:$0xf] %v845_v18 }
 0x156   : > { %v2837_v40 = vpop.f32.mrf.mxu2  ;;  %688 = vst [vmem:[#allocation3 + $0x390] sm:$0xf] %v656_v39  ;;  %v7623_v39 = vld [vmem:[#allocation3 + $0x2e0] sm:$0xf] }
 0x157   : > { %v2838_v41 = vadd.f32 %v2837_v40, %v10073_v17  ;;  %2968 = vmatmul.bf16.gmra.mxu3 %v7584_v16  ;;  %v814_v17 = vld [vmem:[#allocation2 + $0x12a] sm:$0xff]  ;;  %v655_v16 = vpack.c.bf16 %v623_v25, %v623_v25 }
 0x158   : > { %v9070_v40 = vld [vmem:[#allocation3 + $0x2dc] sm:$0xf] }
 0x159   : > { %v2927_v26 = vadd.f32 %v2926_v9, %v2838_v41  ;;  %v846_v9 = vpack.c.bf16 %v814_v17, %v814_v17  ;;  %687 = vst [vmem:[#allocation3 + $0x36c] sm:$0xf] %v655_v16  ;;  %v719_v41 = vld [vmem:[#allocation2 + $0x139] sm:$0xff]  ;;  %v288_v17 = vld [vmem:[#allocation2 + $0x147] sm:$0x1] }
 0x15a   : > { %v3107_v5 = vpop.f32.mrf.mxu1  ;;  %v2929_v13 = vpop.f32.mrf.mxu3  ;;  %306 = vst [vmem:[#allocation2 + $0x149] sm:$0x1] %v288_v17 }
 0x15b   : > { %2879 = vmatmul.bf16.gmra.mxu2 %v7580_v55  ;;  %v3016_v21 = vadd.f32 %v3015_v32, %v2927_v26  ;;  %878 = vst [vmem:[#allocation3 + $0x350] sm:$0xf] %v846_v9  ;;  %v720_v55 = vld [vmem:[#allocation2 + $0x141] sm:$0xff]  ;;  %v7625_v26 = vld [vmem:[#allocation3 + $0x304] sm:$0xf0] }
 0x15c   : > { %v3018_v46 = vpop.f32.mrf.mxu0  ;;  %592 = vst [vmem:[#allocation3 + $0x38c] sm:$0xf] %v846_v9  ;;  %v7628_v37 = vor.u32 %v9071_v57, %v7625_v26 }
 0x15d   : > { %3146 = vmatmul.bf16.gmra.mxu1 %v7592_v28  ;;  %v10176_v29 = vadd.f32 %v3104_v56, %v3016_v21  ;;  %v7617_v28 = vld [vmem:[#allocation3 + $0x2fc] sm:$0xf0]  ;;  %v7615_v56 = vld [vmem:[#allocation3 + $0x2d8] sm:$0xf]  ;;  %v751_v21 = vpack.c.bf16 %v719_v41, %v719_v41 }
 0x15e   : > { %v2840_v61 = vpop.f32.mrf.mxu2 }
 0x15f   : > { %3057 = vmatmul.bf16.gmra.mxu0 %v7588_v31  ;;  %v2841_v6 = vadd.f32 %v2840_v61, %v10080_v12  ;;  %v752_v12 = vpack.c.bf16 %v720_v55, %v720_v55  ;;  %v9074_v61 = vld [vmem:[#allocation3 + $0x2f8] sm:$0xf0]  ;;  %783 = vst [vmem:[#allocation3 + $0x370] sm:$0xf] %v751_v21  ;;  %v625_v21 = vld [vmem:[#allocation2 + $0x150] sm:$0xff] }
 0x161   : > { %v2930_v32 = vadd.f32 %v2929_v13, %v2841_v6  ;;  %v7620_v13 = vor.u32 %v9070_v40, %v7617_v28  ;;  %784 = vst [vmem:[#allocation3 + $0x394] sm:$0xf] %v752_v12  ;;  %v9172_v40 = vld [vmem:[%s11788_s1 + $0x188] sm:$0xff]  ;;  %v815_v28 = vld [vmem:[#allocation2 + $0x13a] sm:$0xff] }
 0x162   : > { %v3109_v0 = vpop.f32.mrf.mxu1  ;;  %v2931_v47 = vpop.f32.mrf.mxu3  ;;  %3188 = vmatpush.bf16.msra.mxu2 %v9172_v40  ;;  %v816_v26 = vld [vmem:[#allocation2 + $0x142] sm:$0xff]  ;;  %v626_v12 = vld [vmem:[#allocation2 + $0x158] sm:$0xff] }
 0x163   : > { %v3019_v30 = vadd.f32 %v3018_v46, %v2930_v32  ;;  %v7616_v46 = vor.u32 %v9074_v61, %v7615_v56  ;;  %v9075_v32 = vld [vmem:[#allocation3 + $0x300] sm:$0xf0]  ;;  %v9180_v61 = vld [vmem:[%s11788_s1 + $0x1c8] sm:$0xff]  ;;  %v848_v17 = vpack.c.bf16 %v816_v26, %v816_v26 }
 0x164   : > { %v3020_v31 = vpop.f32.mrf.mxu0  ;;  %v7624_v55 = vor.u32 %v9075_v32, %v7623_v39  ;;  %3277 = vmatpush.bf16.msra.mxu3 %v9180_v61  ;;  %v721_v39 = vld [vmem:[#allocation2 + $0x151] sm:$0xff]  ;;  %v722_v32 = vld [vmem:[#allocation2 + $0x159] sm:$0xff] }
 0x165   : > { %v10179_v18 = vadd.f32 %v3107_v5, %v3019_v30  ;;  %880 = vst [vmem:[#allocation3 + $0x398] sm:$0xf] %v848_v17  ;;  %v754_v40 = vpack.c.bf16 %v722_v32, %v722_v32  ;;  %v9083_v26 = vld [vmem:[#allocation3 + $0x340] sm:$0xf0] }
 0x166   : > { %v2842_v25 = vpop.f32.mrf.mxu2  ;;  %594 = vst [vmem:[#allocation3 + $0x3d4] sm:$0xf] %v848_v17  ;;  %v9084_v17 = vld [vmem:[#allocation3 + $0x348] sm:$0xf0] }
 0x167   : > { %v2843_v6 = vadd.f32 %v2842_v25, %v10084_v51  ;;  %2973 = vmatmul.bf16.gmra.mxu3 %v7620_v13  ;;  %v847_v51 = vpack.c.bf16 %v815_v28, %v815_v28  ;;  %v657_v13 = vpack.c.bf16 %v625_v21, %v625_v21  ;;  %v658_v25 = vpack.c.bf16 %v626_v12, %v626_v12  ;;  %v9188_v12 = vld [vmem:[%s11788_s1 + $0x208] sm:$0xff] }
 0x168   : > { %786 = vst [vmem:[#allocation3 + $0x3dc] sm:$0xf] %v754_v40  ;;  %3366 = vmatpush.bf16.msra.mxu0 %v9188_v12  ;;  %v628_v40 = vld [vmem:[#allocation2 + $0x170] sm:$0xff] }
 0x169   : > { %v2932_v41 = vadd.f32 %v2931_v47, %v2843_v6  ;;  %879 = vst [vmem:[#allocation3 + $0x374] sm:$0xf] %v847_v51  ;;  %v7653_v6 = vld [vmem:[#allocation3 + $0x344] sm:$0xf0]  ;;  %v660_v12 = vpack.c.bf16 %v628_v40, %v628_v40 }
 0x16a   : > { %v3112_v16 = vpop.f32.mrf.mxu1  ;;  %v2934_v30 = vpop.f32.mrf.mxu3  ;;  %593 = vst [vmem:[#allocation3 + $0x3b0] sm:$0xf] %v847_v51  ;;  %v289_v51 = vld [vmem:[#allocation2 + $0x15f] sm:$0x1] }
 0x16b   : > { %2884 = vmatmul.bf16.gmra.mxu2 %v7616_v46  ;;  %v3021_v9 = vadd.f32 %v3020_v31, %v2932_v41  ;;  %v7651_v46 = vld [vmem:[#allocation3 + $0x320] sm:$0xf]  ;;  %689 = vst [vmem:[#allocation3 + $0x3b4] sm:$0xf] %v657_v13  ;;  %v9080_v41 = vld [vmem:[#allocation3 + $0x32c] sm:$0xf] }
 0x16c   : > { %v3023_v5 = vpop.f32.mrf.mxu0  ;;  %690 = vst [vmem:[#allocation3 + $0x3d8] sm:$0xf] %v658_v25  ;;  %v7652_v13 = vor.u32 %v9083_v26, %v7651_v46  ;;  %v627_v46 = vld [vmem:[#allocation2 + $0x168] sm:$0xff] }
 0x16d   : > { %3151 = vmatmul.bf16.gmra.mxu1 %v7628_v37  ;;  %v10185_v57 = vadd.f32 %v3109_v0, %v3021_v9  ;;  %v9079_v37 = vld [vmem:[#allocation3 + $0x324] sm:$0xf]  ;;  %v7661_v9 = vld [vmem:[#allocation3 + $0x34c] sm:$0xf0]  ;;  %307 = vst [vmem:[#allocation2 + $0x161] sm:$0x1] %v289_v51 }
 0x16e   : > { %v2845_v56 = vpop.f32.mrf.mxu2  ;;  %v7656_v21 = vor.u32 %v9079_v37, %v7653_v6  ;;  %692 = vst [vmem:[#allocation3 + $0x420] sm:$0xf] %v660_v12 }
 0x16f   : > { %3062 = vmatmul.bf16.gmra.mxu0 %v7624_v55  ;;  %v2846_v47 = vadd.f32 %v2845_v56, %v10088_v58  ;;  %v753_v55 = vpack.c.bf16 %v721_v39, %v721_v39 }
 0x171   : > { %v2935_v0 = vadd.f32 %v2934_v30, %v2846_v47  ;;  %785 = vst [vmem:[#allocation3 + $0x3b8] sm:$0xf] %v753_v55 }
 0x172   : > { %v3114_v31 = vpop.f32.mrf.mxu1  ;;  %v2936_v56 = vpop.f32.mrf.mxu3 }
 0x173   : > { %v3024_v58 = vadd.f32 %v3023_v5, %v2935_v0  ;;  %v7664_v5 = vor.u32 %v9080_v41, %v7661_v9  ;;  %v7659_v0 = vld [vmem:[#allocation3 + $0x328] sm:$0xf] }
 0x174   : > { %v3025_v28 = vpop.f32.mrf.mxu0  ;;  %v7660_v37 = vor.u32 %v9084_v17, %v7659_v0  ;;  %v9089_v17 = vld [vmem:[#allocation3 + $0x374] sm:$0xf] }
 0x175   : > { %v10191_v30 = vadd.f32 %v3112_v16, %v3024_v58  ;;  %v817_v58 = vld [vmem:[#allocation2 + $0x152] sm:$0xff] }
 0x176   : > { %v2847_v47 = vpop.f32.mrf.mxu2  ;;  %v849_v41 = vpack.c.bf16 %v817_v58, %v817_v58 }
 0x177   : > { %v2848_v61 = vadd.f32 %v2847_v47, %v10098_v3  ;;  %2978 = vmatmul.bf16.gmra.mxu3 %v7656_v21  ;;  %v818_v3 = vld [vmem:[#allocation2 + $0x15a] sm:$0xff]  ;;  %v659_v21 = vpack.c.bf16 %v627_v46, %v627_v46  ;;  %v10203_v46 = vld [vmem:[%s9627_s11 + $0xf0] sm:$0xff] }
 0x178   : > { %881 = vst [vmem:[#allocation3 + $0x3bc] sm:$0xf] %v849_v41  ;;  %v9088_v47 = vld [vmem:[#allocation3 + $0x36c] sm:$0xf] }
 0x179   : > { %v2937_v39 = vadd.f32 %v2936_v56, %v2848_v61  ;;  %v850_v56 = vpack.c.bf16 %v818_v3, %v818_v3  ;;  %595 = vst [vmem:[#allocation3 + $0x3f8] sm:$0xf] %v849_v41  ;;  %v723_v61 = vld [vmem:[#allocation2 + $0x169] sm:$0xff] }
 0x17a   : > { %v3117_v25 = vpop.f32.mrf.mxu1  ;;  %v2939_v32 = vpop.f32.mrf.mxu3  ;;  %691 = vst [vmem:[#allocation3 + $0x3fc] sm:$0xf] %v659_v21 }
 0x17b   : > { %2889 = vmatmul.bf16.gmra.mxu2 %v7652_v13  ;;  %v3026_v16 = vadd.f32 %v3025_v28, %v2937_v39  ;;  %882 = vst [vmem:[#allocation3 + $0x3e0] sm:$0xf] %v850_v56  ;;  %v724_v13 = vld [vmem:[#allocation2 + $0x171] sm:$0xff]  ;;  %v7697_v39 = vld [vmem:[#allocation3 + $0x394] sm:$0xf0] }
 0x17c   : > { %v3028_v6 = vpop.f32.mrf.mxu0  ;;  %596 = vst [vmem:[#allocation3 + $0x41c] sm:$0xf] %v850_v56 }
 0x17d   : > { %3156 = vmatmul.bf16.gmra.mxu1 %v7664_v5  ;;  %v10197_v55 = vadd.f32 %v3114_v31, %v3026_v16  ;;  %v7689_v5 = vld [vmem:[#allocation3 + $0x38c] sm:$0xf0]  ;;  %v7687_v31 = vld [vmem:[#allocation3 + $0x368] sm:$0xf]  ;;  %v756_v16 = vpack.c.bf16 %v724_v13, %v724_v13  ;;  %11862 = vst [vmem:[#allocation37_spill] sm:$0xff] %v10203_v46 }
 0x17e   : > { %v2850_v9 = vpop.f32.mrf.mxu2  ;;  %v7692_v3 = vor.u32 %v9088_v47, %v7689_v5  ;;  %v9093_v13 = vld [vmem:[#allocation3 + $0x390] sm:$0xf0]  ;;  %232 = vst [vmem:[#allocation2 + $0x181] sm:$0xff] %v10203_v46 }
 0x17f   : > { %3067 = vmatmul.bf16.gmra.mxu0 %v7660_v37  ;;  %v2851_v26 = vadd.f32 %v2850_v9, %v10105_v45  ;;  %v755_v45 = vpack.c.bf16 %v723_v61, %v723_v61  ;;  %v9092_v9 = vld [vmem:[#allocation3 + $0x388] sm:$0xf0]  ;;  %788 = vst [vmem:[#allocation3 + $0x424] sm:$0xf] %v756_v16  ;;  %v7695_v61 = vld [vmem:[#allocation3 + $0x370] sm:$0xf] }
 0x180   : > { %v7688_v12 = vor.u32 %v9092_v9, %v7687_v31  ;;  %v7696_v47 = vor.u32 %v9093_v13, %v7695_v61  ;;  %v819_v31 = vld [vmem:[#allocation2 + $0x16a] sm:$0xff]  ;;  %v7723_v61 = vld [vmem:[#allocation3 + $0x3b0] sm:$0xf] }
 0x181   : > { %v2940_v28 = vadd.f32 %v2939_v32, %v2851_v26  ;;  %v290_v32 = vld [vmem:[#allocation2 + $0x177] sm:$0x1]  ;;  %787 = vst [vmem:[#allocation3 + $0x400] sm:$0xf] %v755_v45  ;;  %v7700_v26 = vor.u32 %v9089_v17, %v7697_v39  ;;  %v851_v39 = vpack.c.bf16 %v819_v31, %v819_v31  ;;  %v9098_v13 = vld [vmem:[#allocation3 + $0x3bc] sm:$0xf] }
 0x182   : > { %v3119_v51 = vpop.f32.mrf.mxu1  ;;  %v2941_v58 = vpop.f32.mrf.mxu3  ;;  %308 = vst [vmem:[#allocation2 + $0x179] sm:$0x1] %v290_v32 }
 0x183   : > { %v3029_v0 = vadd.f32 %v3028_v6, %v2940_v28  ;;  %v10206_v6 = vld [vmem:[%s9627_s11 + $0xf8] sm:$0xff]  ;;  %883 = vst [vmem:[#allocation3 + $0x404] sm:$0xf] %v851_v39  ;;  %v9110_v50 = vld [vmem:[#allocation3 + $0x418] sm:$0xf0] }
 0x184   : > { %v3030_v37 = vpop.f32.mrf.mxu0  ;;  %11863 = vst [vmem:[#allocation38_spill] sm:$0xff] %v10206_v6 }
 0x185   : > { %v10200_v41 = vadd.f32 %v3117_v25, %v3029_v0  ;;  %233 = vst [vmem:[#allocation2 + $0x189] sm:$0xff] %v10206_v6 }
 0x186   : > { %v2852_v40 = vpop.f32.mrf.mxu2  ;;  %597 = vst [vmem:[#allocation3 + $0x440] sm:$0xf] %v851_v39 }
 0x187   : > { %v2853_v21 = vadd.f32 %v2852_v40, %v10109_v43  ;;  %2983 = vmatmul.bf16.gmra.mxu3 %v7692_v3  ;;  %v9171_v43 = vld [vmem:[%s11788_s1 + $0x180] sm:$0xff] }
 0x188   : > { %3189 = vmatpush.bf16.msra.mxu2 %v9171_v43  ;;  %v255_v3 = vld [vmem:[#allocation2 + $0x182] sm:$0x1] }
 0x189   : > { %v2942_v25 = vadd.f32 %v2941_v58, %v2853_v21  ;;  %v820_v16 = vld [vmem:[#allocation2 + $0x172] sm:$0xff]  ;;  %273 = vst [vmem:[#allocation2 + $0x180] sm:$0x1] %v255_v3 }
 0x18a   : > { %v3122_v28 = vpop.f32.mrf.mxu1  ;;  %v2944_v0 = vpop.f32.mrf.mxu3  ;;  %v852_v32 = vpack.c.bf16 %v820_v16, %v820_v16  ;;  %v9107_v24 = vld [vmem:[#allocation3 + $0x404] sm:$0xf] }
 0x18b   : > { %2894 = vmatmul.bf16.gmra.mxu2 %v7688_v12  ;;  %v3031_v56 = vadd.f32 %v3030_v37, %v2942_v25  ;;  %v9179_v37 = vld [vmem:[%s11788_s1 + $0x1c0] sm:$0xff]  ;;  %v7725_v12 = vld [vmem:[#allocation3 + $0x3d4] sm:$0xf0]  ;;  %v7733_v25 = vld [vmem:[#allocation3 + $0x3dc] sm:$0xf0] }
 0x18c   : > { %v3033_v5 = vpop.f32.mrf.mxu0  ;;  %v630_v40 = vld [vmem:[#allocation2 + $0x188] sm:$0xff]  ;;  %3278 = vmatpush.bf16.msra.mxu3 %v9179_v37  ;;  %884 = vst [vmem:[#allocation3 + $0x428] sm:$0xf] %v852_v32  ;;  %v7736_v37 = vor.u32 %v9098_v13, %v7733_v25 }
 0x18d   : > { %3161 = vmatmul.bf16.gmra.mxu1 %v7700_v26  ;;  %v10214_v17 = vadd.f32 %v3119_v51, %v3031_v56  ;;  %v9097_v26 = vld [vmem:[#allocation3 + $0x3b4] sm:$0xf]  ;;  %v662_v21 = vpack.c.bf16 %v630_v40, %v630_v40  ;;  %v757_v56 = vpack.c.bf16 %v10203_v46, %v10203_v46  ;;  %598 = vst [vmem:[#allocation3 + $0x464] sm:$0xf] %v852_v32  ;;  %v7731_v32 = vld [vmem:[#allocation3 + $0x3b8] sm:$0xf] }
 0x18e   : > { %v2855_v45 = vpop.f32.mrf.mxu2  ;;  %v9102_v46 = vld [vmem:[#allocation3 + $0x3d8] sm:$0xf0] }
 0x18f   : > { %3072 = vmatmul.bf16.gmra.mxu0 %v7696_v47  ;;  %v2856_v58 = vadd.f32 %v2855_v45, %v10113_v20  ;;  %694 = vst [vmem:[#allocation3 + $0x468] sm:$0xf] %v662_v21  ;;  %v758_v47 = vpack.c.bf16 %v10206_v6, %v10206_v6  ;;  %v291_v45 = vld [vmem:[#allocation2 + $0x18f] sm:$0x1] }
 0x190   : > { %789 = vst [vmem:[#allocation3 + $0x448] sm:$0xf] %v757_v56  ;;  %v629_v21 = vld [vmem:[#allocation2 + $0x180] sm:$0xff] }
 0x191   : > { %v2945_v51 = vadd.f32 %v2944_v0, %v2856_v58  ;;  %v9101_v0 = vld [vmem:[#allocation3 + $0x3d0] sm:$0xf0]  ;;  %v7728_v58 = vor.u32 %v9097_v26, %v7725_v12  ;;  %790 = vst [vmem:[#allocation3 + $0x46c] sm:$0xf] %v758_v47  ;;  %v7732_v12 = vor.u32 %v9102_v46, %v7731_v32 }
 0x192   : > { %v10217_v9 = vpop.f32.mrf.mxu1  ;;  %v2946_v31 = vpop.f32.mrf.mxu3  ;;  %v7724_v40 = vor.u32 %v9101_v0, %v7723_v61  ;;  %309 = vst [vmem:[#allocation2 + $0x191] sm:$0x1] %v291_v45  ;;  %v821_v56 = vld [vmem:[#allocation2 + $0x182] sm:$0xff]  ;;  %v984_v0 = vld [vmem:[#allocation2 + $0x31] sm:$0xff] }
 0x193   : > { %v3034_v20 = vadd.f32 %v3033_v5, %v2945_v51  ;;  %v9187_v5 = vld [vmem:[%s11788_s1 + $0x200] sm:$0xff] }
 0x194   : > { %v3035_v43 = vpop.f32.mrf.mxu0  ;;  %3367 = vmatpush.bf16.msra.mxu0 %v9187_v5  ;;  %v985_v5 = vld [vmem:[#allocation2 + $0x39] sm:$0xff] }
 0x195   : > { %v10226_v16 = vadd.f32 %v3122_v28, %v3034_v20  ;;  %v661_v28 = vpack.c.bf16 %v629_v21, %v629_v21 }
 0x196   : > { %v2857_v39 = vpop.f32.mrf.mxu2 }
 0x197   : > { %v2858_v3 = vadd.f32 %v2857_v39, %v10123_v52  ;;  %2988 = vmatmul.bf16.gmra.mxu3 %v7728_v58  ;;  %693 = vst [vmem:[#allocation3 + $0x444] sm:$0xf] %v661_v28  ;;  %v853_v52 = vpack.c.bf16 %v821_v56, %v821_v56  ;;  %v1016_v58 = vpack.c.bf16 %v984_v0, %v984_v0  ;;  %v7761_v28 = vld [vmem:[#allocation3 + $0x41c] sm:$0xf0]  ;;  %v1081_v56 = vld [vmem:[#allocation2 + $0x3a] sm:$0xff] }
 0x199   : > { %v2947_v20 = vadd.f32 %v2946_v31, %v2858_v3  ;;  %v822_v47 = vld [vmem:[#allocation2 + $0x18a] sm:$0xff]  ;;  %885 = vst [vmem:[#allocation3 + $0x44c] sm:$0xf] %v853_v52  ;;  %v889_v3 = vld [vmem:[#allocation2 + $0x38] sm:$0xff] }
 0x19a   : > { %v3127_v51 = vpop.f32.mrf.mxu1  ;;  %v2949_v25 = vpop.f32.mrf.mxu3  ;;  %v854_v31 = vpack.c.bf16 %v822_v47, %v822_v47  ;;  %v921_v32 = vpack.c.bf16 %v889_v3, %v889_v3  ;;  %1048 = vst [vmem:[#allocation3 + $0x1c] sm:$0xf] %v1016_v58  ;;  %v1113_v47 = vpack.c.bf16 %v1081_v56, %v1081_v56 }
 0x19b   : > { %2899 = vmatmul.bf16.gmra.mxu2 %v7724_v40  ;;  %v10232_v26 = vadd.f32 %v3035_v43, %v2947_v20  ;;  %v888_v43 = vld [vmem:[#allocation2 + $0x30] sm:$0xff]  ;;  %v9106_v40 = vld [vmem:[#allocation3 + $0x3fc] sm:$0xf] }
 0x19c   : > { %v3038_v13 = vpop.f32.mrf.mxu0  ;;  %886 = vst [vmem:[#allocation3 + $0x470] sm:$0xf] %v854_v31  ;;  %v920_v21 = vpack.c.bf16 %v888_v43, %v888_v43  ;;  %v1080_v20 = vld [vmem:[#allocation2 + $0x32] sm:$0xff] }
 0x19d   : > { %3166 = vmatmul.bf16.gmra.mxu1 %v7736_v37  ;;  %v1017_v37 = vpack.c.bf16 %v985_v5, %v985_v5  ;;  %v7759_v5 = vld [vmem:[#allocation3 + $0x3f8] sm:$0xf]  ;;  %953 = vst [vmem:[#allocation3 + $0x3c] sm:$0xf] %v921_v32 }
 0x19e   : > { %v2860_v61 = vpop.f32.mrf.mxu2  ;;  %952 = vst [vmem:[#allocation3 + $0x18] sm:$0xf] %v920_v21 }
 0x19f   : > { %3077 = vmatmul.bf16.gmra.mxu0 %v7732_v12  ;;  %v2861_v45 = vadd.f32 %v2860_v61, %v10130_v63  ;;  %v7769_v63 = vld [vmem:[#allocation3 + $0x424] sm:$0xf0]  ;;  %1049 = vst [vmem:[#allocation3 + $0x40] sm:$0xf] %v1017_v37  ;;  %v1112_v61 = vpack.c.bf16 %v1080_v20, %v1080_v20  ;;  %v7767_v37 = vld [vmem:[#allocation3 + $0x400] sm:$0xf] }
 0x1a0   : > { %v7772_v43 = vor.u32 %v9107_v24, %v7769_v63  ;;  %1145 = vst [vmem:[#allocation3 + $0x44] sm:$0xf] %v1113_v47  ;;  %v987_v24 = vld [vmem:[#allocation2 + $0x51] sm:$0xff] }
 0x1a1   : > { %v2950_v46 = vadd.f32 %v2949_v25, %v2861_v45  ;;  %v7764_v45 = vor.u32 %v9106_v40, %v7761_v28  ;;  %1144 = vst [vmem:[#allocation3 + $0x20] sm:$0xf] %v1112_v61  ;;  %v986_v28 = vld [vmem:[#allocation2 + $0x49] sm:$0xff]  ;;  %v1019_v63 = vpack.c.bf16 %v987_v24, %v987_v24  ;;  %v9119_v24 = vld [vmem:[#allocation3 + $0x460] sm:$0xf0] }
 0x1a2   : > { %v10235_v39 = vpop.f32.mrf.mxu1  ;;  %v2951_v0 = vpop.f32.mrf.mxu3  ;;  %v890_v61 = vld [vmem:[#allocation2 + $0x48] sm:$0xff]  ;;  %v891_v47 = vld [vmem:[#allocation2 + $0x50] sm:$0xff] }
 0x1a3   : > { %v3039_v12 = vadd.f32 %v3038_v13, %v2950_v46  ;;  %v7760_v13 = vor.u32 %v9110_v50, %v7759_v5  ;;  %v9111_v46 = vld [vmem:[#allocation3 + $0x420] sm:$0xf0]  ;;  %v7797_v5 = vld [vmem:[#allocation3 + $0x464] sm:$0xf0]  ;;  %1051 = vst [vmem:[#allocation3 + $0x88] sm:$0xf] %v1019_v63 }
 0x1a4   : > { %v3040_v52 = vpop.f32.mrf.mxu0 }
 0x1a5   : > { %v10237_v25 = vadd.f32 %v3127_v51, %v3039_v12  ;;  %v7768_v51 = vor.u32 %v9111_v46, %v7767_v37  ;;  %v1018_v12 = vpack.c.bf16 %v986_v28, %v986_v28  ;;  %v9116_v37 = vld [vmem:[#allocation3 + $0x44c] sm:$0xf]  ;;  %v7805_v46 = vld [vmem:[#allocation3 + $0x46c] sm:$0xf0]  ;;  %v7795_v28 = vld [vmem:[#allocation3 + $0x440] sm:$0xf] }
 0x1a6   : > { %v2862_v31 = vpop.f32.mrf.mxu2 }
 0x1a7   : > { %v2863_v58 = vadd.f32 %v2862_v31, %v10134_v48  ;;  %2993 = vmatmul.bf16.gmra.mxu3 %v7764_v45  ;;  %1050 = vst [vmem:[#allocation3 + $0x64] sm:$0xf] %v1018_v12  ;;  %v923_v45 = vpack.c.bf16 %v891_v47, %v891_v47  ;;  %v9115_v31 = vld [vmem:[#allocation3 + $0x444] sm:$0xf] }
 0x1a9   : > { %v2952_v20 = vadd.f32 %v2951_v0, %v2863_v58  ;;  %v1083_v58 = vld [vmem:[#allocation2 + $0x52] sm:$0xff]  ;;  %955 = vst [vmem:[#allocation3 + $0x84] sm:$0xf] %v923_v45 }
 0x1aa   : > { %v3132_v3 = vpop.f32.mrf.mxu1  ;;  %v2954_v40 = vpop.f32.mrf.mxu3 }
 0x1ab   : > { %2904 = vmatmul.bf16.gmra.mxu2 %v7760_v13  ;;  %v10240_v56 = vadd.f32 %v3040_v52, %v2952_v20  ;;  %v922_v52 = vpack.c.bf16 %v890_v61, %v890_v61  ;;  %v1115_v20 = vpack.c.bf16 %v1083_v58, %v1083_v58  ;;  %v7808_v61 = vor.u32 %v9116_v37, %v7805_v46 }
 0x1ac   : > { %v3043_v21 = vpop.f32.mrf.mxu0 }
 0x1ad   : > { %3171 = vmatmul.bf16.gmra.mxu1 %v7772_v43  ;;  %v1082_v43 = vld [vmem:[#allocation2 + $0x4a] sm:$0xff]  ;;  %954 = vst [vmem:[#allocation3 + $0x60] sm:$0xf] %v922_v52  ;;  %v9120_v52 = vld [vmem:[#allocation3 + $0x468] sm:$0xf0] }
 0x1ae   : > { %v2865_v32 = vpop.f32.mrf.mxu2  ;;  %1147 = vst [vmem:[#allocation3 + $0x8c] sm:$0xf] %v1115_v20 }
 0x1af   : > { %3082 = vmatmul.bf16.gmra.mxu0 %v7768_v51  ;;  %v2866_v48 = vadd.f32 %v2865_v32, %v10141_v27  ;;  %v1114_v27 = vpack.c.bf16 %v1082_v43, %v1082_v43 }
 0x1b1   : > { %v2955_v0 = vadd.f32 %v2954_v40, %v2866_v48  ;;  %v7800_v48 = vor.u32 %v9115_v31, %v7797_v5  ;;  %1146 = vst [vmem:[#allocation3 + $0x68] sm:$0xf] %v1114_v27  ;;  %v988_v31 = vld [vmem:[#allocation2 + $0x61] sm:$0xff]  ;;  %v989_v27 = vld [vmem:[#allocation2 + $0x69] sm:$0xff] }
 0x1b2   : > { %v10243_v50 = vpop.f32.mrf.mxu1  ;;  %v2956_v32 = vpop.f32.mrf.mxu3  ;;  %v1020_v46 = vpack.c.bf16 %v988_v31, %v988_v31  ;;  %v1021_v20 = vpack.c.bf16 %v989_v27, %v989_v27  ;;  %v8986_v31 = vld [vmem:[#allocation3 + $0x38] sm:$0xf0] }
 0x1b3   : > { %v3044_v13 = vadd.f32 %v3043_v21, %v2955_v0  ;;  %v7796_v21 = vor.u32 %v9119_v24, %v7795_v28  ;;  %v7803_v0 = vld [vmem:[#allocation3 + $0x448] sm:$0xf]  ;;  %v892_v28 = vld [vmem:[#allocation2 + $0x60] sm:$0xff] }
 0x1b4   : > { %v3045_v51 = vpop.f32.mrf.mxu0  ;;  %v7804_v45 = vor.u32 %v9120_v52, %v7803_v0  ;;  %1052 = vst [vmem:[#allocation3 + $0xac] sm:$0xf] %v1020_v46 }
 0x1b5   : > { %v10245_v40 = vadd.f32 %v3132_v3, %v3044_v13  ;;  %1053 = vst [vmem:[#allocation3 + $0xd0] sm:$0xf] %v1021_v20 }
 0x1b6   : > { %v2867_v12 = vpop.f32.mrf.mxu2 }
 0x1b7   : > { %v2868_v63 = vadd.f32 %v2867_v12, %v10148_v1  ;;  %2998 = vmatmul.bf16.gmra.mxu3 %v7800_v48  ;;  %v8982_v48 = vld [vmem:[#allocation3 + $0x1c] sm:$0xf] }
 0x1b9   : > { %v2957_v43 = vadd.f32 %v2956_v32, %v2868_v63  ;;  %v893_v32 = vld [vmem:[#allocation2 + $0x68] sm:$0xff] }
 0x1ba   : > { %v3137_v47 = vpop.f32.mrf.mxu1  ;;  %v2959_v13 = vpop.f32.mrf.mxu3  ;;  %v925_v12 = vpack.c.bf16 %v893_v32, %v893_v32  ;;  %v1084_v63 = vld [vmem:[#allocation2 + $0x62] sm:$0xff]  ;;  %v8987_v32 = vld [vmem:[#allocation3 + $0x40] sm:$0xf0] }
 0x1bb   : > { %2909 = vmatmul.bf16.gmra.mxu2 %v7796_v21  ;;  %v10248_v58 = vadd.f32 %v3045_v51, %v2957_v43  ;;  %v924_v51 = vpack.c.bf16 %v892_v28, %v892_v28  ;;  %v1085_v21 = vld [vmem:[#allocation2 + $0x6a] sm:$0xff]  ;;  %v1116_v52 = vpack.c.bf16 %v1084_v63, %v1084_v63 }
 0x1bc   : > { %v3048_v3 = vpop.f32.mrf.mxu0  ;;  %v1117_v43 = vpack.c.bf16 %v1085_v21, %v1085_v21  ;;  %957 = vst [vmem:[#allocation3 + $0xcc] sm:$0xf] %v925_v12  ;;  %v7279_v28 = vld [vmem:[#allocation3 + $0x20] sm:$0xf] }
 0x1bd   : > { %3176 = vmatmul.bf16.gmra.mxu1 %v7808_v61  ;;  %v7273_v61 = vld [vmem:[#allocation3 + $0x3c] sm:$0xf0]  ;;  %956 = vst [vmem:[#allocation3 + $0xa8] sm:$0xf] %v924_v51  ;;  %v7280_v63 = vor.u32 %v8987_v32, %v7279_v28 }
 0x1be   : > { %v2870_v5 = vpop.f32.mrf.mxu2  ;;  %1148 = vst [vmem:[#allocation3 + $0xb0] sm:$0xf] %v1116_v52 }
 0x1bf   : > { %3087 = vmatmul.bf16.gmra.mxu0 %v7804_v45  ;;  %v2871_v37 = vadd.f32 %v2870_v5, %v10155_v7  ;;  %v7271_v5 = vld [vmem:[#allocation3 + $0x18] sm:$0xf]  ;;  %1149 = vst [vmem:[#allocation3 + $0xd4] sm:$0xf] %v1117_v43  ;;  %v894_v43 = vld [vmem:[#allocation2 + $0x78] sm:$0xff] }
 0x1c0   : > { %v7272_v20 = vor.u32 %v8986_v31, %v7271_v5  ;;  %v895_v5 = vld [vmem:[#allocation2 + $0x80] sm:$0xff] }
 0x1c1   : > { %v2960_v24 = vadd.f32 %v2959_v13, %v2871_v37  ;;  %v7276_v13 = vor.u32 %v8982_v48, %v7273_v61  ;;  %v991_v48 = vld [vmem:[#allocation2 + $0x81] sm:$0xff] }
 0x1c2   : > { %v10251_v1 = vpop.f32.mrf.mxu1  ;;  %v2961_v45 = vpop.f32.mrf.mxu3 }
 0x1c3   : > { %v3049_v0 = vadd.f32 %v3048_v3, %v2960_v24 }
 0x1c4   : > { %v3050_v7 = vpop.f32.mrf.mxu0 }
 0x1c5   : > { %v10253_v27 = vadd.f32 %v3137_v47, %v3049_v0  ;;  %v990_v0 = vld [vmem:[#allocation2 + $0x79] sm:$0xff] }
 0x1c6   : > { %v2872_v37 = vpop.f32.mrf.mxu2  ;;  %v1022_v52 = vpack.c.bf16 %v990_v0, %v990_v0  ;;  %v7307_v0 = vld [vmem:[#allocation3 + $0x60] sm:$0xf] }
 0x1c7   : > { %v2873_v46 = vadd.f32 %v2872_v37, %v10159_v33  ;;  %3279 = vmatmul.bf16.vlgmr.msra.gmra.mxu3 %v7276_v13  ;;  %v1023_v33 = vpack.c.bf16 %v991_v48, %v991_v48  ;;  %v926_v13 = vpack.c.bf16 %v894_v43, %v894_v43  ;;  %v927_v37 = vpack.c.bf16 %v895_v5, %v895_v5  ;;  %v8995_v48 = vld [vmem:[#allocation3 + $0x80] sm:$0xf0]  ;;  %v8996_v5 = vld [vmem:[#allocation3 + $0x88] sm:$0xf0] }
 0x1c8   : > { %1054 = vst [vmem:[#allocation3 + $0xf4] sm:$0xf] %v1022_v52  ;;  %v7308_v43 = vor.u32 %v8995_v48, %v7307_v0  ;;  %v897_v0 = vld [vmem:[#allocation2 + $0x98] sm:$0xff] }
 0x1c9   : > { %v2962_v3 = vadd.f32 %v2961_v45, %v2873_v46  ;;  %v8991_v45 = vld [vmem:[#allocation3 + $0x64] sm:$0xf]  ;;  %1055 = vst [vmem:[#allocation3 + $0x118] sm:$0xf] %v1023_v33  ;;  %v1086_v46 = vld [vmem:[#allocation2 + $0x7a] sm:$0xff] }
 0x1ca   : > { %v3142_v24 = vpop.f32.mrf.mxu1  ;;  %v2964_v12 = vpop.f32.mrf.mxu3  ;;  %958 = vst [vmem:[#allocation3 + $0xf0] sm:$0xf] %v926_v13 }
 0x1cb   : > { %3190 = vmatmul.bf16.vlgmr.msra.gmra.mxu2 %v7272_v20  ;;  %v10256_v51 = vadd.f32 %v3050_v7, %v2962_v3  ;;  %v7309_v7 = vld [vmem:[#allocation3 + $0x84] sm:$0xf0]  ;;  %v1087_v20 = vld [vmem:[#allocation2 + $0x82] sm:$0xff]  ;;  %v1118_v3 = vpack.c.bf16 %v1086_v46, %v1086_v46  ;;  %959 = vst [vmem:[#allocation3 + $0x114] sm:$0xf] %v927_v37 }
 0x1cc   : > { %v3053_v21 = vpop.f32.mrf.mxu0 }
 0x1cd   : > { %1150 = vst [vmem:[#allocation3 + $0xf8] sm:$0xf] %v1118_v3 }
 0x1ce   : > { %v2875_v47 = vpop.f32.mrf.mxu2 }
 0x1cf   : > { %3368 = vmatmul.bf16.vlgmr.msra.gmra.mxu0 %v7280_v63  ;;  %v2876_v61 = vadd.f32 %v2875_v47, %v10067_v54  ;;  %v1119_v63 = vpack.c.bf16 %v1087_v20, %v1087_v20 }
 0x1d1   : > { %v2965_v31 = vadd.f32 %v2964_v12, %v2876_v61  ;;  %v7312_v61 = vor.u32 %v8991_v45, %v7309_v7  ;;  %1151 = vst [vmem:[#allocation3 + $0x11c] sm:$0xf] %v1119_v63  ;;  %v993_v45 = vld [vmem:[#allocation2 + $0x99] sm:$0xff]  ;;  %v896_v63 = vld [vmem:[#allocation2 + $0x90] sm:$0xff] }
 0x1d2   : > { %v10259_v32 = vpop.f32.mrf.mxu1  ;;  %v2966_v47 = vpop.f32.mrf.mxu3 }
 0x1d3   : > { %v3054_v28 = vadd.f32 %v3053_v21, %v2965_v31  ;;  %v7315_v21 = vld [vmem:[#allocation3 + $0x68] sm:$0xf] }
 0x1d4   : > { %v3055_v54 = vpop.f32.mrf.mxu0  ;;  %v7316_v46 = vor.u32 %v8996_v5, %v7315_v21 }
 0x1d5   : > { %v10261_v12 = vadd.f32 %v3142_v24, %v3054_v28  ;;  %v992_v28 = vld [vmem:[#allocation2 + $0x91] sm:$0xff] }
 0x1d6   : > { %v2877_v52 = vpop.f32.mrf.mxu2  ;;  %v1024_v3 = vpack.c.bf16 %v992_v28, %v992_v28 }
 0x1d7   : > { %v2878_v33 = vadd.f32 %v2877_v52, %v10078_v14  ;;  %3284 = vmatmul.bf16.gmra.mxu3 %v7312_v61  ;;  %v1025_v14 = vpack.c.bf16 %v993_v45, %v993_v45  ;;  %v928_v61 = vpack.c.bf16 %v896_v63, %v896_v63  ;;  %v7345_v52 = vld [vmem:[#allocation3 + $0xcc] sm:$0xf0]  ;;  %v9005_v63 = vld [vmem:[#allocation3 + $0xd0] sm:$0xf0] }
 0x1d8   : > { %1056 = vst [vmem:[#allocation3 + $0x13c] sm:$0xf] %v1024_v3 }
 0x1d9   : > { %v2967_v31 = vadd.f32 %v2966_v47, %v2878_v33  ;;  %v9000_v47 = vld [vmem:[#allocation3 + $0xac] sm:$0xf]  ;;  %1057 = vst [vmem:[#allocation3 + $0x160] sm:$0xf] %v1025_v14  ;;  %v1088_v33 = vld [vmem:[#allocation2 + $0x92] sm:$0xff] }
 0x1da   : > { %v2969_v15 = vpop.f32.mrf.mxu3  ;;  %v3147_v24 = vpop.f32.mrf.mxu1  ;;  %960 = vst [vmem:[#allocation3 + $0x138] sm:$0xf] %v928_v61  ;;  %v1120_v5 = vpack.c.bf16 %v1088_v33, %v1088_v33 }
 0x1db   : > { %3195 = vmatmul.bf16.gmra.mxu2 %v7308_v43  ;;  %v10264_v13 = vadd.f32 %v3055_v54, %v2967_v31  ;;  %v929_v54 = vpack.c.bf16 %v897_v0, %v897_v0  ;;  %v1089_v43 = vld [vmem:[#allocation2 + $0x9a] sm:$0xff] }
 0x1dc   : > { %v3058_v20 = vpop.f32.mrf.mxu0  ;;  %v1121_v31 = vpack.c.bf16 %v1089_v43, %v1089_v43  ;;  %1152 = vst [vmem:[#allocation3 + $0x140] sm:$0xf] %v1120_v5  ;;  %v898_v5 = vld [vmem:[#allocation2 + $0xa8] sm:$0xff] }
 0x1dd   : > { %961 = vst [vmem:[#allocation3 + $0x15c] sm:$0xf] %v929_v54 }
 0x1de   : > { %v2880_v37 = vpop.f32.mrf.mxu2  ;;  %1153 = vst [vmem:[#allocation3 + $0x164] sm:$0xf] %v1121_v31  ;;  %v899_v31 = vld [vmem:[#allocation2 + $0xb0] sm:$0xff] }
 0x1df   : > { %3373 = vmatmul.bf16.gmra.mxu0 %v7316_v46  ;;  %v2881_v7 = vadd.f32 %v2880_v37, %v10082_v36  ;;  %v7343_v36 = vld [vmem:[#allocation3 + $0xa8] sm:$0xf]  ;;  %v9004_v37 = vld [vmem:[#allocation3 + $0xc8] sm:$0xf0] }
 0x1e0   : > { %v7344_v3 = vor.u32 %v9004_v37, %v7343_v36  ;;  %v9009_v37 = vld [vmem:[#allocation3 + $0xf4] sm:$0xf] }
 0x1e1   : > { %v2970_v48 = vadd.f32 %v2969_v15, %v2881_v7  ;;  %v7348_v15 = vor.u32 %v9000_v47, %v7345_v52  ;;  %v994_v47 = vld [vmem:[#allocation2 + $0xa9] sm:$0xff]  ;;  %v995_v52 = vld [vmem:[#allocation2 + $0xb1] sm:$0xff] }
 0x1e2   : > { %v2971_v11 = vpop.f32.mrf.mxu3  ;;  %v10270_v14 = vpop.f32.mrf.mxu1 }
 0x1e3   : > { %v3059_v21 = vadd.f32 %v3058_v20, %v2970_v48  ;;  %v7351_v20 = vld [vmem:[#allocation3 + $0xb0] sm:$0xf] }
 0x1e4   : > { %v3060_v46 = vpop.f32.mrf.mxu0  ;;  %v7352_v61 = vor.u32 %v9005_v63, %v7351_v20 }
 0x1e5   : > { %v10267_v28 = vadd.f32 %v3147_v24, %v3059_v21  ;;  %v1027_v21 = vpack.c.bf16 %v995_v52, %v995_v52 }
 0x1e6   : > { %v2882_v45 = vpop.f32.mrf.mxu2 }
 0x1e7   : > { %v2883_v7 = vadd.f32 %v2882_v45, %v10086_v59  ;;  %3289 = vmatmul.bf16.gmra.mxu3 %v7348_v15  ;;  %v1026_v59 = vpack.c.bf16 %v994_v47, %v994_v47  ;;  %v931_v15 = vpack.c.bf16 %v899_v31, %v899_v31  ;;  %v7381_v45 = vld [vmem:[#allocation3 + $0x114] sm:$0xf0]  ;;  %1059 = vst [vmem:[#allocation3 + $0x1a8] sm:$0xf] %v1027_v21  ;;  %v9013_v47 = vld [vmem:[#allocation3 + $0x110] sm:$0xf0] }
 0x1e8   : > { %v9014_v31 = vld [vmem:[#allocation3 + $0x118] sm:$0xf0] }
 0x1e9   : > { %v2972_v0 = vadd.f32 %v2971_v11, %v2883_v7  ;;  %1058 = vst [vmem:[#allocation3 + $0x184] sm:$0xf] %v1026_v59  ;;  %v930_v11 = vpack.c.bf16 %v898_v5, %v898_v5  ;;  %v1090_v7 = vld [vmem:[#allocation2 + $0xaa] sm:$0xff] }
 0x1ea   : > { %v2974_v24 = vpop.f32.mrf.mxu3  ;;  %v1122_v63 = vpack.c.bf16 %v1090_v7, %v1090_v7  ;;  %963 = vst [vmem:[#allocation3 + $0x1a4] sm:$0xf] %v931_v15  ;;  %v7387_v5 = vld [vmem:[#allocation3 + $0xf8] sm:$0xf] }
 0x1eb   : > { %3200 = vmatmul.bf16.gmra.mxu2 %v7344_v3  ;;  %v10272_v48 = vadd.f32 %v3060_v46, %v2972_v0  ;;  %v3152_v46 = vpop.f32.mrf.mxu1  ;;  %v1091_v3 = vld [vmem:[#allocation2 + $0xb2] sm:$0xff]  ;;  %962 = vst [vmem:[#allocation3 + $0x180] sm:$0xf] %v930_v11  ;;  %v7388_v11 = vor.u32 %v9014_v31, %v7387_v5 }
 0x1ec   : > { %v3063_v54 = vpop.f32.mrf.mxu0  ;;  %v1123_v0 = vpack.c.bf16 %v1091_v3, %v1091_v3  ;;  %1154 = vst [vmem:[#allocation3 + $0x188] sm:$0xf] %v1122_v63 }
 0x1ee   : > { %v2885_v33 = vpop.f32.mrf.mxu2  ;;  %1155 = vst [vmem:[#allocation3 + $0x1ac] sm:$0xf] %v1123_v0  ;;  %v901_v0 = vld [vmem:[#allocation2 + $0xc8] sm:$0xff] }
 0x1ef   : > { %3378 = vmatmul.bf16.gmra.mxu0 %v7352_v61  ;;  %v2886_v43 = vadd.f32 %v2885_v33, %v10093_v8  ;;  %v7379_v33 = vld [vmem:[#allocation3 + $0xf0] sm:$0xf] }
 0x1f0   : > { %v7380_v21 = vor.u32 %v9013_v47, %v7379_v33  ;;  %v9018_v47 = vld [vmem:[#allocation3 + $0x13c] sm:$0xf] }
 0x1f1   : > { %v2975_v36 = vadd.f32 %v2974_v24, %v2886_v43  ;;  %v7384_v24 = vor.u32 %v9009_v37, %v7381_v45 }
 0x1f2   : > { %v2976_v8 = vpop.f32.mrf.mxu3 }
 0x1f3   : > { %v3064_v20 = vadd.f32 %v3063_v54, %v2975_v36 }
 0x1f4   : > { %v3065_v61 = vpop.f32.mrf.mxu0 }
 0x1f5   : > { %v10275_v52 = vadd.f32 %v3152_v46, %v3064_v20  ;;  %v996_v46 = vld [vmem:[#allocation2 + $0xc1] sm:$0xff]  ;;  %v997_v20 = vld [vmem:[#allocation2 + $0xc9] sm:$0xff] }
 0x1f6   : > { %v2887_v43 = vpop.f32.mrf.mxu2  ;;  %v1028_v45 = vpack.c.bf16 %v996_v46, %v996_v46  ;;  %v1029_v63 = vpack.c.bf16 %v997_v20, %v997_v20 }
 0x1f7   : > { %v2888_v59 = vadd.f32 %v2887_v43, %v10103_v53  ;;  %3294 = vmatmul.bf16.gmra.mxu3 %v7384_v24  ;;  %v900_v53 = vld [vmem:[#allocation2 + $0xc0] sm:$0xff]  ;;  %v933_v24 = vpack.c.bf16 %v901_v0, %v901_v0 }
 0x1f8   : > { %1060 = vst [vmem:[#allocation3 + $0x1cc] sm:$0xf] %v1028_v45  ;;  %v1092_v43 = vld [vmem:[#allocation2 + $0xc2] sm:$0xff]  ;;  %v7423_v45 = vld [vmem:[#allocation3 + $0x140] sm:$0xf] }
 0x1f9   : > { %v2977_v54 = vadd.f32 %v2976_v8, %v2888_v59  ;;  %v932_v8 = vpack.c.bf16 %v900_v53, %v900_v53  ;;  %1061 = vst [vmem:[#allocation3 + $0x1f0] sm:$0xf] %v1029_v63  ;;  %v1093_v59 = vld [vmem:[#allocation2 + $0xca] sm:$0xff]  ;;  %v1124_v5 = vpack.c.bf16 %v1092_v43, %v1092_v43  ;;  %v9023_v63 = vld [vmem:[#allocation3 + $0x160] sm:$0xf0] }
 0x1fa   : > { %v2979_v3 = vpop.f32.mrf.mxu3  ;;  %v1125_v31 = vpack.c.bf16 %v1093_v59, %v1093_v59  ;;  %965 = vst [vmem:[#allocation3 + $0x1ec] sm:$0xf] %v933_v24  ;;  %v7424_v0 = vor.u32 %v9023_v63, %v7423_v45  ;;  %v998_v59 = vld [vmem:[#allocation2 + $0xd9] sm:$0xff]  ;;  %v999_v24 = vld [vmem:[#allocation2 + $0xe1] sm:$0xff] }
 0x1fb   : > { %3205 = vmatmul.bf16.gmra.mxu2 %v7380_v21  ;;  %v10278_v36 = vadd.f32 %v3065_v61, %v2977_v54  ;;  %v7417_v61 = vld [vmem:[#allocation3 + $0x15c] sm:$0xf0]  ;;  %964 = vst [vmem:[#allocation3 + $0x1c8] sm:$0xf] %v932_v8 }
 0x1fc   : > { %v3068_v7 = vpop.f32.mrf.mxu0  ;;  %v7420_v46 = vor.u32 %v9018_v47, %v7417_v61  ;;  %1156 = vst [vmem:[#allocation3 + $0x1d0] sm:$0xf] %v1124_v5  ;;  %v1030_v61 = vpack.c.bf16 %v998_v59, %v998_v59  ;;  %v1031_v5 = vpack.c.bf16 %v999_v24, %v999_v24 }
 0x1fd   : > { %1157 = vst [vmem:[#allocation3 + $0x1f4] sm:$0xf] %v1125_v31  ;;  %v903_v31 = vld [vmem:[#allocation2 + $0xe0] sm:$0xff] }
 0x1fe   : > { %v2890_v15 = vpop.f32.mrf.mxu2  ;;  %1062 = vst [vmem:[#allocation3 + $0x214] sm:$0xf] %v1030_v61  ;;  %v7459_v61 = vld [vmem:[#allocation3 + $0x188] sm:$0xf] }
 0x1ff   : > { %3383 = vmatmul.bf16.gmra.mxu0 %v7388_v11  ;;  %v2891_v37 = vadd.f32 %v2890_v15, %v10107_v19  ;;  %v7415_v11 = vld [vmem:[#allocation3 + $0x138] sm:$0xf]  ;;  %v9022_v15 = vld [vmem:[#allocation3 + $0x158] sm:$0xf0]  ;;  %1063 = vst [vmem:[#allocation3 + $0x238] sm:$0xf] %v1031_v5 }
 0x200   : > { %v9032_v5 = vld [vmem:[#allocation3 + $0x1a8] sm:$0xf0] }
 0x201   : > { %v2980_v33 = vadd.f32 %v2979_v3, %v2891_v37  ;;  %v7416_v37 = vor.u32 %v9022_v15, %v7415_v11  ;;  %v9027_v15 = vld [vmem:[#allocation3 + $0x184] sm:$0xf] }
 0x202   : > { %v2981_v19 = vpop.f32.mrf.mxu3 }
 0x203   : > { %v10281_v21 = vadd.f32 %v3068_v7, %v2980_v33 }
 0x204   : > { %v3070_v54 = vpop.f32.mrf.mxu0 }
 0x206   : > { %v2892_v3 = vpop.f32.mrf.mxu2 }
 0x207   : > { %v2893_v20 = vadd.f32 %v2892_v3, %v10111_v62  ;;  %3299 = vmatmul.bf16.gmra.mxu3 %v7420_v46  ;;  %v902_v62 = vld [vmem:[#allocation2 + $0xd8] sm:$0xff]  ;;  %v935_v46 = vpack.c.bf16 %v903_v31, %v903_v31  ;;  %v7460_v31 = vor.u32 %v9032_v5, %v7459_v61 }
 0x208   : > { %v1094_v3 = vld [vmem:[#allocation2 + $0xda] sm:$0xff] }
 0x209   : > { %v2982_v53 = vadd.f32 %v2981_v19, %v2893_v20  ;;  %v934_v19 = vpack.c.bf16 %v902_v62, %v902_v62  ;;  %v1095_v20 = vld [vmem:[#allocation2 + $0xe2] sm:$0xff]  ;;  %v1126_v45 = vpack.c.bf16 %v1094_v3, %v1094_v3  ;;  %967 = vst [vmem:[#allocation3 + $0x234] sm:$0xf] %v935_v46  ;;  %v1001_v46 = vld [vmem:[#allocation2 + $0xf9] sm:$0xff] }
 0x20a   : > { %v2984_v8 = vpop.f32.mrf.mxu3  ;;  %v1127_v63 = vpack.c.bf16 %v1095_v20, %v1095_v20  ;;  %v1000_v20 = vld [vmem:[#allocation2 + $0xf1] sm:$0xff] }
 0x20b   : > { %3210 = vmatmul.bf16.gmra.mxu2 %v7416_v37  ;;  %v10284_v7 = vadd.f32 %v3070_v54, %v2982_v53  ;;  %v7453_v54 = vld [vmem:[#allocation3 + $0x1a4] sm:$0xf0]  ;;  %966 = vst [vmem:[#allocation3 + $0x210] sm:$0xf] %v934_v19 }
 0x20c   : > { %v3073_v33 = vpop.f32.mrf.mxu0  ;;  %v7456_v59 = vor.u32 %v9027_v15, %v7453_v54  ;;  %1158 = vst [vmem:[#allocation3 + $0x218] sm:$0xf] %v1126_v45  ;;  %v1032_v54 = vpack.c.bf16 %v1000_v20, %v1000_v20  ;;  %v1033_v45 = vpack.c.bf16 %v1001_v46, %v1001_v46 }
 0x20d   : > { %1159 = vst [vmem:[#allocation3 + $0x23c] sm:$0xf] %v1127_v63  ;;  %v905_v63 = vld [vmem:[#allocation2 + $0xf8] sm:$0xff] }
 0x20e   : > { %v2895_v43 = vpop.f32.mrf.mxu2  ;;  %1064 = vst [vmem:[#allocation3 + $0x25c] sm:$0xf] %v1032_v54  ;;  %v7495_v54 = vld [vmem:[#allocation3 + $0x1d0] sm:$0xf] }
 0x20f   : > { %3388 = vmatmul.bf16.gmra.mxu0 %v7424_v0  ;;  %v2896_v47 = vadd.f32 %v2895_v43, %v10118_v49  ;;  %v7451_v0 = vld [vmem:[#allocation3 + $0x180] sm:$0xf]  ;;  %v9031_v43 = vld [vmem:[#allocation3 + $0x1a0] sm:$0xf0]  ;;  %1065 = vst [vmem:[#allocation3 + $0x280] sm:$0xf] %v1033_v45 }
 0x210   : > { %v9041_v45 = vld [vmem:[#allocation3 + $0x1f0] sm:$0xf0] }
 0x211   : > { %v2985_v11 = vadd.f32 %v2984_v8, %v2896_v47  ;;  %v7452_v47 = vor.u32 %v9031_v43, %v7451_v0  ;;  %v9036_v43 = vld [vmem:[#allocation3 + $0x1cc] sm:$0xf] }
 0x212   : > { %v2986_v49 = vpop.f32.mrf.mxu3 }
 0x213   : > { %v10287_v37 = vadd.f32 %v3073_v33, %v2985_v11 }
 0x214   : > { %v3075_v53 = vpop.f32.mrf.mxu0 }
 0x216   : > { %v2897_v8 = vpop.f32.mrf.mxu2 }
 0x217   : > { %v2898_v24 = vadd.f32 %v2897_v8, %v10128_v44  ;;  %3304 = vmatmul.bf16.gmra.mxu3 %v7456_v59  ;;  %v904_v44 = vld [vmem:[#allocation2 + $0xf0] sm:$0xff]  ;;  %v937_v59 = vpack.c.bf16 %v905_v63, %v905_v63  ;;  %v7496_v63 = vor.u32 %v9041_v45, %v7495_v54 }
 0x218   : > { %v1096_v8 = vld [vmem:[#allocation2 + $0xf2] sm:$0xff] }
 0x219   : > { %v2987_v62 = vadd.f32 %v2986_v49, %v2898_v24  ;;  %v936_v49 = vpack.c.bf16 %v904_v44, %v904_v44  ;;  %v1097_v24 = vld [vmem:[#allocation2 + $0xfa] sm:$0xff]  ;;  %v1128_v61 = vpack.c.bf16 %v1096_v8, %v1096_v8  ;;  %969 = vst [vmem:[#allocation3 + $0x27c] sm:$0xf] %v937_v59  ;;  %v1003_v59 = vld [vmem:[#allocation2 + $0x111] sm:$0xff] }
 0x21a   : > { %v2989_v19 = vpop.f32.mrf.mxu3  ;;  %v1129_v5 = vpack.c.bf16 %v1097_v24, %v1097_v24  ;;  %v1002_v24 = vld [vmem:[#allocation2 + $0x109] sm:$0xff] }
 0x21b   : > { %3215 = vmatmul.bf16.gmra.mxu2 %v7452_v47  ;;  %v10290_v33 = vadd.f32 %v3075_v53, %v2987_v62  ;;  %v7489_v53 = vld [vmem:[#allocation3 + $0x1ec] sm:$0xf0]  ;;  %968 = vst [vmem:[#allocation3 + $0x258] sm:$0xf] %v936_v49 }
 0x21c   : > { %v3078_v11 = vpop.f32.mrf.mxu0  ;;  %v7492_v20 = vor.u32 %v9036_v43, %v7489_v53  ;;  %1160 = vst [vmem:[#allocation3 + $0x260] sm:$0xf] %v1128_v61  ;;  %v1034_v53 = vpack.c.bf16 %v1002_v24, %v1002_v24  ;;  %v1035_v61 = vpack.c.bf16 %v1003_v59, %v1003_v59 }
 0x21d   : > { %11864 = vst [vmem:[#allocation39_spill] sm:$0xff] %v10290_v33 }
 0x21e   : > { %v2900_v3 = vpop.f32.mrf.mxu2  ;;  %1161 = vst [vmem:[#allocation3 + $0x284] sm:$0xf] %v1129_v5  ;;  %v907_v5 = vld [vmem:[#allocation2 + $0x110] sm:$0xff] }
 0x21f   : > { %3393 = vmatmul.bf16.gmra.mxu0 %v7460_v31  ;;  %v2901_v15 = vadd.f32 %v2900_v3, %v10132_v60  ;;  %v7487_v31 = vld [vmem:[#allocation3 + $0x1c8] sm:$0xf]  ;;  %v9040_v3 = vld [vmem:[#allocation3 + $0x1e8] sm:$0xf0]  ;;  %1066 = vst [vmem:[#allocation3 + $0x2a4] sm:$0xf] %v1034_v53 }
 0x220   : > { %1067 = vst [vmem:[#allocation3 + $0x2c8] sm:$0xf] %v1035_v61  ;;  %v7531_v53 = vld [vmem:[#allocation3 + $0x218] sm:$0xf]  ;;  %v9050_v61 = vld [vmem:[#allocation3 + $0x238] sm:$0xf0] }
 0x221   : > { %v2990_v0 = vadd.f32 %v2989_v19, %v2901_v15  ;;  %v7488_v15 = vor.u32 %v9040_v3, %v7487_v31  ;;  %v9045_v3 = vld [vmem:[#allocation3 + $0x214] sm:$0xf] }
 0x222   : > { %v2991_v60 = vpop.f32.mrf.mxu3 }
 0x223   : > { %v10293_v47 = vadd.f32 %v3078_v11, %v2990_v0 }
 0x224   : > { %v3080_v62 = vpop.f32.mrf.mxu0 }
 0x225   : > { %11865 = vst [vmem:[#allocation40_spill] sm:$0xff] %v10293_v47 }
 0x226   : > { %v2902_v19 = vpop.f32.mrf.mxu2 }
 0x227   : > { %v2903_v46 = vadd.f32 %v2902_v19, %v10136_v23  ;;  %3309 = vmatmul.bf16.gmra.mxu3 %v7492_v20  ;;  %v906_v23 = vld [vmem:[#allocation2 + $0x108] sm:$0xff]  ;;  %v939_v20 = vpack.c.bf16 %v907_v5, %v907_v5  ;;  %v7532_v5 = vor.u32 %v9050_v61, %v7531_v53 }
 0x228   : > { %v1098_v19 = vld [vmem:[#allocation2 + $0x10a] sm:$0xff] }
 0x229   : > { %v2992_v44 = vadd.f32 %v2991_v60, %v2903_v46  ;;  %v938_v60 = vpack.c.bf16 %v906_v23, %v906_v23  ;;  %v1099_v46 = vld [vmem:[#allocation2 + $0x112] sm:$0xff]  ;;  %v1130_v54 = vpack.c.bf16 %v1098_v19, %v1098_v19  ;;  %971 = vst [vmem:[#allocation3 + $0x2c4] sm:$0xf] %v939_v20  ;;  %v1005_v20 = vld [vmem:[#allocation2 + $0x129] sm:$0xff] }
 0x22a   : > { %v2994_v49 = vpop.f32.mrf.mxu3  ;;  %v1131_v45 = vpack.c.bf16 %v1099_v46, %v1099_v46  ;;  %v1004_v46 = vld [vmem:[#allocation2 + $0x121] sm:$0xff] }
 0x22b   : > { %3220 = vmatmul.bf16.gmra.mxu2 %v7488_v15  ;;  %v10296_v11 = vadd.f32 %v3080_v62, %v2992_v44  ;;  %v7525_v62 = vld [vmem:[#allocation3 + $0x234] sm:$0xf0]  ;;  %970 = vst [vmem:[#allocation3 + $0x2a0] sm:$0xf] %v938_v60 }
 0x22c   : > { %v3083_v0 = vpop.f32.mrf.mxu0  ;;  %v7528_v24 = vor.u32 %v9045_v3, %v7525_v62  ;;  %1162 = vst [vmem:[#allocation3 + $0x2a8] sm:$0xf] %v1130_v54  ;;  %v1036_v62 = vpack.c.bf16 %v1004_v46, %v1004_v46  ;;  %v1037_v54 = vpack.c.bf16 %v1005_v20, %v1005_v20 }
 0x22d   : > { %11866 = vst [vmem:[#allocation41_spill] sm:$0xff] %v10296_v11 }
 0x22e   : > { %v2905_v8 = vpop.f32.mrf.mxu2  ;;  %1163 = vst [vmem:[#allocation3 + $0x2cc] sm:$0xf] %v1131_v45  ;;  %v909_v45 = vld [vmem:[#allocation2 + $0x128] sm:$0xff] }
 0x22f   : > { %3398 = vmatmul.bf16.gmra.mxu0 %v7496_v63  ;;  %v2906_v43 = vadd.f32 %v2905_v8, %v10143_v42  ;;  %v7523_v63 = vld [vmem:[#allocation3 + $0x210] sm:$0xf]  ;;  %v9049_v8 = vld [vmem:[#allocation3 + $0x230] sm:$0xf0]  ;;  %1068 = vst [vmem:[#allocation3 + $0x2ec] sm:$0xf] %v1036_v62 }
 0x230   : > { %1069 = vst [vmem:[#allocation3 + $0x310] sm:$0xf] %v1037_v54  ;;  %v7567_v62 = vld [vmem:[#allocation3 + $0x260] sm:$0xf]  ;;  %v9059_v54 = vld [vmem:[#allocation3 + $0x280] sm:$0xf0] }
 0x231   : > { %v2995_v31 = vadd.f32 %v2994_v49, %v2906_v43  ;;  %v7524_v43 = vor.u32 %v9049_v8, %v7523_v63  ;;  %v9054_v8 = vld [vmem:[#allocation3 + $0x25c] sm:$0xf] }
 0x232   : > { %v2996_v42 = vpop.f32.mrf.mxu3 }
 0x233   : > { %v10299_v15 = vadd.f32 %v3083_v0, %v2995_v31 }
 0x234   : > { %v3085_v44 = vpop.f32.mrf.mxu0 }
 0x235   : > { %11867 = vst [vmem:[#allocation42_spill] sm:$0xff] %v10299_v15 }
 0x236   : > { %v2907_v49 = vpop.f32.mrf.mxu2 }
 0x237   : > { %v2908_v59 = vadd.f32 %v2907_v49, %v10153_v22  ;;  %3314 = vmatmul.bf16.gmra.mxu3 %v7528_v24  ;;  %v908_v22 = vld [vmem:[#allocation2 + $0x120] sm:$0xff]  ;;  %v941_v24 = vpack.c.bf16 %v909_v45, %v909_v45  ;;  %v7568_v45 = vor.u32 %v9059_v54, %v7567_v62 }
 0x238   : > { %v1100_v49 = vld [vmem:[#allocation2 + $0x122] sm:$0xff] }
 0x239   : > { %v2997_v23 = vadd.f32 %v2996_v42, %v2908_v59  ;;  %v940_v42 = vpack.c.bf16 %v908_v22, %v908_v22  ;;  %v1101_v59 = vld [vmem:[#allocation2 + $0x12a] sm:$0xff]  ;;  %v1132_v53 = vpack.c.bf16 %v1100_v49, %v1100_v49  ;;  %973 = vst [vmem:[#allocation3 + $0x30c] sm:$0xf] %v941_v24  ;;  %v1007_v24 = vld [vmem:[#allocation2 + $0x141] sm:$0xff] }
 0x23a   : > { %v2999_v60 = vpop.f32.mrf.mxu3  ;;  %v1133_v61 = vpack.c.bf16 %v1101_v59, %v1101_v59  ;;  %v1006_v59 = vld [vmem:[#allocation2 + $0x139] sm:$0xff] }
 0x23b   : > { %3225 = vmatmul.bf16.gmra.mxu2 %v7524_v43  ;;  %v10302_v0 = vadd.f32 %v3085_v44, %v2997_v23  ;;  %v7561_v44 = vld [vmem:[#allocation3 + $0x27c] sm:$0xf0]  ;;  %972 = vst [vmem:[#allocation3 + $0x2e8] sm:$0xf] %v940_v42 }
 0x23c   : > { %v3088_v31 = vpop.f32.mrf.mxu0  ;;  %v7564_v46 = vor.u32 %v9054_v8, %v7561_v44  ;;  %1164 = vst [vmem:[#allocation3 + $0x2f0] sm:$0xf] %v1132_v53  ;;  %v1038_v44 = vpack.c.bf16 %v1006_v59, %v1006_v59  ;;  %v1039_v53 = vpack.c.bf16 %v1007_v24, %v1007_v24 }
 0x23d   : > { %11868 = vst [vmem:[#allocation43_spill] sm:$0xff] %v10302_v0 }
 0x23e   : > { %v2910_v19 = vpop.f32.mrf.mxu2  ;;  %1165 = vst [vmem:[#allocation3 + $0x314] sm:$0xf] %v1133_v61  ;;  %v911_v61 = vld [vmem:[#allocation2 + $0x140] sm:$0xff] }
 0x23f   : > { %3403 = vmatmul.bf16.gmra.mxu0 %v7532_v5  ;;  %v2911_v3 = vadd.f32 %v2910_v19, %v10157_v4  ;;  %v7559_v5 = vld [vmem:[#allocation3 + $0x258] sm:$0xf]  ;;  %v9058_v19 = vld [vmem:[#allocation3 + $0x278] sm:$0xf0]  ;;  %1070 = vst [vmem:[#allocation3 + $0x334] sm:$0xf] %v1038_v44 }
 0x240   : > { %1071 = vst [vmem:[#allocation3 + $0x358] sm:$0xf] %v1039_v53  ;;  %v7603_v44 = vld [vmem:[#allocation3 + $0x2a8] sm:$0xf]  ;;  %v9068_v53 = vld [vmem:[#allocation3 + $0x2c8] sm:$0xf0] }
 0x241   : > { %v3000_v63 = vadd.f32 %v2999_v60, %v2911_v3  ;;  %v7560_v3 = vor.u32 %v9058_v19, %v7559_v5  ;;  %v9063_v19 = vld [vmem:[#allocation3 + $0x2a4] sm:$0xf] }
 0x242   : > { %v3001_v4 = vpop.f32.mrf.mxu3 }
 0x243   : > { %v10305_v43 = vadd.f32 %v3088_v31, %v3000_v63 }
 0x244   : > { %v3090_v23 = vpop.f32.mrf.mxu0 }
 0x245   : > { %11869 = vst [vmem:[#allocation44_spill] sm:$0xff] %v10305_v43 }
 0x246   : > { %v2912_v60 = vpop.f32.mrf.mxu2 }
 0x247   : > { %v2913_v20 = vadd.f32 %v2912_v60, %v10161_v38  ;;  %3319 = vmatmul.bf16.gmra.mxu3 %v7564_v46  ;;  %v910_v38 = vld [vmem:[#allocation2 + $0x138] sm:$0xff]  ;;  %v943_v46 = vpack.c.bf16 %v911_v61, %v911_v61  ;;  %v7604_v61 = vor.u32 %v9068_v53, %v7603_v44 }
 0x248   : > { %v1102_v60 = vld [vmem:[#allocation2 + $0x13a] sm:$0xff] }
 0x249   : > { %v3002_v22 = vadd.f32 %v3001_v4, %v2913_v20  ;;  %v942_v4 = vpack.c.bf16 %v910_v38, %v910_v38  ;;  %v1103_v20 = vld [vmem:[#allocation2 + $0x142] sm:$0xff]  ;;  %v1134_v62 = vpack.c.bf16 %v1102_v60, %v1102_v60  ;;  %975 = vst [vmem:[#allocation3 + $0x354] sm:$0xf] %v943_v46  ;;  %v1009_v46 = vld [vmem:[#allocation2 + $0x159] sm:$0xff] }
 0x24a   : > { %v3280_v42 = vpop.f32.mrf.mxu3  ;;  %v1135_v54 = vpack.c.bf16 %v1103_v20, %v1103_v20  ;;  %v1008_v20 = vld [vmem:[#allocation2 + $0x151] sm:$0xff] }
 0x24b   : > { %3230 = vmatmul.bf16.gmra.mxu2 %v7560_v3  ;;  %v10308_v31 = vadd.f32 %v3090_v23, %v3002_v22  ;;  %v7597_v23 = vld [vmem:[#allocation3 + $0x2c4] sm:$0xf0]  ;;  %974 = vst [vmem:[#allocation3 + $0x330] sm:$0xf] %v942_v4 }
 0x24c   : > { %v3369_v63 = vpop.f32.mrf.mxu0  ;;  %v7600_v59 = vor.u32 %v9063_v19, %v7597_v23  ;;  %1166 = vst [vmem:[#allocation3 + $0x338] sm:$0xf] %v1134_v62  ;;  %v1040_v23 = vpack.c.bf16 %v1008_v20, %v1008_v20  ;;  %v1041_v62 = vpack.c.bf16 %v1009_v46, %v1009_v46 }
 0x24d   : > { %11870 = vst [vmem:[#allocation45_spill] sm:$0xff] %v10308_v31 }
 0x24e   : > { %v3191_v49 = vpop.f32.mrf.mxu2  ;;  %1167 = vst [vmem:[#allocation3 + $0x35c] sm:$0xf] %v1135_v54  ;;  %v913_v54 = vld [vmem:[#allocation2 + $0x158] sm:$0xff] }
 0x24f   : > { %3408 = vmatmul.bf16.gmra.mxu0 %v7568_v45  ;;  %v3192_v8 = vadd.f32 %v3191_v49, %v10170_v2  ;;  %v7595_v45 = vld [vmem:[#allocation3 + $0x2a0] sm:$0xf]  ;;  %v9067_v49 = vld [vmem:[#allocation3 + $0x2c0] sm:$0xf0]  ;;  %1072 = vst [vmem:[#allocation3 + $0x37c] sm:$0xf] %v1040_v23 }
 0x250   : > { %1073 = vst [vmem:[#allocation3 + $0x3a0] sm:$0xf] %v1041_v62  ;;  %v7639_v23 = vld [vmem:[#allocation3 + $0x2f0] sm:$0xf]  ;;  %v9077_v62 = vld [vmem:[#allocation3 + $0x310] sm:$0xf0] }
 0x251   : > { %v3281_v5 = vadd.f32 %v3280_v42, %v3192_v8  ;;  %v7596_v8 = vor.u32 %v9067_v49, %v7595_v45  ;;  %v9072_v49 = vld [vmem:[#allocation3 + $0x2ec] sm:$0xf] }
 0x252   : > { %v3282_v2 = vpop.f32.mrf.mxu3 }
 0x253   : > { %v10311_v3 = vadd.f32 %v3369_v63, %v3281_v5 }
 0x254   : > { %v3371_v22 = vpop.f32.mrf.mxu0 }
 0x255   : > { %11871 = vst [vmem:[#allocation46_spill] sm:$0xff] %v10311_v3 }
 0x256   : > { %v3193_v42 = vpop.f32.mrf.mxu2 }
 0x257   : > { %v3194_v24 = vadd.f32 %v3193_v42, %v10176_v29  ;;  %3324 = vmatmul.bf16.gmra.mxu3 %v7600_v59  ;;  %v912_v29 = vld [vmem:[#allocation2 + $0x150] sm:$0xff]  ;;  %v7633_v59 = vld [vmem:[#allocation3 + $0x30c] sm:$0xf0] }
 0x258   : > { %v1104_v42 = vld [vmem:[#allocation2 + $0x152] sm:$0xff]  ;;  %v7636_v20 = vor.u32 %v9072_v49, %v7633_v59 }
 0x259   : > { %v3283_v38 = vadd.f32 %v3282_v2, %v3194_v24  ;;  %v944_v2 = vpack.c.bf16 %v912_v29, %v912_v29  ;;  %v1105_v24 = vld [vmem:[#allocation2 + $0x15a] sm:$0xff]  ;;  %v1136_v44 = vpack.c.bf16 %v1104_v42, %v1104_v42 }
 0x25a   : > { %v3285_v4 = vpop.f32.mrf.mxu3  ;;  %v1137_v53 = vpack.c.bf16 %v1105_v24, %v1105_v24  ;;  %v1010_v24 = vld [vmem:[#allocation2 + $0x169] sm:$0xff] }
 0x25b   : > { %v10314_v63 = vadd.f32 %v3371_v22, %v3283_v38  ;;  %3235 = vmatmul.bf16.gmra.mxu2 %v7596_v8  ;;  %v945_v22 = vpack.c.bf16 %v913_v54, %v913_v54  ;;  %976 = vst [vmem:[#allocation3 + $0x378] sm:$0xf] %v944_v2  ;;  %v7640_v54 = vor.u32 %v9077_v62, %v7639_v23 }
 0x25c   : > { %v3374_v5 = vpop.f32.mrf.mxu0  ;;  %1168 = vst [vmem:[#allocation3 + $0x380] sm:$0xf] %v1136_v44  ;;  %v1042_v59 = vpack.c.bf16 %v1010_v24, %v1010_v24 }
 0x25d   : > { %11872 = vst [vmem:[#allocation47_spill] sm:$0xff] %v10314_v63 }
 0x25e   : > { %v3196_v60 = vpop.f32.mrf.mxu2  ;;  %977 = vst [vmem:[#allocation3 + $0x39c] sm:$0xf] %v945_v22  ;;  %v1011_v22 = vld [vmem:[#allocation2 + $0x171] sm:$0xff] }
 0x25f   : > { %3413 = vmatmul.bf16.gmra.mxu0 %v7604_v61  ;;  %v3197_v19 = vadd.f32 %v3196_v60, %v10179_v18  ;;  %v7631_v61 = vld [vmem:[#allocation3 + $0x2e8] sm:$0xf]  ;;  %v9076_v60 = vld [vmem:[#allocation3 + $0x308] sm:$0xf0]  ;;  %1169 = vst [vmem:[#allocation3 + $0x3a4] sm:$0xf] %v1137_v53  ;;  %v1043_v44 = vpack.c.bf16 %v1011_v22, %v1011_v22 }
 0x260   : > { %v915_v53 = vld [vmem:[#allocation2 + $0x170] sm:$0xff]  ;;  %1074 = vst [vmem:[#allocation3 + $0x3c4] sm:$0xf] %v1042_v59  ;;  %v7675_v59 = vld [vmem:[#allocation3 + $0x338] sm:$0xf] }
 0x261   : > { %v3286_v45 = vadd.f32 %v3285_v4, %v3197_v19  ;;  %v7632_v19 = vor.u32 %v9076_v60, %v7631_v61  ;;  %v9081_v60 = vld [vmem:[#allocation3 + $0x334] sm:$0xf]  ;;  %1075 = vst [vmem:[#allocation3 + $0x3e8] sm:$0xf] %v1043_v44  ;;  %v9086_v44 = vld [vmem:[#allocation3 + $0x358] sm:$0xf0] }
 0x262   : > { %v3287_v18 = vpop.f32.mrf.mxu3 }
 0x263   : > { %v10317_v8 = vadd.f32 %v3374_v5, %v3286_v45 }
 0x264   : > { %v3376_v38 = vpop.f32.mrf.mxu0 }
 0x266   : > { %v3198_v4 = vpop.f32.mrf.mxu2 }
 0x267   : > { %v3199_v46 = vadd.f32 %v3198_v4, %v10185_v57  ;;  %3329 = vmatmul.bf16.gmra.mxu3 %v7636_v20  ;;  %v914_v57 = vld [vmem:[#allocation2 + $0x168] sm:$0xff] }
 0x268   : > { %v7669_v20 = vld [vmem:[#allocation3 + $0x354] sm:$0xf0] }
 0x269   : > { %v3288_v29 = vadd.f32 %v3287_v18, %v3199_v46  ;;  %v946_v18 = vpack.c.bf16 %v914_v57, %v914_v57  ;;  %v1106_v4 = vld [vmem:[#allocation2 + $0x16a] sm:$0xff]  ;;  %v1107_v46 = vld [vmem:[#allocation2 + $0x172] sm:$0xff]  ;;  %v7672_v24 = vor.u32 %v9081_v60, %v7669_v20  ;;  %v1012_v20 = vld [vmem:[#allocation2 + $0x181] sm:$0xff] }
 0x26a   : > { %v3290_v2 = vpop.f32.mrf.mxu3  ;;  %v1138_v23 = vpack.c.bf16 %v1106_v4, %v1106_v4  ;;  %v1139_v62 = vpack.c.bf16 %v1107_v46, %v1107_v46  ;;  %v1013_v4 = vld [vmem:[#allocation2 + $0x189] sm:$0xff]  ;;  %v1044_v46 = vpack.c.bf16 %v1012_v20, %v1012_v20 }
 0x26b   : > { %v10320_v5 = vadd.f32 %v3376_v38, %v3288_v29  ;;  %3240 = vmatmul.bf16.gmra.mxu2 %v7632_v19  ;;  %v947_v38 = vpack.c.bf16 %v915_v53, %v915_v53  ;;  %978 = vst [vmem:[#allocation3 + $0x3c0] sm:$0xf] %v946_v18 }
 0x26c   : > { %v3379_v45 = vpop.f32.mrf.mxu0  ;;  %1170 = vst [vmem:[#allocation3 + $0x3c8] sm:$0xf] %v1138_v23  ;;  %v1045_v23 = vpack.c.bf16 %v1013_v4, %v1013_v4 }
 0x26d   : > { %979 = vst [vmem:[#allocation3 + $0x3e4] sm:$0xf] %v947_v38 }
 0x26e   : > { %v3201_v42 = vpop.f32.mrf.mxu2  ;;  %1171 = vst [vmem:[#allocation3 + $0x3ec] sm:$0xf] %v1139_v62  ;;  %v916_v62 = vld [vmem:[#allocation2 + $0x180] sm:$0xff] }
 0x26f   : > { %3418 = vmatmul.bf16.gmra.mxu0 %v7640_v54  ;;  %v3202_v49 = vadd.f32 %v3201_v42, %v10191_v30  ;;  %v7667_v54 = vld [vmem:[#allocation3 + $0x330] sm:$0xf]  ;;  %v9085_v42 = vld [vmem:[#allocation3 + $0x350] sm:$0xf0]  ;;  %1076 = vst [vmem:[#allocation3 + $0x40c] sm:$0xf] %v1044_v46 }
 0x270   : > { %1077 = vst [vmem:[#allocation3 + $0x430] sm:$0xf] %v1045_v23  ;;  %v7711_v46 = vld [vmem:[#allocation3 + $0x380] sm:$0xf]  ;;  %v9095_v23 = vld [vmem:[#allocation3 + $0x3a0] sm:$0xf0] }
 0x271   : > { %v3291_v61 = vadd.f32 %v3290_v2, %v3202_v49  ;;  %v7668_v49 = vor.u32 %v9085_v42, %v7667_v54  ;;  %v917_v54 = vld [vmem:[#allocation2 + $0x188] sm:$0xff] }
 0x272   : > { %v3292_v30 = vpop.f32.mrf.mxu3 }
 0x273   : > { %v10323_v19 = vadd.f32 %v3379_v45, %v3291_v61  ;;  %v9346_v45 = vld [vmem:[%s11789_s2 + $0x38] sm:$0xff]  ;;  %v7676_v61 = vor.u32 %v9086_v44, %v7675_v59 }
 0x274   : > { %v3381_v29 = vpop.f32.mrf.mxu0  ;;  %6110 = vmatpush.bf16.msra.mxu1 %v9346_v45 }
 0x276   : > { %v3203_v2 = vpop.f32.mrf.mxu2 }
 0x277   : > { %v3204_v22 = vadd.f32 %v3203_v2, %v10197_v55  ;;  %3334 = vmatmul.bf16.gmra.mxu3 %v7672_v24  ;;  %v948_v24 = vpack.c.bf16 %v916_v62, %v916_v62  ;;  %v7705_v2 = vld [vmem:[#allocation3 + $0x39c] sm:$0xf0]  ;;  %v256_v62 = vld [vmem:[#allocation2 + $0x19a] sm:$0x1] }
 0x278   : > { %274 = vst [vmem:[#allocation2 + $0x198] sm:$0x1] %v256_v62 }
 0x279   : > { %v3293_v57 = vadd.f32 %v3292_v30, %v3204_v22  ;;  %v9090_v30 = vld [vmem:[#allocation3 + $0x37c] sm:$0xf]  ;;  %v1108_v22 = vld [vmem:[#allocation2 + $0x182] sm:$0xff]  ;;  %980 = vst [vmem:[#allocation3 + $0x408] sm:$0xf] %v948_v24  ;;  %v7712_v24 = vor.u32 %v9095_v23, %v7711_v46 }
 0x27a   : > { %v3295_v18 = vpop.f32.mrf.mxu3  ;;  %v1140_v59 = vpack.c.bf16 %v1108_v22, %v1108_v22  ;;  %v7708_v20 = vor.u32 %v9090_v30, %v7705_v2  ;;  %v1014_v22 = vld [vmem:[#allocation2 + $0x199] sm:$0xff] }
 0x27b   : > { %v10329_v53 = vadd.f32 %v3381_v29, %v3293_v57  ;;  %3245 = vmatmul.bf16.gmra.mxu2 %v7668_v49  ;;  %v949_v29 = vpack.c.bf16 %v917_v54, %v917_v54  ;;  %v1109_v49 = vld [vmem:[#allocation2 + $0x18a] sm:$0xff]  ;;  %v292_v54 = vld [vmem:[#allocation2 + $0x1a7] sm:$0x1] }
 0x27c   : > { %v3384_v60 = vpop.f32.mrf.mxu0  ;;  %v1141_v44 = vpack.c.bf16 %v1109_v49, %v1109_v49  ;;  %1172 = vst [vmem:[#allocation3 + $0x410] sm:$0xf] %v1140_v59  ;;  %v1015_v49 = vld [vmem:[#allocation2 + $0x1a1] sm:$0xff]  ;;  %v1046_v59 = vpack.c.bf16 %v1014_v22, %v1014_v22 }
 0x27d   : > { %981 = vst [vmem:[#allocation3 + $0x42c] sm:$0xf] %v949_v29 }
 0x27e   : > { %v3206_v38 = vpop.f32.mrf.mxu2  ;;  %1173 = vst [vmem:[#allocation3 + $0x434] sm:$0xf] %v1141_v44  ;;  %v1047_v44 = vpack.c.bf16 %v1015_v49, %v1015_v49 }
 0x27f   : > { %3423 = vmatmul.bf16.gmra.mxu0 %v7676_v61  ;;  %v3207_v55 = vadd.f32 %v3206_v38, %v10200_v41  ;;  %v7703_v61 = vld [vmem:[#allocation3 + $0x378] sm:$0xf]  ;;  %v9094_v38 = vld [vmem:[#allocation3 + $0x398] sm:$0xf0]  ;;  %310 = vst [vmem:[#allocation2 + $0x1a9] sm:$0x1] %v292_v54 }
 0x280   : > { %1078 = vst [vmem:[#allocation3 + $0x454] sm:$0xf] %v1046_v59  ;;  %v9104_v59 = vld [vmem:[#allocation3 + $0x3e8] sm:$0xf0] }
 0x281   : > { %v3296_v42 = vadd.f32 %v3295_v18, %v3207_v55  ;;  %v7704_v55 = vor.u32 %v9094_v38, %v7703_v61  ;;  %v918_v61 = vld [vmem:[#allocation2 + $0x198] sm:$0xff]  ;;  %1079 = vst [vmem:[#allocation3 + $0x478] sm:$0xf] %v1047_v44 }
 0x282   : > { %v3297_v41 = vpop.f32.mrf.mxu3 }
 0x283   : > { %v10332_v45 = vadd.f32 %v3384_v60, %v3296_v42 }
 0x284   : > { %v3386_v57 = vpop.f32.mrf.mxu0 }
 0x286   : > { %v3208_v18 = vpop.f32.mrf.mxu2  ;;  %v1111_v46 = vld [vmem:[#allocation2 + $0x1a2] sm:$0xff] }
 0x287   : > { %v3209_v4 = vadd.f32 %v3208_v18, %v10214_v17  ;;  %3339 = vmatmul.bf16.gmra.mxu3 %v7708_v20  ;;  %v9099_v20 = vld [vmem:[#allocation3 + $0x3c4] sm:$0xf] }
 0x289   : > { %v3298_v60 = vadd.f32 %v3297_v41, %v3209_v4  ;;  %v919_v41 = vld [vmem:[#allocation2 + $0x1a0] sm:$0xff]  ;;  %v7741_v4 = vld [vmem:[#allocation3 + $0x3e4] sm:$0xf0] }
 0x28a   : > { %v3300_v30 = vpop.f32.mrf.mxu3  ;;  %v951_v18 = vpack.c.bf16 %v919_v41, %v919_v41 }
 0x28b   : > { %v10335_v42 = vadd.f32 %v3386_v57, %v3298_v60  ;;  %3250 = vmatmul.bf16.gmra.mxu2 %v7704_v55  ;;  %v950_v57 = vpack.c.bf16 %v918_v61, %v918_v61  ;;  %v1110_v55 = vld [vmem:[#allocation2 + $0x19a] sm:$0xff]  ;;  %v1143_v60 = vpack.c.bf16 %v1111_v46, %v1111_v46 }
 0x28c   : > { %v3389_v29 = vpop.f32.mrf.mxu0  ;;  %v1142_v62 = vpack.c.bf16 %v1110_v55, %v1110_v55  ;;  %983 = vst [vmem:[#allocation3 + $0x474] sm:$0xf] %v951_v18  ;;  %v9108_v18 = vld [vmem:[#allocation3 + $0x40c] sm:$0xf] }
 0x28d   : > { %982 = vst [vmem:[#allocation3 + $0x450] sm:$0xf] %v950_v57 }
 0x28e   : > { %v3211_v2 = vpop.f32.mrf.mxu2  ;;  %1174 = vst [vmem:[#allocation3 + $0x458] sm:$0xf] %v1142_v62 }
 0x28f   : > { %3428 = vmatmul.bf16.gmra.mxu0 %v7712_v24  ;;  %v3212_v17 = vadd.f32 %v3211_v2, %v10226_v16  ;;  %v7739_v24 = vld [vmem:[#allocation3 + $0x3c0] sm:$0xf]  ;;  %v9103_v2 = vld [vmem:[#allocation3 + $0x3e0] sm:$0xf0]  ;;  %1175 = vst [vmem:[#allocation3 + $0x47c] sm:$0xf] %v1143_v60 }
 0x290   : > { %v7740_v49 = vor.u32 %v9103_v2, %v7739_v24  ;;  %v7775_v60 = vld [vmem:[#allocation3 + $0x408] sm:$0xf]  ;;  %v9112_v24 = vld [vmem:[#allocation3 + $0x428] sm:$0xf0] }
 0x291   : > { %v3301_v38 = vadd.f32 %v3300_v30, %v3212_v17  ;;  %v7744_v30 = vor.u32 %v9099_v20, %v7741_v4  ;;  %v7747_v17 = vld [vmem:[#allocation3 + $0x3c8] sm:$0xf]  ;;  %v7777_v4 = vld [vmem:[#allocation3 + $0x42c] sm:$0xf0] }
 0x292   : > { %v10342_v16 = vpop.f32.mrf.mxu3  ;;  %v7748_v44 = vor.u32 %v9104_v59, %v7747_v17  ;;  %v7780_v2 = vor.u32 %v9108_v18, %v7777_v4  ;;  %v9113_v17 = vld [vmem:[#allocation3 + $0x430] sm:$0xf0] }
 0x293   : > { %v10338_v23 = vadd.f32 %v3389_v29, %v3301_v38  ;;  %v9345_v29 = vld [vmem:[%s11789_s2 + $0x30] sm:$0xff] }
 0x294   : > { %v10340_v54 = vpop.f32.mrf.mxu0  ;;  %6111 = vmatpush.bf16.msra.mxu1 %v9345_v29  ;;  %v7783_v29 = vld [vmem:[#allocation3 + $0x410] sm:$0xf] }
 0x296   : > { %v10344_v22 = vpop.f32.mrf.mxu2 }
 0x297   : > { %3344 = vmatmul.bf16.gmra.mxu3 %v7744_v30 }
 0x29a   : > { %v3305_v41 = vpop.f32.mrf.mxu3 }
 0x29b   : > { %3255 = vmatmul.bf16.gmra.mxu2 %v7740_v49  ;;  %v7776_v49 = vor.u32 %v9112_v24, %v7775_v60  ;;  %v7811_v60 = vld [vmem:[#allocation3 + $0x450] sm:$0xf]  ;;  %v9121_v24 = vld [vmem:[#allocation3 + $0x470] sm:$0xf0] }
 0x29c   : > { %v3394_v61 = vpop.f32.mrf.mxu0 }
 0x29e   : > { %v3216_v38 = vpop.f32.mrf.mxu2 }
 0x29f   : > { %3433 = vmatmul.bf16.gmra.mxu0 %v7748_v44  ;;  %v3217_v20 = vadd.f32 %v3216_v38, %v10237_v25  ;;  %v7784_v25 = vor.u32 %v9113_v17, %v7783_v29  ;;  %v7812_v29 = vor.u32 %v9121_v24, %v7811_v60  ;;  %v9344_v17 = vld [vmem:[%s11789_s2 + $0x28] sm:$0xff] }
 0x2a0   : > { %6112 = vmatpush.bf16.msra.mxu1 %v9344_v17 }
 0x2a1   : > { %v3306_v57 = vadd.f32 %v3305_v41, %v3217_v20  ;;  %v9117_v20 = vld [vmem:[#allocation3 + $0x454] sm:$0xf] }
 0x2a2   : > { %v10354_v62 = vpop.f32.mrf.mxu3 }
 0x2a3   : > { %v10350_v55 = vadd.f32 %v3394_v61, %v3306_v57  ;;  %v7813_v57 = vld [vmem:[#allocation3 + $0x474] sm:$0xf0] }
 0x2a4   : > { %v10352_v46 = vpop.f32.mrf.mxu0 }
 0x2a6   : > { %v10356_v30 = vpop.f32.mrf.mxu2 }
 0x2a7   : > { %3349 = vmatmul.bf16.gmra.mxu3 %v7780_v2  ;;  %v7816_v2 = vor.u32 %v9117_v20, %v7813_v57 }
 0x2aa   : > { %v3310_v44 = vpop.f32.mrf.mxu3 }
 0x2ab   : > { %3260 = vmatmul.bf16.gmra.mxu2 %v7776_v49 }
 0x2ac   : > { %v3399_v59 = vpop.f32.mrf.mxu0 }
 0x2ae   : > { %v3221_v41 = vpop.f32.mrf.mxu2 }
 0x2af   : > { %3438 = vmatmul.bf16.gmra.mxu0 %v7784_v25  ;;  %v3222_v61 = vadd.f32 %v3221_v41, %v10245_v40  ;;  %v7819_v40 = vld [vmem:[#allocation3 + $0x458] sm:$0xf]  ;;  %v9122_v25 = vld [vmem:[#allocation3 + $0x478] sm:$0xf0] }
 0x2b1   : > { %v3311_v38 = vadd.f32 %v3310_v44, %v3222_v61 }
 0x2b2   : > { %v10363_v4 = vpop.f32.mrf.mxu3 }
 0x2b3   : > { %v10359_v10 = vadd.f32 %v3399_v59, %v3311_v38  ;;  %v7820_v59 = vor.u32 %v9122_v25, %v7819_v40 }
 0x2b4   : > { %v10361_v18 = vpop.f32.mrf.mxu0 }
 0x2b6   : > { %v10365_v49 = vpop.f32.mrf.mxu2 }
 0x2b7   : > { %3354 = vmatmul.bf16.gmra.mxu3 %v7816_v2 }
 0x2ba   : > { %v3315_v41 = vpop.f32.mrf.mxu3 }
 0x2bb   : > { %3265 = vmatmul.bf16.gmra.mxu2 %v7812_v29 }
 0x2bc   : > { %v3404_v44 = vpop.f32.mrf.mxu0 }
 0x2be   : > { %v3226_v61 = vpop.f32.mrf.mxu2 }
 0x2bf   : > { %3443 = vmatmul.bf16.gmra.mxu0 %v7820_v59  ;;  %v3227_v38 = vadd.f32 %v3226_v61, %v10253_v27 }
 0x2c1   : > { %v3316_v20 = vadd.f32 %v3315_v41, %v3227_v38  ;;  %v9343_v41 = vld [vmem:[%s11789_s2 + $0x20] sm:$0xff] }
 0x2c2   : > { %v10375_v24 = vpop.f32.mrf.mxu3  ;;  %6113 = vmatpush.bf16.msra.mxu1 %v9343_v41 }
 0x2c3   : > { %v10371_v57 = vadd.f32 %v3404_v44, %v3316_v20  ;;  %v10391_v20 = vpop.f32.mrf.mxu1 }
 0x2c4   : > { %v10373_v60 = vpop.f32.mrf.mxu0 }
 0x2c6   : > { %v10377_v35 = vpop.f32.mrf.mxu2 }
 0x2ca   : > { %v3320_v2 = vpop.f32.mrf.mxu3 }
 0x2cb   : > { %v10402_v31 = vpop.f32.mrf.mxu1 }
 0x2cc   : > { %v3409_v34 = vpop.f32.mrf.mxu0 }
 0x2ce   : > { %v3231_v17 = vpop.f32.mrf.mxu2 }
 0x2cf   : > { %v3232_v29 = vadd.f32 %v3231_v17, %v10261_v12 }
 0x2d1   : > { %v3321_v40 = vadd.f32 %v3320_v2, %v3232_v29 }
 0x2d2   : > { %v10384_v27 = vpop.f32.mrf.mxu3 }
 0x2d3   : > { %v10380_v25 = vadd.f32 %v3409_v34, %v3321_v40  ;;  %v10405_v11 = vpop.f32.mrf.mxu1 }
 0x2d4   : > { %v10382_v59 = vpop.f32.mrf.mxu0 }
 0x2d6   : > { %v10386_v44 = vpop.f32.mrf.mxu2 }
 0x2da   : > { %v3325_v38 = vpop.f32.mrf.mxu3 }
 0x2dc   : > { %v3414_v61 = vpop.f32.mrf.mxu0 }
 0x2de   : > { %v3236_v6 = vpop.f32.mrf.mxu2 }
 0x2df   : > { %v3237_v12 = vadd.f32 %v3236_v6, %v10267_v28  ;;  %v3488_v28 = vmul.f32 %v10314_v63, %v10314_v63 }
 0x2e1   : > { %v3326_v34 = vadd.f32 %v3325_v38, %v3237_v12  ;;  %v3487_v12 = vmul.f32 %v10311_v3, %v10311_v3 }
 0x2e2   : > { %v10398_v29 = vpop.f32.mrf.mxu3 }
 0x2e3   : > { %v10394_v2 = vadd.f32 %v3414_v61, %v3326_v34  ;;  %v3489_v34 = vmul.f32 %v10317_v8, %v10317_v8 }
 0x2e4   : > { %v10396_v17 = vpop.f32.mrf.mxu0 }
 0x2e5   : > { %11873 = vst [vmem:[#allocation48_spill] sm:$0xff] %v10394_v2  ;;  %v10436_v2 = vpop.f32.mrf.mxu1 }
 0x2e6   : > { %v10400_v40 = vpop.f32.mrf.mxu2 }
 0x2ea   : > { %v3330_v41 = vpop.f32.mrf.mxu3 }
 0x2ec   : > { %v3419_v43 = vpop.f32.mrf.mxu0 }
 0x2ee   : > { %v3241_v0 = vpop.f32.mrf.mxu2 }
 0x2ef   : > { %v3242_v15 = vadd.f32 %v3241_v0, %v10275_v52  ;;  %v3125_v52 = vadd.f32 %v10217_v9, %v10232_v26  ;;  %v3519_v0 = vadd.f32 %v3488_v28, %v3487_v12  ;;  %v3491_v9 = vmul.f32 %v10323_v19, %v10323_v19 }
 0x2f0   : > { %v3130_v26 = vadd.f32 %v10235_v39, %v10240_v56  ;;  %v3492_v12 = vmul.f32 %v10329_v53, %v10329_v53  ;;  %v3135_v56 = vadd.f32 %v10243_v50, %v10248_v58  ;;  %v3495_v50 = vmul.f32 %v10338_v23, %v10338_v23 }
 0x2f1   : > { %v3331_v47 = vadd.f32 %v3330_v41, %v3242_v15  ;;  %v3449_v15 = vadd.f32 %v10314_v63, %v10311_v3  ;;  %v3214_v41 = vadd.f32 %v10344_v22, %v3125_v52  ;;  %v3140_v58 = vadd.f32 %v10251_v1, %v10256_v51 }
 0x2f2   : > { %v10413_v38 = vpop.f32.mrf.mxu3  ;;  %v3219_v52 = vadd.f32 %v10356_v30, %v3130_v26  ;;  %v3224_v30 = vadd.f32 %v10365_v49, %v3135_v56  ;;  %v3497_v56 = vmul.f32 %v10350_v55, %v10350_v55 }
 0x2f3   : > { %v10407_v6 = vadd.f32 %v3419_v43, %v3331_v47  ;;  %v9342_v47 = vld [vmem:[%s11789_s2 + $0x18] sm:$0xff]  ;;  %v3490_v43 = vmul.f32 %v10320_v5, %v10320_v5  ;;  %v3229_v1 = vadd.f32 %v10377_v35, %v3140_v58 }
 0x2f4   : > { %v10411_v61 = vpop.f32.mrf.mxu0  ;;  %6114 = vmatpush.bf16.msra.mxu1 %v9342_v47 }
 0x2f5   : > { %11874 = vst [vmem:[#allocation49_spill] sm:$0xff] %v10407_v6  ;;  %v3450_v6 = vadd.f32 %v3449_v15, %v10317_v8  ;;  %v3318_v35 = vadd.f32 %v10375_v24, %v3229_v1  ;;  %v3155_v1 = vadd.f32 %v10391_v20, %v10278_v36  ;;  %v3503_v36 = vmul.f32 %v10380_v25, %v10380_v25 }
 0x2f6   : > { %11875 = vst [vmem:[#allocation50_spill] sm:$0xff] %v10411_v61  ;;  %v10419_v33 = vpop.f32.mrf.mxu2  ;;  %v3520_v61 = vadd.f32 %v3519_v0, %v3489_v34  ;;  %v3303_v34 = vadd.f32 %v10342_v16, %v3214_v41 }
 0x2f7   : > { %v3451_v63 = vadd.f32 %v3450_v6, %v10320_v5  ;;  %v3493_v6 = vmul.f32 %v10332_v45, %v10332_v45 }
 0x2f8   : > { %v3521_v28 = vadd.f32 %v3520_v61, %v3490_v43  ;;  %v3494_v43 = vmul.f32 %v10335_v42, %v10335_v42  ;;  %v10458_v16 = vadd.f32 %v10340_v54, %v3303_v34  ;;  %v3164_v54 = vpop.f32.mrf.mxu1 }
 0x2f9   : > { %v3452_v47 = vadd.f32 %v3451_v63, %v10323_v19  ;;  %v3308_v63 = vadd.f32 %v10354_v62, %v3219_v52  ;;  %v3313_v52 = vadd.f32 %v10363_v4, %v3224_v30 }
 0x2fa   : > { %v10443_v22 = vpop.f32.mrf.mxu3  ;;  %v3522_v15 = vadd.f32 %v3521_v28, %v3491_v9  ;;  %v3496_v62 = vmul.f32 %v10458_v16, %v10458_v16 }
 0x2fb   : > { %v3453_v61 = vadd.f32 %v3452_v47, %v10329_v53  ;;  %v10475_v49 = vadd.f32 %v10352_v46, %v3308_v63  ;;  %v10488_v4 = vadd.f32 %v10361_v18, %v3313_v52 }
 0x2fc   : > { %v10441_v3 = vpop.f32.mrf.mxu0  ;;  %v3523_v0 = vadd.f32 %v3522_v15, %v3492_v12 }
 0x2fd   : > { %v3454_v41 = vadd.f32 %v3453_v61, %v10332_v45  ;;  %v3498_v46 = vmul.f32 %v10475_v49, %v10475_v49  ;;  %v3500_v58 = vmul.f32 %v10488_v4, %v10488_v4 }
 0x2fe   : > { %v10448_v39 = vpop.f32.mrf.mxu2  ;;  %v3524_v9 = vadd.f32 %v3523_v0, %v3493_v6  ;;  %v3145_v6 = vadd.f32 %v10259_v32, %v10264_v13  ;;  %v3150_v32 = vadd.f32 %v10270_v14, %v10272_v48 }
 0x2ff   : > { %v3455_v26 = vadd.f32 %v3454_v41, %v10335_v42  ;;  %v3499_v41 = vmul.f32 %v10359_v10, %v10359_v10 }
 0x300   : > { %v3525_v34 = vadd.f32 %v3524_v9, %v3494_v43  ;;  %v3234_v63 = vadd.f32 %v10386_v44, %v3145_v6  ;;  %v10504_v44 = vadd.f32 %v10373_v60, %v3318_v35  ;;  %v3167_v14 = vpop.f32.mrf.mxu1  ;;  %v3158_v6 = vadd.f32 %v10402_v31, %v10281_v21 }
 0x301   : > { %v3456_v47 = vadd.f32 %v3455_v26, %v10338_v23  ;;  %v3160_v35 = vadd.f32 %v10405_v11, %v10284_v7  ;;  %v9341_v7 = vld [vmem:[%s11789_s2 + $0x10] sm:$0xff] }
 0x302   : > { %v10470_v12 = vpop.f32.mrf.mxu3  ;;  %v3526_v15 = vadd.f32 %v3525_v34, %v3495_v50  ;;  %v3323_v26 = vadd.f32 %v10384_v27, %v3234_v63  ;;  %v3239_v34 = vadd.f32 %v10400_v40, %v3150_v32  ;;  %v3502_v60 = vmul.f32 %v10504_v44, %v10504_v44  ;;  %6115 = vmatpush.bf16.msra.mxu1 %v9341_v7 }
 0x303   : > { %v3457_v61 = vadd.f32 %v3456_v47, %v10458_v16  ;;  %v3501_v47 = vmul.f32 %v10371_v57, %v10371_v57 }
 0x304   : > { %v10468_v28 = vpop.f32.mrf.mxu0  ;;  %v3527_v0 = vadd.f32 %v3526_v15, %v3496_v62  ;;  %v10517_v27 = vadd.f32 %v10382_v59, %v3323_v26  ;;  %v3328_v40 = vadd.f32 %v10398_v29, %v3239_v34  ;;  %v3247_v59 = vadd.f32 %v10448_v39, %v3158_v6 }
 0x305   : > { %v3458_v43 = vadd.f32 %v3457_v61, %v10350_v55  ;;  %v3244_v61 = vadd.f32 %v10419_v33, %v3155_v1 }
 0x306   : > { %v3248_v51 = vpop.f32.mrf.mxu2  ;;  %v3528_v30 = vadd.f32 %v3527_v0, %v3497_v56  ;;  %v3504_v21 = vmul.f32 %v10517_v27, %v10517_v27  ;;  %v10533_v33 = vadd.f32 %v10396_v17, %v3328_v40  ;;  %v3336_v26 = vadd.f32 %v10443_v22, %v3247_v59 }
 0x307   : > { %v3459_v13 = vadd.f32 %v3458_v43, %v10475_v49  ;;  %v3249_v32 = vadd.f32 %v3248_v51, %v3160_v35  ;;  %v11878_v51 = vld [vmem:[#allocation50_spill] sm:$0xff] }
 0x308   : > { %v3529_v18 = vadd.f32 %v3528_v30, %v3498_v46  ;;  %v3163_v30 = vadd.f32 %v10436_v2, %v10287_v37  ;;  %v10558_v6 = vadd.f32 %v10441_v3, %v3336_v26 }
 0x309   : > { %v3460_v24 = vadd.f32 %v3459_v13, %v10359_v10  ;;  %v11876_v13 = vld [vmem:[#allocation48_spill] sm:$0xff] }
 0x30a   : > { %v3340_v50 = vpop.f32.mrf.mxu3  ;;  %v3530_v48 = vadd.f32 %v3529_v18, %v3499_v41  ;;  %v3333_v41 = vadd.f32 %v10413_v38, %v3244_v61  ;;  %v3505_v18 = vmul.f32 %v11876_v13, %v11876_v13  ;;  %v3506_v38 = vmul.f32 %v10533_v33, %v10533_v33 }
 0x30b   : > { %v3461_v52 = vadd.f32 %v3460_v24, %v10488_v4  ;;  %v3169_v24 = vpop.f32.mrf.mxu1  ;;  %v3509_v3 = vmul.f32 %v10558_v6, %v10558_v6 }
 0x30c   : > { %v10498_v9 = vpop.f32.mrf.mxu0  ;;  %v3531_v15 = vadd.f32 %v3530_v48, %v3500_v58  ;;  %v11877_v58 = vld [vmem:[#allocation39_spill] sm:$0xff]  ;;  %v10550_v48 = vadd.f32 %v11878_v51, %v3333_v41 }
 0x30d   : > { %v3462_v56 = vadd.f32 %v3461_v52, %v10371_v57  ;;  %v3165_v17 = vadd.f32 %v3164_v54, %v11877_v58  ;;  %v3338_v52 = vadd.f32 %v10470_v12, %v3249_v32 }
 0x30e   : > { %v3251_v62 = vpop.f32.mrf.mxu2  ;;  %v3532_v0 = vadd.f32 %v3531_v15, %v3501_v47  ;;  %v11879_v15 = vld [vmem:[#allocation49_spill] sm:$0xff]  ;;  %v3508_v12 = vmul.f32 %v10550_v48, %v10550_v48 }
 0x30f   : > { %v3463_v46 = vadd.f32 %v3462_v56, %v10504_v44  ;;  %v3252_v34 = vadd.f32 %v3251_v62, %v3163_v30  ;;  %v3507_v22 = vmul.f32 %v11879_v15, %v11879_v15  ;;  %v10564_v35 = vadd.f32 %v10468_v28, %v3338_v52 }
 0x310   : > { %v3533_v63 = vadd.f32 %v3532_v0, %v3502_v60  ;;  %v11880_v60 = vld [vmem:[#allocation40_spill] sm:$0xff] }
 0x311   : > { %v3464_v29 = vadd.f32 %v3463_v46, %v10380_v25  ;;  %v3168_v40 = vadd.f32 %v3167_v14, %v11880_v60  ;;  %v3341_v61 = vadd.f32 %v3340_v50, %v3252_v34  ;;  %v3510_v28 = vmul.f32 %v10564_v35, %v10564_v35 }
 0x312   : > { %v3342_v43 = vpop.f32.mrf.mxu3  ;;  %v3534_v11 = vadd.f32 %v3533_v63, %v3503_v36 }
 0x313   : > { %v3465_v39 = vadd.f32 %v3464_v29, %v10517_v27  ;;  %v10570_v50 = vadd.f32 %v10498_v9, %v3341_v61 }
 0x314   : > { %v3431_v20 = vpop.f32.mrf.mxu0  ;;  %v3535_v37 = vadd.f32 %v3534_v11, %v3504_v21 }
 0x315   : > { %v3466_v2 = vadd.f32 %v3465_v39, %v11876_v13  ;;  %v3511_v9 = vmul.f32 %v10570_v50, %v10570_v50 }
 0x316   : > { %v3253_v31 = vpop.f32.mrf.mxu2  ;;  %v3536_v1 = vadd.f32 %v3535_v37, %v3505_v18 }
 0x317   : > { %v3254_v47 = vadd.f32 %v3253_v31, %v3165_v17  ;;  %v3467_v54 = vadd.f32 %v3466_v2, %v10533_v33  ;;  %v3172_v31 = vpop.f32.mrf.mxu1 }
 0x318   : > { %v3537_v0 = vadd.f32 %v3536_v1, %v3506_v38 }
 0x319   : > { %v3468_v46 = vadd.f32 %v3467_v54, %v11879_v15  ;;  %v3343_v59 = vadd.f32 %v3342_v43, %v3254_v47  ;;  %v11881_v43 = vld [vmem:[#allocation41_spill] sm:$0xff] }
 0x31a   : > { %v3345_v56 = vpop.f32.mrf.mxu3  ;;  %v3538_v29 = vadd.f32 %v3537_v0, %v3507_v22  ;;  %v3170_v7 = vadd.f32 %v3169_v24, %v11881_v43 }
 0x31b   : > { %v3469_v21 = vadd.f32 %v3468_v46, %v10550_v48  ;;  %v10575_v32 = vadd.f32 %v3431_v20, %v3343_v59 }
 0x31c   : > { %v3434_v62 = vpop.f32.mrf.mxu0  ;;  %v3539_v30 = vadd.f32 %v3538_v29, %v3508_v12 }
 0x31d   : > { %v3470_v41 = vadd.f32 %v3469_v21, %v10558_v6  ;;  %v3512_v20 = vmul.f32 %v10575_v32, %v10575_v32 }
 0x31e   : > { %v3256_v36 = vpop.f32.mrf.mxu2  ;;  %v3540_v18 = vadd.f32 %v3539_v30, %v3509_v3  ;;  %v11883_v3 = vld [vmem:[#allocation43_spill] sm:$0xff] }
 0x31f   : > { %v3257_v63 = vadd.f32 %v3256_v36, %v3168_v40  ;;  %v3471_v58 = vadd.f32 %v3470_v41, %v10564_v35  ;;  %v3174_v46 = vpop.f32.mrf.mxu1 }
 0x320   : > { %v3541_v34 = vadd.f32 %v3540_v18, %v3510_v28 }
 0x321   : > { %v3346_v14 = vadd.f32 %v3345_v56, %v3257_v63  ;;  %v3472_v37 = vadd.f32 %v3471_v58, %v10570_v50  ;;  %v11882_v56 = vld [vmem:[#allocation42_spill] sm:$0xff]  ;;  %v11884_v58 = vld [vmem:[#allocation44_spill] sm:$0xff] }
 0x322   : > { %v3347_v39 = vpop.f32.mrf.mxu3  ;;  %v3542_v38 = vadd.f32 %v3541_v34, %v3511_v9  ;;  %v3173_v60 = vadd.f32 %v3172_v31, %v11882_v56 }
 0x323   : > { %v10581_v17 = vadd.f32 %v3434_v62, %v3346_v14  ;;  %v3473_v24 = vadd.f32 %v3472_v37, %v10575_v32  ;;  %v3175_v14 = vadd.f32 %v3174_v46, %v11883_v3 }
 0x324   : > { %v3436_v11 = vpop.f32.mrf.mxu0  ;;  %v3543_v47 = vadd.f32 %v3542_v38, %v3512_v20 }
 0x325   : > { %v3513_v51 = vmul.f32 %v10581_v17, %v10581_v17  ;;  %v3474_v1 = vadd.f32 %v3473_v24, %v10581_v17 }
 0x326   : > { %v3258_v26 = vpop.f32.mrf.mxu2 }
 0x327   : > { %v3259_v2 = vadd.f32 %v3258_v26, %v3170_v7  ;;  %v3544_v40 = vadd.f32 %v3543_v47, %v3513_v51 }
 0x329   : > { %v3348_v52 = vadd.f32 %v3347_v39, %v3259_v2 }
 0x32a   : > { %v3350_v62 = vpop.f32.mrf.mxu3 }
 0x32b   : > { %v10590_v54 = vadd.f32 %v3436_v11, %v3348_v52  ;;  %v3177_v11 = vpop.f32.mrf.mxu1 }
 0x32c   : > { %v3439_v22 = vpop.f32.mrf.mxu0  ;;  %v3178_v9 = vadd.f32 %v3177_v11, %v11884_v58 }
 0x32d   : > { %v3475_v61 = vadd.f32 %v3474_v1, %v10590_v54  ;;  %v3514_v0 = vmul.f32 %v10590_v54, %v10590_v54  ;;  %v11885_v1 = vld [vmem:[#allocation45_spill] sm:$0xff] }
 0x32e   : > { %v3261_v36 = vpop.f32.mrf.mxu2 }
 0x32f   : > { %v3545_v12 = vadd.f32 %v3544_v40, %v3514_v0  ;;  %v3262_v59 = vadd.f32 %v3261_v36, %v3173_v60 }
 0x331   : > { %v3351_v63 = vadd.f32 %v3350_v62, %v3262_v59 }
 0x332   : > { %v3352_v21 = vpop.f32.mrf.mxu3 }
 0x333   : > { %v10596_v29 = vadd.f32 %v3439_v22, %v3351_v63  ;;  %v3179_v52 = vpop.f32.mrf.mxu1 }
 0x334   : > { %v3441_v41 = vpop.f32.mrf.mxu0  ;;  %v3180_v22 = vadd.f32 %v3179_v52, %v11885_v1 }
 0x335   : > { %v3476_v30 = vadd.f32 %v3475_v61, %v10596_v29  ;;  %v3515_v31 = vmul.f32 %v10596_v29, %v10596_v29 }
 0x336   : > { %v3263_v28 = vpop.f32.mrf.mxu2 }
 0x337   : > { %v3546_v43 = vadd.f32 %v3545_v12, %v3515_v31  ;;  %v3264_v7 = vadd.f32 %v3263_v28, %v3175_v14 }
 0x339   : > { %v3353_v39 = vadd.f32 %v3352_v21, %v3264_v7 }
 0x33a   : > { %v3355_v37 = vpop.f32.mrf.mxu3 }
 0x33b   : > { %v10602_v18 = vadd.f32 %v3441_v41, %v3353_v39 }
 0x33c   : > { %v3444_v24 = vpop.f32.mrf.mxu0 }
 0x33d   : > { %v3477_v26 = vadd.f32 %v3476_v30, %v10602_v18  ;;  %v3516_v34 = vmul.f32 %v10602_v18, %v10602_v18 }
 0x33e   : > { %v3266_v20 = vpop.f32.mrf.mxu2 }
 0x33f   : > { %v3547_v2 = vadd.f32 %v3546_v43, %v3516_v34  ;;  %v3267_v38 = vadd.f32 %v3266_v20, %v3178_v9 }
 0x341   : > { %v3356_v51 = vadd.f32 %v3355_v37, %v3267_v38 }
 0x342   : > { %v3357_v0 = vpop.f32.mrf.mxu3 }
 0x343   : > { %v10608_v47 = vadd.f32 %v3444_v24, %v3356_v51 }
 0x344   : > { %v3446_v36 = vpop.f32.mrf.mxu0 }
 0x345   : > { %v3478_v62 = vadd.f32 %v3477_v26, %v10608_v47  ;;  %v3517_v56 = vmul.f32 %v10608_v47, %v10608_v47 }
 0x346   : > { %v3268_v60 = vpop.f32.mrf.mxu2 }
 0x347   : > { %v3548_v40 = vadd.f32 %v3547_v2, %v3517_v56  ;;  %v3269_v61 = vadd.f32 %v3268_v60, %v3180_v22 }
 0x349   : > { %v3358_v46 = vadd.f32 %v3357_v0, %v3269_v61  ;;  %v11887_v0 = vld [vmem:[#allocation47_spill] sm:$0xff] }
 0x34b   : > { %v10614_v12 = vadd.f32 %v3446_v36, %v3358_v46 }
 0x34d   : > { %v3479_v59 = vadd.f32 %v3478_v62, %v10614_v12  ;;  %v3518_v63 = vmul.f32 %v10614_v12, %v10614_v12 }
 0x34f   : > { %v3480_v21 = vrot.slane %v3479_v59, 4  ;;  %v3549_v3 = vadd.f32 %v3548_v40, %v3518_v63  ;;  %v11886_v40 = vld [vmem:[#allocation46_spill] sm:$0xff] }
 0x351   : > { %v3481_v14 = vadd.f32 %v3480_v21, %v3479_v59  ;;  %v3550_v30 = vrot.slane %v3549_v3, 4 }
 0x353   : > { %v3482_v31 = vrot.slane %v3481_v14, 2  ;;  %v3551_v41 = vadd.f32 %v3550_v30, %v3549_v3 }
 0x355   : > { %v3483_v28 = vadd.f32 %v3482_v31, %v3481_v14  ;;  %v3552_v43 = vrot.slane %v3551_v41, 2 }
 0x357   : > { %v3484_v7 = vrot.slane %v3483_v28, 1  ;;  %v3553_v11 = vadd.f32 %v3552_v43, %v3551_v41 }
 0x359   : > { %v3485_v39 = vadd.f32 %v3484_v7, %v3483_v28  ;;  %v3554_v58 = vrot.slane %v3553_v11, 1 }
 0x35b   : > { %v10619_v9 = vmul.f32 0.00390625, %v3485_v39  ;;  %v3555_v26 = vadd.f32 %v3554_v58, %v3553_v11 }
 0x35d   : > { %v3556_v34 = vmul.f32 0.00390625, %v3555_v26  ;;  %v3557_v37 = vmul.f32 %v10619_v9, %v10619_v9  ;;  %v3590_v20 = vsub.f32 %v10614_v12, %v10619_v9  ;;  %v3585_v24 = vsub.f32 %v10581_v17, %v10619_v9  ;;  %v9351_v17 = vld [vmem:[%s11789_s2 + $0x60] sm:$0xff] }
 0x35e   : > { %v3586_v51 = vsub.f32 %v10590_v54, %v10619_v9  ;;  %v3587_v52 = vsub.f32 %v10596_v29, %v10619_v9  ;;  %v3588_v1 = vsub.f32 %v10602_v18, %v10619_v9  ;;  %v3589_v22 = vsub.f32 %v10608_v47, %v10619_v9  ;;  %v9362_v18 = vld [vmem:[%s11789_s2 + $0xb8] sm:$0xff] }
 0x35f   : > { %v3558_v2 = vsub.f32 %v3556_v34, %v3557_v37  ;;  %v3559_v61 = vsub.f32 %v11886_v40, %v10619_v9  ;;  %v3560_v46 = vsub.f32 %v11887_v0, %v10619_v9  ;;  %v3561_v36 = vsub.f32 %v10317_v8, %v10619_v9  ;;  %v9370_v47 = vld [vmem:[%s11789_s2 + $0xf8] sm:$0xff]  ;;  %6288 = vmatpush.bf16.msrb.mxu3 %v9362_v18 }
 0x360   : > { %v3562_v12 = vsub.f32 %v10320_v5, %v10619_v9  ;;  %v3563_v63 = vsub.f32 %v10323_v19, %v10619_v9  ;;  %v3564_v21 = vsub.f32 %v10329_v53, %v10619_v9  ;;  %v3565_v3 = vsub.f32 %v10332_v45, %v10619_v9  ;;  %v9340_v45 = vld [vmem:[%s11789_s2 + $0x8] sm:$0xff]  ;;  %6377 = vmatpush.bf16.msrb.mxu0 %v9370_v47 }
 0x361   : > { %v3591_v38 = vadd.f32 1e-05, %v3558_v2  ;;  %v3566_v14 = vsub.f32 %v10335_v42, %v10619_v9  ;;  %v3567_v30 = vsub.f32 %v10338_v23, %v10619_v9  ;;  %v3568_v8 = vsub.f32 %v10458_v16, %v10619_v9  ;;  %v9354_v42 = vld [vmem:[%s11789_s2 + $0x78] sm:$0xff]  ;;  %6116 = vmatpush.bf16.msra.mxu1 %v9340_v45  ;;  %v9361_v45 = vld [vmem:[%s11789_s2 + $0xb0] sm:$0xff] }
 0x362   : > { %v3569_v5 = vsub.f32 %v10350_v55, %v10619_v9  ;;  %v3570_v19 = vsub.f32 %v10475_v49, %v10619_v9  ;;  %v3571_v53 = vsub.f32 %v10359_v10, %v10619_v9  ;;  %v3572_v23 = vsub.f32 %v10488_v4, %v10619_v9  ;;  %6199 = vmatpush.bf16.msrb.mxu2 %v9354_v42  ;;  %v9339_v42 = vld [vmem:[%s11789_s2] sm:$0xff] }
 0x363   : > { %9469 = vrsqrt.f32 %v3591_v38  ;;  %v3573_v55 = vsub.f32 %v10371_v57, %v10619_v9  ;;  %v3574_v16 = vsub.f32 %v10504_v44, %v10619_v9  ;;  %v3575_v10 = vsub.f32 %v10380_v25, %v10619_v9  ;;  %6289 = vmatpush.bf16.msrb.mxu3 %v9361_v45 }
 0x364   : > { %vm3598_vm1 = vweird.f32 %v3591_v38  ;;  %v3576_v41 = vsub.f32 %v10517_v27, %v10619_v9  ;;  %v3577_v28 = vsub.f32 %v11876_v13, %v10619_v9  ;;  %v3578_v57 = vsub.f32 %v10533_v33, %v10619_v9  ;;  %v9353_v33 = vld [vmem:[%s11789_s2 + $0x70] sm:$0xff] }
 0x365   : > { %v3579_v4 = vsub.f32 %v11879_v15, %v10619_v9  ;;  %v3580_v25 = vsub.f32 %v10550_v48, %v10619_v9  ;;  %v3581_v44 = vsub.f32 %v10558_v6, %v10619_v9  ;;  %v3582_v13 = vsub.f32 %v10564_v35, %v10619_v9  ;;  %6117 = vmatpush.bf16.msra.mxu1 %v9339_v42 }
 0x366   : > { %v3583_v43 = vsub.f32 %v10570_v50, %v10619_v9  ;;  %v3584_v7 = vsub.f32 %v10575_v32, %v10619_v9  ;;  %6200 = vmatpush.bf16.msrb.mxu2 %v9353_v33  ;;  %v9350_v9 = vld [vmem:[%s11789_s2 + $0x58] sm:$0xff] }
 0x369   : > { %v9470_v62 = vpop.eup %9469 }
 0x36a   : > { %v3593_v56 = vmul.f32 %v9470_v62, %v3591_v38  ;;  %vm3599_vm0 = vweird.f32 %v9470_v62 }
 0x36b   : > { %vm3600_vm2 = vmor %vm3598_vm1, %vm3599_vm0 }
 0x36c   : > { %v3594_v60 = vmul.f32 %v9470_v62, %v3593_v56  ;;  %v9352_v56 = vld [vmem:[%s11789_s2 + $0x68] sm:$0xff] }
 0x36d   : > { %6201 = vmatpush.bf16.msrb.mxu2 %v9352_v56  ;;  %v9364_v56 = vld [vmem:[%s11789_s2 + $0xc8] sm:$0xff] }
 0x36e   : > { %v3595_v59 = vmul.f32 0.5, %v3594_v60 }
 0x370   : > { %v3596_v31 = vsub.f32 1.5, %v3595_v59 }
 0x371   : > { %6202 = vmatpush.bf16.msrb.mxu2 %v9351_v17 }
 0x372   : > { %v3597_v49 = vmul.f32 %v9470_v62, %v3596_v31 }
 0x374   : > { %v3601_v27 = vsel %vm3600_vm2, %v9470_v62, %v3597_v49  ;;  %v9368_v49 = vld [vmem:[%s11789_s2 + $0xe8] sm:$0xff] }
 0x375   : > { %v3633_v15 = vmul.f32 %v3601_v27, %v3590_v20  ;;  %v3602_v11 = vmul.f32 %v3601_v27, %v3559_v61  ;;  %v3603_v48 = vmul.f32 %v3601_v27, %v3560_v46  ;;  %v3604_v39 = vmul.f32 %v3601_v27, %v3561_v36  ;;  %6203 = vmatpush.bf16.msrb.mxu2 %v9350_v9 }
 0x376   : > { %v3605_v58 = vmul.f32 %v3601_v27, %v3562_v12  ;;  %v3606_v6 = vmul.f32 %v3601_v27, %v3563_v63  ;;  %v3607_v26 = vmul.f32 %v3601_v27, %v3564_v21  ;;  %v10697_v34 = vmul.f32 %v3601_v27, %v3565_v3 }
 0x377   : > { %v3665_v35 = vmax.f32 %v3633_v15, 0.0  ;;  %v10699_v37 = vmul.f32 %v3601_v27, %v3566_v14  ;;  %v10701_v50 = vmul.f32 %v3601_v27, %v3567_v30  ;;  %v10703_v32 = vmul.f32 %v3601_v27, %v3568_v8 }
 0x378   : > { %v10705_v2 = vmul.f32 %v3601_v27, %v3569_v5  ;;  %v10707_v38 = vmul.f32 %v3601_v27, %v3570_v19  ;;  %v10709_v20 = vmul.f32 %v3601_v27, %v3571_v53  ;;  %v10711_v62 = vmul.f32 %v3601_v27, %v3572_v23  ;;  %v9369_v23 = vld [vmem:[%s11789_s2 + $0xf0] sm:$0xff] }
 0x379   : > { %3697 = vst [vmem:[#allocation2 + $0x189] sm:$0xff] %v3665_v35  ;;  %v10716_v60 = vmul.f32 %v3601_v27, %v3573_v55  ;;  %v10718_v40 = vmul.f32 %v3601_v27, %v3574_v16  ;;  %v10720_v61 = vmul.f32 %v3601_v27, %v3575_v10  ;;  %v10722_v0 = vmul.f32 %v3601_v27, %v3576_v41  ;;  %v9360_v55 = vld [vmem:[%s11789_s2 + $0xa8] sm:$0xff]  ;;  %v9349_v16 = vld [vmem:[%s11789_s2 + $0x50] sm:$0xff] }
 0x37a   : > { %v10724_v46 = vmul.f32 %v3601_v27, %v3577_v28  ;;  %v10726_v36 = vmul.f32 %v3601_v27, %v3578_v57  ;;  %v10728_v12 = vmul.f32 %v3601_v27, %v3579_v4  ;;  %v10730_v59 = vmul.f32 %v3601_v27, %v3580_v25  ;;  %6378 = vmatpush.bf16.msrb.mxu0 %v9369_v23  ;;  %v9348_v57 = vld [vmem:[%s11789_s2 + $0x48] sm:$0xff]  ;;  %v9357_v35 = vld [vmem:[%s11789_s2 + $0x90] sm:$0xff] }
 0x37b   : > { %v10732_v63 = vmul.f32 %v3601_v27, %v3581_v44  ;;  %v10734_v21 = vmul.f32 %v3601_v27, %v3582_v13  ;;  %v10736_v3 = vmul.f32 %v3601_v27, %v3583_v43  ;;  %v10738_v14 = vmul.f32 %v3601_v27, %v3584_v7  ;;  %6204 = vmatpush.bf16.msrb.mxu2 %v9349_v16  ;;  %v9367_v13 = vld [vmem:[%s11789_s2 + $0xe0] sm:$0xff] }
 0x37c   : > { %v10743_v30 = vmul.f32 %v3601_v27, %v3585_v24  ;;  %v10748_v8 = vmul.f32 %v3601_v27, %v3586_v51  ;;  %v10753_v5 = vmul.f32 %v3601_v27, %v3587_v52  ;;  %v10758_v31 = vmul.f32 %v3601_v27, %v3588_v1  ;;  %6290 = vmatpush.bf16.msrb.mxu3 %v9360_v55  ;;  %v9347_v43 = vld [vmem:[%s11789_s2 + $0x40] sm:$0xff] }
 0x37d   : > { %v3632_v54 = vmul.f32 %v3601_v27, %v3589_v22  ;;  %v10766_v24 = vmax.f32 %v3602_v11, 0.0  ;;  %v10768_v51 = vmax.f32 %v3603_v48, 0.0  ;;  %v10770_v29 = vmax.f32 %v3604_v39, 0.0  ;;  %v9359_v27 = vld [vmem:[%s11789_s2 + $0xa0] sm:$0xff]  ;;  %v9358_v11 = vld [vmem:[%s11789_s2 + $0x98] sm:$0xff] }
 0x37e   : > { %v10772_v52 = vmax.f32 %v3605_v58, 0.0  ;;  %v10779_v1 = vmax.f32 %v3606_v6, 0.0  ;;  %v3662_v22 = vmax.f32 %v10753_v5, 0.0  ;;  %v3663_v19 = vmax.f32 %v10758_v31, 0.0  ;;  %6379 = vmatpush.bf16.msrb.mxu0 %v9368_v49  ;;  %v9366_v58 = vld [vmem:[%s11789_s2 + $0xd8] sm:$0xff] }
 0x37f   : > { %3666 = vst [vmem:[#allocation2 + $0x19] sm:$0xff] %v10766_v24  ;;  %v3664_v53 = vmax.f32 %v3632_v54, 0.0  ;;  %v10809_v10 = vmax.f32 %v3607_v26, 0.0  ;;  %v10817_v41 = vmax.f32 %v10697_v34, 0.0  ;;  %v10825_v4 = vmax.f32 %v10699_v37, 0.0  ;;  %6205 = vmatpush.bf16.msrb.mxu2 %v9348_v57 }
 0x380   : > { %3667 = vst [vmem:[#allocation2 + $0x21] sm:$0xff] %v10768_v51  ;;  %v10828_v44 = vmax.f32 %v10701_v50, 0.0  ;;  %v10842_v7 = vmax.f32 %v10703_v32, 0.0  ;;  %v10846_v33 = vmax.f32 %v10705_v2, 0.0  ;;  %6291 = vmatpush.bf16.msrb.mxu3 %v9359_v27  ;;  %v10853_v48 = vmax.f32 %v10707_v38, 0.0  ;;  %v9365_v50 = vld [vmem:[%s11789_s2 + $0xd0] sm:$0xff] }
 0x381   : > { %3698 = vst [vmem:[#allocation2 + $0x1] sm:$0xff] %v10770_v29  ;;  %v10859_v6 = vmax.f32 %v10709_v20, 0.0  ;;  %v10862_v26 = vmax.f32 %v10711_v62, 0.0  ;;  %v10866_v34 = vmax.f32 %v10716_v60, 0.0  ;;  %v10873_v37 = vmax.f32 %v10718_v40, 0.0  ;;  %v9356_v20 = vld [vmem:[%s11789_s2 + $0x88] sm:$0xff] }
 0x382   : > { %3699 = vst [vmem:[#allocation2 + $0x9] sm:$0xff] %v10772_v52  ;;  %6380 = vmatpush.bf16.msrb.mxu0 %v9367_v13  ;;  %v3650_v32 = vmax.f32 %v10720_v61, 0.0  ;;  %v3651_v2 = vmax.f32 %v10722_v0, 0.0  ;;  %v3652_v38 = vmax.f32 %v10724_v46, 0.0  ;;  %v3653_v62 = vmax.f32 %v10726_v36, 0.0  ;;  %v9355_v0 = vld [vmem:[%s11789_s2 + $0x80] sm:$0xff] }
 0x383   : > { %3668 = vst [vmem:[#allocation2 + $0x31] sm:$0xff] %v10770_v29  ;;  %6206 = vmatpush.bf16.msrb.mxu2 %v9347_v43  ;;  %v3654_v60 = vmax.f32 %v10728_v12, 0.0  ;;  %v3655_v40 = vmax.f32 %v10730_v59, 0.0  ;;  %v3656_v61 = vmax.f32 %v10732_v63, 0.0  ;;  %v3657_v46 = vmax.f32 %v10734_v21, 0.0  ;;  %v9363_v36 = vld [vmem:[%s11789_s2 + $0xc0] sm:$0xff] }
 0x384   : > { %3669 = vst [vmem:[#allocation2 + $0x39] sm:$0xff] %v10772_v52  ;;  %6292 = vmatpush.bf16.msrb.mxu3 %v9358_v11  ;;  %v3658_v12 = vmax.f32 %v10736_v3, 0.0  ;;  %v3659_v59 = vmax.f32 %v10738_v14, 0.0  ;;  %v3660_v63 = vmax.f32 %v10743_v30, 0.0  ;;  %v3661_v17 = vmax.f32 %v10748_v8, 0.0  ;;  %v9378_v21 = vld [vmem:[%s11789_s2 + $0x138] sm:$0xff] }
 0x385   : > { %3670 = vst [vmem:[#allocation2 + $0x49] sm:$0xff] %v10779_v1  ;;  %v3902_v3 = vpack.c.bf16 %v10770_v29, %v10770_v29  ;;  %6466 = vmatpush.bf16.msrb.mxu1 %v9378_v21  ;;  %v3903_v30 = vpack.c.bf16 %v10772_v52, %v10772_v52  ;;  %v3904_v5 = vpack.c.bf16 %v10766_v24, %v10766_v24 }
 0x386   : > { %3696 = vst [vmem:[#allocation2 + $0x181] sm:$0xff] %v3664_v53  ;;  %6381 = vmatpush.bf16.msrb.mxu0 %v9366_v58  ;;  %v3703_v42 = vld [vmem:[#allocation2 + $0x1a] sm:$0x1]  ;;  %v3905_v52 = vpack.c.bf16 %v10768_v51, %v10768_v51 }
 0x387   : > { %3700 = vst [vmem:[#allocation2 + $0x199] sm:$0xff] %v3662_v22  ;;  %v4063_v45 = vld [vmem:[#allocation2 + $0x20] sm:$0xff] }
 0x388   : > { %3701 = vst [vmem:[#allocation2 + $0x1a1] sm:$0xff] %v3663_v19  ;;  %v3702_v28 = vld [vmem:[#allocation2 + $0x2] sm:$0x1]  ;;  %6293 = vmatpush.bf16.msrb.mxu3 %v9357_v35  ;;  %v4095_v23 = vpack.c.bf16 %v4063_v45, %v4063_v45  ;;  %v3968_v31 = vld [vmem:[#allocation2 + $0x1a] sm:$0xff]  ;;  %v3739_v16 = vld [vmem:[#allocation2 + $0x27] sm:$0x1] }
 0x389   : > { %3720 = vst [vmem:[#allocation2] sm:$0x1] %v3702_v28  ;;  %v3738_v25 = vld [vmem:[#allocation2 + $0xf] sm:$0x1]  ;;  %v3966_v8 = vld [vmem:[#allocation2 + $0x2] sm:$0xff]  ;;  %v4000_v49 = vpack.c.bf16 %v3968_v31, %v3968_v31 }
 0x38a   : > { %3756 = vst [vmem:[#allocation2 + $0x11] sm:$0x1] %v3738_v25  ;;  %6382 = vmatpush.bf16.msrb.mxu0 %v9365_v50  ;;  %v3775_v14 = vld [vmem:[#allocation2 + $0x8] sm:$0xff]  ;;  %v3998_v53 = vpack.c.bf16 %v3966_v8, %v3966_v8  ;;  %v3704_v27 = vld [vmem:[#allocation2 + $0x32] sm:$0x1] }
 0x38b   : > { %3671 = vst [vmem:[#allocation2 + $0x51] sm:$0xff] %v10809_v10  ;;  %v3807_v9 = vpack.c.bf16 %v3775_v14, %v3775_v14  ;;  %v3970_v58 = vld [vmem:[#allocation2 + $0x32] sm:$0xff]  ;;  %v3740_v35 = vld [vmem:[#allocation2 + $0x3f] sm:$0x1] }
 0x38c   : > { %3672 = vst [vmem:[#allocation2 + $0x61] sm:$0xff] %v10817_v41  ;;  %6294 = vmatpush.bf16.msrb.mxu3 %v9356_v20 }
 0x38d   : > { %3673 = vst [vmem:[#allocation2 + $0x69] sm:$0xff] %v10825_v4 }
 0x38e   : > { %v3719_v15 = vld [vmem:[#allocation2 + $0x19a] sm:$0x1]  ;;  %3674 = vst [vmem:[#allocation2 + $0x79] sm:$0xff] %v10828_v44  ;;  %6383 = vmatpush.bf16.msrb.mxu0 %v9364_v56  ;;  %v3705_v56 = vld [vmem:[#allocation2 + $0x4a] sm:$0x1] }
 0x38f   : > { %3737 = vst [vmem:[#allocation2 + $0x198] sm:$0x1] %v3719_v15  ;;  %v3755_v39 = vld [vmem:[#allocation2 + $0x1a7] sm:$0x1] }
 0x390   : > { %3773 = vst [vmem:[#allocation2 + $0x1a9] sm:$0x1] %v3755_v39  ;;  %6295 = vmatpush.bf16.msrb.mxu3 %v9355_v0  ;;  %v3774_v54 = vld [vmem:[#allocation2] sm:$0xff] }
 0x391   : > { %3675 = vst [vmem:[#allocation2 + $0x81] sm:$0xff] %v10842_v7  ;;  %v3806_v18 = vpack.c.bf16 %v3774_v54, %v3774_v54  ;;  %v3967_v47 = vld [vmem:[#allocation2 + $0xa] sm:$0xff] }
 0x392   : > { %3676 = vst [vmem:[#allocation2 + $0x91] sm:$0xff] %v10846_v33  ;;  %6384 = vmatpush.bf16.msrb.mxu0 %v9363_v36  ;;  %v3999_v29 = vpack.c.bf16 %v3967_v47, %v3967_v47  ;;  %v3908_v36 = vpack.c.bf16 %v10779_v1, %v10779_v1  ;;  %v3972_v21 = vld [vmem:[#allocation2 + $0x4a] sm:$0xff]  ;;  %v3741_v1 = vld [vmem:[#allocation2 + $0x57] sm:$0x1] }
 0x393   : > { %3677 = vst [vmem:[#allocation2 + $0x99] sm:$0xff] %v10853_v48  ;;  %v3706_v45 = vld [vmem:[#allocation2 + $0x62] sm:$0x1] }
 0x394   : > { %3678 = vst [vmem:[#allocation2 + $0xa9] sm:$0xff] %v10859_v6  ;;  %v4069_v8 = vld [vmem:[#allocation2 + $0x68] sm:$0xff] }
 0x395   : > { %3679 = vst [vmem:[#allocation2 + $0xb1] sm:$0xff] %v10862_v26  ;;  %v3974_v31 = vld [vmem:[#allocation2 + $0x62] sm:$0xff] }
 0x396   : > { %3680 = vst [vmem:[#allocation2 + $0xc1] sm:$0xff] %v10866_v34 }
 0x397   : > { %3681 = vst [vmem:[#allocation2 + $0xc9] sm:$0xff] %v10873_v37 }
 0x398   : > { %3682 = vst [vmem:[#allocation2 + $0xd9] sm:$0xff] %v3650_v32  ;;  %v4002_v32 = vpack.c.bf16 %v3970_v58, %v3970_v58 }
 0x399   : > { %3683 = vst [vmem:[#allocation2 + $0xe1] sm:$0xff] %v3651_v2 }
 0x39a   : > { %3684 = vst [vmem:[#allocation2 + $0xf1] sm:$0xff] %v3652_v38  ;;  %v4067_v38 = vld [vmem:[#allocation2 + $0x50] sm:$0xff] }
 0x39b   : > { %3685 = vst [vmem:[#allocation2 + $0xf9] sm:$0xff] %v3653_v62 }
 0x39c   : > { %3686 = vst [vmem:[#allocation2 + $0x109] sm:$0xff] %v3654_v60 }
 0x39d   : > { %3687 = vst [vmem:[#allocation2 + $0x111] sm:$0xff] %v3655_v40 }
 0x39e   : > { %3688 = vst [vmem:[#allocation2 + $0x121] sm:$0xff] %v3656_v61  ;;  %v4099_v61 = vpack.c.bf16 %v4067_v38, %v4067_v38  ;;  %v3976_v38 = vld [vmem:[#allocation2 + $0x7a] sm:$0xff] }
 0x39f   : > { %3689 = vst [vmem:[#allocation2 + $0x129] sm:$0xff] %v3657_v46 }
 0x3a0   : > { %3690 = vst [vmem:[#allocation2 + $0x139] sm:$0xff] %v3658_v12 }
 0x3a1   : > { %3691 = vst [vmem:[#allocation2 + $0x141] sm:$0xff] %v3659_v59 }
 0x3a2   : > { %3692 = vst [vmem:[#allocation2 + $0x151] sm:$0xff] %v3660_v63  ;;  %v3909_v63 = vpack.c.bf16 %v10809_v10, %v10809_v10  ;;  %v4004_v10 = vpack.c.bf16 %v3972_v21, %v3972_v21  ;;  %v3978_v21 = vld [vmem:[#allocation2 + $0x92] sm:$0xff] }
 0x3a3   : > { %3693 = vst [vmem:[#allocation2 + $0x159] sm:$0xff] %v3661_v17 }
 0x3a4   : > { %3694 = vst [vmem:[#allocation2 + $0x169] sm:$0xff] %v3662_v22 }
 0x3a5   : > { %3695 = vst [vmem:[#allocation2 + $0x171] sm:$0xff] %v3663_v19  ;;  %v4065_v19 = vld [vmem:[#allocation2 + $0x38] sm:$0xff] }
 0x3a6   : > { %3934 = vst [vmem:[#allocation3 + $0x4] sm:$0xf] %v3902_v3  ;;  %v4097_v24 = vpack.c.bf16 %v4065_v19, %v4065_v19 }
 0x3a7   : > { %3935 = vst [vmem:[#allocation3 + $0x28] sm:$0xf] %v3903_v30 }
 0x3a8   : > { %3838 = vst [vmem:[#allocation3] sm:$0xf] %v3806_v18 }
 0x3a9   : > { %3839 = vst [vmem:[#allocation3 + $0x24] sm:$0xf] %v3807_v9 }
 0x3aa   : > { %4030 = vst [vmem:[#allocation3 + $0x8] sm:$0xf] %v3998_v53 }
 0x3ab   : > { %4031 = vst [vmem:[#allocation3 + $0x2c] sm:$0xf] %v3999_v29  ;;  %v4101_v29 = vpack.c.bf16 %v4069_v8, %v4069_v8 }
 0x3ac   : > { %3721 = vst [vmem:[#allocation2 + $0x18] sm:$0x1] %v3703_v42 }
 0x3ad   : > { %v9195_v22 = vld [vmem:[#allocation3 + $0x4] sm:$0xf]  ;;  %4127 = vst [vmem:[#allocation3 + $0x30] sm:$0xf] %v4095_v23 }
 0x3ae   : > { %v8113_v55 = vld [vmem:[#allocation3 + $0x24] sm:$0xf0]  ;;  %3936 = vst [vmem:[#allocation3 + $0x4c] sm:$0xf] %v3904_v5  ;;  %v3910_v5 = vpack.c.bf16 %v10817_v41, %v10817_v41 }
 0x3af   : > { %v8116_v28 = vor.u32 %v9195_v22, %v8113_v55  ;;  %v8111_v57 = vld [vmem:[#allocation3] sm:$0xf]  ;;  %3937 = vst [vmem:[#allocation3 + $0x70] sm:$0xf] %v3905_v52  ;;  %v3911_v52 = vpack.c.bf16 %v10825_v4, %v10825_v4  ;;  %v3742_v22 = vld [vmem:[#allocation2 + $0x6f] sm:$0x1] }
 0x3b0   : > { %v9199_v25 = vld [vmem:[#allocation3 + $0x20] sm:$0xf0]  ;;  %3841 = vst [vmem:[#allocation3 + $0x6c] sm:$0xf] %v4095_v23 }
 0x3b1   : > { %6207 = vmatmul.bf16.vlgmr.msrb.gmra.mxu2 %v8116_v28  ;;  %v8112_v13 = vor.u32 %v9199_v25, %v8111_v57  ;;  %3757 = vst [vmem:[#allocation2 + $0x29] sm:$0x1] %v3739_v16  ;;  %v8119_v51 = vld [vmem:[#allocation3 + $0x8] sm:$0xf]  ;;  %v4006_v28 = vpack.c.bf16 %v3974_v31, %v3974_v31  ;;  %v3917_v31 = vpack.c.bf16 %v10862_v26, %v10862_v26 }
 0x3b2   : > { %v9200_v43 = vld [vmem:[#allocation3 + $0x28] sm:$0xf0]  ;;  %4032 = vst [vmem:[#allocation3 + $0x50] sm:$0xf] %v4000_v49 }
 0x3b3   : > { %6118 = vmatmul.bf16.vlgmr.msra.gmra.mxu1 %v8112_v13  ;;  %v8120_v15 = vor.u32 %v9200_v43, %v8119_v51  ;;  %v4062_v11 = vld [vmem:[#allocation2 + $0x18] sm:$0xff]  ;;  %3722 = vst [vmem:[#allocation2 + $0x30] sm:$0x1] %v3704_v27  ;;  %v4071_v27 = vld [vmem:[#allocation2 + $0x80] sm:$0xff] }
 0x3b4   : > { %v4094_v39 = vpack.c.bf16 %v4062_v11, %v4062_v11  ;;  %4129 = vst [vmem:[#allocation3 + $0x78] sm:$0xf] %v4097_v24  ;;  %v8121_v46 = vld [vmem:[#allocation3 + $0x2c] sm:$0xf0]  ;;  %v3707_v43 = vld [vmem:[#allocation2 + $0x7a] sm:$0x1] }
 0x3b5   : > { %6296 = vmatmul.bf16.vlgmr.msrb.gmra.mxu3 %v8120_v15  ;;  %3938 = vst [vmem:[#allocation3 + $0x94] sm:$0xf] %v3902_v3  ;;  %v9204_v60 = vld [vmem:[#allocation3 + $0x4c] sm:$0xf]  ;;  %v9377_v3 = vld [vmem:[%s11789_s2 + $0x130] sm:$0xff] }
 0x3b6   : > { %4126 = vst [vmem:[#allocation3 + $0xc] sm:$0xf] %v4094_v39  ;;  %v8149_v40 = vld [vmem:[#allocation3 + $0x6c] sm:$0xf0]  ;;  %6467 = vmatpush.bf16.msrb.mxu1 %v9377_v3 }
 0x3b7   : > { %3840 = vst [vmem:[#allocation3 + $0x48] sm:$0xf] %v4094_v39  ;;  %v8152_v17 = vor.u32 %v9204_v60, %v8149_v40  ;;  %v9208_v54 = vld [vmem:[#allocation3 + $0x68] sm:$0xf0]  ;;  %v4103_v39 = vpack.c.bf16 %v4071_v27, %v4071_v27  ;;  %v3743_v60 = vld [vmem:[#allocation2 + $0x87] sm:$0x1]  ;;  %v4008_v40 = vpack.c.bf16 %v3976_v38, %v3976_v38 }
 0x3b8   : > { %v3969_v50 = vld [vmem:[#allocation2 + $0x22] sm:$0xff]  ;;  %3939 = vst [vmem:[#allocation3 + $0xb8] sm:$0xf] %v3903_v30  ;;  %v3746_v38 = vld [vmem:[#allocation2 + $0xcf] sm:$0x1] }
 0x3b9   : > { %v4001_v2 = vpack.c.bf16 %v3969_v50, %v3969_v50  ;;  %3843 = vst [vmem:[#allocation3 + $0xb4] sm:$0xf] %v4097_v24  ;;  %v8155_v18 = vld [vmem:[#allocation3 + $0x50] sm:$0xf] }
 0x3ba   : > { %v4064_v20 = vld [vmem:[#allocation2 + $0x30] sm:$0xff]  ;;  %3758 = vst [vmem:[#allocation2 + $0x41] sm:$0x1] %v3740_v35  ;;  %v3912_v35 = vpack.c.bf16 %v10828_v44, %v10828_v44 }
 0x3bb   : > { %4033 = vst [vmem:[#allocation3 + $0x74] sm:$0xf] %v4001_v2  ;;  %v4096_v62 = vpack.c.bf16 %v4064_v20, %v4064_v20  ;;  %v8157_v57 = vld [vmem:[#allocation3 + $0x74] sm:$0xf0]  ;;  %v3708_v44 = vld [vmem:[#allocation2 + $0x92] sm:$0x1] }
 0x3bc   : > { %4034 = vst [vmem:[#allocation3 + $0x98] sm:$0xf] %v4002_v32  ;;  %v9213_v55 = vld [vmem:[#allocation3 + $0x94] sm:$0xf]  ;;  %v3913_v32 = vpack.c.bf16 %v10842_v7, %v10842_v7 }
 0x3bd   : > { %v9196_v0 = vld [vmem:[#allocation3 + $0xc] sm:$0xf]  ;;  %4128 = vst [vmem:[#allocation3 + $0x54] sm:$0xf] %v4096_v62 }
 0x3be   : > { %v8124_v12 = vor.u32 %v9196_v0, %v8121_v46  ;;  %v8147_v59 = vld [vmem:[#allocation3 + $0x48] sm:$0xf]  ;;  %3842 = vst [vmem:[#allocation3 + $0x90] sm:$0xf] %v4096_v62 }
 0x3bf   : > { %3723 = vst [vmem:[#allocation2 + $0x48] sm:$0x1] %v3705_v56  ;;  %v8148_v14 = vor.u32 %v9208_v54, %v8147_v59  ;;  %v8185_v16 = vld [vmem:[#allocation3 + $0xb4] sm:$0xf0]  ;;  %v4073_v62 = vld [vmem:[#allocation2 + $0x98] sm:$0xff] }
 0x3c0   : > { %6385 = vmatmul.bf16.vlgmr.msrb.gmra.mxu0 %v8124_v12  ;;  %4131 = vst [vmem:[#allocation3 + $0xc0] sm:$0xf] %v4099_v61  ;;  %v8188_v4 = vor.u32 %v9213_v55, %v8185_v16  ;;  %v9217_v15 = vld [vmem:[#allocation3 + $0xb0] sm:$0xf0]  ;;  %v4077_v55 = vld [vmem:[#allocation2 + $0xc8] sm:$0xff] }
 0x3c1   : > { %6212 = vmatmul.bf16.gmra.mxu2 %v8152_v17  ;;  %v3971_v30 = vld [vmem:[#allocation2 + $0x3a] sm:$0xff]  ;;  %3940 = vst [vmem:[#allocation3 + $0xdc] sm:$0xf] %v3908_v36  ;;  %v3914_v36 = vpack.c.bf16 %v10846_v33, %v10846_v33  ;;  %v9376_v33 = vld [vmem:[%s11789_s2 + $0x128] sm:$0xff] }
 0x3c2   : > { %v9209_v47 = vld [vmem:[#allocation3 + $0x70] sm:$0xf0]  ;;  %v4003_v9 = vpack.c.bf16 %v3971_v30, %v3971_v30  ;;  %3941 = vst [vmem:[#allocation3 + $0x100] sm:$0xf] %v3909_v63  ;;  %v3915_v63 = vpack.c.bf16 %v10853_v48, %v10853_v48  ;;  %6468 = vmatpush.bf16.msrb.mxu1 %v9376_v33 }
 0x3c3   : > { %6123 = vmatmul.bf16.gmra.mxu1 %v8148_v14  ;;  %v8156_v53 = vor.u32 %v9209_v47, %v8155_v18  ;;  %3845 = vst [vmem:[#allocation3 + $0xfc] sm:$0xf] %v4099_v61  ;;  %v8191_v50 = vld [vmem:[#allocation3 + $0x98] sm:$0xf]  ;;  %v4105_v61 = vpack.c.bf16 %v4073_v62, %v4073_v62  ;;  %v4010_v47 = vpack.c.bf16 %v3978_v21, %v3978_v21 }
 0x3c4   : > { %4035 = vst [vmem:[#allocation3 + $0xbc] sm:$0xf] %v4003_v9  ;;  %v9205_v19 = vld [vmem:[#allocation3 + $0x54] sm:$0xf] }
 0x3c5   : > { %6301 = vmatmul.bf16.gmra.mxu3 %v8156_v53  ;;  %3759 = vst [vmem:[#allocation2 + $0x59] sm:$0x1] %v3741_v1  ;;  %v8160_v41 = vor.u32 %v9205_v19, %v8157_v57  ;;  %v8183_v24 = vld [vmem:[#allocation3 + $0x90] sm:$0xf]  ;;  %v3744_v1 = vld [vmem:[#allocation2 + $0x9f] sm:$0x1] }
 0x3c6   : > { %v4066_v42 = vld [vmem:[#allocation2 + $0x48] sm:$0xff]  ;;  %4036 = vst [vmem:[#allocation3 + $0xe0] sm:$0xf] %v4004_v10  ;;  %v8184_v58 = vor.u32 %v9217_v15, %v8183_v24  ;;  %v4075_v10 = vld [vmem:[#allocation2 + $0xb0] sm:$0xff]  ;;  %v3918_v15 = vpack.c.bf16 %v10866_v34, %v10866_v34 }
 0x3c7   : > { %v4098_v23 = vpack.c.bf16 %v4066_v42, %v4066_v42  ;;  %3724 = vst [vmem:[#allocation2 + $0x60] sm:$0x1] %v3706_v45  ;;  %v8193_v17 = vld [vmem:[#allocation3 + $0xbc] sm:$0xf0] }
 0x3c8   : > { %4133 = vst [vmem:[#allocation3 + $0x108] sm:$0xf] %v4101_v29  ;;  %v9222_v12 = vld [vmem:[#allocation3 + $0xdc] sm:$0xf] }
 0x3c9   : > { %4130 = vst [vmem:[#allocation3 + $0x9c] sm:$0xf] %v4098_v23  ;;  %v8221_v59 = vld [vmem:[#allocation3 + $0xfc] sm:$0xf0] }
 0x3ca   : > { %3844 = vst [vmem:[#allocation3 + $0xd8] sm:$0xf] %v4098_v23  ;;  %v8224_v14 = vor.u32 %v9222_v12, %v8221_v59  ;;  %v9226_v30 = vld [vmem:[#allocation3 + $0xf8] sm:$0xf0]  ;;  %v3709_v23 = vld [vmem:[#allocation2 + $0xaa] sm:$0x1] }
 0x3cb   : > { %3942 = vst [vmem:[#allocation3 + $0x124] sm:$0xf] %v3910_v5  ;;  %v9218_v11 = vld [vmem:[#allocation3 + $0xb8] sm:$0xf0]  ;;  %v4107_v5 = vpack.c.bf16 %v4075_v10, %v4075_v10  ;;  %v3984_v12 = vld [vmem:[#allocation2 + $0xda] sm:$0xff] }
 0x3cc   : > { %v3973_v49 = vld [vmem:[#allocation2 + $0x52] sm:$0xff]  ;;  %3943 = vst [vmem:[#allocation3 + $0x148] sm:$0xf] %v3911_v52  ;;  %v8192_v2 = vor.u32 %v9218_v11, %v8191_v50  ;;  %v3916_v52 = vpack.c.bf16 %v10859_v6, %v10859_v6  ;;  %v4109_v6 = vpack.c.bf16 %v4077_v55, %v4077_v55  ;;  %v3982_v50 = vld [vmem:[#allocation2 + $0xc2] sm:$0xff]  ;;  %v3748_v55 = vld [vmem:[#allocation2 + $0xff] sm:$0x1] }
 0x3cd   : > { %v4005_v25 = vpack.c.bf16 %v3973_v49, %v3973_v49  ;;  %3847 = vst [vmem:[#allocation3 + $0x144] sm:$0xf] %v4101_v29  ;;  %v8227_v53 = vld [vmem:[#allocation3 + $0xe0] sm:$0xf]  ;;  %v3745_v49 = vld [vmem:[#allocation2 + $0xb7] sm:$0x1]  ;;  %v4014_v34 = vpack.c.bf16 %v3982_v50, %v3982_v50 }
 0x3ce   : > { %v4068_v13 = vld [vmem:[#allocation2 + $0x60] sm:$0xff]  ;;  %3760 = vst [vmem:[#allocation2 + $0x71] sm:$0x1] %v3742_v22  ;;  %v3980_v22 = vld [vmem:[#allocation2 + $0xaa] sm:$0xff] }
 0x3cf   : > { %4037 = vst [vmem:[#allocation3 + $0x104] sm:$0xf] %v4005_v25  ;;  %v4100_v51 = vpack.c.bf16 %v4068_v13, %v4068_v13  ;;  %v3710_v25 = vld [vmem:[#allocation2 + $0xc2] sm:$0x1]  ;;  %v8229_v24 = vld [vmem:[#allocation3 + $0x104] sm:$0xf0] }
 0x3d0   : > { %6390 = vmatmul.bf16.gmra.mxu0 %v8160_v41  ;;  %4038 = vst [vmem:[#allocation3 + $0x128] sm:$0xf] %v4006_v28  ;;  %v9214_v7 = vld [vmem:[#allocation3 + $0x9c] sm:$0xf]  ;;  %v4012_v28 = vpack.c.bf16 %v3980_v22, %v3980_v22 }
 0x3d1   : > { %6217 = vmatmul.bf16.gmra.mxu2 %v8188_v4  ;;  %4132 = vst [vmem:[#allocation3 + $0xe4] sm:$0xf] %v4100_v51  ;;  %v8196_v54 = vor.u32 %v9214_v7, %v8193_v17  ;;  %v8219_v3 = vld [vmem:[#allocation3 + $0xd8] sm:$0xf] }
 0x3d2   : > { %3846 = vst [vmem:[#allocation3 + $0x120] sm:$0xf] %v4100_v51  ;;  %v8220_v48 = vor.u32 %v9226_v30, %v8219_v3  ;;  %v9231_v27 = vld [vmem:[#allocation3 + $0x124] sm:$0xf]  ;;  %v3988_v50 = vld [vmem:[#allocation2 + $0x10a] sm:$0xff] }
 0x3d3   : > { %6128 = vmatmul.bf16.gmra.mxu1 %v8184_v58  ;;  %3725 = vst [vmem:[#allocation2 + $0x78] sm:$0x1] %v3707_v43  ;;  %v8257_v41 = vld [vmem:[#allocation3 + $0x144] sm:$0xf0]  ;;  %v3919_v58 = vpack.c.bf16 %v10873_v37, %v10873_v37 }
 0x3d4   : > { %4135 = vst [vmem:[#allocation3 + $0x150] sm:$0xf] %v4103_v39  ;;  %v8260_v51 = vor.u32 %v9231_v27, %v8257_v41  ;;  %v9235_v11 = vld [vmem:[#allocation3 + $0x140] sm:$0xf0]  ;;  %v3888_v37 = vld [vmem:[#allocation2 + $0xd9] sm:$0xff]  ;;  %v3892_v41 = vld [vmem:[#allocation2 + $0x109] sm:$0xff] }
 0x3d5   : > { %6306 = vmatmul.bf16.gmra.mxu3 %v8192_v2  ;;  %v3975_v20 = vld [vmem:[#allocation2 + $0x6a] sm:$0xff]  ;;  %3944 = vst [vmem:[#allocation3 + $0x16c] sm:$0xf] %v3912_v35  ;;  %v3920_v7 = vpack.c.bf16 %v3888_v37, %v3888_v37  ;;  %v4020_v37 = vpack.c.bf16 %v3988_v50, %v3988_v50  ;;  %v3994_v50 = vld [vmem:[#allocation2 + $0x152] sm:$0xff] }
 0x3d6   : > { %v4007_v56 = vpack.c.bf16 %v3975_v20, %v3975_v20  ;;  %3945 = vst [vmem:[#allocation3 + $0x190] sm:$0xf] %v3913_v32  ;;  %v9227_v8 = vld [vmem:[#allocation3 + $0x100] sm:$0xf0] }
 0x3d7   : > { %3849 = vst [vmem:[#allocation3 + $0x18c] sm:$0xf] %v4103_v39  ;;  %v8228_v29 = vor.u32 %v9227_v8, %v8227_v53  ;;  %v8263_v32 = vld [vmem:[#allocation3 + $0x128] sm:$0xf]  ;;  %v4016_v8 = vpack.c.bf16 %v3984_v12, %v3984_v12 }
 0x3d8   : > { %4039 = vst [vmem:[#allocation3 + $0x14c] sm:$0xf] %v4007_v56  ;;  %v9223_v57 = vld [vmem:[#allocation3 + $0xe4] sm:$0xf]  ;;  %v4079_v56 = vld [vmem:[#allocation2 + $0xe0] sm:$0xff] }
 0x3d9   : > { %3761 = vst [vmem:[#allocation2 + $0x89] sm:$0x1] %v3743_v60  ;;  %v8232_v26 = vor.u32 %v9223_v57, %v8229_v24  ;;  %v8255_v13 = vld [vmem:[#allocation3 + $0x120] sm:$0xf] }
 0x3da   : > { %v4070_v0 = vld [vmem:[#allocation2 + $0x78] sm:$0xff]  ;;  %4040 = vst [vmem:[#allocation3 + $0x170] sm:$0xf] %v4008_v40  ;;  %v8256_v35 = vor.u32 %v9235_v11, %v8255_v13  ;;  %v4083_v57 = vld [vmem:[#allocation2 + $0x110] sm:$0xff] }
 0x3db   : > { %v4102_v46 = vpack.c.bf16 %v4070_v0, %v4070_v0  ;;  %3726 = vst [vmem:[#allocation2 + $0x90] sm:$0x1] %v3708_v44  ;;  %v3889_v44 = vld [vmem:[#allocation2 + $0xe1] sm:$0xff]  ;;  %v4111_v0 = vpack.c.bf16 %v4079_v56, %v4079_v56  ;;  %v3890_v53 = vld [vmem:[#allocation2 + $0xf1] sm:$0xff] }
 0x3dc   : > { %4137 = vst [vmem:[#allocation3 + $0x198] sm:$0xf] %v4105_v61  ;;  %v9240_v59 = vld [vmem:[#allocation3 + $0x16c] sm:$0xf]  ;;  %v8265_v17 = vld [vmem:[#allocation3 + $0x14c] sm:$0xf0] }
 0x3dd   : > { %4134 = vst [vmem:[#allocation3 + $0x12c] sm:$0xf] %v4102_v46 }
 0x3de   : > { %3848 = vst [vmem:[#allocation3 + $0x168] sm:$0xf] %v4102_v46  ;;  %v3921_v46 = vpack.c.bf16 %v3889_v44, %v3889_v44  ;;  %v3714_v44 = vld [vmem:[#allocation2 + $0x122] sm:$0x1] }
 0x3df   : > { %3946 = vst [vmem:[#allocation3 + $0x1b4] sm:$0xf] %v3914_v36  ;;  %v9236_v39 = vld [vmem:[#allocation3 + $0x148] sm:$0xf0] }
 0x3e0   : > { %6395 = vmatmul.bf16.gmra.mxu0 %v8196_v54  ;;  %v3977_v18 = vld [vmem:[#allocation2 + $0x82] sm:$0xff]  ;;  %3947 = vst [vmem:[#allocation3 + $0x1d8] sm:$0xf] %v3915_v63  ;;  %v8264_v2 = vor.u32 %v9236_v39, %v8263_v32  ;;  %v4081_v54 = vld [vmem:[#allocation2 + $0xf8] sm:$0xff] }
 0x3e1   : > { %6222 = vmatmul.bf16.gmra.mxu2 %v8224_v14  ;;  %v4009_v9 = vpack.c.bf16 %v3977_v18, %v3977_v18  ;;  %3851 = vst [vmem:[#allocation3 + $0x1d4] sm:$0xf] %v4105_v61  ;;  %v3711_v61 = vld [vmem:[#allocation2 + $0xda] sm:$0x1]  ;;  %v8293_v63 = vld [vmem:[#allocation3 + $0x18c] sm:$0xf0]  ;;  %v4113_v10 = vpack.c.bf16 %v4081_v54, %v4081_v54 }
 0x3e2   : > { %v4072_v45 = vld [vmem:[#allocation2 + $0x90] sm:$0xff]  ;;  %3762 = vst [vmem:[#allocation2 + $0xa1] sm:$0x1] %v3744_v1  ;;  %v3747_v1 = vld [vmem:[#allocation2 + $0xe7] sm:$0x1]  ;;  %v8296_v33 = vor.u32 %v9240_v59, %v8293_v63 }
 0x3e3   : > { %6133 = vmatmul.bf16.gmra.mxu1 %v8220_v48  ;;  %4041 = vst [vmem:[#allocation3 + $0x194] sm:$0xf] %v4009_v9  ;;  %v4104_v42 = vpack.c.bf16 %v4072_v45, %v4072_v45  ;;  %v9244_v18 = vld [vmem:[#allocation3 + $0x188] sm:$0xf0]  ;;  %v9375_v9 = vld [vmem:[%s11789_s2 + $0x120] sm:$0xff] }
 0x3e4   : > { %4042 = vst [vmem:[#allocation3 + $0x1b8] sm:$0xf] %v4010_v47  ;;  %v9232_v36 = vld [vmem:[#allocation3 + $0x12c] sm:$0xf]  ;;  %v3712_v47 = vld [vmem:[#allocation2 + $0xf2] sm:$0x1]  ;;  %6469 = vmatpush.bf16.msrb.mxu1 %v9375_v9 }
 0x3e5   : > { %6311 = vmatmul.bf16.gmra.mxu3 %v8228_v29  ;;  %4136 = vst [vmem:[#allocation3 + $0x174] sm:$0xf] %v4104_v42  ;;  %v8268_v3 = vor.u32 %v9232_v36, %v8265_v17  ;;  %v8291_v14 = vld [vmem:[#allocation3 + $0x168] sm:$0xf]  ;;  %v3990_v63 = vld [vmem:[#allocation2 + $0x122] sm:$0xff] }
 0x3e6   : > { %3850 = vst [vmem:[#allocation3 + $0x1b0] sm:$0xf] %v4104_v42  ;;  %v8292_v45 = vor.u32 %v9244_v18, %v8291_v14  ;;  %v3891_v29 = vld [vmem:[#allocation2 + $0xf9] sm:$0xff]  ;;  %v3750_v54 = vld [vmem:[#allocation2 + $0x12f] sm:$0x1] }
 0x3e7   : > { %3727 = vst [vmem:[#allocation2 + $0xa8] sm:$0x1] %v3709_v23  ;;  %v8299_v42 = vld [vmem:[#allocation3 + $0x170] sm:$0xf]  ;;  %v3923_v22 = vpack.c.bf16 %v3891_v29, %v3891_v29  ;;  %v8329_v13 = vld [vmem:[#allocation3 + $0x1d4] sm:$0xf0] }
 0x3e8   : > { %4139 = vst [vmem:[#allocation3 + $0x1e0] sm:$0xf] %v4107_v5  ;;  %v9253_v32 = vld [vmem:[#allocation3 + $0x1d0] sm:$0xf0]  ;;  %v3715_v29 = vld [vmem:[#allocation2 + $0x13a] sm:$0x1] }
 0x3e9   : > { %v3979_v19 = vld [vmem:[#allocation2 + $0x9a] sm:$0xff]  ;;  %3948 = vst [vmem:[#allocation3 + $0x1fc] sm:$0xf] %v3916_v52 }
 0x3ea   : > { %v4011_v16 = vpack.c.bf16 %v3979_v19, %v3979_v19  ;;  %3949 = vst [vmem:[#allocation3 + $0x220] sm:$0xf] %v3917_v31  ;;  %v9245_v48 = vld [vmem:[#allocation3 + $0x190] sm:$0xf0]  ;;  %v3922_v31 = vpack.c.bf16 %v3890_v53, %v3890_v53  ;;  %v3986_v19 = vld [vmem:[#allocation2 + $0xf2] sm:$0xff] }
 0x3eb   : > { %3853 = vst [vmem:[#allocation3 + $0x21c] sm:$0xf] %v4107_v5  ;;  %v8300_v5 = vor.u32 %v9245_v48, %v8299_v42  ;;  %v3897_v42 = vld [vmem:[#allocation2 + $0x141] sm:$0xff] }
 0x3ec   : > { %4043 = vst [vmem:[#allocation3 + $0x1dc] sm:$0xf] %v4011_v16 }
 0x3ed   : > { %3763 = vst [vmem:[#allocation2 + $0xb9] sm:$0x1] %v3745_v49  ;;  %v4018_v49 = vpack.c.bf16 %v3986_v19, %v3986_v19  ;;  %v8327_v39 = vld [vmem:[#allocation3 + $0x1b0] sm:$0xf] }
 0x3ee   : > { %v4074_v4 = vld [vmem:[#allocation2 + $0xa8] sm:$0xff]  ;;  %4044 = vst [vmem:[#allocation3 + $0x200] sm:$0xf] %v4012_v28 }
 0x3ef   : > { %v4106_v43 = vpack.c.bf16 %v4074_v4, %v4074_v4  ;;  %3728 = vst [vmem:[#allocation2 + $0xc0] sm:$0x1] %v3710_v25  ;;  %v9249_v25 = vld [vmem:[#allocation3 + $0x1b4] sm:$0xf]  ;;  %v3713_v4 = vld [vmem:[#allocation2 + $0x10a] sm:$0x1] }
 0x3f0   : > { %6400 = vmatmul.bf16.gmra.mxu0 %v8232_v26  ;;  %4141 = vst [vmem:[#allocation3 + $0x228] sm:$0xf] %v4109_v6  ;;  %v3893_v26 = vld [vmem:[#allocation2 + $0x111] sm:$0xff]  ;;  %v9258_v17 = vld [vmem:[#allocation3 + $0x1fc] sm:$0xf] }
 0x3f1   : > { %6227 = vmatmul.bf16.gmra.mxu2 %v8260_v51  ;;  %4138 = vst [vmem:[#allocation3 + $0x1bc] sm:$0xf] %v4106_v43  ;;  %v4115_v51 = vpack.c.bf16 %v4083_v57, %v4083_v57  ;;  %v4089_v57 = vld [vmem:[#allocation2 + $0x158] sm:$0xff] }
 0x3f2   : > { %3852 = vst [vmem:[#allocation3 + $0x1f8] sm:$0xf] %v4106_v43  ;;  %v8301_v43 = vld [vmem:[#allocation3 + $0x194] sm:$0xf0]  ;;  %v9262_v48 = vld [vmem:[#allocation3 + $0x218] sm:$0xf0] }
 0x3f3   : > { %6138 = vmatmul.bf16.gmra.mxu1 %v8256_v35  ;;  %3950 = vst [vmem:[#allocation3 + $0x244] sm:$0xf] %v3918_v15  ;;  %v3924_v15 = vpack.c.bf16 %v3892_v41, %v3892_v41  ;;  %v8332_v35 = vor.u32 %v9249_v25, %v8329_v13  ;;  %v3899_v13 = vld [vmem:[#allocation2 + $0x159] sm:$0xff] }
 0x3f4   : > { %v3981_v20 = vld [vmem:[#allocation2 + $0xb2] sm:$0xff]  ;;  %3951 = vst [vmem:[#allocation3 + $0x268] sm:$0xf] %v3919_v58  ;;  %v3925_v58 = vpack.c.bf16 %v3893_v26, %v3893_v26 }
 0x3f5   : > { %6316 = vmatmul.bf16.gmra.mxu3 %v8264_v2  ;;  %v4013_v62 = vpack.c.bf16 %v3981_v20, %v3981_v20  ;;  %3855 = vst [vmem:[#allocation3 + $0x264] sm:$0xf] %v4109_v6  ;;  %v9241_v6 = vld [vmem:[#allocation3 + $0x174] sm:$0xf]  ;;  %v9254_v2 = vld [vmem:[#allocation3 + $0x1d8] sm:$0xf0] }
 0x3f6   : > { %v4076_v60 = vld [vmem:[#allocation2 + $0xc0] sm:$0xff]  ;;  %3764 = vst [vmem:[#allocation2 + $0xd1] sm:$0x1] %v3746_v38  ;;  %v8304_v11 = vor.u32 %v9241_v6, %v8301_v43  ;;  %v8328_v38 = vor.u32 %v9253_v32, %v8327_v39  ;;  %v8371_v19 = vld [vmem:[#allocation3 + $0x200] sm:$0xf] }
 0x3f7   : > { %4045 = vst [vmem:[#allocation3 + $0x224] sm:$0xf] %v4013_v62  ;;  %v4108_v40 = vpack.c.bf16 %v4076_v60, %v4076_v60  ;;  %v8335_v62 = vld [vmem:[#allocation3 + $0x1b8] sm:$0xf]  ;;  %v3749_v60 = vld [vmem:[#allocation2 + $0x117] sm:$0x1] }
 0x3f8   : > { %4046 = vst [vmem:[#allocation3 + $0x248] sm:$0xf] %v4014_v34  ;;  %v4085_v34 = vld [vmem:[#allocation2 + $0x128] sm:$0xff]  ;;  %v3716_v6 = vld [vmem:[#allocation2 + $0x152] sm:$0x1] }
 0x3f9   : > { %4140 = vst [vmem:[#allocation3 + $0x204] sm:$0xf] %v4108_v40  ;;  %v3898_v26 = vld [vmem:[#allocation2 + $0x151] sm:$0xff] }
 0x3fa   : > { %3854 = vst [vmem:[#allocation3 + $0x240] sm:$0xf] %v4108_v40  ;;  %v8336_v40 = vor.u32 %v9254_v2, %v8335_v62 }
 0x3fb   : > { %3729 = vst [vmem:[#allocation2 + $0xd8] sm:$0x1] %v3711_v61  ;;  %v4117_v61 = vpack.c.bf16 %v4085_v34, %v4085_v34  ;;  %v8401_v39 = vld [vmem:[#allocation3 + $0x264] sm:$0xf0]  ;;  %v3752_v34 = vld [vmem:[#allocation2 + $0x15f] sm:$0x1] }
 0x3fc   : > { %4143 = vst [vmem:[#allocation3 + $0x270] sm:$0xf] %v4111_v0 }
 0x3fd   : > { %v3983_v21 = vld [vmem:[#allocation2 + $0xca] sm:$0xff]  ;;  %3952 = vst [vmem:[#allocation3 + $0x28c] sm:$0xf] %v3920_v7 }
 0x3fe   : > { %v4015_v30 = vpack.c.bf16 %v3983_v21, %v3983_v21  ;;  %3953 = vst [vmem:[#allocation3 + $0x2b0] sm:$0xf] %v3921_v46  ;;  %v3895_v7 = vld [vmem:[#allocation2 + $0x129] sm:$0xff] }
 0x3ff   : > { %3857 = vst [vmem:[#allocation3 + $0x2ac] sm:$0xf] %v4111_v0  ;;  %v3894_v0 = vld [vmem:[#allocation2 + $0x121] sm:$0xff]  ;;  %v3927_v59 = vpack.c.bf16 %v3895_v7, %v3895_v7  ;;  %v9250_v21 = vld [vmem:[#allocation3 + $0x1bc] sm:$0xf] }
 0x400   : > { %6405 = vmatmul.bf16.gmra.mxu0 %v8268_v3  ;;  %4047 = vst [vmem:[#allocation3 + $0x26c] sm:$0xf] %v4015_v30  ;;  %v3926_v12 = vpack.c.bf16 %v3894_v0, %v3894_v0  ;;  %v8365_v3 = vld [vmem:[#allocation3 + $0x21c] sm:$0xf0]  ;;  %v4022_v30 = vpack.c.bf16 %v3990_v63, %v3990_v63  ;;  %v8407_v0 = vld [vmem:[#allocation3 + $0x248] sm:$0xf] }
 0x401   : > { %6232 = vmatmul.bf16.gmra.mxu2 %v8296_v33  ;;  %3765 = vst [vmem:[#allocation2 + $0xe9] sm:$0x1] %v3747_v1  ;;  %v8337_v1 = vld [vmem:[#allocation3 + $0x1dc] sm:$0xf0]  ;;  %v4087_v33 = vld [vmem:[#allocation2 + $0x140] sm:$0xff]  ;;  %v8368_v53 = vor.u32 %v9258_v17, %v8365_v3 }
 0x402   : > { %v4078_v23 = vld [vmem:[#allocation2 + $0xd8] sm:$0xff]  ;;  %4048 = vst [vmem:[#allocation3 + $0x290] sm:$0xf] %v4016_v8  ;;  %v8340_v18 = vor.u32 %v9250_v21, %v8337_v1  ;;  %v8399_v2 = vld [vmem:[#allocation3 + $0x240] sm:$0xf] }
 0x403   : > { %6143 = vmatmul.bf16.gmra.mxu1 %v8292_v45  ;;  %v4110_v52 = vpack.c.bf16 %v4078_v23, %v4078_v23  ;;  %3730 = vst [vmem:[#allocation2 + $0xf0] sm:$0x1] %v3712_v47  ;;  %v8363_v47 = vld [vmem:[#allocation3 + $0x1f8] sm:$0xf]  ;;  %v9263_v23 = vld [vmem:[#allocation3 + $0x220] sm:$0xf0] }
 0x404   : > { %4145 = vst [vmem:[#allocation3 + $0x2b8] sm:$0xf] %v4113_v10  ;;  %v3717_v17 = vld [vmem:[#allocation2 + $0x16a] sm:$0x1] }
 0x405   : > { %6321 = vmatmul.bf16.gmra.mxu3 %v8300_v5  ;;  %4142 = vst [vmem:[#allocation3 + $0x24c] sm:$0xf] %v4110_v52  ;;  %v9374_v5 = vld [vmem:[%s11789_s2 + $0x118] sm:$0xff] }
 0x406   : > { %3856 = vst [vmem:[#allocation3 + $0x288] sm:$0xf] %v4110_v52  ;;  %v4119_v52 = vpack.c.bf16 %v4087_v33, %v4087_v33  ;;  %6470 = vmatpush.bf16.msrb.mxu1 %v9374_v5 }
 0x407   : > { %3954 = vst [vmem:[#allocation3 + $0x2d4] sm:$0xf] %v3922_v31  ;;  %v8364_v31 = vor.u32 %v9262_v48, %v8363_v47  ;;  %v4093_v47 = vld [vmem:[#allocation2 + $0x188] sm:$0xff]  ;;  %v9276_v48 = vld [vmem:[#allocation3 + $0x28c] sm:$0xf] }
 0x408   : > { %v3985_v16 = vld [vmem:[#allocation2 + $0xe2] sm:$0xff]  ;;  %3955 = vst [vmem:[#allocation3 + $0x2f8] sm:$0xf] %v3923_v22  ;;  %v4125_v5 = vpack.c.bf16 %v4093_v47, %v4093_v47 }
 0x409   : > { %v4017_v28 = vpack.c.bf16 %v3985_v16, %v3985_v16  ;;  %3859 = vst [vmem:[#allocation3 + $0x2f4] sm:$0xf] %v4113_v10  ;;  %v3896_v10 = vld [vmem:[#allocation2 + $0x139] sm:$0xff]  ;;  %v8372_v16 = vor.u32 %v9263_v23, %v8371_v19  ;;  %v3718_v23 = vld [vmem:[#allocation2 + $0x182] sm:$0x1]  ;;  %v4448_v47 = vld [vmem:[#allocation2 + $0x49] sm:$0xff] }
 0x40a   : > { %v4080_v27 = vld [vmem:[#allocation2 + $0xf0] sm:$0xff]  ;;  %3766 = vst [vmem:[#allocation2 + $0x101] sm:$0x1] %v3748_v55  ;;  %v3928_v22 = vpack.c.bf16 %v3896_v10, %v3896_v10  ;;  %v3929_v55 = vpack.c.bf16 %v3897_v42, %v3897_v42 }
 0x40b   : > { %4049 = vst [vmem:[#allocation3 + $0x2b4] sm:$0xf] %v4017_v28  ;;  %v4112_v24 = vpack.c.bf16 %v4080_v27, %v4080_v27  ;;  %v3751_v27 = vld [vmem:[#allocation2 + $0x147] sm:$0x1]  ;;  %v3753_v10 = vld [vmem:[#allocation2 + $0x177] sm:$0x1] }
 0x40c   : > { %4050 = vst [vmem:[#allocation3 + $0x2d8] sm:$0xf] %v4018_v49  ;;  %v3992_v49 = vld [vmem:[#allocation2 + $0x13a] sm:$0xff] }
 0x40d   : > { %4144 = vst [vmem:[#allocation3 + $0x294] sm:$0xf] %v4112_v24  ;;  %v4024_v41 = vpack.c.bf16 %v3992_v49, %v3992_v49  ;;  %v8435_v49 = vld [vmem:[#allocation3 + $0x288] sm:$0xf] }
 0x40e   : > { %3858 = vst [vmem:[#allocation3 + $0x2d0] sm:$0xf] %v4112_v24  ;;  %v4121_v24 = vpack.c.bf16 %v4089_v57, %v4089_v57  ;;  %v4158_v57 = vld [vmem:[#allocation2 + $0x19] sm:$0xff] }
 0x40f   : > { %3731 = vst [vmem:[#allocation2 + $0x108] sm:$0x1] %v3713_v4 }
 0x410   : > { %6410 = vmatmul.bf16.gmra.mxu0 %v8304_v11  ;;  %4147 = vst [vmem:[#allocation3 + $0x300] sm:$0xf] %v4115_v51  ;;  %v9267_v11 = vld [vmem:[#allocation3 + $0x244] sm:$0xf] }
 0x411   : > { %6237 = vmatmul.bf16.gmra.mxu2 %v8332_v35  ;;  %v3987_v20 = vld [vmem:[#allocation2 + $0xfa] sm:$0xff]  ;;  %3956 = vst [vmem:[#allocation3 + $0x31c] sm:$0xf] %v3924_v15  ;;  %v3930_v15 = vpack.c.bf16 %v3898_v26, %v3898_v26 }
 0x412   : > { %v4019_v56 = vpack.c.bf16 %v3987_v20, %v3987_v20  ;;  %3957 = vst [vmem:[#allocation3 + $0x340] sm:$0xf] %v3925_v58  ;;  %v3931_v58 = vpack.c.bf16 %v3899_v13, %v3899_v13  ;;  %v8373_v35 = vld [vmem:[#allocation3 + $0x224] sm:$0xf0]  ;;  %v9271_v20 = vld [vmem:[#allocation3 + $0x260] sm:$0xf0] }
 0x413   : > { %6148 = vmatmul.bf16.gmra.mxu1 %v8328_v38  ;;  %3861 = vst [vmem:[#allocation3 + $0x33c] sm:$0xf] %v4115_v51  ;;  %v9259_v51 = vld [vmem:[#allocation3 + $0x204] sm:$0xf]  ;;  %v8404_v38 = vor.u32 %v9267_v11, %v8401_v39  ;;  %v4190_v39 = vpack.c.bf16 %v4158_v57, %v4158_v57 }
 0x414   : > { %4051 = vst [vmem:[#allocation3 + $0x2fc] sm:$0xf] %v4019_v56  ;;  %v8376_v32 = vor.u32 %v9259_v51, %v8373_v35  ;;  %v9272_v56 = vld [vmem:[#allocation3 + $0x268] sm:$0xf0]  ;;  %v9373_v51 = vld [vmem:[%s11789_s2 + $0x110] sm:$0xff] }
 0x415   : > { %6326 = vmatmul.bf16.gmra.mxu3 %v8336_v40  ;;  %3767 = vst [vmem:[#allocation2 + $0x119] sm:$0x1] %v3749_v60  ;;  %v8400_v40 = vor.u32 %v9271_v20, %v8399_v2  ;;  %v8443_v35 = vld [vmem:[#allocation3 + $0x290] sm:$0xf]  ;;  %6471 = vmatpush.bf16.msrb.mxu1 %v9373_v51  ;;  %v4351_v2 = vld [vmem:[#allocation2 + $0x38] sm:$0xff] }
 0x416   : > { %v4082_v46 = vld [vmem:[#allocation2 + $0x108] sm:$0xff]  ;;  %4052 = vst [vmem:[#allocation3 + $0x320] sm:$0xf] %v4020_v37  ;;  %v4026_v37 = vpack.c.bf16 %v3994_v50, %v3994_v50 }
 0x417   : > { %v4114_v36 = vpack.c.bf16 %v4082_v46, %v4082_v46  ;;  %3732 = vst [vmem:[#allocation2 + $0x120] sm:$0x1] %v3714_v44  ;;  %v3900_v46 = vld [vmem:[#allocation2 + $0x169] sm:$0xff] }
 0x418   : > { %4149 = vst [vmem:[#allocation3 + $0x348] sm:$0xf] %v4117_v61  ;;  %v3932_v3 = vpack.c.bf16 %v3900_v46, %v3900_v46 }
 0x419   : > { %4146 = vst [vmem:[#allocation3 + $0x2dc] sm:$0xf] %v4114_v36 }
 0x41a   : > { %3860 = vst [vmem:[#allocation3 + $0x318] sm:$0xf] %v4114_v36  ;;  %v8408_v36 = vor.u32 %v9272_v56, %v8407_v0  ;;  %v4256_v0 = vld [vmem:[#allocation2 + $0x32] sm:$0xff] }
 0x41b   : > { %3958 = vst [vmem:[#allocation3 + $0x364] sm:$0xf] %v3926_v12 }
 0x41c   : > { %v3989_v14 = vld [vmem:[#allocation2 + $0x112] sm:$0xff]  ;;  %3959 = vst [vmem:[#allocation3 + $0x388] sm:$0xf] %v3927_v59 }
 0x41d   : > { %v4021_v8 = vpack.c.bf16 %v3989_v14, %v3989_v14  ;;  %3863 = vst [vmem:[#allocation3 + $0x384] sm:$0xf] %v4117_v61  ;;  %v4091_v61 = vld [vmem:[#allocation2 + $0x170] sm:$0xff] }
 0x41e   : > { %v4084_v9 = vld [vmem:[#allocation2 + $0x120] sm:$0xff]  ;;  %3768 = vst [vmem:[#allocation2 + $0x131] sm:$0x1] %v3750_v54  ;;  %v3901_v59 = vld [vmem:[#allocation2 + $0x171] sm:$0xff]  ;;  %v4123_v21 = vpack.c.bf16 %v4091_v61, %v4091_v61  ;;  %v4383_v61 = vpack.c.bf16 %v4351_v2, %v4351_v2 }
 0x41f   : > { %4053 = vst [vmem:[#allocation3 + $0x344] sm:$0xf] %v4021_v8  ;;  %v4116_v45 = vpack.c.bf16 %v4084_v9, %v4084_v9  ;;  %v3933_v14 = vpack.c.bf16 %v3901_v59, %v3901_v59 }
 0x420   : > { %6415 = vmatmul.bf16.gmra.mxu0 %v8340_v18  ;;  %4054 = vst [vmem:[#allocation3 + $0x368] sm:$0xf] %v4022_v30  ;;  %v3996_v30 = vld [vmem:[#allocation2 + $0x16a] sm:$0xff] }
 0x421   : > { %6242 = vmatmul.bf16.gmra.mxu2 %v8368_v53  ;;  %4148 = vst [vmem:[#allocation3 + $0x324] sm:$0xf] %v4116_v45  ;;  %v4028_v53 = vpack.c.bf16 %v3996_v30, %v3996_v30  ;;  %v9277_v30 = vld [vmem:[#allocation3 + $0x294] sm:$0xf] }
 0x422   : > { %3862 = vst [vmem:[#allocation3 + $0x360] sm:$0xf] %v4116_v45  ;;  %v9268_v45 = vld [vmem:[#allocation3 + $0x24c] sm:$0xf] }
 0x423   : > { %6153 = vmatmul.bf16.gmra.mxu1 %v8364_v31  ;;  %3733 = vst [vmem:[#allocation2 + $0x138] sm:$0x1] %v3715_v29  ;;  %v8437_v29 = vld [vmem:[#allocation3 + $0x2ac] sm:$0xf0] }
 0x424   : > { %4151 = vst [vmem:[#allocation3 + $0x390] sm:$0xf] %v4119_v52 }
 0x425   : > { %6331 = vmatmul.bf16.gmra.mxu3 %v8372_v16  ;;  %v3991_v28 = vld [vmem:[#allocation2 + $0x12a] sm:$0xff]  ;;  %3960 = vst [vmem:[#allocation3 + $0x3ac] sm:$0xf] %v3928_v22  ;;  %v8409_v22 = vld [vmem:[#allocation3 + $0x26c] sm:$0xf0] }
 0x426   : > { %v4023_v25 = vpack.c.bf16 %v3991_v28, %v3991_v28  ;;  %3961 = vst [vmem:[#allocation3 + $0x3d0] sm:$0xf] %v3929_v55  ;;  %v4255_v55 = vld [vmem:[#allocation2 + $0x22] sm:$0xff]  ;;  %v8412_v16 = vor.u32 %v9268_v45, %v8409_v22  ;;  %v4449_v45 = vld [vmem:[#allocation2 + $0x51] sm:$0xff]  ;;  %v4480_v22 = vpack.c.bf16 %v4448_v47, %v4448_v47  ;;  %v9298_v47 = vld [vmem:[#allocation3 + $0x338] sm:$0xf0] }
 0x427   : > { %3865 = vst [vmem:[#allocation3 + $0x3cc] sm:$0xf] %v4119_v52  ;;  %v4254_v52 = vld [vmem:[#allocation2 + $0x1a] sm:$0xff]  ;;  %v4481_v57 = vpack.c.bf16 %v4449_v45, %v4449_v45 }
 0x428   : > { %4055 = vst [vmem:[#allocation3 + $0x38c] sm:$0xf] %v4023_v25  ;;  %v8440_v25 = vor.u32 %v9276_v48, %v8437_v29 }
 0x429   : > { %3769 = vst [vmem:[#allocation2 + $0x149] sm:$0x1] %v3751_v27  ;;  %v9280_v27 = vld [vmem:[#allocation3 + $0x2a8] sm:$0xf0] }
 0x42a   : > { %v4086_v4 = vld [vmem:[#allocation2 + $0x138] sm:$0xff]  ;;  %4056 = vst [vmem:[#allocation3 + $0x3b0] sm:$0xf] %v4024_v41  ;;  %v8436_v11 = vor.u32 %v9280_v27, %v8435_v49  ;;  %v9289_v49 = vld [vmem:[#allocation3 + $0x2f0] sm:$0xf0] }
 0x42b   : > { %v4118_v43 = vpack.c.bf16 %v4086_v4, %v4086_v4  ;;  %3734 = vst [vmem:[#allocation2 + $0x150] sm:$0x1] %v3716_v6  ;;  %v4286_v6 = vpack.c.bf16 %v4254_v52, %v4254_v52  ;;  %v9281_v4 = vld [vmem:[#allocation3 + $0x2b0] sm:$0xf0] }
 0x42c   : > { %4153 = vst [vmem:[#allocation3 + $0x3d8] sm:$0xf] %v4121_v24 }
 0x42d   : > { %4150 = vst [vmem:[#allocation3 + $0x36c] sm:$0xf] %v4118_v43 }
 0x42e   : > { %3864 = vst [vmem:[#allocation3 + $0x3a8] sm:$0xf] %v4118_v43  ;;  %v4287_v43 = vpack.c.bf16 %v4255_v55, %v4255_v55 }
 0x42f   : > { %3962 = vst [vmem:[#allocation3 + $0x3f4] sm:$0xf] %v3930_v15 }
 0x430   : > { %6420 = vmatmul.bf16.gmra.mxu0 %v8376_v32  ;;  %v6119_v62 = vpop.f32.mrf.mxu1  ;;  %v3993_v60 = vld [vmem:[#allocation2 + $0x142] sm:$0xff]  ;;  %3963 = vst [vmem:[#allocation3 + $0x418] sm:$0xf] %v3931_v58  ;;  %v4350_v58 = vld [vmem:[#allocation2 + $0x30] sm:$0xff]  ;;  %v8444_v32 = vor.u32 %v9281_v4, %v8443_v35 }
 0x431   : > { %6247 = vmatmul.bf16.gmra.mxu2 %v8404_v38  ;;  %v4025_v44 = vpack.c.bf16 %v3993_v60, %v3993_v60  ;;  %3867 = vst [vmem:[#allocation3 + $0x414] sm:$0xf] %v4121_v24  ;;  %v4159_v24 = vld [vmem:[#allocation2 + $0x21] sm:$0xff]  ;;  %v4451_v35 = vld [vmem:[#allocation2 + $0x69] sm:$0xff] }
 0x432   : > { %v4088_v7 = vld [vmem:[#allocation2 + $0x150] sm:$0xff]  ;;  %3770 = vst [vmem:[#allocation2 + $0x161] sm:$0x1] %v3752_v34  ;;  %v4191_v50 = vpack.c.bf16 %v4159_v24, %v4159_v24  ;;  %v4382_v34 = vpack.c.bf16 %v4350_v58, %v4350_v58  ;;  %v4355_v4 = vld [vmem:[#allocation2 + $0x68] sm:$0xff] }
 0x433   : > { %6158 = vmatmul.bf16.gmra.mxu1 %v8400_v40  ;;  %4057 = vst [vmem:[#allocation3 + $0x3d4] sm:$0xf] %v4025_v44  ;;  %v4120_v12 = vpack.c.bf16 %v4088_v7, %v4088_v7  ;;  %v4447_v40 = vld [vmem:[#allocation2 + $0x39] sm:$0xff] }
 0x434   : > { %v6208_v63 = vpop.f32.mrf.mxu2  ;;  %4058 = vst [vmem:[#allocation3 + $0x3f8] sm:$0xf] %v4026_v37 }
 0x435   : > { %v6209_v54 = vadd.f32 %v6208_v63, %v6119_v62  ;;  %6336 = vmatmul.bf16.gmra.mxu3 %v8408_v36  ;;  %4152 = vst [vmem:[#allocation3 + $0x3b4] sm:$0xf] %v4120_v12  ;;  %v4446_v62 = vld [vmem:[#allocation2 + $0x31] sm:$0xff]  ;;  %v4257_v36 = vld [vmem:[#allocation2 + $0x3a] sm:$0xff]  ;;  %v4479_v63 = vpack.c.bf16 %v4447_v40, %v4447_v40  ;;  %v9294_v40 = vld [vmem:[#allocation3 + $0x31c] sm:$0xf] }
 0x436   : > { %3866 = vst [vmem:[#allocation3 + $0x3f0] sm:$0xf] %v4120_v12  ;;  %v4478_v46 = vpack.c.bf16 %v4446_v62, %v4446_v62  ;;  %v4483_v62 = vpack.c.bf16 %v4451_v35, %v4451_v35 }
 0x437   : > { %3735 = vst [vmem:[#allocation2 + $0x168] sm:$0x1] %v3717_v17 }
 0x438   : > { %v6297_v1 = vpop.f32.mrf.mxu3  ;;  %v6121_v8 = vpop.f32.mrf.mxu1  ;;  %4155 = vst [vmem:[#allocation3 + $0x420] sm:$0xf] %v4123_v21 }
 0x439   : > { %v10958_v33 = vadd.f32 %v6297_v1, %v6209_v54  ;;  %v3995_v18 = vld [vmem:[#allocation2 + $0x15a] sm:$0xff]  ;;  %3964 = vst [vmem:[#allocation3 + $0x43c] sm:$0xf] %v3932_v3  ;;  %v9285_v54 = vld [vmem:[#allocation3 + $0x2d4] sm:$0xf]  ;;  %v4289_v3 = vpack.c.bf16 %v4257_v36, %v4257_v36  ;;  %v4353_v1 = vld [vmem:[#allocation2 + $0x50] sm:$0xff] }
 0x43a   : > { %v4027_v9 = vpack.c.bf16 %v3995_v18, %v3995_v18  ;;  %3965 = vst [vmem:[#allocation3 + $0x460] sm:$0xf] %v3933_v14  ;;  %v4352_v14 = vld [vmem:[#allocation2 + $0x48] sm:$0xff]  ;;  %v8509_v36 = vld [vmem:[#allocation3 + $0x33c] sm:$0xf0] }
 0x43b   : > { %3869 = vst [vmem:[#allocation3 + $0x45c] sm:$0xf] %v4123_v21  ;;  %v4288_v21 = vpack.c.bf16 %v4256_v0, %v4256_v0  ;;  %v8473_v18 = vld [vmem:[#allocation3 + $0x2f4] sm:$0xf0]  ;;  %v9286_v0 = vld [vmem:[#allocation3 + $0x2dc] sm:$0xf] }
 0x43c   : > { %v6210_v42 = vpop.f32.mrf.mxu2  ;;  %4059 = vst [vmem:[#allocation3 + $0x41c] sm:$0xf] %v4027_v9  ;;  %v8445_v9 = vld [vmem:[#allocation3 + $0x2b4] sm:$0xf0]  ;;  %v8476_v52 = vor.u32 %v9285_v54, %v8473_v18  ;;  %v8512_v18 = vor.u32 %v9294_v40, %v8509_v36  ;;  %v8545_v40 = vld [vmem:[#allocation3 + $0x384] sm:$0xf0] }
 0x43d   : > { %v10960_v31 = vpop.f32.mrf.mxu0  ;;  %v6211_v19 = vadd.f32 %v6210_v42, %v6121_v8  ;;  %3771 = vst [vmem:[#allocation2 + $0x179] sm:$0x1] %v3753_v10  ;;  %v8448_v29 = vor.u32 %v9277_v30, %v8445_v9  ;;  %v8471_v42 = vld [vmem:[#allocation3 + $0x2d0] sm:$0xf]  ;;  %v8507_v30 = vld [vmem:[#allocation3 + $0x318] sm:$0xf] }
 0x43e   : > { %v4090_v28 = vld [vmem:[#allocation2 + $0x168] sm:$0xff]  ;;  %4060 = vst [vmem:[#allocation3 + $0x440] sm:$0xf] %v4028_v53  ;;  %v4384_v53 = vpack.c.bf16 %v4352_v14, %v4352_v14  ;;  %v8472_v27 = vor.u32 %v9289_v49, %v8471_v42  ;;  %v4457_v36 = vld [vmem:[#allocation2 + $0xb1] sm:$0xff] }
 0x43f   : > { %v4122_v41 = vpack.c.bf16 %v4090_v28, %v4090_v28  ;;  %3736 = vst [vmem:[#allocation2 + $0x180] sm:$0x1] %v3718_v23  ;;  %v4385_v23 = vpack.c.bf16 %v4353_v1, %v4353_v1  ;;  %v9290_v28 = vld [vmem:[#allocation3 + $0x2f8] sm:$0xf0] }
 0x440   : > { %6425 = vmatmul.bf16.gmra.mxu0 %v8412_v16  ;;  %v6299_v26 = vpop.f32.mrf.mxu3  ;;  %v6124_v13 = vpop.f32.mrf.mxu1  ;;  %4157 = vst [vmem:[#allocation3 + $0x468] sm:$0xf] %v4125_v5  ;;  %v4258_v5 = vld [vmem:[#allocation2 + $0x4a] sm:$0xff] }
 0x441   : > { %6252 = vmatmul.bf16.gmra.mxu2 %v8440_v25  ;;  %v10965_v15 = vadd.f32 %v6299_v26, %v6211_v19  ;;  %4154 = vst [vmem:[#allocation3 + $0x3fc] sm:$0xf] %v4122_v41  ;;  %v4259_v19 = vld [vmem:[#allocation2 + $0x52] sm:$0xff]  ;;  %v4354_v26 = vld [vmem:[#allocation2 + $0x60] sm:$0xff]  ;;  %v9372_v42 = vld [vmem:[%s11789_s2 + $0x108] sm:$0xff] }
 0x442   : > { %3868 = vst [vmem:[#allocation3 + $0x438] sm:$0xf] %v4122_v41  ;;  %v4290_v41 = vpack.c.bf16 %v4258_v5, %v4258_v5  ;;  %v4291_v24 = vpack.c.bf16 %v4259_v19, %v4259_v19  ;;  %v4386_v58 = vpack.c.bf16 %v4354_v26, %v4354_v26  ;;  %v8515_v19 = vld [vmem:[#allocation3 + $0x320] sm:$0xf]  ;;  %6472 = vmatpush.bf16.msrb.mxu1 %v9372_v42  ;;  %v4455_v26 = vld [vmem:[#allocation2 + $0x99] sm:$0xff] }
 0x443   : > { %6163 = vmatmul.bf16.gmra.mxu1 %v8436_v11  ;;  %4318 = vst [vmem:[#allocation3 + $0x14] sm:$0xf] %v4286_v6  ;;  %v8479_v6 = vld [vmem:[#allocation3 + $0x2d8] sm:$0xf]  ;;  %v4487_v35 = vpack.c.bf16 %v4455_v26, %v4455_v26 }
 0x444   : > { %v6213_v38 = vpop.f32.mrf.mxu2  ;;  %v3997_v20 = vld [vmem:[#allocation2 + $0x172] sm:$0xff]  ;;  %4319 = vst [vmem:[#allocation3 + $0x38] sm:$0xf] %v4287_v43  ;;  %v4450_v43 = vld [vmem:[#allocation2 + $0x61] sm:$0xff] }
 0x445   : > { %v10967_v56 = vpop.f32.mrf.mxu0  ;;  %v6214_v60 = vadd.f32 %v6213_v38, %v6124_v13  ;;  %6341 = vmatmul.bf16.gmra.mxu3 %v8444_v32  ;;  %v4029_v37 = vpack.c.bf16 %v3997_v20, %v3997_v20  ;;  %4222 = vst [vmem:[#allocation3 + $0x10] sm:$0xf] %v4190_v39  ;;  %v8480_v13 = vor.u32 %v9290_v28, %v8479_v6  ;;  %v4260_v32 = vld [vmem:[#allocation2 + $0x62] sm:$0xff]  ;;  %v4261_v38 = vld [vmem:[#allocation2 + $0x6a] sm:$0xff]  ;;  %v4359_v28 = vld [vmem:[#allocation2 + $0x98] sm:$0xff] }
 0x446   : > { %v4092_v44 = vld [vmem:[#allocation2 + $0x180] sm:$0xff]  ;;  %4223 = vst [vmem:[#allocation3 + $0x34] sm:$0xf] %v4191_v50  ;;  %v4387_v50 = vpack.c.bf16 %v4355_v4, %v4355_v4  ;;  %v4482_v2 = vpack.c.bf16 %v4450_v43, %v4450_v43  ;;  %v4264_v4 = vld [vmem:[#allocation2 + $0x92] sm:$0xff] }
 0x447   : > { %4061 = vst [vmem:[#allocation3 + $0x464] sm:$0xf] %v4029_v37  ;;  %v4124_v7 = vpack.c.bf16 %v4092_v44, %v4092_v44  ;;  %v4292_v37 = vpack.c.bf16 %v4260_v32, %v4260_v32  ;;  %v4293_v44 = vpack.c.bf16 %v4261_v38, %v4261_v38  ;;  %v4265_v43 = vld [vmem:[#allocation2 + $0x9a] sm:$0xff]  ;;  %v4296_v32 = vpack.c.bf16 %v4264_v4, %v4264_v4 }
 0x448   : > { %v6302_v12 = vpop.f32.mrf.mxu3  ;;  %v6126_v59 = vpop.f32.mrf.mxu1  ;;  %4414 = vst [vmem:[#allocation3 + $0x18] sm:$0xf] %v4382_v34  ;;  %v4297_v38 = vpack.c.bf16 %v4265_v43, %v4265_v43 }
 0x449   : > { %v10969_v17 = vadd.f32 %v6302_v12, %v6214_v60  ;;  %4156 = vst [vmem:[#allocation3 + $0x444] sm:$0xf] %v4124_v7  ;;  %v4357_v7 = vld [vmem:[#allocation2 + $0x80] sm:$0xff] }
 0x44a   : > { %4415 = vst [vmem:[#allocation3 + $0x3c] sm:$0xf] %v4383_v61  ;;  %v4356_v61 = vld [vmem:[#allocation2 + $0x78] sm:$0xff]  ;;  %v4389_v1 = vpack.c.bf16 %v4357_v7, %v4357_v7 }
 0x44b   : > { %4510 = vst [vmem:[#allocation3 + $0x1c] sm:$0xf] %v4478_v46  ;;  %v4452_v12 = vld [vmem:[#allocation2 + $0x79] sm:$0xff]  ;;  %v4388_v54 = vpack.c.bf16 %v4356_v61, %v4356_v61 }
 0x44c   : > { %v6215_v8 = vpop.f32.mrf.mxu2  ;;  %4511 = vst [vmem:[#allocation3 + $0x40] sm:$0xf] %v4479_v63  ;;  %v4484_v9 = vpack.c.bf16 %v4452_v12, %v4452_v12 }
 0x44d   : > { %v10971_v48 = vpop.f32.mrf.mxu0  ;;  %v6216_v10 = vadd.f32 %v6215_v8, %v6126_v59  ;;  %4320 = vst [vmem:[#allocation3 + $0x5c] sm:$0xf] %v4288_v21  ;;  %v4262_v8 = vld [vmem:[#allocation2 + $0x7a] sm:$0xff] }
 0x44e   : > { %4321 = vst [vmem:[#allocation3 + $0x80] sm:$0xf] %v4289_v3  ;;  %v4453_v3 = vld [vmem:[#allocation2 + $0x81] sm:$0xff] }
 0x44f   : > { %4224 = vst [vmem:[#allocation3 + $0x58] sm:$0xf] %v4478_v46 }
 0x450   : > { %6430 = vmatmul.bf16.gmra.mxu0 %v8448_v29  ;;  %v6304_v55 = vpop.f32.mrf.mxu3  ;;  %v6129_v16 = vpop.f32.mrf.mxu1  ;;  %4225 = vst [vmem:[#allocation3 + $0x7c] sm:$0xf] %v4479_v63  ;;  %v8481_v63 = vld [vmem:[#allocation3 + $0x2fc] sm:$0xf0]  ;;  %v9299_v29 = vld [vmem:[#allocation3 + $0x340] sm:$0xf0] }
 0x451   : > { %6257 = vmatmul.bf16.gmra.mxu2 %v8476_v52  ;;  %v10973_v25 = vadd.f32 %v6304_v55, %v6216_v10  ;;  %4416 = vst [vmem:[#allocation3 + $0x60] sm:$0xf] %v4384_v53  ;;  %v8484_v14 = vor.u32 %v9286_v0, %v8481_v63  ;;  %v4263_v10 = vld [vmem:[#allocation2 + $0x82] sm:$0xff]  ;;  %v8508_v52 = vor.u32 %v9298_v47, %v8507_v30  ;;  %v8517_v0 = vld [vmem:[#allocation3 + $0x344] sm:$0xf0] }
 0x452   : > { %4417 = vst [vmem:[#allocation3 + $0x84] sm:$0xf] %v4385_v23  ;;  %v4485_v23 = vpack.c.bf16 %v4453_v3, %v4453_v3  ;;  %v4295_v55 = vpack.c.bf16 %v4263_v10, %v4263_v10  ;;  %v8516_v49 = vor.u32 %v9299_v29, %v8515_v19  ;;  %v8543_v63 = vld [vmem:[#allocation3 + $0x360] sm:$0xf]  ;;  %v9308_v47 = vld [vmem:[#allocation3 + $0x388] sm:$0xf0] }
 0x453   : > { %6168 = vmatmul.bf16.gmra.mxu1 %v8472_v27  ;;  %4512 = vst [vmem:[#allocation3 + $0x64] sm:$0xf] %v4480_v22  ;;  %v4454_v27 = vld [vmem:[#allocation2 + $0x91] sm:$0xff] }
 0x454   : > { %v6218_v51 = vpop.f32.mrf.mxu2  ;;  %4513 = vst [vmem:[#allocation3 + $0x88] sm:$0xf] %v4481_v57  ;;  %v4267_v30 = vld [vmem:[#allocation2 + $0xb2] sm:$0xff] }
 0x455   : > { %v10975_v11 = vpop.f32.mrf.mxu0  ;;  %v6219_v39 = vadd.f32 %v6218_v51, %v6129_v16  ;;  %6346 = vmatmul.bf16.gmra.mxu3 %v8480_v13  ;;  %4322 = vst [vmem:[#allocation3 + $0xa4] sm:$0xf] %v4290_v41  ;;  %v4358_v16 = vld [vmem:[#allocation2 + $0x90] sm:$0xff]  ;;  %v4391_v13 = vpack.c.bf16 %v4359_v28, %v4359_v28  ;;  %v4486_v51 = vpack.c.bf16 %v4454_v27, %v4454_v27  ;;  %v8551_v29 = vld [vmem:[#allocation3 + $0x368] sm:$0xf] }
 0x456   : > { %4323 = vst [vmem:[#allocation3 + $0xc8] sm:$0xf] %v4291_v24  ;;  %v4390_v24 = vpack.c.bf16 %v4358_v16, %v4358_v16  ;;  %v4299_v42 = vpack.c.bf16 %v4267_v30, %v4267_v30  ;;  %v9386_v28 = vld [vmem:[%s11789_s2 + $0x178] sm:$0xff]  ;;  %v4459_v27 = vld [vmem:[#allocation2 + $0xc9] sm:$0xff] }
 0x457   : > { %4226 = vst [vmem:[#allocation3 + $0xa0] sm:$0xf] %v4480_v22  ;;  %v4294_v22 = vpack.c.bf16 %v4262_v8, %v4262_v8  ;;  %6555 = vmatpush.bf16.msra.mxu2 %v9386_v28  ;;  %v4491_v43 = vpack.c.bf16 %v4459_v27, %v4459_v27  ;;  %v4270_v30 = vld [vmem:[#allocation2 + $0xda] sm:$0xff] }
 0x458   : > { %v6307_v20 = vpop.f32.mrf.mxu3  ;;  %v6131_v34 = vpop.f32.mrf.mxu1  ;;  %4227 = vst [vmem:[#allocation3 + $0xc4] sm:$0xf] %v4481_v57  ;;  %v4367_v27 = vld [vmem:[#allocation2 + $0xf8] sm:$0xff] }
 0x459   : > { %v10977_v60 = vadd.f32 %v6307_v20, %v6219_v39  ;;  %4418 = vst [vmem:[#allocation3 + $0xa8] sm:$0xf] %v4386_v58  ;;  %v4360_v20 = vld [vmem:[#allocation2 + $0xa8] sm:$0xff] }
 0x45a   : > { %4419 = vst [vmem:[#allocation3 + $0xcc] sm:$0xf] %v4387_v50 }
 0x45b   : > { %4514 = vst [vmem:[#allocation3 + $0xac] sm:$0xf] %v4482_v2 }
 0x45c   : > { %v6220_v46 = vpop.f32.mrf.mxu2  ;;  %4515 = vst [vmem:[#allocation3 + $0xd0] sm:$0xf] %v4483_v62 }
 0x45d   : > { %v10979_v59 = vpop.f32.mrf.mxu0  ;;  %v6221_v21 = vadd.f32 %v6220_v46, %v6131_v34  ;;  %4324 = vst [vmem:[#allocation3 + $0xec] sm:$0xf] %v4292_v37  ;;  %v9295_v34 = vld [vmem:[#allocation3 + $0x324] sm:$0xf]  ;;  %v4392_v46 = vpack.c.bf16 %v4360_v20, %v4360_v20 }
 0x45e   : > { %4325 = vst [vmem:[#allocation3 + $0x110] sm:$0xf] %v4293_v44  ;;  %v4456_v44 = vld [vmem:[#allocation2 + $0xa9] sm:$0xff]  ;;  %v8520_v12 = vor.u32 %v9295_v34, %v8517_v0  ;;  %v8581_v34 = vld [vmem:[#allocation3 + $0x3cc] sm:$0xf0] }
 0x45f   : > { %4228 = vst [vmem:[#allocation3 + $0xe8] sm:$0xf] %v4482_v2  ;;  %v9303_v2 = vld [vmem:[#allocation3 + $0x364] sm:$0xf] }
 0x460   : > { %6435 = vmatmul.bf16.gmra.mxu0 %v8484_v14  ;;  %v6309_v53 = vpop.f32.mrf.mxu3  ;;  %v6134_v45 = vpop.f32.mrf.mxu1  ;;  %4229 = vst [vmem:[#allocation3 + $0x10c] sm:$0xf] %v4483_v62  ;;  %v4361_v62 = vld [vmem:[#allocation2 + $0xb0] sm:$0xff]  ;;  %v8548_v3 = vor.u32 %v9303_v2, %v8545_v40  ;;  %v4488_v14 = vpack.c.bf16 %v4456_v44, %v4456_v44  ;;  %v9304_v2 = vld [vmem:[#allocation3 + $0x36c] sm:$0xf] }
 0x461   : > { %6262 = vmatmul.bf16.gmra.mxu2 %v8512_v18  ;;  %v10984_v5 = vadd.f32 %v6309_v53, %v6221_v21  ;;  %4420 = vst [vmem:[#allocation3 + $0xf0] sm:$0xf] %v4388_v54  ;;  %v4393_v21 = vpack.c.bf16 %v4361_v62, %v4361_v62  ;;  %v4266_v54 = vld [vmem:[#allocation2 + $0xaa] sm:$0xff]  ;;  %v9307_v18 = vld [vmem:[#allocation3 + $0x380] sm:$0xf0]  ;;  %v4365_v62 = vld [vmem:[#allocation2 + $0xe0] sm:$0xff] }
 0x462   : > { %4421 = vst [vmem:[#allocation3 + $0x114] sm:$0xf] %v4389_v1  ;;  %v8544_v53 = vor.u32 %v9307_v18, %v8543_v63  ;;  %v8553_v40 = vld [vmem:[#allocation3 + $0x38c] sm:$0xf0]  ;;  %v9385_v0 = vld [vmem:[%s11789_s2 + $0x170] sm:$0xff] }
 0x463   : > { %6173 = vmatmul.bf16.gmra.mxu1 %v8508_v52  ;;  %4516 = vst [vmem:[#allocation3 + $0xf4] sm:$0xf] %v4484_v9  ;;  %v8552_v52 = vor.u32 %v9308_v47, %v8551_v29  ;;  %6556 = vmatpush.bf16.msra.mxu2 %v9385_v0  ;;  %v9371_v18 = vld [vmem:[%s11789_s2 + $0x100] sm:$0xff]  ;;  %v9384_v47 = vld [vmem:[%s11789_s2 + $0x168] sm:$0xff] }
 0x464   : > { %v6223_v57 = vpop.f32.mrf.mxu2  ;;  %4517 = vst [vmem:[#allocation3 + $0x118] sm:$0xf] %v4485_v23  ;;  %6473 = vmatpush.bf16.msrb.mxu1 %v9371_v18  ;;  %v4273_v0 = vld [vmem:[#allocation2 + $0xfa] sm:$0xff]  ;;  %v9381_v18 = vld [vmem:[%s11789_s2 + $0x150] sm:$0xff] }
 0x465   : > { %v10986_v41 = vpop.f32.mrf.mxu0  ;;  %v6224_v6 = vadd.f32 %v6223_v57, %v6134_v45  ;;  %6351 = vmatmul.bf16.gmra.mxu3 %v8516_v49  ;;  %4326 = vst [vmem:[#allocation3 + $0x134] sm:$0xf] %v4294_v22  ;;  %v4298_v45 = vpack.c.bf16 %v4266_v54, %v4266_v54  ;;  %v4363_v22 = vld [vmem:[#allocation2 + $0xc8] sm:$0xff] }
 0x466   : > { %4327 = vst [vmem:[#allocation3 + $0x158] sm:$0xf] %v4295_v55  ;;  %v4458_v55 = vld [vmem:[#allocation2 + $0xc1] sm:$0xff] }
 0x467   : > { %4230 = vst [vmem:[#allocation3 + $0x130] sm:$0xf] %v4484_v9  ;;  %v4489_v9 = vpack.c.bf16 %v4457_v36, %v4457_v36  ;;  %v4490_v26 = vpack.c.bf16 %v4458_v55, %v4458_v55  ;;  %v8579_v36 = vld [vmem:[#allocation3 + $0x3a8] sm:$0xf]  ;;  %6557 = vmatpush.bf16.msra.mxu2 %v9384_v47  ;;  %v9391_v47 = vld [vmem:[%s11789_s2 + $0x1a0] sm:$0xff] }
 0x468   : > { %v6312_v39 = vpop.f32.mrf.mxu3  ;;  %v6136_v58 = vpop.f32.mrf.mxu1  ;;  %4231 = vst [vmem:[#allocation3 + $0x154] sm:$0xf] %v4485_v23  ;;  %v4362_v23 = vld [vmem:[#allocation2 + $0xc0] sm:$0xff] }
 0x469   : > { %v10988_v50 = vadd.f32 %v6312_v39, %v6224_v6  ;;  %4422 = vst [vmem:[#allocation3 + $0x138] sm:$0xf] %v4390_v24  ;;  %v4394_v57 = vpack.c.bf16 %v4362_v23, %v4362_v23  ;;  %v4395_v6 = vpack.c.bf16 %v4363_v22, %v4363_v22  ;;  %v4268_v24 = vld [vmem:[#allocation2 + $0xc2] sm:$0xff] }
 0x46a   : > { %4423 = vst [vmem:[#allocation3 + $0x15c] sm:$0xf] %v4391_v13  ;;  %v4269_v13 = vld [vmem:[#allocation2 + $0xca] sm:$0xff]  ;;  %v8587_v22 = vld [vmem:[#allocation3 + $0x3b0] sm:$0xf] }
 0x46b   : > { %4518 = vst [vmem:[#allocation3 + $0x13c] sm:$0xf] %v4486_v51 }
 0x46c   : > { %v6225_v37 = vpop.f32.mrf.mxu2  ;;  %4519 = vst [vmem:[#allocation3 + $0x160] sm:$0xf] %v4487_v35 }
 0x46d   : > { %v10990_v61 = vpop.f32.mrf.mxu0  ;;  %v6226_v7 = vadd.f32 %v6225_v37, %v6136_v58  ;;  %4328 = vst [vmem:[#allocation3 + $0x17c] sm:$0xf] %v4296_v32  ;;  %v4300_v58 = vpack.c.bf16 %v4268_v24, %v4268_v24  ;;  %v4301_v32 = vpack.c.bf16 %v4269_v13, %v4269_v13  ;;  %v9393_v13 = vld [vmem:[%s11789_s2 + $0x1b0] sm:$0xff] }
 0x46e   : > { %4329 = vst [vmem:[#allocation3 + $0x1a0] sm:$0xf] %v4297_v38  ;;  %v4364_v38 = vld [vmem:[#allocation2 + $0xd8] sm:$0xff] }
 0x46f   : > { %4232 = vst [vmem:[#allocation3 + $0x178] sm:$0xf] %v4486_v51  ;;  %v4396_v63 = vpack.c.bf16 %v4364_v38, %v4364_v38 }
 0x470   : > { %6440 = vmatmul.bf16.gmra.mxu0 %v8520_v12  ;;  %v6314_v1 = vpop.f32.mrf.mxu3  ;;  %v6139_v8 = vpop.f32.mrf.mxu1  ;;  %4233 = vst [vmem:[#allocation3 + $0x19c] sm:$0xf] %v4487_v35  ;;  %v9312_v35 = vld [vmem:[#allocation3 + $0x3ac] sm:$0xf] }
 0x471   : > { %6267 = vmatmul.bf16.gmra.mxu2 %v8548_v3  ;;  %v10992_v10 = vadd.f32 %v6314_v1, %v6226_v7  ;;  %4424 = vst [vmem:[#allocation3 + $0x180] sm:$0xf] %v4392_v46  ;;  %v4460_v7 = vld [vmem:[#allocation2 + $0xd9] sm:$0xff]  ;;  %v8556_v46 = vor.u32 %v9304_v2, %v8553_v40  ;;  %v8584_v54 = vor.u32 %v9312_v35, %v8581_v34  ;;  %v9317_v3 = vld [vmem:[#allocation3 + $0x3d0] sm:$0xf0] }
 0x472   : > { %4425 = vst [vmem:[#allocation3 + $0x1a4] sm:$0xf] %v4393_v21  ;;  %v9316_v12 = vld [vmem:[#allocation3 + $0x3c8] sm:$0xf0]  ;;  %v4461_v21 = vld [vmem:[#allocation2 + $0xe1] sm:$0xff]  ;;  %v8588_v55 = vor.u32 %v9317_v3, %v8587_v22  ;;  %v4399_v34 = vpack.c.bf16 %v4367_v27, %v4367_v27  ;;  %v4305_v3 = vpack.c.bf16 %v4273_v0, %v4273_v0 }
 0x473   : > { %6178 = vmatmul.bf16.gmra.mxu1 %v8544_v53  ;;  %4520 = vst [vmem:[#allocation3 + $0x184] sm:$0xf] %v4488_v14  ;;  %v4492_v53 = vpack.c.bf16 %v4460_v7, %v4460_v7  ;;  %v8580_v29 = vor.u32 %v9316_v12, %v8579_v36  ;;  %v4493_v23 = vpack.c.bf16 %v4461_v21, %v4461_v21  ;;  %v8589_v36 = vld [vmem:[#allocation3 + $0x3d4] sm:$0xf0]  ;;  %v9321_v12 = vld [vmem:[#allocation3 + $0x3f4] sm:$0xf] }
 0x474   : > { %v6228_v19 = vpop.f32.mrf.mxu2  ;;  %4521 = vst [vmem:[#allocation3 + $0x1a8] sm:$0xf] %v4489_v9  ;;  %v9326_v22 = vld [vmem:[#allocation3 + $0x418] sm:$0xf0]  ;;  %v9390_v27 = vld [vmem:[%s11789_s2 + $0x198] sm:$0xff] }
 0x475   : > { %v10994_v16 = vpop.f32.mrf.mxu0  ;;  %v6229_v49 = vadd.f32 %v6228_v19, %v6139_v8  ;;  %6356 = vmatmul.bf16.gmra.mxu3 %v8552_v52  ;;  %4330 = vst [vmem:[#allocation3 + $0x1c4] sm:$0xf] %v4298_v45  ;;  %v4271_v52 = vld [vmem:[#allocation2 + $0xe2] sm:$0xff]  ;;  %v4302_v19 = vpack.c.bf16 %v4270_v30, %v4270_v30  ;;  %v4369_v30 = vld [vmem:[#allocation2 + $0x110] sm:$0xff] }
 0x476   : > { %4331 = vst [vmem:[#allocation3 + $0x1e8] sm:$0xf] %v4299_v42  ;;  %v9402_v42 = vld [vmem:[%s11789_s2 + $0x1f8] sm:$0xff]  ;;  %v4303_v28 = vpack.c.bf16 %v4271_v52, %v4271_v52  ;;  %v4371_v0 = vld [vmem:[#allocation2 + $0x128] sm:$0xff] }
 0x477   : > { %4234 = vst [vmem:[#allocation3 + $0x1c0] sm:$0xf] %v4488_v14  ;;  %v4397_v14 = vpack.c.bf16 %v4365_v62, %v4365_v62  ;;  %6733 = vmatpush.bf16.msra.mxu0 %v9402_v42  ;;  %v4272_v62 = vld [vmem:[#allocation2 + $0xf2] sm:$0xff]  ;;  %v9325_v42 = vld [vmem:[#allocation3 + $0x410] sm:$0xf0] }
 0x478   : > { %v6317_v4 = vpop.f32.mrf.mxu3  ;;  %v6141_v51 = vpop.f32.mrf.mxu1  ;;  %4235 = vst [vmem:[#allocation3 + $0x1e4] sm:$0xf] %v4489_v9  ;;  %v9394_v9 = vld [vmem:[%s11789_s2 + $0x1b8] sm:$0xff] }
 0x479   : > { %v10999_v39 = vadd.f32 %v6317_v4, %v6229_v49  ;;  %4426 = vst [vmem:[#allocation3 + $0x1c8] sm:$0xf] %v4394_v57  ;;  %6644 = vmatpush.bf16.msra.mxu3 %v9394_v9  ;;  %v4366_v57 = vld [vmem:[#allocation2 + $0xf0] sm:$0xff]  ;;  %v9399_v9 = vld [vmem:[%s11789_s2 + $0x1e0] sm:$0xff] }
 0x47a   : > { %4427 = vst [vmem:[#allocation3 + $0x1ec] sm:$0xf] %v4395_v6  ;;  %v9401_v4 = vld [vmem:[%s11789_s2 + $0x1f0] sm:$0xff]  ;;  %v4398_v35 = vpack.c.bf16 %v4366_v57, %v4366_v57  ;;  %v9380_v57 = vld [vmem:[%s11789_s2 + $0x148] sm:$0xff] }
 0x47b   : > { %4522 = vst [vmem:[#allocation3 + $0x1cc] sm:$0xf] %v4490_v26  ;;  %6734 = vmatpush.bf16.msra.mxu0 %v9401_v4 }
 0x47c   : > { %v6230_v20 = vpop.f32.mrf.mxu2  ;;  %4523 = vst [vmem:[#allocation3 + $0x1f0] sm:$0xf] %v4491_v43 }
 0x47d   : > { %v11001_v37 = vpop.f32.mrf.mxu0  ;;  %v6231_v44 = vadd.f32 %v6230_v20, %v6141_v51  ;;  %4332 = vst [vmem:[#allocation3 + $0x20c] sm:$0xf] %v4300_v58  ;;  %v4462_v51 = vld [vmem:[#allocation2 + $0xf1] sm:$0xff]  ;;  %6645 = vmatpush.bf16.msra.mxu3 %v9393_v13  ;;  %v9392_v58 = vld [vmem:[%s11789_s2 + $0x1a8] sm:$0xff] }
 0x47e   : > { %4333 = vst [vmem:[#allocation3 + $0x230] sm:$0xf] %v4301_v32  ;;  %v4463_v32 = vld [vmem:[#allocation2 + $0xf9] sm:$0xff]  ;;  %v9400_v20 = vld [vmem:[%s11789_s2 + $0x1e8] sm:$0xff] }
 0x47f   : > { %4236 = vst [vmem:[#allocation3 + $0x208] sm:$0xf] %v4490_v26  ;;  %v9383_v26 = vld [vmem:[%s11789_s2 + $0x160] sm:$0xff]  ;;  %v4495_v7 = vpack.c.bf16 %v4463_v32, %v4463_v32  ;;  %6735 = vmatpush.bf16.msra.mxu0 %v9400_v20 }
 0x480   : > { %6445 = vmatmul.bf16.gmra.mxu0 %v8556_v46  ;;  %v6319_v1 = vpop.f32.mrf.mxu3  ;;  %v6144_v8 = vpop.f32.mrf.mxu1  ;;  %4237 = vst [vmem:[#allocation3 + $0x22c] sm:$0xf] %v4491_v43  ;;  %6558 = vmatpush.bf16.msra.mxu2 %v9383_v26  ;;  %v9382_v43 = vld [vmem:[%s11789_s2 + $0x158] sm:$0xff]  ;;  %v9313_v46 = vld [vmem:[#allocation3 + $0x3b4] sm:$0xf]  ;;  %v4274_v26 = vld [vmem:[#allocation2 + $0x10a] sm:$0xff] }
 0x481   : > { %6272 = vmatmul.bf16.gmra.mxu2 %v8584_v54  ;;  %v11015_v45 = vadd.f32 %v6319_v1, %v6231_v44  ;;  %4428 = vst [vmem:[#allocation3 + $0x210] sm:$0xf] %v4396_v63  ;;  %v4494_v44 = vpack.c.bf16 %v4462_v51, %v4462_v51  ;;  %6646 = vmatpush.bf16.msra.mxu3 %v9392_v58  ;;  %v8617_v54 = vld [vmem:[#allocation3 + $0x414] sm:$0xf0]  ;;  %v9398_v51 = vld [vmem:[%s11789_s2 + $0x1d8] sm:$0xff] }
 0x482   : > { %4429 = vst [vmem:[#allocation3 + $0x234] sm:$0xf] %v4397_v14  ;;  %v4304_v63 = vpack.c.bf16 %v4272_v62, %v4272_v62  ;;  %v4368_v14 = vld [vmem:[#allocation2 + $0x108] sm:$0xff]  ;;  %v8620_v52 = vor.u32 %v9321_v12, %v8617_v54  ;;  %v4275_v58 = vld [vmem:[#allocation2 + $0x112] sm:$0xff]  ;;  %v4370_v62 = vld [vmem:[#allocation2 + $0x120] sm:$0xff] }
 0x483   : > { %6183 = vmatmul.bf16.gmra.mxu1 %v8580_v29  ;;  %4524 = vst [vmem:[#allocation3 + $0x214] sm:$0xf] %v4492_v53  ;;  %v8615_v29 = vld [vmem:[#allocation3 + $0x3f0] sm:$0xf]  ;;  %6736 = vmatpush.bf16.msra.mxu0 %v9399_v9  ;;  %v4467_v54 = vld [vmem:[#allocation2 + $0x129] sm:$0xff] }
 0x484   : > { %v6233_v49 = vpop.f32.mrf.mxu2  ;;  %4525 = vst [vmem:[#allocation3 + $0x238] sm:$0xf] %v4493_v23  ;;  %6559 = vmatpush.bf16.msra.mxu2 %v9382_v43  ;;  %v8616_v4 = vor.u32 %v9325_v42, %v8615_v29  ;;  %v4466_v12 = vld [vmem:[#allocation2 + $0x121] sm:$0xff]  ;;  %v4277_v29 = vld [vmem:[#allocation2 + $0x12a] sm:$0xff]  ;;  %v4499_v42 = vpack.c.bf16 %v4467_v54, %v4467_v54 }
 0x485   : > { %v11020_v6 = vpop.f32.mrf.mxu0  ;;  %v6234_v24 = vadd.f32 %v6233_v49, %v6144_v8  ;;  %6361 = vmatmul.bf16.gmra.mxu3 %v8588_v55  ;;  %4334 = vst [vmem:[#allocation3 + $0x254] sm:$0xf] %v4302_v19  ;;  %v4400_v19 = vpack.c.bf16 %v4368_v14, %v4368_v14  ;;  %v4465_v55 = vld [vmem:[#allocation2 + $0x111] sm:$0xff]  ;;  %v9396_v9 = vld [vmem:[%s11789_s2 + $0x1c8] sm:$0xff] }
 0x486   : > { %4335 = vst [vmem:[#allocation3 + $0x278] sm:$0xf] %v4303_v28  ;;  %6647 = vmatpush.bf16.msra.mxu3 %v9391_v47  ;;  %v4497_v32 = vpack.c.bf16 %v4465_v55, %v4465_v55  ;;  %v4279_v54 = vld [vmem:[#allocation2 + $0x142] sm:$0xff] }
 0x487   : > { %4238 = vst [vmem:[#allocation3 + $0x250] sm:$0xf] %v4492_v53  ;;  %v8592_v53 = vor.u32 %v9313_v46, %v8589_v36  ;;  %6737 = vmatpush.bf16.msra.mxu0 %v9398_v51  ;;  %v9397_v36 = vld [vmem:[%s11789_s2 + $0x1d0] sm:$0xff] }
 0x488   : > { %v6322_v2 = vpop.f32.mrf.mxu3  ;;  %v6146_v38 = vpop.f32.mrf.mxu1  ;;  %4239 = vst [vmem:[#allocation3 + $0x274] sm:$0xf] %v4493_v23  ;;  %v4464_v23 = vld [vmem:[#allocation2 + $0x109] sm:$0xff]  ;;  %6560 = vmatpush.bf16.msra.mxu2 %v9381_v18 }
 0x489   : > { %v11040_v40 = vadd.f32 %v6322_v2, %v6234_v24  ;;  %4430 = vst [vmem:[#allocation3 + $0x258] sm:$0xf] %v4398_v35  ;;  %v4401_v24 = vpack.c.bf16 %v4369_v30, %v4369_v30  ;;  %v4496_v43 = vpack.c.bf16 %v4464_v23, %v4464_v23  ;;  %v8623_v35 = vld [vmem:[#allocation3 + $0x3f8] sm:$0xf]  ;;  %v9322_v23 = vld [vmem:[#allocation3 + $0x3fc] sm:$0xf] }
 0x48a   : > { %4431 = vst [vmem:[#allocation3 + $0x27c] sm:$0xf] %v4399_v34  ;;  %v8624_v2 = vor.u32 %v9326_v22, %v8623_v35  ;;  %6648 = vmatpush.bf16.msra.mxu3 %v9390_v27  ;;  %v4307_v34 = vpack.c.bf16 %v4275_v58, %v4275_v58  ;;  %v9388_v30 = vld [vmem:[%s11789_s2 + $0x188] sm:$0xff]  ;;  %v4468_v58 = vld [vmem:[#allocation2 + $0x139] sm:$0xff] }
 0x48b   : > { %4526 = vst [vmem:[#allocation3 + $0x25c] sm:$0xf] %v4494_v44  ;;  %v4276_v18 = vld [vmem:[#allocation2 + $0x122] sm:$0xff]  ;;  %6738 = vmatpush.bf16.msra.mxu0 %v9397_v36  ;;  %v9330_v22 = vld [vmem:[#allocation3 + $0x43c] sm:$0xf] }
 0x48c   : > { %v6235_v21 = vpop.f32.mrf.mxu2  ;;  %4527 = vst [vmem:[#allocation3 + $0x280] sm:$0xf] %v4495_v7  ;;  %6561 = vmatpush.bf16.msra.mxu2 %v9380_v57  ;;  %v4372_v57 = vld [vmem:[#allocation2 + $0x138] sm:$0xff] }
 0x48d   : > { %v11042_v1 = vpop.f32.mrf.mxu0  ;;  %v6236_v8 = vadd.f32 %v6235_v21, %v6146_v38  ;;  %4336 = vst [vmem:[#allocation3 + $0x29c] sm:$0xf] %v4304_v63  ;;  %v4306_v38 = vpack.c.bf16 %v4274_v26, %v4274_v26  ;;  %v4402_v21 = vpack.c.bf16 %v4370_v62, %v4370_v62  ;;  %v9395_v26 = vld [vmem:[%s11789_s2 + $0x1c0] sm:$0xff]  ;;  %v9335_v62 = vld [vmem:[#allocation3 + $0x460] sm:$0xf0] }
 0x48e   : > { %4337 = vst [vmem:[#allocation3 + $0x2c0] sm:$0xf] %v4305_v3 }
 0x48f   : > { %4240 = vst [vmem:[#allocation3 + $0x298] sm:$0xf] %v4494_v44  ;;  %v9379_v44 = vld [vmem:[%s11789_s2 + $0x140] sm:$0xff]  ;;  %6739 = vmatpush.bf16.msra.mxu0 %v9396_v9  ;;  %v4311_v9 = vpack.c.bf16 %v4279_v54, %v4279_v54 }
 0x490   : > { %6450 = vmatmul.bf16.gmra.mxu0 %v8592_v53  ;;  %v6324_v49 = vpop.f32.mrf.mxu3  ;;  %v6149_v28 = vpop.f32.mrf.mxu1  ;;  %4241 = vst [vmem:[#allocation3 + $0x2bc] sm:$0xf] %v4495_v7  ;;  %v9389_v7 = vld [vmem:[%s11789_s2 + $0x190] sm:$0xff]  ;;  %6562 = vmatpush.bf16.msra.mxu2 %v9379_v44  ;;  %v4498_v53 = vpack.c.bf16 %v4466_v12, %v4466_v12  ;;  %v4278_v44 = vld [vmem:[#allocation2 + $0x13a] sm:$0xff] }
 0x491   : > { %6277 = vmatmul.bf16.gmra.mxu2 %v8620_v52  ;;  %v11059_v13 = vadd.f32 %v6324_v49, %v6236_v8  ;;  %4432 = vst [vmem:[#allocation3 + $0x2a0] sm:$0xf] %v4400_v19  ;;  %6649 = vmatpush.bf16.msra.mxu3 %v9389_v7  ;;  %v4403_v8 = vpack.c.bf16 %v4371_v0, %v4371_v0  ;;  %v8625_v52 = vld [vmem:[#allocation3 + $0x41c] sm:$0xf0]  ;;  %v9410_v0 = vld [vmem:[%s11789_s2 + $0x238] sm:$0xff] }
 0x492   : > { %4433 = vst [vmem:[#allocation3 + $0x2c4] sm:$0xf] %v4401_v24  ;;  %v4308_v19 = vpack.c.bf16 %v4276_v18, %v4276_v18  ;;  %v8653_v49 = vld [vmem:[#allocation3 + $0x45c] sm:$0xf0]  ;;  %v9387_v24 = vld [vmem:[%s11789_s2 + $0x180] sm:$0xff]  ;;  %v8628_v51 = vor.u32 %v9322_v23, %v8625_v52  ;;  %6822 = vmatpush.bf16.msra.mxu1 %v9410_v0  ;;  %v4375_v52 = vld [vmem:[#allocation2 + $0x158] sm:$0xff] }
 0x493   : > { %6188 = vmatmul.bf16.gmra.mxu1 %v8616_v4  ;;  %4528 = vst [vmem:[#allocation3 + $0x2a4] sm:$0xf] %v4496_v43  ;;  %v4373_v4 = vld [vmem:[#allocation2 + $0x140] sm:$0xff]  ;;  %v8656_v35 = vor.u32 %v9330_v22, %v8653_v49  ;;  %6740 = vmatpush.bf16.msra.mxu0 %v9395_v26  ;;  %v4407_v49 = vpack.c.bf16 %v4375_v52, %v4375_v52  ;;  %v4377_v0 = vld [vmem:[#allocation2 + $0x170] sm:$0xff] }
 0x494   : > { %v6238_v20 = vpop.f32.mrf.mxu2  ;;  %4529 = vst [vmem:[#allocation3 + $0x2c8] sm:$0xf] %v4497_v32 }
 0x495   : > { %v6239_v46 = vadd.f32 %v6238_v20, %v6149_v28  ;;  %6366 = vmatmul.bf16.gmra.mxu3 %v8624_v2  ;;  %v11073_v63 = vpop.f32.mrf.mxu0  ;;  %4338 = vst [vmem:[#allocation3 + $0x2e4] sm:$0xf] %v4306_v38  ;;  %v4309_v28 = vpack.c.bf16 %v4277_v29, %v4277_v29  ;;  %v4404_v2 = vpack.c.bf16 %v4372_v57, %v4372_v57  ;;  %v4469_v38 = vld [vmem:[#allocation2 + $0x141] sm:$0xff]  ;;  %v4374_v29 = vld [vmem:[#allocation2 + $0x150] sm:$0xff] }
 0x496   : > { %4339 = vst [vmem:[#allocation3 + $0x308] sm:$0xf] %v4307_v34  ;;  %6650 = vmatpush.bf16.msra.mxu3 %v9388_v30  ;;  %v4406_v22 = vpack.c.bf16 %v4374_v29, %v4374_v29 }
 0x497   : > { %4242 = vst [vmem:[#allocation3 + $0x2e0] sm:$0xf] %v4496_v43  ;;  %v8651_v43 = vld [vmem:[#allocation3 + $0x438] sm:$0xf] }
 0x498   : > { %v6327_v3 = vpop.f32.mrf.mxu3  ;;  %v6151_v14 = vpop.f32.mrf.mxu1  ;;  %4243 = vst [vmem:[#allocation3 + $0x304] sm:$0xf] %v4497_v32  ;;  %v9334_v32 = vld [vmem:[#allocation3 + $0x458] sm:$0xf0] }
 0x499   : > { %v11078_v47 = vadd.f32 %v6327_v3, %v6239_v46  ;;  %4434 = vst [vmem:[#allocation3 + $0x2e8] sm:$0xf] %v4402_v21  ;;  %v4405_v46 = vpack.c.bf16 %v4373_v4, %v4373_v4  ;;  %v8652_v12 = vor.u32 %v9334_v32, %v8651_v43  ;;  %v4500_v21 = vpack.c.bf16 %v4468_v58, %v4468_v58  ;;  %v8659_v3 = vld [vmem:[#allocation3 + $0x440] sm:$0xf]  ;;  %v8661_v43 = vld [vmem:[#allocation3 + $0x464] sm:$0xf0] }
 0x49a   : > { %4435 = vst [vmem:[#allocation3 + $0x30c] sm:$0xf] %v4403_v8  ;;  %6651 = vmatpush.bf16.msra.mxu3 %v9387_v24  ;;  %v8660_v30 = vor.u32 %v9335_v62, %v8659_v3  ;;  %v4310_v8 = vpack.c.bf16 %v4278_v44, %v4278_v44  ;;  %v4281_v24 = vld [vmem:[#allocation2 + $0x15a] sm:$0xff]  ;;  %v9197_v32 = vld [vmem:[#allocation3 + $0x14] sm:$0xf]  ;;  %v4473_v3 = vld [vmem:[#allocation2 + $0x171] sm:$0xff] }
 0x49b   : > { %4530 = vst [vmem:[#allocation3 + $0x2ec] sm:$0xf] %v4498_v53  ;;  %v8127_v62 = vld [vmem:[#allocation3 + $0x10] sm:$0xf]  ;;  %v9201_v44 = vld [vmem:[#allocation3 + $0x30] sm:$0xf0] }
 0x49c   : > { %v6240_v55 = vpop.f32.mrf.mxu2  ;;  %4531 = vst [vmem:[#allocation3 + $0x310] sm:$0xf] %v4499_v42 }
 0x49d   : > { %v6241_v27 = vadd.f32 %v6240_v55, %v6151_v14  ;;  %4340 = vst [vmem:[#allocation3 + $0x32c] sm:$0xf] %v4308_v19  ;;  %v11092_v7 = vpop.f32.mrf.mxu0  ;;  %v4501_v14 = vpack.c.bf16 %v4469_v38, %v4469_v38  ;;  %v4471_v19 = vld [vmem:[#allocation2 + $0x159] sm:$0xff]  ;;  %v11102_v38 = vpack.c.bf16 %v4281_v24, %v4281_v24 }
 0x49e   : > { %4341 = vst [vmem:[#allocation3 + $0x350] sm:$0xf] %v4309_v28  ;;  %v4280_v28 = vld [vmem:[#allocation2 + $0x152] sm:$0xff]  ;;  %v4503_v26 = vpack.c.bf16 %v4471_v19, %v4471_v19  ;;  %v4505_v19 = vpack.c.bf16 %v4473_v3, %v4473_v3  ;;  %v4378_v24 = vld [vmem:[#allocation2 + $0x180] sm:$0xff] }
 0x49f   : > { %4244 = vst [vmem:[#allocation3 + $0x328] sm:$0xf] %v4498_v53  ;;  %v4470_v53 = vld [vmem:[#allocation2 + $0x151] sm:$0xff]  ;;  %v11100_v58 = vpack.c.bf16 %v4280_v28, %v4280_v28 }
 0x4a0   : > { %6455 = vmatmul.bf16.gmra.mxu0 %v8628_v51  ;;  %v6329_v20 = vpop.f32.mrf.mxu3  ;;  %v6154_v34 = vpop.f32.mrf.mxu1  ;;  %4245 = vst [vmem:[#allocation3 + $0x34c] sm:$0xf] %v4499_v42  ;;  %v9331_v51 = vld [vmem:[#allocation3 + $0x444] sm:$0xf] }
 0x4a1   : > { %6282 = vmatmul.bf16.gmra.mxu2 %v8656_v35  ;;  %v11094_v36 = vadd.f32 %v6329_v20, %v6241_v27  ;;  %4436 = vst [vmem:[#allocation3 + $0x330] sm:$0xf] %v4404_v2  ;;  %v4502_v27 = vpack.c.bf16 %v4470_v53, %v4470_v53  ;;  %v8129_v2 = vld [vmem:[#allocation3 + $0x34] sm:$0xf0]  ;;  %v4283_v53 = vld [vmem:[#allocation2 + $0x172] sm:$0xff] }
 0x4a2   : > { %4437 = vst [vmem:[#allocation3 + $0x354] sm:$0xf] %v4405_v46  ;;  %v4376_v20 = vld [vmem:[#allocation2 + $0x168] sm:$0xff]  ;;  %v8664_v46 = vor.u32 %v9331_v51, %v8661_v43  ;;  %v11110_v28 = vpack.c.bf16 %v4283_v53, %v4283_v53  ;;  %v4381_v53 = vld [vmem:[#allocation2 + $0x1a0] sm:$0xff] }
 0x4a3   : > { %6193 = vmatmul.bf16.gmra.mxu1 %v8652_v12  ;;  %4532 = vst [vmem:[#allocation3 + $0x334] sm:$0xf] %v4500_v21  ;;  %v4472_v12 = vld [vmem:[#allocation2 + $0x169] sm:$0xff]  ;;  %v4408_v54 = vpack.c.bf16 %v4376_v20, %v4376_v20 }
 0x4a4   : > { %v6243_v18 = vpop.f32.mrf.mxu2  ;;  %4533 = vst [vmem:[#allocation3 + $0x358] sm:$0xf] %v4501_v14  ;;  %v4504_v52 = vpack.c.bf16 %v4472_v12, %v4472_v12 }
 0x4a5   : > { %v6244_v23 = vadd.f32 %v6243_v18, %v6154_v34  ;;  %6371 = vmatmul.bf16.gmra.mxu3 %v8660_v30  ;;  %4342 = vst [vmem:[#allocation3 + $0x374] sm:$0xf] %v4310_v8  ;;  %v11098_v4 = vpop.f32.mrf.mxu0  ;;  %v8135_v8 = vld [vmem:[#allocation3 + $0x18] sm:$0xf]  ;;  %v4409_v18 = vpack.c.bf16 %v4377_v0, %v4377_v0 }
 0x4a6   : > { %4343 = vst [vmem:[#allocation3 + $0x398] sm:$0xf] %v4311_v9  ;;  %v4282_v9 = vld [vmem:[#allocation2 + $0x16a] sm:$0xff] }
 0x4a7   : > { %4246 = vst [vmem:[#allocation3 + $0x370] sm:$0xf] %v4500_v21  ;;  %v8132_v21 = vor.u32 %v9197_v32, %v8129_v2  ;;  %v4475_v32 = vld [vmem:[#allocation2 + $0x189] sm:$0xff] }
 0x4a8   : > { %v6332_v55 = vpop.f32.mrf.mxu3  ;;  %v6156_v42 = vpop.f32.mrf.mxu1  ;;  %4247 = vst [vmem:[#allocation3 + $0x394] sm:$0xf] %v4501_v14  ;;  %v4507_v12 = vpack.c.bf16 %v4475_v32, %v4475_v32  ;;  %v9409_v32 = vld [vmem:[%s11789_s2 + $0x230] sm:$0xff] }
 0x4a9   : > { %v11096_v57 = vadd.f32 %v6332_v55, %v6244_v23  ;;  %4438 = vst [vmem:[#allocation3 + $0x378] sm:$0xf] %v4406_v22  ;;  %v8128_v23 = vor.u32 %v9201_v44, %v8127_v62  ;;  %v9202_v22 = vld [vmem:[#allocation3 + $0x38] sm:$0xf0]  ;;  %6823 = vmatpush.bf16.msra.mxu1 %v9409_v32  ;;  %v4549_v32 = vld [vmem:[#allocation2 + $0x82] sm:$0xff] }
 0x4aa   : > { %4439 = vst [vmem:[#allocation3 + $0x39c] sm:$0xf] %v4407_v49  ;;  %v8136_v55 = vor.u32 %v9202_v22, %v8135_v8  ;;  %v9198_v44 = vld [vmem:[#allocation3 + $0x1c] sm:$0xf] }
 0x4ab   : > { %4534 = vst [vmem:[#allocation3 + $0x37c] sm:$0xf] %v4502_v27  ;;  %v9210_v22 = vld [vmem:[#allocation3 + $0x78] sm:$0xf0] }
 0x4ac   : > { %v6245_v35 = vpop.f32.mrf.mxu2  ;;  %4535 = vst [vmem:[#allocation3 + $0x3a0] sm:$0xf] %v4503_v26 }
 0x4ad   : > { %v6246_v34 = vadd.f32 %v6245_v35, %v6156_v42  ;;  %4344 = vst [vmem:[#allocation3 + $0x3bc] sm:$0xf] %v11100_v58  ;;  %v11108_v42 = vpack.c.bf16 %v4282_v9, %v4282_v9  ;;  %v11112_v51 = vpop.f32.mrf.mxu0  ;;  %v4474_v35 = vld [vmem:[#allocation2 + $0x181] sm:$0xff] }
 0x4ae   : > { %4345 = vst [vmem:[#allocation3 + $0x3e0] sm:$0xf] %v11102_v38  ;;  %v4506_v0 = vpack.c.bf16 %v4474_v35, %v4474_v35 }
 0x4af   : > { %4248 = vst [vmem:[#allocation3 + $0x3b8] sm:$0xf] %v4502_v27  ;;  %v4379_v27 = vld [vmem:[#allocation2 + $0x188] sm:$0xff] }
 0x4b0   : > { %6460 = vmatmul.bf16.gmra.mxu0 %v8664_v46  ;;  %v6334_v14 = vpop.f32.mrf.mxu3  ;;  %v6159_v30 = vpop.f32.mrf.mxu1  ;;  %4249 = vst [vmem:[#allocation3 + $0x3dc] sm:$0xf] %v4503_v26  ;;  %v4410_v26 = vpack.c.bf16 %v4378_v24, %v4378_v24  ;;  %v4284_v46 = vld [vmem:[#allocation2 + $0x182] sm:$0xff] }
 0x4b1   : > { %6563 = vmatmul.bf16.vlgmr.msra.gmra.mxu2 %v8132_v21  ;;  %v11106_v29 = vadd.f32 %v6334_v14, %v6246_v34  ;;  %4440 = vst [vmem:[#allocation3 + $0x3c0] sm:$0xf] %v4408_v54  ;;  %v4411_v34 = vpack.c.bf16 %v4379_v27, %v4379_v27  ;;  %v8137_v21 = vld [vmem:[#allocation3 + $0x3c] sm:$0xf0]  ;;  %v9206_v14 = vld [vmem:[#allocation3 + $0x5c] sm:$0xf]  ;;  %v11118_v8 = vpack.c.bf16 %v4284_v46, %v4284_v46 }
 0x4b2   : > { %4441 = vst [vmem:[#allocation3 + $0x3e4] sm:$0xf] %v4409_v18  ;;  %v8165_v54 = vld [vmem:[#allocation3 + $0x7c] sm:$0xf0]  ;;  %v4380_v18 = vld [vmem:[#allocation2 + $0x198] sm:$0xff] }
 0x4b3   : > { %11888 = vst [vmem:[#allocation48_spill] sm:$0xff] %v11106_v29  ;;  %6474 = vmatmul.bf16.vlgmr.msrb.gmra.mxu1 %v8128_v23  ;;  %v8163_v23 = vld [vmem:[#allocation3 + $0x58] sm:$0xf]  ;;  %v4412_v24 = vpack.c.bf16 %v4380_v18, %v4380_v18 }
 0x4b4   : > { %v6248_v49 = vpop.f32.mrf.mxu2  ;;  %4536 = vst [vmem:[#allocation3 + $0x3c4] sm:$0xf] %v4504_v52  ;;  %v8164_v46 = vor.u32 %v9210_v22, %v8163_v23  ;;  %v4544_v18 = vld [vmem:[#allocation2 + $0x4a] sm:$0xff] }
 0x4b5   : > { %v6249_v43 = vadd.f32 %v6248_v49, %v6159_v30  ;;  %6652 = vmatmul.bf16.vlgmr.msra.gmra.mxu3 %v8136_v55  ;;  %4537 = vst [vmem:[#allocation3 + $0x3e8] sm:$0xf] %v4505_v19  ;;  %v3754_v30 = vld [vmem:[#allocation2 + $0x18f] sm:$0x1]  ;;  %v4476_v55 = vld [vmem:[#allocation2 + $0x199] sm:$0xff]  ;;  %v8168_v49 = vor.u32 %v9206_v14, %v8165_v54  ;;  %v4576_v23 = vpack.c.bf16 %v4544_v18, %v4544_v18 }
 0x4b6   : > { %4346 = vst [vmem:[#allocation3 + $0x404] sm:$0xf] %v11108_v42  ;;  %v9211_v54 = vld [vmem:[#allocation3 + $0x80] sm:$0xf0]  ;;  %v4547_v22 = vld [vmem:[#allocation2 + $0x6a] sm:$0xff] }
 0x4b7   : > { %4347 = vst [vmem:[#allocation3 + $0x428] sm:$0xf] %v11110_v28  ;;  %v9215_v18 = vld [vmem:[#allocation3 + $0xa4] sm:$0xf] }
 0x4b8   : > { %v6337_v2 = vpop.f32.mrf.mxu3  ;;  %v6161_v20 = vpop.f32.mrf.mxu1  ;;  %4250 = vst [vmem:[#allocation3 + $0x400] sm:$0xf] %v4504_v52  ;;  %v8140_v52 = vor.u32 %v9198_v44, %v8137_v21  ;;  %v4508_v44 = vpack.c.bf16 %v4476_v55, %v4476_v55  ;;  %v4543_v21 = vld [vmem:[#allocation2 + $0x3a] sm:$0xff] }
 0x4b9   : > { %v11116_v62 = vadd.f32 %v6337_v2, %v6249_v43  ;;  %4251 = vst [vmem:[#allocation3 + $0x424] sm:$0xf] %v4505_v19  ;;  %v11120_v19 = vpop.f32.mrf.mxu0  ;;  %v4477_v43 = vld [vmem:[#allocation2 + $0x1a1] sm:$0xff]  ;;  %v4413_v2 = vpack.c.bf16 %v4381_v53, %v4381_v53  ;;  %v4575_v53 = vpack.c.bf16 %v4543_v21, %v4543_v21 }
 0x4ba   : > { %4442 = vst [vmem:[#allocation3 + $0x408] sm:$0xf] %v4410_v26  ;;  %v8171_v26 = vld [vmem:[#allocation3 + $0x60] sm:$0xf] }
 0x4bb   : > { %11889 = vst [vmem:[#allocation39_spill] sm:$0xff] %v11116_v62  ;;  %v8172_v14 = vor.u32 %v9211_v54, %v8171_v26  ;;  %v4545_v62 = vld [vmem:[#allocation2 + $0x52] sm:$0xff]  ;;  %v4551_v54 = vld [vmem:[#allocation2 + $0x9a] sm:$0xff] }
 0x4bc   : > { %v6250_v3 = vpop.f32.mrf.mxu2  ;;  %4443 = vst [vmem:[#allocation3 + $0x42c] sm:$0xf] %v4411_v34 }
 0x4bd   : > { %v6251_v9 = vadd.f32 %v6250_v3, %v6161_v20  ;;  %4538 = vst [vmem:[#allocation3 + $0x40c] sm:$0xf] %v4506_v0  ;;  %v4542_v20 = vld [vmem:[#allocation2 + $0x32] sm:$0xff]  ;;  %v4509_v3 = vpack.c.bf16 %v4477_v43, %v4477_v43  ;;  %v4548_v43 = vld [vmem:[#allocation2 + $0x7a] sm:$0xff] }
 0x4be   : > { %4539 = vst [vmem:[#allocation3 + $0x430] sm:$0xf] %v4507_v12  ;;  %v4580_v21 = vpack.c.bf16 %v4548_v43, %v4548_v43  ;;  %v4555_v43 = vld [vmem:[#allocation2 + $0xca] sm:$0xff] }
 0x4bf   : > { %11890 = vst [vmem:[#allocation50_spill] sm:$0xff] %v11120_v19 }
 0x4c0   : > { %3772 = vst [vmem:[#allocation2 + $0x191] sm:$0x1] %v3754_v30  ;;  %6741 = vmatmul.bf16.vlgmr.msra.gmra.mxu0 %v8140_v52  ;;  %v6339_v27 = vpop.f32.mrf.mxu3  ;;  %v6164_v35 = vpop.f32.mrf.mxu1  ;;  %v4574_v30 = vpack.c.bf16 %v4542_v20, %v4542_v20  ;;  %v4579_v20 = vpack.c.bf16 %v4547_v22, %v4547_v22  ;;  %v4554_v22 = vld [vmem:[#allocation2 + $0xc2] sm:$0xff] }
 0x4c1   : > { %4348 = vst [vmem:[#allocation3 + $0x44c] sm:$0xf] %v11118_v8  ;;  %6568 = vmatmul.bf16.gmra.mxu2 %v8168_v49  ;;  %v11126_v34 = vadd.f32 %v6339_v27, %v6251_v9  ;;  %v4546_v9 = vld [vmem:[#allocation2 + $0x62] sm:$0xff] }
 0x4c2   : > { %4252 = vst [vmem:[#allocation3 + $0x448] sm:$0xf] %v4506_v0  ;;  %v4578_v26 = vpack.c.bf16 %v4546_v9, %v4546_v9  ;;  %v4553_v9 = vld [vmem:[#allocation2 + $0xb2] sm:$0xff] }
 0x4c3   : > { %11891 = vst [vmem:[#allocation49_spill] sm:$0xff] %v11126_v34  ;;  %6479 = vmatmul.bf16.gmra.mxu1 %v8164_v46  ;;  %v4550_v46 = vld [vmem:[#allocation2 + $0x92] sm:$0xff] }
 0x4c4   : > { %4253 = vst [vmem:[#allocation3 + $0x46c] sm:$0xf] %v4507_v12  ;;  %v6253_v52 = vpop.f32.mrf.mxu2  ;;  %v4577_v12 = vpack.c.bf16 %v4545_v62, %v4545_v62  ;;  %v4581_v62 = vpack.c.bf16 %v4549_v32, %v4549_v32  ;;  %v9219_v34 = vld [vmem:[#allocation3 + $0xc0] sm:$0xf0]  ;;  %v4556_v32 = vld [vmem:[#allocation2 + $0xda] sm:$0xff] }
 0x4c5   : > { %4444 = vst [vmem:[#allocation3 + $0x450] sm:$0xf] %v4412_v24  ;;  %v6254_v49 = vadd.f32 %v6253_v52, %v6164_v35  ;;  %6657 = vmatmul.bf16.gmra.mxu3 %v8172_v14  ;;  %v4552_v14 = vld [vmem:[#allocation2 + $0xaa] sm:$0xff]  ;;  %v8201_v52 = vld [vmem:[#allocation3 + $0xc4] sm:$0xf0] }
 0x4c6   : > { %4445 = vst [vmem:[#allocation3 + $0x474] sm:$0xf] %v4413_v2  ;;  %v11130_v2 = vpop.f32.mrf.mxu0 }
 0x4c7   : > { %4540 = vst [vmem:[#allocation3 + $0x454] sm:$0xf] %v4508_v44  ;;  %v4285_v0 = vld [vmem:[#allocation2 + $0x18a] sm:$0xff]  ;;  %v9207_v44 = vld [vmem:[#allocation3 + $0x64] sm:$0xf] }
 0x4c8   : > { %4541 = vst [vmem:[#allocation3 + $0x478] sm:$0xf] %v4509_v3  ;;  %v11128_v55 = vpack.c.bf16 %v4285_v0, %v4285_v0  ;;  %v6342_v24 = vpop.f32.mrf.mxu3  ;;  %v6166_v27 = vpop.f32.mrf.mxu1  ;;  %v8173_v3 = vld [vmem:[#allocation3 + $0x84] sm:$0xf0]  ;;  %v8199_v0 = vld [vmem:[#allocation3 + $0xa0] sm:$0xf] }
 0x4c9   : > { %4606 = vst [vmem:[#allocation3 + $0x20] sm:$0xf] %v4574_v30  ;;  %v11132_v35 = vadd.f32 %v6342_v24, %v6254_v49  ;;  %v4583_v24 = vpack.c.bf16 %v4551_v54, %v4551_v54  ;;  %v8200_v54 = vor.u32 %v9219_v34, %v8199_v0 }
 0x4ca   : > { %4607 = vst [vmem:[#allocation3 + $0x44] sm:$0xf] %v4575_v53  ;;  %v4582_v53 = vpack.c.bf16 %v4550_v46, %v4550_v46  ;;  %v4586_v46 = vpack.c.bf16 %v4554_v22, %v4554_v22 }
 0x4cb   : > { %11892 = vst [vmem:[#allocation40_spill] sm:$0xff] %v11130_v2  ;;  %v8204_v2 = vor.u32 %v9215_v18, %v8201_v52  ;;  %v4560_v52 = vld [vmem:[#allocation2 + $0x10a] sm:$0xff] }
 0x4cc   : > { %11893 = vst [vmem:[#allocation41_spill] sm:$0xff] %v11132_v35  ;;  %v6255_v30 = vpop.f32.mrf.mxu2  ;;  %v8176_v35 = vor.u32 %v9207_v44, %v8173_v3  ;;  %v4587_v44 = vpack.c.bf16 %v4555_v43, %v4555_v43  ;;  %v9220_v3 = vld [vmem:[#allocation3 + $0xc8] sm:$0xf0]  ;;  %v4592_v0 = vpack.c.bf16 %v4560_v52, %v4560_v52 }
 0x4cd   : > { %4349 = vst [vmem:[#allocation3 + $0x470] sm:$0xf] %v11128_v55  ;;  %v6256_v49 = vadd.f32 %v6255_v30, %v6166_v27  ;;  %v4557_v27 = vld [vmem:[#allocation2 + $0xe2] sm:$0xff] }
 0x4ce   : > { %4608 = vst [vmem:[#allocation3 + $0x68] sm:$0xf] %v4576_v23  ;;  %v4584_v23 = vpack.c.bf16 %v4552_v14, %v4552_v14  ;;  %v4588_v14 = vpack.c.bf16 %v4556_v32, %v4556_v32  ;;  %v11137_v30 = vpop.f32.mrf.mxu0  ;;  %v4589_v18 = vpack.c.bf16 %v4557_v27, %v4557_v27 }
 0x4cf   : > { %4609 = vst [vmem:[#allocation3 + $0x8c] sm:$0xf] %v4577_v12  ;;  %v4585_v12 = vpack.c.bf16 %v4553_v9, %v4553_v9 }
 0x4d0   : > { %4610 = vst [vmem:[#allocation3 + $0xb0] sm:$0xf] %v4578_v26  ;;  %6746 = vmatmul.bf16.gmra.mxu0 %v8176_v35  ;;  %v6344_v19 = vpop.f32.mrf.mxu3  ;;  %v6169_v29 = vpop.f32.mrf.mxu1  ;;  %v8207_v26 = vld [vmem:[#allocation3 + $0xa8] sm:$0xf] }
 0x4d1   : > { %4611 = vst [vmem:[#allocation3 + $0xd4] sm:$0xf] %v4579_v20  ;;  %6573 = vmatmul.bf16.gmra.mxu2 %v8204_v2  ;;  %v11135_v20 = vadd.f32 %v6344_v19, %v6256_v49  ;;  %v8208_v35 = vor.u32 %v9220_v3, %v8207_v26  ;;  %v4561_v19 = vld [vmem:[#allocation2 + $0x112] sm:$0xff]  ;;  %v4562_v49 = vld [vmem:[#allocation2 + $0x122] sm:$0xff] }
 0x4d2   : > { %4612 = vst [vmem:[#allocation3 + $0xf8] sm:$0xf] %v4580_v21  ;;  %v4558_v21 = vld [vmem:[#allocation2 + $0xf2] sm:$0xff]  ;;  %v4593_v22 = vpack.c.bf16 %v4561_v19, %v4561_v19  ;;  %v4565_v26 = vld [vmem:[#allocation2 + $0x142] sm:$0xff] }
 0x4d3   : > { %4613 = vst [vmem:[#allocation3 + $0x11c] sm:$0xf] %v4581_v62  ;;  %v4559_v62 = vld [vmem:[#allocation2 + $0xfa] sm:$0xff]  ;;  %6484 = vmatmul.bf16.gmra.mxu1 %v8200_v54  ;;  %v4590_v2 = vpack.c.bf16 %v4558_v21, %v4558_v21  ;;  %v4597_v21 = vpack.c.bf16 %v4565_v26, %v4565_v26 }
 0x4d4   : > { %4614 = vst [vmem:[#allocation3 + $0x140] sm:$0xf] %v4582_v53  ;;  %v6258_v53 = vpop.f32.mrf.mxu2  ;;  %v4591_v34 = vpack.c.bf16 %v4559_v62, %v4559_v62  ;;  %v9216_v54 = vld [vmem:[#allocation3 + $0xac] sm:$0xf] }
 0x4d5   : > { %4615 = vst [vmem:[#allocation3 + $0x164] sm:$0xf] %v4583_v24  ;;  %v6259_v9 = vadd.f32 %v6258_v53, %v6169_v29  ;;  %6662 = vmatmul.bf16.gmra.mxu3 %v8208_v35  ;;  %v4563_v24 = vld [vmem:[#allocation2 + $0x12a] sm:$0xff]  ;;  %v8235_v53 = vld [vmem:[#allocation3 + $0xe8] sm:$0xf] }
 0x4d6   : > { %4616 = vst [vmem:[#allocation3 + $0x188] sm:$0xf] %v4584_v23  ;;  %v4564_v23 = vld [vmem:[#allocation2 + $0x13a] sm:$0xff]  ;;  %v11141_v62 = vpop.f32.mrf.mxu0 }
 0x4d7   : > { %4617 = vst [vmem:[#allocation3 + $0x1ac] sm:$0xf] %v4585_v12  ;;  %v4594_v12 = vpack.c.bf16 %v4562_v49, %v4562_v49  ;;  %v4596_v29 = vpack.c.bf16 %v4564_v23, %v4564_v23 }
 0x4d8   : > { %4618 = vst [vmem:[#allocation3 + $0x1d0] sm:$0xf] %v4586_v46  ;;  %v6347_v43 = vpop.f32.mrf.mxu3  ;;  %v6171_v32 = vpop.f32.mrf.mxu1  ;;  %v4595_v46 = vpack.c.bf16 %v4563_v24, %v4563_v24  ;;  %v9408_v24 = vld [vmem:[%s11789_s2 + $0x228] sm:$0xff] }
 0x4d9   : > { %4619 = vst [vmem:[#allocation3 + $0x1f4] sm:$0xf] %v4587_v44  ;;  %v11139_v27 = vadd.f32 %v6347_v43, %v6259_v9  ;;  %v8209_v44 = vld [vmem:[#allocation3 + $0xcc] sm:$0xf0]  ;;  %6824 = vmatpush.bf16.msra.mxu1 %v9408_v24  ;;  %v9238_v24 = vld [vmem:[#allocation3 + $0x158] sm:$0xf0] }
 0x4da   : > { %4620 = vst [vmem:[#allocation3 + $0x218] sm:$0xf] %v4588_v14  ;;  %v8237_v14 = vld [vmem:[#allocation3 + $0x10c] sm:$0xf0]  ;;  %v8212_v52 = vor.u32 %v9216_v54, %v8209_v44 }
 0x4db   : > { %4621 = vst [vmem:[#allocation3 + $0x23c] sm:$0xf] %v4589_v18  ;;  %v9224_v18 = vld [vmem:[#allocation3 + $0xec] sm:$0xf] }
 0x4dc   : > { %4622 = vst [vmem:[#allocation3 + $0x260] sm:$0xf] %v4590_v2  ;;  %v6260_v3 = vpop.f32.mrf.mxu2  ;;  %v9228_v2 = vld [vmem:[#allocation3 + $0x108] sm:$0xf0]  ;;  %v8240_v19 = vor.u32 %v9224_v18, %v8237_v14 }
 0x4dd   : > { %4623 = vst [vmem:[#allocation3 + $0x284] sm:$0xf] %v4591_v34  ;;  %v6261_v35 = vadd.f32 %v6260_v3, %v6171_v32  ;;  %v4572_v9 = vld [vmem:[#allocation2 + $0x19a] sm:$0xff]  ;;  %v8236_v43 = vor.u32 %v9228_v2, %v8235_v53  ;;  %v9229_v32 = vld [vmem:[#allocation3 + $0x110] sm:$0xf0] }
 0x4de   : > { %4624 = vst [vmem:[#allocation3 + $0x2a8] sm:$0xf] %v4592_v0  ;;  %v8243_v0 = vld [vmem:[#allocation3 + $0xf0] sm:$0xf]  ;;  %v11154_v54 = vpop.f32.mrf.mxu0  ;;  %v8245_v3 = vld [vmem:[#allocation3 + $0x114] sm:$0xf0] }
 0x4df   : > { %4625 = vst [vmem:[#allocation3 + $0x2cc] sm:$0xf] %v4593_v22  ;;  %v4573_v22 = vld [vmem:[#allocation2 + $0x1a2] sm:$0xff]  ;;  %v8244_v26 = vor.u32 %v9229_v32, %v8243_v0 }
 0x4e0   : > { %4626 = vst [vmem:[#allocation3 + $0x2f0] sm:$0xf] %v4594_v12  ;;  %6751 = vmatmul.bf16.gmra.mxu0 %v8212_v52  ;;  %v6349_v34 = vpop.f32.mrf.mxu3  ;;  %v6174_v49 = vpop.f32.mrf.mxu1  ;;  %v4604_v12 = vpack.c.bf16 %v4572_v9, %v4572_v9  ;;  %v9233_v52 = vld [vmem:[#allocation3 + $0x134] sm:$0xf]  ;;  %v8279_v9 = vld [vmem:[#allocation3 + $0x138] sm:$0xf] }
 0x4e1   : > { %4627 = vst [vmem:[#allocation3 + $0x314] sm:$0xf] %v4595_v46  ;;  %6578 = vmatmul.bf16.gmra.mxu2 %v8240_v19  ;;  %v11147_v23 = vadd.f32 %v6349_v34, %v6261_v35  ;;  %v4605_v46 = vpack.c.bf16 %v4573_v22, %v4573_v22  ;;  %v9237_v53 = vld [vmem:[#allocation3 + $0x150] sm:$0xf0]  ;;  %v8280_v22 = vor.u32 %v9238_v24, %v8279_v9 }
 0x4e2   : > { %4628 = vst [vmem:[#allocation3 + $0x338] sm:$0xf] %v4596_v29 }
 0x4e3   : > { %4629 = vst [vmem:[#allocation3 + $0x35c] sm:$0xf] %v4597_v21  ;;  %6489 = vmatmul.bf16.gmra.mxu1 %v8236_v43  ;;  %v9225_v21 = vld [vmem:[#allocation3 + $0xf4] sm:$0xf] }
 0x4e4   : > { %4630 = vst [vmem:[#allocation3 + $0x380] sm:$0xf] %v11100_v58  ;;  %v6263_v29 = vpop.f32.mrf.mxu2  ;;  %v8248_v18 = vor.u32 %v9225_v21, %v8245_v3  ;;  %v8309_v21 = vld [vmem:[#allocation3 + $0x19c] sm:$0xf0] }
 0x4e5   : > { %4631 = vst [vmem:[#allocation3 + $0x3a4] sm:$0xf] %v11102_v38  ;;  %v6264_v58 = vadd.f32 %v6263_v29, %v6174_v49  ;;  %6667 = vmatmul.bf16.gmra.mxu3 %v8244_v26 }
 0x4e6   : > { %4632 = vst [vmem:[#allocation3 + $0x3c8] sm:$0xf] %v11108_v42  ;;  %v11158_v34 = vpop.f32.mrf.mxu0 }
 0x4e7   : > { %4633 = vst [vmem:[#allocation3 + $0x3ec] sm:$0xf] %v11110_v28  ;;  %v8273_v28 = vld [vmem:[#allocation3 + $0x154] sm:$0xf0] }
 0x4e8   : > { %4634 = vst [vmem:[#allocation3 + $0x410] sm:$0xf] %v11118_v8  ;;  %v6352_v38 = vpop.f32.mrf.mxu3  ;;  %v6176_v44 = vpop.f32.mrf.mxu1  ;;  %v8271_v8 = vld [vmem:[#allocation3 + $0x130] sm:$0xf]  ;;  %v8276_v2 = vor.u32 %v9233_v52, %v8273_v28  ;;  %v9242_v28 = vld [vmem:[#allocation3 + $0x17c] sm:$0xf] }
 0x4e9   : > { %4635 = vst [vmem:[#allocation3 + $0x434] sm:$0xf] %v11128_v55  ;;  %v11156_v42 = vadd.f32 %v6352_v38, %v6264_v58  ;;  %v8272_v0 = vor.u32 %v9237_v53, %v8271_v8  ;;  %v9234_v58 = vld [vmem:[#allocation3 + $0x13c] sm:$0xf]  ;;  %v8281_v38 = vld [vmem:[#allocation3 + $0x15c] sm:$0xf0]  ;;  %v8312_v52 = vor.u32 %v9242_v28, %v8309_v21 }
 0x4ea   : > { %4636 = vst [vmem:[#allocation3 + $0x458] sm:$0xf] %v4604_v12 }
 0x4eb   : > { %4637 = vst [vmem:[#allocation3 + $0x47c] sm:$0xf] %v4605_v46 }
 0x4ec   : > { %v6265_v14 = vpop.f32.mrf.mxu2 }
 0x4ed   : > { %v6266_v35 = vadd.f32 %v6265_v14, %v6176_v44  ;;  %v8284_v14 = vor.u32 %v9234_v58, %v8281_v38  ;;  %v9243_v38 = vld [vmem:[#allocation3 + $0x184] sm:$0xf] }
 0x4ee   : > { %v11164_v29 = vpop.f32.mrf.mxu0 }
 0x4f0   : > { %6756 = vmatmul.bf16.gmra.mxu0 %v8248_v18  ;;  %v6354_v55 = vpop.f32.mrf.mxu3  ;;  %v6179_v19 = vpop.f32.mrf.mxu1  ;;  %v9246_v18 = vld [vmem:[#allocation3 + $0x198] sm:$0xf0] }
 0x4f1   : > { %6583 = vmatmul.bf16.gmra.mxu2 %v8276_v2  ;;  %v11160_v49 = vadd.f32 %v6354_v55, %v6266_v35  ;;  %v8307_v35 = vld [vmem:[#allocation3 + $0x178] sm:$0xf]  ;;  %v8315_v2 = vld [vmem:[#allocation3 + $0x180] sm:$0xf]  ;;  %v9407_v55 = vld [vmem:[%s11789_s2 + $0x220] sm:$0xff] }
 0x4f2   : > { %v8308_v9 = vor.u32 %v9246_v18, %v8307_v35  ;;  %6825 = vmatpush.bf16.msra.mxu1 %v9407_v55  ;;  %v9251_v35 = vld [vmem:[#allocation3 + $0x1c4] sm:$0xf]  ;;  %v8343_v18 = vld [vmem:[#allocation3 + $0x1c0] sm:$0xf] }
 0x4f3   : > { %6494 = vmatmul.bf16.gmra.mxu1 %v8272_v0  ;;  %v9247_v0 = vld [vmem:[#allocation3 + $0x1a0] sm:$0xf0] }
 0x4f4   : > { %v6268_v43 = vpop.f32.mrf.mxu2  ;;  %v8316_v24 = vor.u32 %v9247_v0, %v8315_v2 }
 0x4f5   : > { %v6269_v32 = vadd.f32 %v6268_v43, %v6179_v19  ;;  %6672 = vmatmul.bf16.gmra.mxu3 %v8280_v22 }
 0x4f6   : > { %v11171_v43 = vpop.f32.mrf.mxu0 }
 0x4f8   : > { %v6357_v12 = vpop.f32.mrf.mxu3  ;;  %v6181_v26 = vpop.f32.mrf.mxu1 }
 0x4f9   : > { %v11162_v46 = vadd.f32 %v6357_v12, %v6269_v32 }
 0x4fc   : > { %v6270_v44 = vpop.f32.mrf.mxu2 }
 0x4fd   : > { %v6271_v3 = vadd.f32 %v6270_v44, %v6181_v26  ;;  %v8317_v44 = vld [vmem:[#allocation3 + $0x1a4] sm:$0xf0] }
 0x4fe   : > { %v8320_v28 = vor.u32 %v9243_v38, %v8317_v44 }
 0x500   : > { %6761 = vmatmul.bf16.gmra.mxu0 %v8284_v14  ;;  %v6359_v8 = vpop.f32.mrf.mxu3  ;;  %v6184_v53 = vpop.f32.mrf.mxu1  ;;  %v8345_v14 = vld [vmem:[#allocation3 + $0x1e4] sm:$0xf0] }
 0x501   : > { %6588 = vmatmul.bf16.gmra.mxu2 %v8312_v52  ;;  %v11169_v19 = vadd.f32 %v6359_v8, %v6271_v3  ;;  %v9255_v52 = vld [vmem:[#allocation3 + $0x1e0] sm:$0xf0]  ;;  %v11175_v8 = vpop.f32.mrf.mxu0  ;;  %v8348_v2 = vor.u32 %v9251_v35, %v8345_v14  ;;  %v9252_v14 = vld [vmem:[#allocation3 + $0x1cc] sm:$0xf] }
 0x503   : > { %11894 = vst [vmem:[#allocation42_spill] sm:$0xff] %v11169_v19  ;;  %6499 = vmatmul.bf16.gmra.mxu1 %v8308_v9  ;;  %v8351_v9 = vld [vmem:[#allocation3 + $0x1c8] sm:$0xf]  ;;  %v8381_v19 = vld [vmem:[#allocation3 + $0x22c] sm:$0xf0] }
 0x504   : > { %v6273_v22 = vpop.f32.mrf.mxu2 }
 0x505   : > { %v6274_v32 = vadd.f32 %v6273_v22, %v6184_v53  ;;  %6677 = vmatmul.bf16.gmra.mxu3 %v8316_v24  ;;  %v8344_v24 = vor.u32 %v9255_v52, %v8343_v18  ;;  %v9256_v22 = vld [vmem:[#allocation3 + $0x1e8] sm:$0xf0]  ;;  %v8379_v18 = vld [vmem:[#allocation3 + $0x208] sm:$0xf] }
 0x506   : > { %v9264_v52 = vld [vmem:[#allocation3 + $0x228] sm:$0xf0] }
 0x508   : > { %v6362_v12 = vpop.f32.mrf.mxu3  ;;  %v6186_v26 = vpop.f32.mrf.mxu1 }
 0x509   : > { %v11173_v58 = vadd.f32 %v6362_v12, %v6274_v32  ;;  %v8352_v32 = vor.u32 %v9256_v22, %v8351_v9  ;;  %v8387_v22 = vld [vmem:[#allocation3 + $0x210] sm:$0xf] }
 0x50b   : > { %11895 = vst [vmem:[#allocation43_spill] sm:$0xff] %v11173_v58 }
 0x50c   : > { %v6275_v21 = vpop.f32.mrf.mxu2 }
 0x50d   : > { %v6276_v3 = vadd.f32 %v6275_v21, %v6186_v26  ;;  %v11179_v21 = vpop.f32.mrf.mxu0 }
 0x50e   : > { %11897 = vst [vmem:[#allocation45_spill] sm:$0xff] %v11179_v21 }
 0x510   : > { %6766 = vmatmul.bf16.gmra.mxu0 %v8320_v28  ;;  %v6364_v55 = vpop.f32.mrf.mxu3  ;;  %v6189_v53 = vpop.f32.mrf.mxu1  ;;  %v8353_v28 = vld [vmem:[#allocation3 + $0x1ec] sm:$0xf0] }
 0x511   : > { %6593 = vmatmul.bf16.gmra.mxu2 %v8348_v2  ;;  %v11177_v0 = vadd.f32 %v6364_v55, %v6276_v3  ;;  %v8356_v3 = vor.u32 %v9252_v14, %v8353_v28  ;;  %v9260_v55 = vld [vmem:[#allocation3 + $0x20c] sm:$0xf] }
 0x513   : > { %11896 = vst [vmem:[#allocation44_spill] sm:$0xff] %v11177_v0  ;;  %6504 = vmatmul.bf16.gmra.mxu1 %v8344_v24  ;;  %v8384_v24 = vor.u32 %v9260_v55, %v8381_v19  ;;  %v8389_v0 = vld [vmem:[#allocation3 + $0x234] sm:$0xf0] }
 0x514   : > { %v6278_v12 = vpop.f32.mrf.mxu2 }
 0x515   : > { %v6279_v26 = vadd.f32 %v6278_v12, %v6189_v53  ;;  %6682 = vmatmul.bf16.gmra.mxu3 %v8352_v32  ;;  %v9406_v32 = vld [vmem:[%s11789_s2 + $0x218] sm:$0xff] }
 0x516   : > { %6826 = vmatpush.bf16.msra.mxu1 %v9406_v32  ;;  %v8415_v32 = vld [vmem:[#allocation3 + $0x250] sm:$0xf] }
 0x518   : > { %v6367_v38 = vpop.f32.mrf.mxu3  ;;  %v6191_v44 = vpop.f32.mrf.mxu1 }
 0x519   : > { %v11181_v58 = vadd.f32 %v6367_v38, %v6279_v26  ;;  %v8380_v26 = vor.u32 %v9264_v52, %v8379_v18  ;;  %v9265_v38 = vld [vmem:[#allocation3 + $0x230] sm:$0xf0] }
 0x51a   : > { %v8388_v14 = vor.u32 %v9265_v38, %v8387_v22 }
 0x51b   : > { %11898 = vst [vmem:[#allocation46_spill] sm:$0xff] %v11181_v58  ;;  %v9261_v58 = vld [vmem:[#allocation3 + $0x214] sm:$0xf] }
 0x51c   : > { %v6280_v35 = vpop.f32.mrf.mxu2  ;;  %v8392_v52 = vor.u32 %v9261_v58, %v8389_v0 }
 0x51d   : > { %v6281_v2 = vadd.f32 %v6280_v35, %v6191_v44  ;;  %v11188_v44 = vpop.f32.mrf.mxu0 }
 0x520   : > { %6771 = vmatmul.bf16.gmra.mxu0 %v8356_v3  ;;  %v6369_v9 = vpop.f32.mrf.mxu3  ;;  %v6194_v53 = vpop.f32.mrf.mxu1 }
 0x521   : > { %6598 = vmatmul.bf16.gmra.mxu2 %v8384_v24  ;;  %v11186_v12 = vadd.f32 %v6369_v9, %v6281_v2  ;;  %v8417_v24 = vld [vmem:[#allocation3 + $0x274] sm:$0xf0]  ;;  %v9269_v9 = vld [vmem:[#allocation3 + $0x254] sm:$0xf] }
 0x523   : > { %11899 = vst [vmem:[#allocation47_spill] sm:$0xff] %v11186_v12  ;;  %6509 = vmatmul.bf16.gmra.mxu1 %v8380_v26  ;;  %v9273_v12 = vld [vmem:[#allocation3 + $0x270] sm:$0xf0]  ;;  %v8420_v26 = vor.u32 %v9269_v9, %v8417_v24 }
 0x524   : > { %v6283_v28 = vpop.f32.mrf.mxu2 }
 0x525   : > { %v6284_v19 = vadd.f32 %v6283_v28, %v6194_v53  ;;  %6687 = vmatmul.bf16.gmra.mxu3 %v8388_v14  ;;  %v11192_v2 = vpop.f32.mrf.mxu0  ;;  %v6387_v53 = vadd.f32 %v10960_v31, %v10958_v33  ;;  %v8423_v14 = vld [vmem:[#allocation3 + $0x258] sm:$0xf]  ;;  %v6389_v33 = vadd.f32 %v10967_v56, %v10965_v15 }
 0x528   : > { %v6372_v35 = vpop.f32.mrf.mxu3  ;;  %v6196_v3 = vpop.f32.mrf.mxu1 }
 0x529   : > { %v11190_v55 = vadd.f32 %v6372_v35, %v6284_v19  ;;  %v8416_v35 = vor.u32 %v9273_v12, %v8415_v32  ;;  %v8453_v12 = vld [vmem:[#allocation3 + $0x2bc] sm:$0xf0] }
 0x52b   : > { %11900 = vst [vmem:[#allocation51_spill] sm:$0xff] %v11190_v55  ;;  %v9274_v55 = vld [vmem:[#allocation3 + $0x278] sm:$0xf0] }
 0x52c   : > { %v6285_v21 = vpop.f32.mrf.mxu2 }
 0x52d   : > { %v6286_v18 = vadd.f32 %v6285_v21, %v6196_v3  ;;  %v8424_v21 = vor.u32 %v9274_v55, %v8423_v14  ;;  %v11198_v3 = vpop.f32.mrf.mxu0  ;;  %v9278_v55 = vld [vmem:[#allocation3 + $0x29c] sm:$0xf] }
 0x52e   : > { %v9282_v14 = vld [vmem:[#allocation3 + $0x2b8] sm:$0xf0] }
 0x530   : > { %6776 = vmatmul.bf16.gmra.mxu0 %v8392_v52  ;;  %v6374_v22 = vpop.f32.mrf.mxu3  ;;  %v6475_v38 = vpop.f32.mrf.mxu1 }
 0x531   : > { %6603 = vmatmul.bf16.gmra.mxu2 %v8420_v26  ;;  %v11196_v28 = vadd.f32 %v6374_v22, %v6286_v18  ;;  %v6476_v19 = vadd.f32 %v6475_v38, %v6387_v53  ;;  %v9270_v18 = vld [vmem:[#allocation3 + $0x25c] sm:$0xf]  ;;  %v8425_v26 = vld [vmem:[#allocation3 + $0x27c] sm:$0xf0]  ;;  %v8451_v38 = vld [vmem:[#allocation3 + $0x298] sm:$0xf] }
 0x532   : > { %v8428_v22 = vor.u32 %v9270_v18, %v8425_v26  ;;  %v6394_v26 = vadd.f32 %v10975_v11, %v10973_v25  ;;  %v6397_v25 = vadd.f32 %v10979_v59, %v10977_v60  ;;  %v6399_v60 = vadd.f32 %v10986_v41, %v10984_v5 }
 0x533   : > { %6514 = vmatmul.bf16.gmra.mxu1 %v8416_v35  ;;  %v6392_v35 = vadd.f32 %v10971_v48, %v10969_v17  ;;  %v6402_v5 = vadd.f32 %v10990_v61, %v10988_v50  ;;  %v6404_v61 = vadd.f32 %v10994_v16, %v10992_v10  ;;  %v6407_v10 = vadd.f32 %v11001_v37, %v10999_v39 }
 0x534   : > { %v6564_v58 = vpop.f32.mrf.mxu2  ;;  %v6409_v39 = vadd.f32 %v11020_v6, %v11015_v45  ;;  %v6412_v45 = vadd.f32 %v11042_v1, %v11040_v40 }
 0x535   : > { %6692 = vmatmul.bf16.gmra.mxu3 %v8424_v21  ;;  %v6565_v0 = vadd.f32 %v6564_v58, %v6476_v19  ;;  %v8456_v19 = vor.u32 %v9278_v55, %v8453_v12  ;;  %v8459_v21 = vld [vmem:[#allocation3 + $0x2a0] sm:$0xf] }
 0x536   : > { %v9405_v58 = vld [vmem:[%s11789_s2 + $0x210] sm:$0xff] }
 0x537   : > { %6827 = vmatpush.bf16.msra.mxu1 %v9405_v58  ;;  %v8487_v58 = vld [vmem:[#allocation3 + $0x2e0] sm:$0xf] }
 0x538   : > { %v6653_v31 = vpop.f32.mrf.mxu3  ;;  %v6477_v24 = vpop.f32.mrf.mxu1 }
 0x539   : > { %v11202_v52 = vadd.f32 %v6653_v31, %v6565_v0  ;;  %v6478_v9 = vadd.f32 %v6477_v24, %v6389_v33  ;;  %v11209_v0 = vpop.f32.mrf.mxu0  ;;  %v8452_v24 = vor.u32 %v9282_v14, %v8451_v38  ;;  %v8489_v14 = vld [vmem:[#allocation3 + $0x304] sm:$0xf0] }
 0x53c   : > { %v6566_v53 = vpop.f32.mrf.mxu2 }
 0x53d   : > { %v6567_v32 = vadd.f32 %v6566_v53, %v6478_v9  ;;  %v9283_v9 = vld [vmem:[#allocation3 + $0x2c0] sm:$0xf0] }
 0x53e   : > { %v8460_v18 = vor.u32 %v9283_v9, %v8459_v21  ;;  %v9287_v21 = vld [vmem:[#allocation3 + $0x2e4] sm:$0xf] }
 0x540   : > { %6781 = vmatmul.bf16.gmra.mxu0 %v8428_v22  ;;  %v6655_v15 = vpop.f32.mrf.mxu3  ;;  %v6480_v56 = vpop.f32.mrf.mxu1 }
 0x541   : > { %6608 = vmatmul.bf16.gmra.mxu2 %v8456_v19  ;;  %v11211_v33 = vadd.f32 %v6655_v15, %v6567_v32  ;;  %v6481_v31 = vadd.f32 %v6480_v56, %v6392_v35  ;;  %v11217_v19 = vpop.f32.mrf.mxu0  ;;  %v9279_v32 = vld [vmem:[#allocation3 + $0x2a4] sm:$0xf]  ;;  %v8461_v35 = vld [vmem:[#allocation3 + $0x2c4] sm:$0xf0] }
 0x542   : > { %v8464_v56 = vor.u32 %v9279_v32, %v8461_v35 }
 0x543   : > { %6519 = vmatmul.bf16.gmra.mxu1 %v8452_v24  ;;  %v9291_v24 = vld [vmem:[#allocation3 + $0x300] sm:$0xf0] }
 0x544   : > { %v6569_v17 = vpop.f32.mrf.mxu2 }
 0x545   : > { %6697 = vmatmul.bf16.gmra.mxu3 %v8460_v18  ;;  %v6570_v48 = vadd.f32 %v6569_v17, %v6481_v31  ;;  %v8492_v31 = vor.u32 %v9287_v21, %v8489_v14  ;;  %v8495_v18 = vld [vmem:[#allocation3 + $0x2e8] sm:$0xf]  ;;  %v8497_v21 = vld [vmem:[#allocation3 + $0x30c] sm:$0xf0] }
 0x548   : > { %v6658_v53 = vpop.f32.mrf.mxu3  ;;  %v6482_v12 = vpop.f32.mrf.mxu1 }
 0x549   : > { %v11215_v22 = vadd.f32 %v6658_v53, %v6570_v48  ;;  %v6483_v55 = vadd.f32 %v6482_v12, %v6394_v26  ;;  %v8488_v26 = vor.u32 %v9291_v24, %v8487_v58  ;;  %v9292_v53 = vld [vmem:[#allocation3 + $0x308] sm:$0xf0]  ;;  %v11223_v32 = vpop.f32.mrf.mxu0  ;;  %v8525_v58 = vld [vmem:[#allocation3 + $0x34c] sm:$0xf0] }
 0x54a   : > { %v8496_v12 = vor.u32 %v9292_v53, %v8495_v18  ;;  %v9300_v18 = vld [vmem:[#allocation3 + $0x348] sm:$0xf0] }
 0x54c   : > { %v6571_v38 = vpop.f32.mrf.mxu2 }
 0x54d   : > { %v6572_v15 = vadd.f32 %v6571_v38, %v6483_v55 }
 0x550   : > { %6786 = vmatmul.bf16.gmra.mxu0 %v8464_v56  ;;  %v6660_v11 = vpop.f32.mrf.mxu3  ;;  %v6485_v9 = vpop.f32.mrf.mxu1 }
 0x551   : > { %6613 = vmatmul.bf16.gmra.mxu2 %v8492_v31  ;;  %v11221_v17 = vadd.f32 %v6660_v11, %v6572_v15  ;;  %v6486_v48 = vadd.f32 %v6485_v9, %v6397_v25  ;;  %v9288_v15 = vld [vmem:[#allocation3 + $0x2ec] sm:$0xf]  ;;  %v8523_v9 = vld [vmem:[#allocation3 + $0x328] sm:$0xf] }
 0x552   : > { %v8500_v25 = vor.u32 %v9288_v15, %v8497_v21  ;;  %v9296_v11 = vld [vmem:[#allocation3 + $0x32c] sm:$0xf] }
 0x553   : > { %6524 = vmatmul.bf16.gmra.mxu1 %v8488_v26  ;;  %v11229_v26 = vpop.f32.mrf.mxu0 }
 0x554   : > { %v6574_v55 = vpop.f32.mrf.mxu2 }
 0x555   : > { %6702 = vmatmul.bf16.gmra.mxu3 %v8496_v12  ;;  %v6575_v35 = vadd.f32 %v6574_v55, %v6486_v48  ;;  %v8528_v48 = vor.u32 %v9296_v11, %v8525_v58  ;;  %v8531_v12 = vld [vmem:[#allocation3 + $0x330] sm:$0xf]  ;;  %v9404_v55 = vld [vmem:[%s11789_s2 + $0x208] sm:$0xff]  ;;  %v9297_v11 = vld [vmem:[#allocation3 + $0x334] sm:$0xf] }
 0x556   : > { %6828 = vmatpush.bf16.msra.mxu1 %v9404_v55  ;;  %v9309_v55 = vld [vmem:[#allocation3 + $0x390] sm:$0xf0] }
 0x558   : > { %v6663_v59 = vpop.f32.mrf.mxu3  ;;  %v6487_v38 = vpop.f32.mrf.mxu1 }
 0x559   : > { %v11227_v14 = vadd.f32 %v6663_v59, %v6575_v35  ;;  %v6488_v56 = vadd.f32 %v6487_v38, %v6399_v60  ;;  %v8524_v59 = vor.u32 %v9300_v18, %v8523_v9  ;;  %v9301_v38 = vld [vmem:[#allocation3 + $0x350] sm:$0xf0]  ;;  %v8561_v18 = vld [vmem:[#allocation3 + $0x394] sm:$0xf0] }
 0x55b   : > { %v11240_v58 = vpop.f32.mrf.mxu0 }
 0x55c   : > { %v6576_v31 = vpop.f32.mrf.mxu2 }
 0x55d   : > { %v6577_v24 = vadd.f32 %v6576_v31, %v6488_v56  ;;  %v8532_v56 = vor.u32 %v9301_v38, %v8531_v12  ;;  %v8559_v12 = vld [vmem:[#allocation3 + $0x370] sm:$0xf]  ;;  %v8567_v38 = vld [vmem:[#allocation3 + $0x378] sm:$0xf] }
 0x560   : > { %6791 = vmatmul.bf16.gmra.mxu0 %v8500_v25  ;;  %v6665_v41 = vpop.f32.mrf.mxu3  ;;  %v6490_v53 = vpop.f32.mrf.mxu1 }
 0x561   : > { %6618 = vmatmul.bf16.gmra.mxu2 %v8528_v48  ;;  %v11236_v35 = vadd.f32 %v6665_v41, %v6577_v24  ;;  %v6491_v60 = vadd.f32 %v6490_v53, %v6402_v5  ;;  %v8533_v48 = vld [vmem:[#allocation3 + $0x354] sm:$0xf0]  ;;  %v9305_v53 = vld [vmem:[#allocation3 + $0x374] sm:$0xf] }
 0x562   : > { %v8536_v41 = vor.u32 %v9297_v11, %v8533_v48 }
 0x563   : > { %6529 = vmatmul.bf16.gmra.mxu1 %v8524_v59 }
 0x564   : > { %v6579_v15 = vpop.f32.mrf.mxu2 }
 0x565   : > { %6707 = vmatmul.bf16.gmra.mxu3 %v8532_v56  ;;  %v6580_v50 = vadd.f32 %v6579_v15, %v6491_v60  ;;  %v8564_v60 = vor.u32 %v9305_v53, %v8561_v18 }
 0x568   : > { %v6668_v21 = vpop.f32.mrf.mxu3  ;;  %v6492_v31 = vpop.f32.mrf.mxu1 }
 0x569   : > { %v11242_v25 = vadd.f32 %v6668_v21, %v6580_v50  ;;  %v6493_v24 = vadd.f32 %v6492_v31, %v6404_v61  ;;  %v8560_v50 = vor.u32 %v9309_v55, %v8559_v12  ;;  %v9310_v61 = vld [vmem:[#allocation3 + $0x398] sm:$0xf0]  ;;  %v11248_v21 = vpop.f32.mrf.mxu0  ;;  %v8597_v12 = vld [vmem:[#allocation3 + $0x3dc] sm:$0xf0] }
 0x56a   : > { %v8568_v31 = vor.u32 %v9310_v61, %v8567_v38  ;;  %v9318_v38 = vld [vmem:[#allocation3 + $0x3d8] sm:$0xf0]  ;;  %v8603_v61 = vld [vmem:[#allocation3 + $0x3c0] sm:$0xf] }
 0x56c   : > { %v6581_v9 = vpop.f32.mrf.mxu2 }
 0x56d   : > { %v6582_v5 = vadd.f32 %v6581_v9, %v6493_v24 }
 0x570   : > { %6796 = vmatmul.bf16.gmra.mxu0 %v8536_v41  ;;  %v6670_v16 = vpop.f32.mrf.mxu3  ;;  %v6495_v59 = vpop.f32.mrf.mxu1  ;;  %v8569_v41 = vld [vmem:[#allocation3 + $0x39c] sm:$0xf0] }
 0x571   : > { %6623 = vmatmul.bf16.gmra.mxu2 %v8564_v60  ;;  %v11246_v56 = vadd.f32 %v6670_v16, %v6582_v5  ;;  %v6496_v15 = vadd.f32 %v6495_v59, %v6407_v10  ;;  %v9306_v5 = vld [vmem:[#allocation3 + $0x37c] sm:$0xf]  ;;  %v11254_v55 = vpop.f32.mrf.mxu0  ;;  %v8595_v59 = vld [vmem:[#allocation3 + $0x3b8] sm:$0xf] }
 0x572   : > { %v8572_v10 = vor.u32 %v9306_v5, %v8569_v41  ;;  %v9314_v16 = vld [vmem:[#allocation3 + $0x3bc] sm:$0xf]  ;;  %v6414_v5 = vadd.f32 %v11073_v63, %v11059_v13 }
 0x573   : > { %6534 = vmatmul.bf16.gmra.mxu1 %v8560_v50 }
 0x574   : > { %v6584_v24 = vpop.f32.mrf.mxu2 }
 0x575   : > { %6712 = vmatmul.bf16.gmra.mxu3 %v8568_v31  ;;  %v6585_v11 = vadd.f32 %v6584_v24, %v6496_v15  ;;  %v8600_v15 = vor.u32 %v9314_v16, %v8597_v12  ;;  %v9403_v31 = vld [vmem:[%s11789_s2 + $0x200] sm:$0xff]  ;;  %v8605_v16 = vld [vmem:[#allocation3 + $0x3e4] sm:$0xf0] }
 0x576   : > { %6829 = vmatpush.bf16.msra.mxu1 %v9403_v31 }
 0x578   : > { %v6673_v37 = vpop.f32.mrf.mxu3  ;;  %v6497_v48 = vpop.f32.mrf.mxu1 }
 0x579   : > { %v11252_v9 = vadd.f32 %v6673_v37, %v6585_v11  ;;  %v6498_v18 = vadd.f32 %v6497_v48, %v6409_v39  ;;  %v8596_v39 = vor.u32 %v9318_v38, %v8595_v59  ;;  %v9319_v37 = vld [vmem:[#allocation3 + $0x3e0] sm:$0xf0]  ;;  %v11263_v1 = vpop.f32.mrf.mxu0  ;;  %v8633_v38 = vld [vmem:[#allocation3 + $0x424] sm:$0xf0] }
 0x57a   : > { %v8604_v48 = vor.u32 %v9319_v37, %v8603_v61  ;;  %v9327_v61 = vld [vmem:[#allocation3 + $0x420] sm:$0xf0] }
 0x57c   : > { %v6586_v53 = vpop.f32.mrf.mxu2 }
 0x57d   : > { %v6587_v60 = vadd.f32 %v6586_v53, %v6498_v18 }
 0x580   : > { %6801 = vmatmul.bf16.gmra.mxu0 %v8572_v10  ;;  %v6675_v6 = vpop.f32.mrf.mxu3  ;;  %v6500_v50 = vpop.f32.mrf.mxu1  ;;  %v9315_v10 = vld [vmem:[#allocation3 + $0x3c4] sm:$0xf] }
 0x581   : > { %6628 = vmatmul.bf16.gmra.mxu2 %v8600_v15  ;;  %v11261_v24 = vadd.f32 %v6675_v6, %v6587_v60  ;;  %v6501_v11 = vadd.f32 %v6500_v50, %v6412_v45  ;;  %v8608_v45 = vor.u32 %v9315_v10, %v8605_v16  ;;  %v9323_v6 = vld [vmem:[#allocation3 + $0x404] sm:$0xf]  ;;  %v8631_v50 = vld [vmem:[#allocation3 + $0x400] sm:$0xf]  ;;  %v11271_v37 = vpop.f32.mrf.mxu0 }
 0x582   : > { %v8636_v31 = vor.u32 %v9323_v6, %v8633_v38 }
 0x583   : > { %6539 = vmatmul.bf16.gmra.mxu1 %v8596_v39  ;;  %v8639_v39 = vld [vmem:[#allocation3 + $0x408] sm:$0xf] }
 0x584   : > { %v6589_v18 = vpop.f32.mrf.mxu2 }
 0x585   : > { %6717 = vmatmul.bf16.gmra.mxu3 %v8604_v48  ;;  %v6590_v40 = vadd.f32 %v6589_v18, %v6501_v11  ;;  %v6417_v11 = vadd.f32 %v11092_v7, %v11078_v47  ;;  %v6419_v47 = vadd.f32 %v11098_v4, %v11094_v36  ;;  %v6422_v36 = vadd.f32 %v11112_v51, %v11096_v57 }
 0x588   : > { %v6678_v41 = vpop.f32.mrf.mxu3  ;;  %v6502_v53 = vpop.f32.mrf.mxu1 }
 0x589   : > { %v11267_v12 = vadd.f32 %v6678_v41, %v6590_v40  ;;  %v6503_v60 = vadd.f32 %v6502_v53, %v6414_v5  ;;  %v8632_v40 = vor.u32 %v9327_v61, %v8631_v50  ;;  %v9328_v5 = vld [vmem:[#allocation3 + $0x428] sm:$0xf0]  ;;  %v11279_v38 = vpop.f32.mrf.mxu0  ;;  %v8669_v50 = vld [vmem:[#allocation3 + $0x46c] sm:$0xf0] }
 0x58a   : > { %v8640_v41 = vor.u32 %v9328_v5, %v8639_v39 }
 0x58c   : > { %v6591_v59 = vpop.f32.mrf.mxu2 }
 0x58d   : > { %v6592_v15 = vadd.f32 %v6591_v59, %v6503_v60 }
 0x590   : > { %6806 = vmatmul.bf16.gmra.mxu0 %v8608_v45  ;;  %v6680_v13 = vpop.f32.mrf.mxu3  ;;  %v6505_v63 = vpop.f32.mrf.mxu1  ;;  %v8641_v45 = vld [vmem:[#allocation3 + $0x42c] sm:$0xf0] }
 0x591   : > { %6633 = vmatmul.bf16.gmra.mxu2 %v8636_v31  ;;  %v11273_v48 = vadd.f32 %v6680_v13, %v6592_v15  ;;  %v6506_v18 = vadd.f32 %v6505_v63, %v6417_v11  ;;  %v9324_v15 = vld [vmem:[#allocation3 + $0x40c] sm:$0xf]  ;;  %v8667_v13 = vld [vmem:[#allocation3 + $0x448] sm:$0xf] }
 0x592   : > { %v8644_v31 = vor.u32 %v9324_v15, %v8641_v45  ;;  %v9332_v11 = vld [vmem:[#allocation3 + $0x44c] sm:$0xf]  ;;  %v11902_v45 = vld [vmem:[#allocation50_spill] sm:$0xff] }
 0x593   : > { %6544 = vmatmul.bf16.gmra.mxu1 %v8632_v40  ;;  %v9336_v63 = vld [vmem:[#allocation3 + $0x468] sm:$0xf0]  ;;  %v8672_v39 = vor.u32 %v9332_v11, %v8669_v50  ;;  %v8675_v40 = vld [vmem:[#allocation3 + $0x450] sm:$0xf]  ;;  %v8677_v11 = vld [vmem:[#allocation3 + $0x474] sm:$0xf0] }
 0x594   : > { %v6594_v53 = vpop.f32.mrf.mxu2  ;;  %v11901_v15 = vld [vmem:[#allocation48_spill] sm:$0xff] }
 0x595   : > { %6722 = vmatmul.bf16.gmra.mxu3 %v8640_v41  ;;  %v6595_v60 = vadd.f32 %v6594_v53, %v6506_v18  ;;  %v8668_v53 = vor.u32 %v9336_v63, %v8667_v13  ;;  %v6424_v57 = vadd.f32 %v11902_v45, %v11901_v15 }
 0x598   : > { %v6683_v7 = vpop.f32.mrf.mxu3  ;;  %v6507_v10 = vpop.f32.mrf.mxu1 }
 0x599   : > { %v11277_v16 = vadd.f32 %v6683_v7, %v6595_v60  ;;  %v6508_v59 = vadd.f32 %v6507_v10, %v6419_v47  ;;  %v9337_v60 = vld [vmem:[#allocation3 + $0x470] sm:$0xf0]  ;;  %v11285_v10 = vpop.f32.mrf.mxu0 }
 0x59a   : > { %v8676_v47 = vor.u32 %v9337_v60, %v8675_v40  ;;  %v11905_v40 = vld [vmem:[#allocation40_spill] sm:$0xff] }
 0x59c   : > { %v6596_v6 = vpop.f32.mrf.mxu2 }
 0x59d   : > { %v6597_v61 = vadd.f32 %v6596_v6, %v6508_v59 }
 0x5a0   : > { %6811 = vmatmul.bf16.gmra.mxu0 %v8644_v31  ;;  %v6685_v4 = vpop.f32.mrf.mxu3  ;;  %v6510_v18 = vpop.f32.mrf.mxu1 }
 0x5a1   : > { %6638 = vmatmul.bf16.gmra.mxu2 %v8672_v39  ;;  %v11283_v5 = vadd.f32 %v6685_v4, %v6597_v61  ;;  %v6511_v41 = vadd.f32 %v6510_v18, %v6422_v36  ;;  %v9333_v61 = vld [vmem:[#allocation3 + $0x454] sm:$0xf]  ;;  %v9203_v36 = vld [vmem:[#allocation3 + $0x40] sm:$0xf0]  ;;  %v11291_v4 = vpop.f32.mrf.mxu0 }
 0x5a2   : > { %v8680_v63 = vor.u32 %v9333_v61, %v8677_v11  ;;  %v11904_v18 = vld [vmem:[#allocation39_spill] sm:$0xff] }
 0x5a3   : > { %6549 = vmatmul.bf16.gmra.mxu1 %v8668_v53  ;;  %v6427_v53 = vadd.f32 %v11905_v40, %v11904_v18  ;;  %v9212_v40 = vld [vmem:[#allocation3 + $0x88] sm:$0xf0] }
 0x5a4   : > { %v6599_v7 = vpop.f32.mrf.mxu2 }
 0x5a5   : > { %6727 = vmatmul.bf16.gmra.mxu3 %v8676_v47  ;;  %v6600_v59 = vadd.f32 %v6599_v7, %v6511_v41  ;;  %v8143_v47 = vld [vmem:[#allocation3 + $0x20] sm:$0xf] }
 0x5a6   : > { %v8144_v15 = vor.u32 %v9203_v36, %v8143_v47  ;;  %v8179_v36 = vld [vmem:[#allocation3 + $0x68] sm:$0xf] }
 0x5a8   : > { %v6688_v51 = vpop.f32.mrf.mxu3  ;;  %v6512_v6 = vpop.f32.mrf.mxu1 }
 0x5a9   : > { %v11289_v50 = vadd.f32 %v6688_v51, %v6600_v59  ;;  %v6513_v31 = vadd.f32 %v6512_v6, %v6424_v57  ;;  %v11906_v51 = vld [vmem:[#allocation49_spill] sm:$0xff] }
 0x5aa   : > { %v6429_v6 = vadd.f32 %v11137_v30, %v11906_v51 }
 0x5ab   : > { %11903 = vst [vmem:[#allocation48_spill] sm:$0xff] %v11289_v50  ;;  %v11907_v50 = vld [vmem:[#allocation41_spill] sm:$0xff] }
 0x5ac   : > { %v6601_v39 = vpop.f32.mrf.mxu2 }
 0x5ad   : > { %v6602_v13 = vadd.f32 %v6601_v39, %v6513_v31 }
 0x5b0   : > { %6816 = vmatmul.bf16.gmra.mxu0 %v8680_v63  ;;  %v6690_v41 = vpop.f32.mrf.mxu3  ;;  %v6515_v60 = vpop.f32.mrf.mxu1 }
 0x5b1   : > { %v11295_v7 = vadd.f32 %v6690_v41, %v6602_v13  ;;  %v6516_v59 = vadd.f32 %v6515_v60, %v6427_v53  ;;  %v6432_v13 = vadd.f32 %v11141_v62, %v11907_v50  ;;  %v9221_v50 = vld [vmem:[#allocation3 + $0xd0] sm:$0xf0] }
 0x5b3   : > { %6830 = vmatmul.bf16.vlgmr.msra.gmra.mxu1 %v8144_v15 }
 0x5b4   : > { %v6604_v45 = vpop.f32.mrf.mxu2 }
 0x5b5   : > { %v6605_v57 = vadd.f32 %v6604_v45, %v6516_v59  ;;  %v8180_v59 = vor.u32 %v9212_v40, %v8179_v36  ;;  %v6434_v45 = vadd.f32 %v11154_v54, %v11135_v20  ;;  %v8215_v40 = vld [vmem:[#allocation3 + $0xb0] sm:$0xf]  ;;  %v6439_v36 = vadd.f32 %v11164_v29, %v11147_v23 }
 0x5b8   : > { %v6693_v31 = vpop.f32.mrf.mxu3  ;;  %v6517_v61 = vpop.f32.mrf.mxu1 }
 0x5b9   : > { %v11299_v11 = vadd.f32 %v6693_v31, %v6605_v57  ;;  %v6518_v39 = vadd.f32 %v6517_v61, %v6429_v6 }
 0x5bc   : > { %v6606_v18 = vpop.f32.mrf.mxu2 }
 0x5bd   : > { %v6607_v63 = vadd.f32 %v6606_v18, %v6518_v39  ;;  %v6437_v39 = vadd.f32 %v11158_v34, %v11139_v27  ;;  %v9230_v27 = vld [vmem:[#allocation3 + $0x118] sm:$0xf0]  ;;  %v6442_v34 = vadd.f32 %v11171_v43, %v11156_v42 }
 0x5be   : > { %v11909_v43 = vld [vmem:[#allocation42_spill] sm:$0xff] }
 0x5c0   : > { %v6695_v41 = vpop.f32.mrf.mxu3  ;;  %v6520_v53 = vpop.f32.mrf.mxu1 }
 0x5c1   : > { %v11303_v60 = vadd.f32 %v6695_v41, %v6607_v63  ;;  %v6521_v47 = vadd.f32 %v6520_v53, %v6432_v13  ;;  %v8216_v53 = vor.u32 %v9221_v50, %v8215_v40  ;;  %v11908_v50 = vld [vmem:[#allocation45_spill] sm:$0xff] }
 0x5c3   : > { %6835 = vmatmul.bf16.gmra.mxu1 %v8180_v59 }
 0x5c4   : > { %v6609_v30 = vpop.f32.mrf.mxu2 }
 0x5c5   : > { %v6610_v15 = vadd.f32 %v6609_v30, %v6521_v47 }
 0x5c8   : > { %v6698_v57 = vpop.f32.mrf.mxu3  ;;  %v6522_v51 = vpop.f32.mrf.mxu1 }
 0x5c9   : > { %v11307_v6 = vadd.f32 %v6698_v57, %v6610_v15  ;;  %v6523_v31 = vadd.f32 %v6522_v51, %v6434_v45  ;;  %v8251_v57 = vld [vmem:[#allocation3 + $0xf8] sm:$0xf] }
 0x5cc   : > { %v6611_v61 = vpop.f32.mrf.mxu2 }
 0x5cd   : > { %v6612_v62 = vadd.f32 %v6611_v61, %v6523_v31  ;;  %v8252_v31 = vor.u32 %v9230_v27, %v8251_v57  ;;  %v6444_v61 = vadd.f32 %v11175_v8, %v11160_v49  ;;  %v9248_v49 = vld [vmem:[#allocation3 + $0x1a8] sm:$0xf0]  ;;  %v11910_v8 = vld [vmem:[#allocation43_spill] sm:$0xff] }
 0x5ce   : > { %v11911_v27 = vld [vmem:[#allocation44_spill] sm:$0xff] }
 0x5d0   : > { %v6700_v18 = vpop.f32.mrf.mxu3  ;;  %v6525_v63 = vpop.f32.mrf.mxu1 }
 0x5d1   : > { %v11311_v13 = vadd.f32 %v6700_v18, %v6612_v62  ;;  %v6526_v41 = vadd.f32 %v6525_v63, %v6437_v39  ;;  %v9239_v62 = vld [vmem:[#allocation3 + $0x160] sm:$0xf0]  ;;  %v6447_v39 = vadd.f32 %v11908_v50, %v11162_v46  ;;  %v8287_v63 = vld [vmem:[#allocation3 + $0x140] sm:$0xf] }
 0x5d2   : > { %v8288_v42 = vor.u32 %v9239_v62, %v8287_v63  ;;  %v8359_v62 = vld [vmem:[#allocation3 + $0x1d0] sm:$0xf] }
 0x5d3   : > { %6840 = vmatmul.bf16.gmra.mxu1 %v8216_v53 }
 0x5d4   : > { %v6614_v20 = vpop.f32.mrf.mxu2 }
 0x5d5   : > { %v6615_v54 = vadd.f32 %v6614_v20, %v6526_v41  ;;  %v6449_v41 = vadd.f32 %v11188_v44, %v11909_v43  ;;  %v9257_v44 = vld [vmem:[#allocation3 + $0x1f0] sm:$0xf0]  ;;  %v11914_v43 = vld [vmem:[#allocation51_spill] sm:$0xff] }
 0x5d8   : > { %v6703_v47 = vpop.f32.mrf.mxu3  ;;  %v6527_v59 = vpop.f32.mrf.mxu1 }
 0x5d9   : > { %v11315_v30 = vadd.f32 %v6703_v47, %v6615_v54  ;;  %v11317_v15 = vadd.f32 %v6527_v59, %v6439_v36  ;;  %v6452_v54 = vadd.f32 %v11192_v2, %v11910_v8  ;;  %v8323_v47 = vld [vmem:[#allocation3 + $0x188] sm:$0xf]  ;;  %v8360_v2 = vor.u32 %v9257_v44, %v8359_v62  ;;  %v6762_v44 = vpop.f32.mrf.mxu0 }
 0x5da   : > { %v8324_v46 = vor.u32 %v9248_v49, %v8323_v47  ;;  %v8395_v49 = vld [vmem:[#allocation3 + $0x218] sm:$0xf]  ;;  %v6748_v62 = vadd.f32 %v11254_v55, %v11215_v22 }
 0x5e0   : > { %v6530_v45 = vpop.f32.mrf.mxu1 }
 0x5e1   : > { %v11321_v51 = vadd.f32 %v6530_v45, %v6442_v34  ;;  %v6454_v34 = vadd.f32 %v11198_v3, %v11911_v27  ;;  %v9266_v3 = vld [vmem:[#allocation3 + $0x238] sm:$0xf0] }
 0x5e3   : > { %6845 = vmatmul.bf16.gmra.mxu1 %v8252_v31  ;;  %v11912_v31 = vld [vmem:[#allocation46_spill] sm:$0xff] }
 0x5e8   : > { %v6532_v23 = vpop.f32.mrf.mxu1 }
 0x5e9   : > { %v11325_v29 = vadd.f32 %v6532_v23, %v6444_v61  ;;  %v6457_v61 = vadd.f32 %v11209_v0, %v11912_v31  ;;  %v8396_v0 = vor.u32 %v9266_v3, %v8395_v49  ;;  %v6745_v31 = vadd.f32 %v11248_v21, %v11211_v33  ;;  %v9293_v21 = vld [vmem:[#allocation3 + $0x310] sm:$0xf0] }
 0x5f0   : > { %v6535_v18 = vpop.f32.mrf.mxu1 }
 0x5f1   : > { %v11329_v40 = vadd.f32 %v6535_v18, %v6447_v39  ;;  %v11913_v39 = vld [vmem:[#allocation47_spill] sm:$0xff] }
 0x5f2   : > { %v6459_v18 = vadd.f32 %v11217_v19, %v11913_v39  ;;  %v9275_v19 = vld [vmem:[#allocation3 + $0x280] sm:$0xf0] }
 0x5f3   : > { %6850 = vmatmul.bf16.gmra.mxu1 %v8288_v42 }
 0x5f8   : > { %v6537_v53 = vpop.f32.mrf.mxu1 }
 0x5f9   : > { %v11333_v20 = vadd.f32 %v6537_v53, %v6449_v41  ;;  %v6462_v41 = vadd.f32 %v11223_v32, %v11914_v43  ;;  %v6753_v43 = vadd.f32 %v11271_v37, %v11227_v14  ;;  %v8539_v14 = vld [vmem:[#allocation3 + $0x338] sm:$0xf] }
 0x600   : > { %v6540_v36 = vpop.f32.mrf.mxu1 }
 0x601   : > { %v11337_v59 = vadd.f32 %v6540_v36, %v6452_v54  ;;  %v6464_v54 = vadd.f32 %v11229_v26, %v11196_v28  ;;  %v6764_v28 = vpop.f32.mrf.mxu0  ;;  %v9284_v26 = vld [vmem:[#allocation3 + $0x2c8] sm:$0xf0] }
 0x603   : > { %6855 = vmatmul.bf16.gmra.mxu1 %v8324_v46  ;;  %v6743_v46 = vadd.f32 %v11240_v58, %v11202_v52  ;;  %v8467_v52 = vld [vmem:[#allocation3 + $0x2a8] sm:$0xf] }
 0x604   : > { %v8468_v39 = vor.u32 %v9284_v26, %v8467_v52  ;;  %v6765_v52 = vadd.f32 %v6764_v28, %v11261_v24  ;;  %v9329_v28 = vld [vmem:[#allocation3 + $0x430] sm:$0xf0] }
 0x608   : > { %v6542_v45 = vpop.f32.mrf.mxu1 }
 0x609   : > { %v11341_v57 = vadd.f32 %v6542_v45, %v6454_v34  ;;  %v8431_v34 = vld [vmem:[#allocation3 + $0x260] sm:$0xf] }
 0x60a   : > { %v8432_v32 = vor.u32 %v9275_v19, %v8431_v34  ;;  %v6758_v19 = vadd.f32 %v11285_v10, %v11242_v25 }
 0x610   : > { %v6545_v23 = vpop.f32.mrf.mxu1 }
 0x611   : > { %v11345_v50 = vadd.f32 %v6545_v23, %v6457_v61 }
 0x613   : > { %6860 = vmatmul.bf16.gmra.mxu1 %v8360_v2 }
 0x618   : > { %v6547_v63 = vpop.f32.mrf.mxu1 }
 0x619   : > { %v11349_v42 = vadd.f32 %v6547_v63, %v6459_v18  ;;  %v6750_v18 = vadd.f32 %v11263_v1, %v11221_v17  ;;  %v6767_v63 = vpop.f32.mrf.mxu0 }
 0x620   : > { %v6550_v53 = vpop.f32.mrf.mxu1 }
 0x621   : > { %v11353_v8 = vadd.f32 %v6550_v53, %v6462_v41  ;;  %v8503_v53 = vld [vmem:[#allocation3 + $0x2f0] sm:$0xf]  ;;  %v6769_v49 = vpop.f32.mrf.mxu0 }
 0x622   : > { %v8504_v55 = vor.u32 %v9293_v21, %v8503_v53  ;;  %v6770_v53 = vadd.f32 %v6769_v49, %v11273_v48  ;;  %v9338_v48 = vld [vmem:[#allocation3 + $0x478] sm:$0xf0]  ;;  %v11918_v49 = vld [vmem:[#allocation48_spill] sm:$0xff] }
 0x623   : > { %6865 = vmatmul.bf16.gmra.mxu1 %v8396_v0  ;;  %v6755_v0 = vadd.f32 %v11279_v38, %v11236_v35  ;;  %v9311_v38 = vld [vmem:[#allocation3 + $0x3a0] sm:$0xf0] }
 0x628   : > { %v6552_v36 = vpop.f32.mrf.mxu1 }
 0x629   : > { %v11357_v47 = vadd.f32 %v6552_v36, %v6464_v54  ;;  %v6772_v1 = vpop.f32.mrf.mxu0  ;;  %v9302_v36 = vld [vmem:[#allocation3 + $0x358] sm:$0xf0] }
 0x630   : > { %v6831_v27 = vpop.f32.mrf.mxu1 }
 0x631   : > { %v11361_v45 = vadd.f32 %v6831_v27, %v6743_v46  ;;  %v8540_v27 = vor.u32 %v9302_v36, %v8539_v14  ;;  %v6774_v34 = vpop.f32.mrf.mxu0 }
 0x633   : > { %6870 = vmatmul.bf16.gmra.mxu1 %v8432_v32  ;;  %v6760_v32 = vadd.f32 %v11291_v4, %v11246_v56  ;;  %v9320_v56 = vld [vmem:[#allocation3 + $0x3e8] sm:$0xf0]  ;;  %v6768_v4 = vadd.f32 %v6767_v63, %v11267_v12  ;;  %v6775_v63 = vadd.f32 %v6774_v34, %v11283_v5 }
 0x638   : > { %v6833_v61 = vpop.f32.mrf.mxu1 }
 0x639   : > { %v11365_v23 = vadd.f32 %v6833_v61, %v6745_v31  ;;  %v6763_v61 = vadd.f32 %v6762_v44, %v11252_v9  ;;  %v6777_v26 = vpop.f32.mrf.mxu0 }
 0x640   : > { %v6836_v2 = vpop.f32.mrf.mxu1 }
 0x641   : > { %v11369_v58 = vadd.f32 %v6836_v2, %v6748_v62  ;;  %v8575_v2 = vld [vmem:[#allocation3 + $0x380] sm:$0xf] }
 0x642   : > { %v8576_v10 = vor.u32 %v9311_v38, %v8575_v2 }
 0x643   : > { %6875 = vmatmul.bf16.gmra.mxu1 %v8468_v39 }
 0x648   : > { %v6838_v3 = vpop.f32.mrf.mxu1 }
 0x649   : > { %v11373_v33 = vadd.f32 %v6838_v3, %v6750_v18  ;;  %v6779_v3 = vpop.f32.mrf.mxu0 }
 0x64a   : > { %v6780_v2 = vadd.f32 %v6779_v3, %v11295_v7 }
 0x650   : > { %v6841_v41 = vpop.f32.mrf.mxu1 }
 0x651   : > { %v11377_v22 = vadd.f32 %v6841_v41, %v6753_v43  ;;  %v8611_v43 = vld [vmem:[#allocation3 + $0x3c8] sm:$0xf]  ;;  %v6782_v44 = vpop.f32.mrf.mxu0 }
 0x652   : > { %v8612_v9 = vor.u32 %v9320_v56, %v8611_v43 }
 0x653   : > { %6880 = vmatmul.bf16.gmra.mxu1 %v8504_v55 }
 0x658   : > { %v6843_v54 = vpop.f32.mrf.mxu1 }
 0x659   : > { %v11381_v17 = vadd.f32 %v6843_v54, %v6755_v0  ;;  %v6784_v24 = vpop.f32.mrf.mxu0  ;;  %v6773_v54 = vadd.f32 %v6772_v1, %v11277_v16 }
 0x660   : > { %v6846_v46 = vpop.f32.mrf.mxu1 }
 0x661   : > { %v11385_v37 = vadd.f32 %v6846_v46, %v6758_v19  ;;  %v8647_v19 = vld [vmem:[#allocation3 + $0x410] sm:$0xf]  ;;  %v6787_v14 = vpop.f32.mrf.mxu0 }
 0x662   : > { %v8648_v12 = vor.u32 %v9329_v28, %v8647_v19  ;;  %v6788_v7 = vadd.f32 %v6787_v14, %v11307_v6 }
 0x663   : > { %6885 = vmatmul.bf16.gmra.mxu1 %v8540_v27 }
 0x668   : > { %v6848_v31 = vpop.f32.mrf.mxu1 }
 0x669   : > { %v11389_v35 = vadd.f32 %v6848_v31, %v6760_v32  ;;  %v6778_v31 = vadd.f32 %v6777_v26, %v11918_v49  ;;  %v6789_v1 = vpop.f32.mrf.mxu0  ;;  %v6785_v26 = vadd.f32 %v6784_v24, %v11303_v60 }
 0x66a   : > { %v6790_v60 = vadd.f32 %v6789_v1, %v11311_v13  ;;  %v6949_v13 = vmul.f32 %v11361_v45, %v11361_v45 }
 0x670   : > { %v6851_v62 = vpop.f32.mrf.mxu1 }
 0x671   : > { %v11392_v25 = vadd.f32 %v6851_v62, %v6763_v61  ;;  %v8683_v61 = vld [vmem:[#allocation3 + $0x458] sm:$0xf]  ;;  %v6792_v5 = vpop.f32.mrf.mxu0 }
 0x672   : > { %v8684_v16 = vor.u32 %v9338_v48, %v8683_v61  ;;  %v6793_v34 = vadd.f32 %v6792_v5, %v11315_v30  ;;  %v6911_v48 = vadd.f32 %v11365_v23, %v11361_v45 }
 0x673   : > { %6890 = vmatmul.bf16.gmra.mxu1 %v8576_v10 }
 0x678   : > { %v6853_v39 = vpop.f32.mrf.mxu1 }
 0x679   : > { %v11395_v18 = vadd.f32 %v6853_v39, %v6765_v52  ;;  %v6783_v39 = vadd.f32 %v6782_v44, %v11299_v11  ;;  %v11429_v30 = vpop.f32.mrf.mxu0 }
 0x67b   : > { %11915 = vst [vmem:[#allocation50_spill] sm:$0xff] %v11395_v18 }
 0x680   : > { %v6856_v21 = vpop.f32.mrf.mxu1 }
 0x681   : > { %v11398_v41 = vadd.f32 %v6856_v21, %v6768_v4 }
 0x683   : > { %6895 = vmatmul.bf16.gmra.mxu1 %v8612_v9  ;;  %v11422_v9 = vpop.f32.mrf.mxu2 }
 0x688   : > { %v6858_v55 = vpop.f32.mrf.mxu1 }
 0x689   : > { %v11401_v0 = vadd.f32 %v6858_v55, %v6770_v53  ;;  %v11424_v53 = vpop.f32.mrf.mxu3 }
 0x68b   : > { %11916 = vst [vmem:[#allocation39_spill] sm:$0xff] %v11401_v0  ;;  %v11431_v11 = vpop.f32.mrf.mxu2 }
 0x690   : > { %v6861_v36 = vpop.f32.mrf.mxu1 }
 0x691   : > { %v11404_v46 = vadd.f32 %v6861_v36, %v6773_v54  ;;  %v11433_v44 = vpop.f32.mrf.mxu3  ;;  %v11438_v54 = vpop.f32.mrf.mxu0 }
 0x693   : > { %6900 = vmatmul.bf16.gmra.mxu1 %v8648_v12  ;;  %v11440_v36 = vpop.f32.mrf.mxu2 }
 0x698   : > { %v6863_v27 = vpop.f32.mrf.mxu1 }
 0x699   : > { %v11407_v32 = vadd.f32 %v6863_v27, %v6775_v63  ;;  %v11442_v19 = vpop.f32.mrf.mxu3  ;;  %v6950_v63 = vmul.f32 %v11365_v23, %v11365_v23  ;;  %v11448_v14 = vpop.f32.mrf.mxu0  ;;  %v6951_v27 = vmul.f32 %v11369_v58, %v11369_v58 }
 0x69b   : > { %11917 = vst [vmem:[#allocation40_spill] sm:$0xff] %v11407_v32  ;;  %v6981_v49 = vadd.f32 %v6950_v63, %v6949_v13  ;;  %v11460_v61 = vpop.f32.mrf.mxu2 }
 0x6a0   : > { %v6866_v38 = vpop.f32.mrf.mxu1 }
 0x6a1   : > { %v11410_v62 = vadd.f32 %v6866_v38, %v6778_v31  ;;  %v6952_v31 = vmul.f32 %v11373_v33, %v11373_v33  ;;  %v11463_v1 = vpop.f32.mrf.mxu3 }
 0x6a3   : > { %6905 = vmatmul.bf16.gmra.mxu1 %v8684_v16  ;;  %v6912_v16 = vadd.f32 %v6911_v48, %v11369_v58  ;;  %v6626_v48 = vpop.f32.mrf.mxu2 }
 0x6a5   : > { %v6913_v5 = vadd.f32 %v6912_v16, %v11373_v33 }
 0x6a8   : > { %v6868_v10 = vpop.f32.mrf.mxu1 }
 0x6a9   : > { %v11413_v52 = vadd.f32 %v6868_v10, %v6780_v2  ;;  %v6982_v2 = vadd.f32 %v6981_v49, %v6951_v27  ;;  %v6953_v10 = vmul.f32 %v11377_v22, %v11377_v22  ;;  %v6957_v27 = vmul.f32 %v11392_v25, %v11392_v25 }
 0x6b0   : > { %v6871_v56 = vpop.f32.mrf.mxu1 }
 0x6b1   : > { %v11417_v4 = vadd.f32 %v6871_v56, %v6783_v39  ;;  %v6954_v39 = vmul.f32 %v11381_v17, %v11381_v17  ;;  %v6914_v56 = vadd.f32 %v6913_v5, %v11377_v22 }
 0x6b8   : > { %v6873_v21 = vpop.f32.mrf.mxu1 }
 0x6b9   : > { %v11420_v43 = vadd.f32 %v6873_v21, %v6785_v26  ;;  %v6955_v21 = vmul.f32 %v11385_v37, %v11385_v37 }
 0x6c0   : > { %v6876_v3 = vpop.f32.mrf.mxu1 }
 0x6c1   : > { %v11427_v55 = vadd.f32 %v6876_v3, %v6788_v7  ;;  %v6915_v7 = vadd.f32 %v6914_v56, %v11381_v17  ;;  %v11474_v3 = vpop.f32.mrf.mxu0 }
 0x6c3   : > { %v6916_v63 = vadd.f32 %v6915_v7, %v11385_v37 }
 0x6c5   : > { %v6917_v49 = vadd.f32 %v6916_v63, %v11389_v35  ;;  %v6961_v63 = vmul.f32 %v11404_v46, %v11404_v46 }
 0x6c8   : > { %v6878_v24 = vpop.f32.mrf.mxu1 }
 0x6c9   : > { %v11436_v28 = vadd.f32 %v6878_v24, %v6790_v60  ;;  %v6956_v24 = vmul.f32 %v11389_v35, %v11389_v35 }
 0x6d0   : > { %v6881_v6 = vpop.f32.mrf.mxu1 }
 0x6d1   : > { %v11444_v12 = vadd.f32 %v6881_v6, %v6793_v34  ;;  %v6983_v34 = vadd.f32 %v6982_v2, %v6952_v31  ;;  %v6715_v31 = vpop.f32.mrf.mxu3  ;;  %v6958_v2 = vmul.f32 %v11395_v18, %v11395_v18 }
 0x6d3   : > { %v6984_v26 = vadd.f32 %v6983_v34, %v6953_v10  ;;  %v6918_v10 = vadd.f32 %v6917_v49, %v11392_v25  ;;  %v6959_v34 = vmul.f32 %v11398_v41, %v11398_v41  ;;  %v6962_v49 = vmul.f32 %v11407_v32, %v11407_v32 }
 0x6d5   : > { %v6985_v60 = vadd.f32 %v6984_v26, %v6954_v39  ;;  %v6919_v39 = vadd.f32 %v6918_v10, %v11395_v18  ;;  %v6960_v26 = vmul.f32 %v11401_v0, %v11401_v0  ;;  %v6963_v18 = vmul.f32 %v11410_v62, %v11410_v62 }
 0x6d7   : > { %v6986_v13 = vadd.f32 %v6985_v60, %v6955_v21  ;;  %v6920_v7 = vadd.f32 %v6919_v39, %v11398_v41  ;;  %v6804_v60 = vpop.f32.mrf.mxu0 }
 0x6d8   : > { %v11458_v38 = vpop.f32.mrf.mxu1 }
 0x6d9   : > { %v6987_v16 = vadd.f32 %v6986_v13, %v6956_v24  ;;  %v6921_v13 = vadd.f32 %v6920_v7, %v11401_v0  ;;  %v6718_v10 = vpop.f32.mrf.mxu3 }
 0x6db   : > { %v6988_v5 = vadd.f32 %v6987_v16, %v6957_v27  ;;  %v6629_v16 = vpop.f32.mrf.mxu2 }
 0x6dd   : > { %v6989_v56 = vadd.f32 %v6988_v5, %v6958_v2  ;;  %v6922_v2 = vadd.f32 %v6921_v13, %v11404_v46 }
 0x6df   : > { %v6990_v24 = vadd.f32 %v6989_v56, %v6959_v34  ;;  %v6923_v39 = vadd.f32 %v6922_v2, %v11407_v32  ;;  %v6617_v34 = vadd.f32 %v11422_v9, %v11317_v15  ;;  %v6807_v32 = vpop.f32.mrf.mxu0  ;;  %v6966_v9 = vmul.f32 %v11420_v43, %v11420_v43 }
 0x6e0   : > { %v11478_v6 = vpop.f32.mrf.mxu1 }
 0x6e1   : > { %v6991_v27 = vadd.f32 %v6990_v24, %v6960_v26  ;;  %v6964_v26 = vmul.f32 %v11413_v52, %v11413_v52  ;;  %v6924_v24 = vadd.f32 %v6923_v39, %v11410_v62  ;;  %v6706_v0 = vadd.f32 %v11424_v53, %v6617_v34 }
 0x6e2   : > { %v6967_v39 = vmul.f32 %v11427_v55, %v11427_v55  ;;  %v6625_v34 = vadd.f32 %v11460_v61, %v11329_v40 }
 0x6e3   : > { %v6992_v5 = vadd.f32 %v6991_v27, %v6961_v63  ;;  %v6965_v63 = vmul.f32 %v11417_v4, %v11417_v4  ;;  %v6620_v27 = vadd.f32 %v11431_v11, %v11321_v51  ;;  %v6925_v2 = vadd.f32 %v6924_v24, %v11413_v52  ;;  %v6720_v24 = vpop.f32.mrf.mxu3 }
 0x6e4   : > { %v6795_v51 = vadd.f32 %v11429_v30, %v6706_v0  ;;  %v6714_v0 = vadd.f32 %v11463_v1, %v6625_v34 }
 0x6e5   : > { %v6993_v56 = vadd.f32 %v6992_v5, %v6962_v49  ;;  %v6709_v49 = vadd.f32 %v11433_v44, %v6620_v27  ;;  %v6622_v5 = vadd.f32 %v11440_v36, %v11325_v29  ;;  %v6627_v44 = vadd.f32 %v6626_v48, %v11333_v20 }
 0x6e6   : > { %v6968_v36 = vmul.f32 %v11436_v28, %v11436_v28  ;;  %v6969_v20 = vmul.f32 %v11444_v12, %v11444_v12  ;;  %v6630_v48 = vadd.f32 %v6629_v16, %v11337_v59 }
 0x6e7   : > { %v6994_v13 = vadd.f32 %v6993_v56, %v6963_v18  ;;  %v6926_v18 = vadd.f32 %v6925_v2, %v11417_v4  ;;  %v6711_v11 = vadd.f32 %v11442_v19, %v6622_v5  ;;  %v6631_v56 = vpop.f32.mrf.mxu2  ;;  %v6798_v40 = vadd.f32 %v11438_v54, %v6709_v49  ;;  %v6809_v5 = vpop.f32.mrf.mxu0 }
 0x6e8   : > { %v6888_v21 = vpop.f32.mrf.mxu1  ;;  %v6716_v19 = vadd.f32 %v6715_v31, %v6627_v44  ;;  %v6803_v49 = vadd.f32 %v11474_v3, %v6714_v0 }
 0x6e9   : > { %v6995_v15 = vadd.f32 %v6994_v13, %v6964_v26  ;;  %v6927_v26 = vadd.f32 %v6926_v18, %v11420_v43  ;;  %v11530_v13 = vadd.f32 %v11458_v38, %v6795_v51  ;;  %v11540_v2 = vadd.f32 %v11478_v6, %v6798_v40 }
 0x6ea   : > { %v6800_v38 = vadd.f32 %v11448_v14, %v6711_v11  ;;  %v6805_v14 = vadd.f32 %v6804_v60, %v6716_v19 }
 0x6eb   : > { %v6996_v53 = vadd.f32 %v6995_v15, %v6965_v63  ;;  %v6928_v30 = vadd.f32 %v6927_v26, %v11427_v55  ;;  %v6970_v1 = vmul.f32 %v11530_v13, %v11530_v13  ;;  %v6971_v6 = vmul.f32 %v11540_v2, %v11540_v2  ;;  %v6723_v44 = vpop.f32.mrf.mxu3 }
 0x6ec   : > { %v11546_v31 = vadd.f32 %v6888_v21, %v6800_v38 }
 0x6ed   : > { %v6997_v29 = vadd.f32 %v6996_v53, %v6966_v9  ;;  %v6929_v27 = vadd.f32 %v6928_v30, %v11436_v28  ;;  %v6719_v9 = vadd.f32 %v6718_v10, %v6630_v48  ;;  %v6632_v53 = vadd.f32 %v6631_v56, %v11341_v57 }
 0x6ee   : > { %v6972_v3 = vmul.f32 %v11546_v31, %v11546_v31 }
 0x6ef   : > { %v6998_v61 = vadd.f32 %v6997_v29, %v6967_v39  ;;  %v6930_v54 = vadd.f32 %v6929_v27, %v11444_v12  ;;  %v6634_v51 = vpop.f32.mrf.mxu2  ;;  %v6808_v34 = vadd.f32 %v6807_v32, %v6719_v9  ;;  %v6721_v26 = vadd.f32 %v6720_v24, %v6632_v53  ;;  %v6812_v40 = vpop.f32.mrf.mxu0 }
 0x6f0   : > { %v6891_v7 = vpop.f32.mrf.mxu1 }
 0x6f1   : > { %v6999_v15 = vadd.f32 %v6998_v61, %v6968_v36  ;;  %v6931_v16 = vadd.f32 %v6930_v54, %v11530_v13  ;;  %v11552_v18 = vadd.f32 %v6891_v7, %v6803_v49  ;;  %v6810_v24 = vadd.f32 %v6809_v5, %v6721_v26 }
 0x6f2   : > { %v6635_v61 = vadd.f32 %v6634_v51, %v11345_v50 }
 0x6f3   : > { %v7000_v59 = vadd.f32 %v6999_v15, %v6969_v20  ;;  %v6932_v21 = vadd.f32 %v6931_v16, %v11540_v2  ;;  %v6973_v60 = vmul.f32 %v11552_v18, %v11552_v18  ;;  %v6725_v49 = vpop.f32.mrf.mxu3 }
 0x6f4   : > { %v6724_v15 = vadd.f32 %v6723_v44, %v6635_v61 }
 0x6f5   : > { %v7001_v39 = vadd.f32 %v7000_v59, %v6970_v1  ;;  %v6933_v7 = vadd.f32 %v6932_v21, %v11546_v31 }
 0x6f6   : > { %v6813_v5 = vadd.f32 %v6812_v40, %v6724_v15 }
 0x6f7   : > { %v7002_v29 = vadd.f32 %v7001_v39, %v6971_v6  ;;  %v6934_v36 = vadd.f32 %v6933_v7, %v11552_v18  ;;  %v6636_v38 = vpop.f32.mrf.mxu2 }
 0x6f8   : > { %v6893_v63 = vpop.f32.mrf.mxu1  ;;  %v6637_v6 = vadd.f32 %v6636_v38, %v11349_v42 }
 0x6f9   : > { %v11558_v11 = vadd.f32 %v6893_v63, %v6805_v14  ;;  %v7003_v56 = vadd.f32 %v7002_v29, %v6972_v3  ;;  %v6814_v14 = vpop.f32.mrf.mxu0 }
 0x6fa   : > { %v6726_v53 = vadd.f32 %v6725_v49, %v6637_v6 }
 0x6fb   : > { %v6974_v0 = vmul.f32 %v11558_v11, %v11558_v11  ;;  %v7004_v30 = vadd.f32 %v7003_v56, %v6973_v60  ;;  %v6935_v63 = vadd.f32 %v6934_v36, %v11558_v11  ;;  %v6728_v3 = vpop.f32.mrf.mxu3 }
 0x6fd   : > { %v7005_v20 = vadd.f32 %v7004_v30, %v6974_v0 }
 0x6ff   : > { %v6639_v51 = vpop.f32.mrf.mxu2 }
 0x700   : > { %v6896_v10 = vpop.f32.mrf.mxu1  ;;  %v6640_v44 = vadd.f32 %v6639_v51, %v11353_v8 }
 0x701   : > { %v11563_v57 = vadd.f32 %v6896_v10, %v6808_v34  ;;  %v6815_v34 = vadd.f32 %v6814_v14, %v6726_v53  ;;  %v6817_v56 = vpop.f32.mrf.mxu0 }
 0x702   : > { %v6729_v7 = vadd.f32 %v6728_v3, %v6640_v44 }
 0x703   : > { %v6975_v32 = vmul.f32 %v11563_v57, %v11563_v57  ;;  %v6936_v48 = vadd.f32 %v6935_v63, %v11563_v57  ;;  %v6730_v63 = vpop.f32.mrf.mxu3 }
 0x704   : > { %v6818_v30 = vadd.f32 %v6817_v56, %v6729_v7 }
 0x705   : > { %v7006_v1 = vadd.f32 %v7005_v20, %v6975_v32 }
 0x707   : > { %v6641_v0 = vpop.f32.mrf.mxu2 }
 0x708   : > { %v6898_v19 = vpop.f32.mrf.mxu1 }
 0x709   : > { %v11573_v27 = vadd.f32 %v6898_v19, %v6810_v24  ;;  %v6642_v24 = vadd.f32 %v6641_v0, %v11357_v47 }
 0x70b   : > { %v6937_v9 = vadd.f32 %v6936_v48, %v11573_v27  ;;  %v6976_v54 = vmul.f32 %v11573_v27, %v11573_v27  ;;  %v6731_v19 = vadd.f32 %v6730_v63, %v6642_v24  ;;  %v6819_v48 = vpop.f32.mrf.mxu0 }
 0x70d   : > { %v7007_v59 = vadd.f32 %v7006_v1, %v6976_v54  ;;  %v6820_v38 = vadd.f32 %v6819_v48, %v6731_v19 }
 0x710   : > { %v6901_v16 = vpop.f32.mrf.mxu1 }
 0x711   : > { %v11579_v50 = vadd.f32 %v6901_v16, %v6813_v5 }
 0x713   : > { %v6938_v39 = vadd.f32 %v6937_v9, %v11579_v50  ;;  %v6977_v10 = vmul.f32 %v11579_v50, %v11579_v50 }
 0x715   : > { %v7008_v21 = vadd.f32 %v7007_v59, %v6977_v10 }
 0x718   : > { %v6903_v26 = vpop.f32.mrf.mxu1 }
 0x719   : > { %v11585_v29 = vadd.f32 %v6903_v26, %v6815_v34 }
 0x71b   : > { %v6939_v42 = vadd.f32 %v6938_v39, %v11585_v29  ;;  %v6978_v60 = vmul.f32 %v11585_v29, %v11585_v29 }
 0x71d   : > { %v7009_v36 = vadd.f32 %v7008_v21, %v6978_v60 }
 0x720   : > { %v6906_v32 = vpop.f32.mrf.mxu1 }
 0x721   : > { %v11591_v40 = vadd.f32 %v6906_v32, %v6818_v30 }
 0x723   : > { %v6940_v8 = vadd.f32 %v6939_v42, %v11591_v40  ;;  %v6979_v61 = vmul.f32 %v11591_v40, %v11591_v40 }
 0x725   : > { %v7010_v20 = vadd.f32 %v7009_v36, %v6979_v61 }
 0x728   : > { %v6908_v15 = vpop.f32.mrf.mxu1 }
 0x729   : > { %v11596_v1 = vadd.f32 %v6908_v15, %v6820_v38 }
 0x72b   : > { %v6941_v9 = vadd.f32 %v6940_v8, %v11596_v1  ;;  %v6980_v54 = vmul.f32 %v11596_v1, %v11596_v1 }
 0x72d   : > { %v6942_v47 = vrot.slane %v6941_v9, 4  ;;  %v7011_v49 = vadd.f32 %v7010_v20, %v6980_v54 }
 0x72f   : > { %v6943_v59 = vadd.f32 %v6942_v47, %v6941_v9  ;;  %v7012_v5 = vrot.slane %v7011_v49, 4 }
 0x731   : > { %v6944_v16 = vrot.slane %v6943_v59, 2  ;;  %v7013_v6 = vadd.f32 %v7012_v5, %v7011_v49 }
 0x733   : > { %v6945_v14 = vadd.f32 %v6944_v16, %v6943_v59  ;;  %v7014_v53 = vrot.slane %v7013_v6, 2 }
 0x735   : > { %v6946_v39 = vrot.slane %v6945_v14, 1  ;;  %v7015_v10 = vadd.f32 %v7014_v53, %v7013_v6 }
 0x737   : > { %v6947_v51 = vadd.f32 %v6946_v39, %v6945_v14  ;;  %v7016_v21 = vrot.slane %v7015_v10, 1 }
 0x739   : > { %v11601_v3 = vmul.f32 0.00390625, %v6947_v51  ;;  %v7017_v34 = vadd.f32 %v7016_v21, %v7015_v10 }
 0x73b   : > { %v7018_v26 = vmul.f32 0.00390625, %v7017_v34  ;;  %v7019_v44 = vmul.f32 %v11601_v3, %v11601_v3  ;;  %v7052_v7 = vsub.f32 %v11596_v1, %v11601_v3  ;;  %v7047_v56 = vsub.f32 %v11563_v57, %v11601_v3  ;;  %v11923_v57 = vld [vmem:[#allocation13_spill] sm:$0xff] }
 0x73c   : > { %v7048_v36 = vsub.f32 %v11573_v27, %v11601_v3  ;;  %v7049_v0 = vsub.f32 %v11579_v50, %v11601_v3  ;;  %v7050_v30 = vsub.f32 %v11585_v29, %v11601_v3  ;;  %v7051_v63 = vsub.f32 %v11591_v40, %v11601_v3  ;;  %v11928_v29 = vld [vmem:[#allocation20_spill] sm:$0xff]  ;;  %v11929_v40 = vld [vmem:[#allocation23_spill] sm:$0xff] }
 0x73d   : > { %v7020_v42 = vsub.f32 %v7018_v26, %v7019_v44  ;;  %v7021_v8 = vsub.f32 %v11361_v45, %v11601_v3  ;;  %v7022_v61 = vsub.f32 %v11365_v23, %v11601_v3  ;;  %v7023_v20 = vsub.f32 %v11369_v58, %v11601_v3  ;;  %v11919_v58 = vld [vmem:[#allocation50_spill] sm:$0xff] }
 0x73e   : > { %v7024_v48 = vsub.f32 %v11373_v33, %v11601_v3  ;;  %v7025_v15 = vsub.f32 %v11377_v22, %v11601_v3  ;;  %v7026_v1 = vsub.f32 %v11381_v17, %v11601_v3  ;;  %v7027_v9 = vsub.f32 %v11385_v37, %v11601_v3  ;;  %v11920_v17 = vld [vmem:[#allocation39_spill] sm:$0xff]  ;;  %v11922_v26 = vld [vmem:[#allocation38_spill] sm:$0xff] }
 0x73f   : > { %v7053_v60 = vadd.f32 1e-05, %v7020_v42  ;;  %v7028_v45 = vsub.f32 %v11389_v35, %v11601_v3  ;;  %v7029_v23 = vsub.f32 %v11392_v25, %v11601_v3  ;;  %v7030_v33 = vsub.f32 %v11919_v58, %v11601_v3  ;;  %v11921_v35 = vld [vmem:[#allocation40_spill] sm:$0xff] }
 0x740   : > { %v7031_v54 = vsub.f32 %v11398_v41, %v11601_v3  ;;  %v7032_v47 = vsub.f32 %v11920_v17, %v11601_v3  ;;  %v7033_v37 = vsub.f32 %v11404_v46, %v11601_v3  ;;  %v7034_v49 = vsub.f32 %v11921_v35, %v11601_v3  ;;  %v11924_v17 = vld [vmem:[#allocation14_spill] sm:$0xff] }
 0x741   : > { %9471 = vrsqrt.f32 %v7053_v60  ;;  %v7035_v25 = vsub.f32 %v11410_v62, %v11601_v3  ;;  %v7036_v59 = vsub.f32 %v11413_v52, %v11601_v3  ;;  %v7037_v41 = vsub.f32 %v11417_v4, %v11601_v3 }
 0x742   : > { %vm7060_vm4 = vweird.f32 %v7053_v60  ;;  %v7038_v16 = vsub.f32 %v11420_v43, %v11601_v3  ;;  %v7039_v46 = vsub.f32 %v11427_v55, %v11601_v3  ;;  %v7040_v62 = vsub.f32 %v11436_v28, %v11601_v3 }
 0x743   : > { %v7041_v52 = vsub.f32 %v11444_v12, %v11601_v3  ;;  %v7042_v4 = vsub.f32 %v11530_v13, %v11601_v3  ;;  %v7043_v6 = vsub.f32 %v11540_v2, %v11601_v3  ;;  %v7044_v43 = vsub.f32 %v11546_v31, %v11601_v3 }
 0x744   : > { %v7045_v55 = vsub.f32 %v11552_v18, %v11601_v3  ;;  %v7046_v53 = vsub.f32 %v11558_v11, %v11601_v3 }
 0x747   : > { %v9472_v32 = vpop.eup %9471 }
 0x748   : > { %v7055_v24 = vmul.f32 %v9472_v32, %v7053_v60  ;;  %vm7061_vm3 = vweird.f32 %v9472_v32 }
 0x749   : > { %vm7062_vm5 = vmor %vm7060_vm4, %vm7061_vm3 }
 0x74a   : > { %v7056_v19 = vmul.f32 %v9472_v32, %v7055_v24 }
 0x74c   : > { %v7057_v38 = vmul.f32 0.5, %v7056_v19 }
 0x74e   : > { %v7058_v22 = vsub.f32 1.5, %v7057_v38 }
 0x750   : > { %v7059_v5 = vmul.f32 %v9472_v32, %v7058_v22 }
 0x752   : > { %v7063_v14 = vsel %vm7062_vm5, %v9472_v32, %v7059_v5 }
 0x753   : > { %v7095_v28 = vmul.f32 %v7063_v14, %v7052_v7  ;;  %v7064_v39 = vmul.f32 %v7063_v14, %v7021_v8  ;;  %v7065_v10 = vmul.f32 %v7063_v14, %v7022_v61  ;;  %v7066_v12 = vmul.f32 %v7063_v14, %v7023_v20 }
 0x754   : > { %v7067_v51 = vmul.f32 %v7063_v14, %v7024_v48  ;;  %v7068_v21 = vmul.f32 %v7063_v14, %v7025_v15  ;;  %v7069_v13 = vmul.f32 %v7063_v14, %v7026_v1  ;;  %v7070_v34 = vmul.f32 %v7063_v14, %v7027_v9 }
 0x755   : > { %v7127_v2 = vadd.f32 %v7095_v28, %v11922_v26  ;;  %v7071_v44 = vmul.f32 %v7063_v14, %v7028_v45  ;;  %v7072_v42 = vmul.f32 %v7063_v14, %v7029_v23  ;;  %v7073_v60 = vmul.f32 %v7063_v14, %v7030_v33  ;;  %v11938_v28 = vld [vmem:[#allocation8_spill] sm:$0xff] }
 0x756   : > { %v7074_v31 = vmul.f32 %v7063_v14, %v7031_v54  ;;  %v7075_v32 = vmul.f32 %v7063_v14, %v7032_v47  ;;  %v7076_v24 = vmul.f32 %v7063_v14, %v7033_v37  ;;  %v7077_v18 = vmul.f32 %v7063_v14, %v7034_v49  ;;  %v11925_v47 = vld [vmem:[#allocation9_spill] sm:$0xff]  ;;  %v11926_v37 = vld [vmem:[#allocation10_spill] sm:$0xff]  ;;  %v11942_v26 = vld [vmem:[#allocation16_spill] sm:$0xff] }
 0x757   : > { %7159 = vst [vmem:[%s11673_s10 + $0xf8] sm:$0xff] %v7127_v2  ;;  %v7078_v11 = vmul.f32 %v7063_v14, %v7035_v25  ;;  %v7079_v7 = vmul.f32 %v7063_v14, %v7036_v59  ;;  %v7080_v19 = vmul.f32 %v7063_v14, %v7037_v41  ;;  %v7081_v8 = vmul.f32 %v7063_v14, %v7038_v16  ;;  %v11931_v25 = vld [vmem:[#allocation27_spill] sm:$0xff]  ;;  %v11932_v41 = vld [vmem:[#allocation28_spill] sm:$0xff] }
 0x758   : > { %v7082_v61 = vmul.f32 %v7063_v14, %v7039_v46  ;;  %v7083_v20 = vmul.f32 %v7063_v14, %v7040_v62  ;;  %v7084_v48 = vmul.f32 %v7063_v14, %v7041_v52  ;;  %v7085_v38 = vmul.f32 %v7063_v14, %v7042_v4  ;;  %v11933_v16 = vld [vmem:[#allocation31_spill] sm:$0xff]  ;;  %v11934_v62 = vld [vmem:[#allocation32_spill] sm:$0xff] }
 0x759   : > { %v7086_v15 = vmul.f32 %v7063_v14, %v7043_v6  ;;  %v7087_v1 = vmul.f32 %v7063_v14, %v7044_v43  ;;  %v7088_v9 = vmul.f32 %v7063_v14, %v7045_v55  ;;  %v7089_v45 = vmul.f32 %v7063_v14, %v7046_v53  ;;  %v11935_v4 = vld [vmem:[#allocation35_spill] sm:$0xff] }
 0x75a   : > { %v7090_v23 = vmul.f32 %v7063_v14, %v7047_v56  ;;  %v7091_v58 = vmul.f32 %v7063_v14, %v7048_v36  ;;  %v7092_v33 = vmul.f32 %v7063_v14, %v7049_v0  ;;  %v7093_v54 = vmul.f32 %v7063_v14, %v7050_v30  ;;  %v11927_v0 = vld [vmem:[#allocation19_spill] sm:$0xff] }
 0x75b   : > { %v7094_v22 = vmul.f32 %v7063_v14, %v7051_v63  ;;  %v7096_v56 = vadd.f32 %v7064_v39, %v11923_v57  ;;  %v7097_v27 = vadd.f32 %v7065_v10, %v11924_v17  ;;  %v7098_v36 = vadd.f32 %v7066_v12, %v11925_v47  ;;  %v11930_v63 = vld [vmem:[#allocation24_spill] sm:$0xff]  ;;  %v11937_v55 = vld [vmem:[#allocation7_spill] sm:$0xff] }
 0x75c   : > { %v7099_v50 = vadd.f32 %v7067_v51, %v11926_v37  ;;  %v7100_v35 = vadd.f32 %v7068_v21, %v11927_v0  ;;  %v7101_v30 = vadd.f32 %v7069_v13, %v11928_v29  ;;  %v7102_v3 = vadd.f32 %v7070_v34, %v11929_v40  ;;  %v11936_v14 = vld [vmem:[#allocation36_spill] sm:$0xff]  ;;  %v11939_v10 = vld [vmem:[#allocation11_spill] sm:$0xff] }
 0x75d   : > { %7128 = vst [vmem:[%s11673_s10] sm:$0xff] %v7096_v56  ;;  %v7103_v49 = vadd.f32 %v7071_v44, %v11930_v63  ;;  %v7104_v59 = vadd.f32 %v7072_v42, %v11931_v25  ;;  %v7105_v5 = vadd.f32 %v7073_v60, %v11932_v41  ;;  %v7106_v46 = vadd.f32 %v7074_v31, %v11933_v16  ;;  %v11940_v51 = vld [vmem:[#allocation12_spill] sm:$0xff]  ;;  %v11941_v13 = vld [vmem:[#allocation15_spill] sm:$0xff]  ;;  %v11943_v44 = vld [vmem:[#allocation17_spill] sm:$0xff] }
 0x75e   : > { %7129 = vst [vmem:[%s11673_s10 + $0x8] sm:$0xff] %v7097_v27  ;;  %v7107_v52 = vadd.f32 %v7075_v32, %v11934_v62  ;;  %v7108_v6 = vadd.f32 %v7076_v24, %v11935_v4  ;;  %v7109_v43 = vadd.f32 %v7077_v18, %v11936_v14  ;;  %v7110_v53 = vadd.f32 %v7078_v11, %v11937_v55  ;;  %v11944_v60 = vld [vmem:[#allocation18_spill] sm:$0xff]  ;;  %v11945_v32 = vld [vmem:[#allocation21_spill] sm:$0xff] }
 0x75f   : > { %7130 = vst [vmem:[%s11673_s10 + $0x10] sm:$0xff] %v7098_v36  ;;  %v7111_v39 = vadd.f32 %v7079_v7, %v11938_v28  ;;  %v7112_v12 = vadd.f32 %v7080_v19, %v11939_v10  ;;  %v7113_v21 = vadd.f32 %v7081_v8, %v11940_v51  ;;  %v7114_v34 = vadd.f32 %v7082_v61, %v11941_v13  ;;  %v11946_v18 = vld [vmem:[#allocation22_spill] sm:$0xff]  ;;  %v11947_v7 = vld [vmem:[#allocation25_spill] sm:$0xff] }
 0x760   : > { %7131 = vst [vmem:[%s11673_s10 + $0x18] sm:$0xff] %v7099_v50  ;;  %v7115_v2 = vadd.f32 %v7083_v20, %v11942_v26  ;;  %v7116_v42 = vadd.f32 %v7084_v48, %v11943_v44  ;;  %v7117_v31 = vadd.f32 %v7085_v38, %v11944_v60  ;;  %v7118_v24 = vadd.f32 %v7086_v15, %v11945_v32  ;;  %v11948_v8 = vld [vmem:[#allocation26_spill] sm:$0xff]  ;;  %v11949_v20 = vld [vmem:[#allocation29_spill] sm:$0xff] }
 0x761   : > { %7132 = vst [vmem:[%s11673_s10 + $0x20] sm:$0xff] %v7100_v35  ;;  %v7119_v11 = vadd.f32 %v7087_v1, %v11946_v18  ;;  %v7120_v19 = vadd.f32 %v7088_v9, %v11947_v7  ;;  %v7121_v61 = vadd.f32 %v7089_v45, %v11948_v8  ;;  %v7122_v48 = vadd.f32 %v7090_v23, %v11949_v20  ;;  %v11950_v38 = vld [vmem:[#allocation30_spill] sm:$0xff]  ;;  %v11951_v1 = vld [vmem:[#allocation33_spill] sm:$0xff] }
 0x762   : > { %7133 = vst [vmem:[%s11673_s10 + $0x28] sm:$0xff] %v7101_v30  ;;  %v7123_v15 = vadd.f32 %v7091_v58, %v11950_v38  ;;  %v7124_v9 = vadd.f32 %v7092_v33, %v11951_v1  ;;  %v11952_v45 = vld [vmem:[#allocation34_spill] sm:$0xff]  ;;  %v11953_v56 = vld [vmem:[#allocation37_spill] sm:$0xff] }
 0x763   : > { %7134 = vst [vmem:[%s11673_s10 + $0x30] sm:$0xff] %v7102_v3  ;;  %v7125_v57 = vadd.f32 %v7093_v54, %v11952_v45  ;;  %v7126_v17 = vadd.f32 %v7094_v22, %v11953_v56 }
 0x764   : > { %7135 = vst [vmem:[%s11673_s10 + $0x38] sm:$0xff] %v7103_v49 }
 0x765   : > { %7136 = vst [vmem:[%s11673_s10 + $0x40] sm:$0xff] %v7104_v59 }
 0x766   : > { %7137 = vst [vmem:[%s11673_s10 + $0x48] sm:$0xff] %v7105_v5 }
 0x767   : > { %7138 = vst [vmem:[%s11673_s10 + $0x50] sm:$0xff] %v7106_v46 }
 0x768   : > { %7139 = vst [vmem:[%s11673_s10 + $0x58] sm:$0xff] %v7107_v52 }
 0x769   : > { %7140 = vst [vmem:[%s11673_s10 + $0x60] sm:$0xff] %v7108_v6 }
 0x76a   : > { %7141 = vst [vmem:[%s11673_s10 + $0x68] sm:$0xff] %v7109_v43 }
 0x76b   : > { %7142 = vst [vmem:[%s11673_s10 + $0x70] sm:$0xff] %v7110_v53 }
 0x76c   : > { %7143 = vst [vmem:[%s11673_s10 + $0x78] sm:$0xff] %v7111_v39 }
 0x76d   : > { %7144 = vst [vmem:[%s11673_s10 + $0x80] sm:$0xff] %v7112_v12 }
 0x76e   : > { %7145 = vst [vmem:[%s11673_s10 + $0x88] sm:$0xff] %v7113_v21 }
 0x76f   : > { %7146 = vst [vmem:[%s11673_s10 + $0x90] sm:$0xff] %v7114_v34 }
 0x770   : > { %7147 = vst [vmem:[%s11673_s10 + $0x98] sm:$0xff] %v7115_v2 }
 0x771   : > { %7148 = vst [vmem:[%s11673_s10 + $0xa0] sm:$0xff] %v7116_v42 }
 0x772   : > { %7149 = vst [vmem:[%s11673_s10 + $0xa8] sm:$0xff] %v7117_v31 }
 0x773   : > { %7150 = vst [vmem:[%s11673_s10 + $0xb0] sm:$0xff] %v7118_v24 }
 0x774   : > { %7151 = vst [vmem:[%s11673_s10 + $0xb8] sm:$0xff] %v7119_v11 }
 0x775   : > { %7152 = vst [vmem:[%s11673_s10 + $0xc0] sm:$0xff] %v7120_v19 }
 0x776   : > { %7153 = vst [vmem:[%s11673_s10 + $0xc8] sm:$0xff] %v7121_v61 }
 0x777   : > { %7154 = vst [vmem:[%s11673_s10 + $0xd0] sm:$0xff] %v7122_v48 }
 0x778   : > { %7155 = vst [vmem:[%s11673_s10 + $0xd8] sm:$0xff] %v7123_v15 }
 0x779   : > { %7156 = vst [vmem:[%s11673_s10 + $0xe0] sm:$0xff] %v7124_v9 }
 0x77a   : > { %7157 = vst [vmem:[%s11673_s10 + $0xe8] sm:$0xff] %v7125_v57 }
 0x77b   : > { %7158 = vst [vmem:[%s11673_s10 + $0xf0] sm:$0xff] %v7126_v17 }
 0x77c   : > { %9500 = shalt.err (!%p9497_p3)
}
 0x77d   : > { %s9537_s6 = smov 128   ;;  %s9538_s7 = smov 8  }
 0x77e   : > { %9428 = dma.vmem_to_hbm [thread:$0]  (%p9597_p5), %s7174_s16, 4096, %s7176_s25, %s7161_s26, %s9537_s6, %s9537_s6, %s9538_s7  }
 0x77f PF: > { %p9434_p4 = scmp.ge.s32.totalorder %s9535_s15, 2  ;;  %s7190_s8 = sand.u32 1, %s9523_s12  }
 0x780   : > { %s7191_s9 = scalar_lea.sflag [#allocation5], %s7190_s8 }
 0x781   : > { %p9431_p7 = pnand %p9434_p4, %p9601_p6 }
 0x783   : > { %p9432_p8 = pneg %p9431_p7 }
 0x785   : > { %9518 = dma.done.wait (%p9432_p8), %s7191_s9, 4096  }
 0x786   : > { %9520 = vsyncadd (%p9432_p8), %s7191_s9, 4294963200  ;;  %p13_p9 = scmp.ge.s32.totalorder %s9584_s18, 4   ;;  %s11954_s12 = smov %s9527_s13 }
 0x787   : > { %s11955_s13 = smov %s9531_s14  ;;  %s11956_s14 = smov %s9595_s21 }
 0x788   : > { %s11957_s15 = smov %s9584_s18  ;;  %15 = sbr.rel (!%p13_p9) target bundleno = 3 (0x3), region = 70 }
 0x78d   :  { %7197 = vsyncpa [#allocation5], 1 }
 0x78e   :  { %7199 = vsyncpa [#allocation5 + $0x1], 1 }

</bundles_post_ra>
